<compile_context>
chip_gen: v7x
topology: tpu7x:2x2x1
jax: 0.10.0
libtpu: 0.0.40
codegen_flags: <defaults>
</compile_context>

<pallas_src>
import math

import jax
import jax.numpy as jnp
from jax.experimental import pallas as pl
from jax.experimental.pallas import tpu as pltpu

_BN_EPS = 1e-5
_LEAKY_SLOPE = 0.1

# Channel-width divisor so the demo runs at SMALL shapes (architecture topology,
# kernel sizes, strides and concat structure are unchanged).
CH_DIV = 4


def ch(c):
    return c // CH_DIV


# ----------------------------------------------------------------------------
# Small helpers (padding / tile selection)
# ----------------------------------------------------------------------------
def _round_up(n, m):
    return ((n + m - 1) // m) * m


def _pad2d(a, rows, cols):
    r, c = a.shape
    if r == rows and c == cols:
        return a
    return jnp.pad(a, ((0, rows - r), (0, cols - c)))


def _pad_vec(v, n):
    if v.shape[0] == n:
        return v
    return jnp.pad(v, (0, n - v.shape[0]))


def _pick_divisor_tile(n, cap, unit):
    """Largest multiple of `unit` that divides `n` and is <= cap."""
    cap = min(cap, n)
    t = (cap // unit) * unit
    while t >= unit:
        if n % t == 0:
            return t
        t -= unit
    return n


_VMEM_LIMIT = 28 * 1024 * 1024      # safe on v5e / v6e / v7x (<= physical VMEM)
_TILE_CAPS = None


def _tile_caps():
    """(TM_cap, TN_cap, TK_cap).  128-wide N on v5-class chips (128x128 MXU),
    256-wide N on v6e / v7x (2x256 MXU)."""
    global _TILE_CAPS
    if _TILE_CAPS is None:
        try:
            kind = jax.devices()[0].device_kind.lower()
        except Exception:  # pragma: no cover - defensive
            kind = ""
        tn_cap = 128 if "v5" in kind else 256
        _TILE_CAPS = (512, tn_cap, 1024)
    return _TILE_CAPS


def _matmul_tiling(M, K, cout):
    """Per-layer tile sizes and padded dims.  M / Cout are rounded up to the
    chosen tile multiple (uniform lane-dense tiles, zero rows/cols are free);
    K is rounded to 128 and tiled by its largest <=cap divisor."""
    tm_cap, tn_cap, tk_cap = _tile_caps()
    TM = min(tm_cap, _round_up(M, 16))
    TN = min(tn_cap, _round_up(cout, 128))
    Cp = _round_up(cout, TN)
    # Keep >=2 blocks on the parallel axes when the layer is big enough, so the
    # two TensorCores of a v7x chip both get work.
    if Cp // TN == 1 and TM >= M and M > 256:
        TM = _round_up((M + 1) // 2, 16)
    Mp = _round_up(M, TM)
    Kp = _round_up(K, 128)
    TK = _pick_divisor_tile(Kp, tk_cap, 128)
    return TM, Mp, TN, Cp, TK, Kp


def _mm_params():
    return pltpu.CompilerParams(
        dimension_semantics=("parallel", "parallel", "arbitrary"),
        vmem_limit_bytes=_VMEM_LIMIT)


def _ew_params(ndims):
    return pltpu.CompilerParams(
        dimension_semantics=("parallel",) * ndims,
        vmem_limit_bytes=_VMEM_LIMIT)


# ----------------------------------------------------------------------------
# Pallas kernels
# ----------------------------------------------------------------------------
def _matmul_stats_kernel(x_ref, w_ref, y_ref, stats_ref, acc_ref):
    """Tiled bf16 matmul with f32 accumulation, bf16 output.

    On the last K step also emits per-channel sum (row 0) and sum-of-squares
    (row 1) of this M-tile into stats_ref (8-row block for sublane alignment).
    """
    kk = pl.program_id(2)

    @pl.when(kk == 0)
    def _():
        acc_ref[...] = jnp.zeros_like(acc_ref)

    acc_ref[...] += jnp.dot(x_ref[...], w_ref[...],
                            preferred_element_type=jnp.float32)

    @pl.when(kk == pl.num_programs(2) - 1)
    def _():
        acc = acc_ref[...]
        y_ref[...] = acc.astype(y_ref.dtype)
        stats_ref[...] = jnp.zeros_like(stats_ref)
        stats_ref[0:1, :] = jnp.sum(acc, axis=0, keepdims=True)
        stats_ref[1:2, :] = jnp.sum(acc * acc, axis=0, keepdims=True)


def _matmul_bias_kernel(x_ref, w_ref, b_ref, o_ref, acc_ref):
    """Tiled bf16 matmul + bias, f32 output (final yolo-head 1x1 conv)."""
    kk = pl.program_id(2)

    @pl.when(kk == 0)
    def _():
        acc_ref[...] = jnp.zeros_like(acc_ref)

    acc_ref[...] += jnp.dot(x_ref[...], w_ref[...],
                            preferred_element_type=jnp.float32)

    @pl.when(kk == pl.num_programs(2) - 1)
    def _():
        o_ref[...] = acc_ref[...] + b_ref[...]


def _bn_leaky_kernel(y_ref, scale_ref, shift_ref, o_ref):
    """Per-channel affine (folded BatchNorm) + LeakyReLU(0.1).

    bf16 in / bf16 out, f32 compute (v5e has no bf16 VPU path).
    """
    z = y_ref[...].astype(jnp.float32) * scale_ref[...] + shift_ref[...]
    o_ref[...] = jnp.where(z >= 0.0, z, _LEAKY_SLOPE * z).astype(o_ref.dtype)


def _spp_pool5_valid(t):
    """Valid 5x5 max pool on a (1, H, W, C) f32 tile (separable row/col max)."""
    Ho, Wo = t.shape[1] - 4, t.shape[2] - 4
    r = t[:, 0:Ho]
    for dy in range(1, 5):
        r = jnp.maximum(r, t[:, dy:dy + Ho])
    o = r[:, :, 0:Wo]
    for dx in range(1, 5):
        o = jnp.maximum(o, r[:, :, dx:dx + Wo])
    return o


def _spp_center_crop(t, H, W):
    oy = (t.shape[1] - H) // 2
    ox = (t.shape[2] - W) // 2
    return t[:, oy:oy + H, ox:ox + W, :]


def _spp_tiled_kernel(xp_ref, o_ref):
    """One (batch, channel-block, segment) step.

    Segment s selects which of [pool13, pool9, pool5, identity] is written to
    its channel slot of the concatenated output.  pool13/9/5 are composed valid
    5x5 pools of the (-inf)-padded input (pad=6), center-cropped.
    """
    s = pl.program_id(2)
    H, W = o_ref.shape[1], o_ref.shape[2]
    xp = xp_ref[...].astype(jnp.float32)

    @pl.when(s == 0)
    def _():
        o_ref[...] = _spp_pool5_valid(
            _spp_pool5_valid(_spp_pool5_valid(xp))).astype(o_ref.dtype)

    @pl.when(s == 1)
    def _():
        o_ref[...] = _spp_center_crop(
            _spp_pool5_valid(_spp_pool5_valid(xp)), H, W).astype(o_ref.dtype)

    @pl.when(s == 2)
    def _():
        o_ref[...] = _spp_center_crop(
            _spp_pool5_valid(xp), H, W).astype(o_ref.dtype)

    @pl.when(s == 3)
    def _():
        o_ref[...] = _spp_center_crop(xp, H, W).astype(o_ref.dtype)


def _spp_smallc_kernel(xp_ref, o_ref):
    """Small-channel fallback: one batch image per step, shared pool chain and
    a direct [pool13, pool9, pool5, x] concat write (full-4C lane block)."""
    H, W = o_ref.shape[1], o_ref.shape[2]
    xp = xp_ref[...].astype(jnp.float32)
    q1 = _spp_pool5_valid(xp)
    q2 = _spp_pool5_valid(q1)
    q3 = _spp_pool5_valid(q2)
    o_ref[...] = jnp.concatenate(
        [q3, _spp_center_crop(q2, H, W), _spp_center_crop(q1, H, W),
         _spp_center_crop(xp, H, W)], axis=-1).astype(o_ref.dtype)


# ----------------------------------------------------------------------------
# Glue: im2col, tiled conv wrappers, SPP, upsample
# ----------------------------------------------------------------------------
def _im2col(x, k, stride):
    # x: (N, H, W, C) NHWC (bf16) -> (N*Ho*Wo, k*k*C)
    # TODO(synk): 3x3 taps are still materialized in glue (9x LHS HBM traffic);
    # moving the tap loop into the matmul kernel via shifted windows is the
    # next big HBM lever.
    N, H, W, C = x.shape
    pad = (k - 1) // 2 if k else 0
    if pad:
        x = jnp.pad(x, ((0, 0), (pad, pad), (pad, pad), (0, 0)))
    Ho = (H + 2 * pad - k) // stride + 1
    Wo = (W + 2 * pad - k) // stride + 1
    cols = []
    for dy in range(k):
        for dx in range(k):
            cols.append(x[:, dy:dy + stride * Ho:stride,
                          dx:dx + stride * Wo:stride, :])
    patches = jnp.concatenate(cols, axis=-1)        # (N, Ho, Wo, k*k*C)
    return patches.reshape(N * Ho * Wo, k * k * C), (N, Ho, Wo)


def _tiled_matmul_stats(x2d, w2d):
    """bf16 tiled matmul -> (bf16 y (Mp,Cp), f32 channel sum, f32 channel sumsq)."""
    M, K = x2d.shape
    cout = w2d.shape[1]
    TM, Mp, TN, Cp, TK, Kp = _matmul_tiling(M, K, cout)
    xb = _pad2d(x2d, Mp, Kp).astype(jnp.bfloat16)
    wb = _pad2d(w2d, Kp, Cp).astype(jnp.bfloat16)
    grid = (Mp // TM, Cp // TN, Kp // TK)
    y, stats = pl.pallas_call(
        _matmul_stats_kernel,
        grid=grid,
        in_specs=[pl.BlockSpec((TM, TK), lambda i, j, kk: (i, kk)),
                  pl.BlockSpec((TK, TN), lambda i, j, kk: (kk, j))],
        out_specs=(pl.BlockSpec((TM, TN), lambda i, j, kk: (i, j)),
                   pl.BlockSpec((8, TN), lambda i, j, kk: (i, j))),
        out_shape=(jax.ShapeDtypeStruct((Mp, Cp), jnp.bfloat16),
                   jax.ShapeDtypeStruct((grid[0] * 8, Cp), jnp.float32)),
        scratch_shapes=[pltpu.VMEM((TM, TN), jnp.float32)],
        compiler_params=_mm_params(),
    )(xb, wb)
    stats = stats.reshape(grid[0], 8, Cp)
    # M-padding rows of the matmul output are exactly zero (zero LHS rows), so
    # they contribute nothing to the sums; divide by the true M in the caller.
    ssum = jnp.sum(stats[:, 0, :], axis=0)
    ssq = jnp.sum(stats[:, 1, :], axis=0)
    return y, ssum, ssq, Mp, Cp, TM


def conv_bn_leaky(x, p):
    """Conv(bias=False) + BatchNorm2d(train-mode batch stats) + LeakyReLU(0.1)."""
    k, stride = p['k'], p['stride']
    x2d, (N, Ho, Wo) = _im2col(x, k, stride)
    cout = p['w'].shape[-1]
    w2d = p['w'].reshape(-1, cout)
    M = x2d.shape[0]

    # Phase 1: tiled bf16 matmul (f32 MXU accumulation) + per-channel sum/sumsq.
    y, ssum, ssq, Mp, Cp, TM = _tiled_matmul_stats(x2d, w2d)

    # Fold BN into per-channel scale/shift (tiny O(Cout) f32 math in glue).
    # TODO(synk): single-pass E[x^2]-E[x]^2 variance from bf16-operand matmul
    # stats; switch to a shifted/two-pass variance if bit-level parity with the
    # PyTorch f32 reference is required.
    mean = ssum / M
    var = jnp.maximum(ssq / M - mean * mean, 0.0)
    inv = jax.lax.rsqrt(var + _BN_EPS)
    gamma = _pad_vec(p['gamma'], Cp)
    beta = _pad_vec(p['beta'], Cp)
    scale = (gamma * inv).reshape(1, Cp)
    shift = (beta - mean * gamma * inv).reshape(1, Cp)

    # Phase 2: normalize + LeakyReLU.  1-D grid over M, full Cout lane block,
    # bf16 in/out, f32 compute.
    # TODO(synk): fold this into the next layer's matmul prologue (per-K scale/
    # shift on the LHS tile) to remove one HBM round trip per conv; needs
    # zero-padding-aware masking for 3x3 consumers and concat-edge bookkeeping.
    out = pl.pallas_call(
        _bn_leaky_kernel,
        grid=(Mp // TM,),
        in_specs=[pl.BlockSpec((TM, Cp), lambda i: (i, 0)),
                  pl.BlockSpec((1, Cp), lambda i: (0, 0)),
                  pl.BlockSpec((1, Cp), lambda i: (0, 0))],
        out_specs=pl.BlockSpec((TM, Cp), lambda i: (i, 0)),
        out_shape=jax.ShapeDtypeStruct((Mp, Cp), jnp.bfloat16),
        compiler_params=_ew_params(1),
    )(y, scale, shift)
    return out[:M, :cout].reshape(N, Ho, Wo, cout)


def conv_bias(x, p):
    """Plain 1x1 Conv2d with bias (final yolo-head layer), tiled; f32 output."""
    x2d, (N, Ho, Wo) = _im2col(x, p['k'], p['stride'])
    cout = p['w'].shape[-1]
    w2d = p['w'].reshape(-1, cout)
    M, K = x2d.shape
    TM, Mp, TN, Cp, TK, Kp = _matmul_tiling(M, K, cout)
    xb = _pad2d(x2d, Mp, Kp).astype(jnp.bfloat16)
    wb = _pad2d(w2d, Kp, Cp).astype(jnp.bfloat16)
    b = _pad_vec(p['b'], Cp).reshape(1, Cp)
    grid = (Mp // TM, Cp // TN, Kp // TK)
    out = pl.pallas_call(
        _matmul_bias_kernel,
        grid=grid,
        in_specs=[pl.BlockSpec((TM, TK), lambda i, j, kk: (i, kk)),
                  pl.BlockSpec((TK, TN), lambda i, j, kk: (kk, j)),
                  pl.BlockSpec((1, TN), lambda i, j, kk: (0, j))],
        out_specs=pl.BlockSpec((TM, TN), lambda i, j, kk: (i, j)),
        out_shape=jax.ShapeDtypeStruct((Mp, Cp), jnp.float32),
        scratch_shapes=[pltpu.VMEM((TM, TN), jnp.float32)],
        compiler_params=_mm_params(),
    )(xb, wb, b)
    return out[:M, :cout].reshape(N, Ho, Wo, cout)


def spp_fused(x):
    """SpatialPyramidPooling: concat([pool13, pool9, pool5, x]) along channels."""
    N, H, W, C = x.shape
    pad = 6  # largest pool size 13 -> 13 // 2
    xp = jnp.pad(x, ((0, 0), (pad, pad), (pad, pad), (0, 0)),
                 constant_values=-jnp.inf)
    out_shape = jax.ShapeDtypeStruct((N, H, W, 4 * C), x.dtype)
    if C % 128 == 0:
        # Tiled path: grid over (batch, 128-channel block, segment); the input
        # block is constant along the inner segment axis, so it stays resident.
        Cb = 128
        nblk = C // Cb
        return pl.pallas_call(
            _spp_tiled_kernel,
            grid=(N, nblk, 4),
            in_specs=[pl.BlockSpec((1, H + 2 * pad, W + 2 * pad, Cb),
                                   lambda n, j, s: (n, 0, 0, j))],
            out_specs=pl.BlockSpec((1, H, W, Cb),
                                   lambda n, j, s: (n, 0, 0, s * nblk + j)),
            out_shape=out_shape,
            compiler_params=pltpu.CompilerParams(
                dimension_semantics=("parallel", "parallel", "arbitrary"),
                vmem_limit_bytes=_VMEM_LIMIT),
        )(xp)
    # Small-channel fallback (demo-sized nets with C < 128): one batch image
    # per grid step, full channel block, direct concat write.
    return pl.pallas_call(
        _spp_smallc_kernel,
        grid=(N,),
        in_specs=[pl.BlockSpec((1, H + 2 * pad, W + 2 * pad, C),
                               lambda n: (n, 0, 0, 0))],
        out_specs=pl.BlockSpec((1, H, W, 4 * C), lambda n: (n, 0, 0, 0)),
        out_shape=out_shape,
        compiler_params=_ew_params(1),
    )(xp)


def upsample_nearest_2x(x):
    # pure data movement (nn.Upsample(scale_factor=2, mode='nearest')) -> glue
    # TODO(synk): fold the 2x nearest upsample into the consumer's index_map.
    return jnp.repeat(jnp.repeat(x, 2, axis=1), 2, axis=2)


# ----------------------------------------------------------------------------
# Parameter construction (deterministic, mirrors YoloV4Body._init_weights)
# ----------------------------------------------------------------------------
def init_params(key, num_classes=4, num_anchors=3):
    fo = num_anchors * (5 + num_classes)
    keys = list(jax.random.split(key, 64))
    kcount = [0]

    def next_key():
        k = keys[kcount[0]]
        kcount[0] += 1
        return k

    def conv_block(cin, cout, k, stride=1):
        std = math.sqrt(2.0 / (k * k * cout))
        w = std * jax.random.normal(next_key(), (k, k, cin, cout), jnp.float32)
        return {'w': w,
                'gamma': jnp.ones((cout,), jnp.float32),
                'beta': jnp.zeros((cout,), jnp.float32),
                'k': k, 'stride': stride}

    def plain_conv(cin, cout, k=1):
        std = math.sqrt(2.0 / (k * k * cout))
        w = std * jax.random.normal(next_key(), (k, k, cin, cout), jnp.float32)
        return {'w': w, 'b': jnp.zeros((cout,), jnp.float32), 'k': k, 'stride': 1}

    def three_conv(f, cin):
        return [conv_block(cin, f[0], 1), conv_block(f[0], f[1], 3),
                conv_block(f[1], f[0], 1)]

    def five_conv(f, cin):
        return [conv_block(cin, f[0], 1), conv_block(f[0], f[1], 3),
                conv_block(f[1], f[0], 1), conv_block(f[0], f[1], 3),
                conv_block(f[1], f[0], 1)]

    p = {}
    p['conv1'] = three_conv([ch(512), ch(1024)], ch(1024))
    p['conv2'] = three_conv([ch(512), ch(1024)], ch(2048))
    p['upsample1'] = conv_block(ch(512), ch(256), 1)
    p['conv_for_P4'] = conv_block(ch(512), ch(256), 1)
    p['five_conv1'] = five_conv([ch(256), ch(512)], ch(512))
    p['upsample2'] = conv_block(ch(256), ch(128), 1)
    p['conv_for_P3'] = conv_block(ch(256), ch(128), 1)
    p['five_conv2'] = five_conv([ch(128), ch(256)], ch(256))
    p['head3_conv'] = conv_block(ch(128), ch(256), 3)
    p['head3_out'] = plain_conv(ch(256), fo)
    p['down_sample1'] = conv_block(ch(128), ch(256), 3, stride=2)
    p['five_conv3'] = five_conv([ch(256), ch(512)], ch(512))
    p['head2_conv'] = conv_block(ch(256), ch(512), 3)
    p['head2_out'] = plain_conv(ch(512), fo)
    p['down_sample2'] = conv_block(ch(256), ch(512), 3, stride=2)
    p['five_conv4'] = five_conv([ch(512), ch(1024)], ch(1024))
    p['head1_conv'] = conv_block(ch(512), ch(1024), 3)
    p['head1_out'] = plain_conv(ch(1024), fo)
    return p


# ----------------------------------------------------------------------------
# Forward pass (mirrors YoloV4Body.forward, post-backbone)
# ----------------------------------------------------------------------------
def yolov4_body_forward(params, x2, x1, x0):
    """x2/x1/x0: backbone feature maps in NCHW; returns (out0, out1, out2) NCHW."""
    nhwc = lambda t: jnp.transpose(t, (0, 2, 3, 1)).astype(jnp.bfloat16)
    nchw = lambda t: jnp.transpose(t, (0, 3, 1, 2))
    x2, x1, x0 = nhwc(x2), nhwc(x1), nhwc(x0)

    def run_seq(seq, x):
        for p in seq:
            x = conv_bn_leaky(x, p)
        return x

    P5 = run_seq(params['conv1'], x0)
    # SPP: maxpools applied in reversed pool_sizes order [13, 9, 5], then + [x]
    P5 = spp_fused(P5)
    P5 = run_seq(params['conv2'], P5)

    P5_up = upsample_nearest_2x(conv_bn_leaky(P5, params['upsample1']))
    P4 = conv_bn_leaky(x1, params['conv_for_P4'])
    P4 = jnp.concatenate([P4, P5_up], axis=-1)
    P4 = run_seq(params['five_conv1'], P4)

    P4_up = upsample_nearest_2x(conv_bn_leaky(P4, params['upsample2']))
    P3 = conv_bn_leaky(x2, params['conv_for_P3'])
    P3 = jnp.concatenate([P3, P4_up], axis=-1)
    P3 = run_seq(params['five_conv2'], P3)

    P3_down = conv_bn_leaky(P3, params['down_sample1'])
    P4 = jnp.concatenate([P3_down, P4], axis=-1)
    P4 = run_seq(params['five_conv3'], P4)

    P4_down = conv_bn_leaky(P4, params['down_sample2'])
    P5 = jnp.concatenate([P4_down, P5], axis=-1)
    P5 = run_seq(params['five_conv4'], P5)

    out2 = conv_bias(conv_bn_leaky(P3, params['head3_conv']), params['head3_out'])
    out1 = conv_bias(conv_bn_leaky(P4, params['head2_conv']), params['head2_out'])
    out0 = conv_bias(conv_bn_leaky(P5, params['head1_conv']), params['head1_out'])
    return nchw(out0), nchw(out1), nchw(out2)


if __name__ == "__main__":
    key = jax.random.PRNGKey(0)
    kp, k2, k1, k0 = jax.random.split(key, 4)

    num_classes, num_anchors = 4, 3
    fo = num_anchors * (5 + num_classes)          # 27
    params = init_params(kp, num_classes, num_anchors)

    N = 2
    # backbone feature maps (NCHW, like PyTorch): strides 8 / 16 / 32 of a 128px image
    x2 = jax.random.normal(k2, (N, ch(256), 16, 16), jnp.float32)
    x1 = jax.random.normal(k1, (N, ch(512), 8, 8), jnp.float32)
    x0 = jax.random.normal(k0, (N, ch(1024), 4, 4), jnp.float32)

    fwd = jax.jit(lambda a, b, c: yolov4_body_forward(params, a, b, c))
    out0, out1, out2 = fwd(x2, x1, x0)
    jax.block_until_ready((out0, out1, out2))

    assert out0.shape == (N, fo, 4, 4), out0.shape
    assert out1.shape == (N, fo, 8, 8), out1.shape
    assert out2.shape == (N, fo, 16, 16), out2.shape
    assert all(bool(jnp.isfinite(o).all()) for o in (out0, out1, out2))
    print("KERNEL_OK")
</pallas_src>

<mosaic_0001>
module attributes {stable_mosaic.version = 11 : i64} {
  func.func @_bn_leaky_kernel(%arg0: i32, %arg1: memref<32x128xbf16, #tpu.memory_space<vmem>>, %arg2: memref<1x128xf32, #tpu.memory_space<vmem>>, %arg3: memref<1x128xf32, #tpu.memory_space<vmem>>, %arg4: memref<32x128xbf16, #tpu.memory_space<vmem>>) attributes {dimension_semantics = [#tpu.dimension_semantics<parallel>], iteration_bounds = array<i64: 1>, scalar_prefetch = 0 : i64, scratch_operands = 0 : i64, tpu.core_type = #tpu.core_type<tc>, window_params = [{transform_indices = @transform_0, window_bounds = array<i64: 32, 128>}, {pipeline_mode = #tpu.pipeline_mode<synchronous>, transform_indices = @transform_1, window_bounds = array<i64: 1, 128>}, {pipeline_mode = #tpu.pipeline_mode<synchronous>, transform_indices = @transform_2, window_bounds = array<i64: 1, 128>}, {transform_indices = @transform_3, window_bounds = array<i64: 32, 128>}]} {
    %c0 = arith.constant 0 : index
    %c0_0 = arith.constant 0 : index
    %0 = vector.load %arg1[%c0, %c0_0] : memref<32x128xbf16, #tpu.memory_space<vmem>>, vector<32x128xbf16>
    %1 = arith.extf %0 : vector<32x128xbf16> to vector<32x128xf32>
    %c0_1 = arith.constant 0 : index
    %c0_2 = arith.constant 0 : index
    %2 = vector.load %arg2[%c0_1, %c0_2] : memref<1x128xf32, #tpu.memory_space<vmem>>, vector<1x128xf32>
    %3 = vector.broadcast %2 : vector<1x128xf32> to vector<32x128xf32>
    %4 = arith.mulf %1, %3 : vector<32x128xf32>
    %c0_3 = arith.constant 0 : index
    %c0_4 = arith.constant 0 : index
    %5 = vector.load %arg3[%c0_3, %c0_4] : memref<1x128xf32, #tpu.memory_space<vmem>>, vector<1x128xf32>
    %6 = vector.broadcast %5 : vector<1x128xf32> to vector<32x128xf32>
    %7 = arith.addf %4, %6 : vector<32x128xf32>
    %cst = arith.constant 0.000000e+00 : f32
    %8 = vector.broadcast %cst : f32 to vector<32x128xf32>
    %9 = arith.cmpf oge, %7, %8 : vector<32x128xf32>
    %cst_5 = arith.constant 1.000000e-01 : f32
    %10 = vector.broadcast %cst_5 : f32 to vector<32x128xf32>
    %11 = arith.mulf %10, %7 : vector<32x128xf32>
    %12 = arith.select %9, %7, %11 : vector<32x128xi1>, vector<32x128xf32>
    %13 = arith.truncf %12 : vector<32x128xf32> to vector<32x128xbf16>
    %c0_6 = arith.constant 0 : index
    %c0_7 = arith.constant 0 : index
    %14 = vector.load %arg4[%c0_6, %c0_7] : memref<32x128xbf16, #tpu.memory_space<vmem>>, vector<32x128xbf16>
    tpu.vector_store %arg4[%c0_6, %c0_7], %13 {strides = array<i32>} : memref<32x128xbf16, #tpu.memory_space<vmem>>, vector<32x128xbf16>,
    return
  }
  func.func @transform_0(%arg0: i32) -> (i32, i32) {
    %c0_i32 = arith.constant 0 : i32
    %c0_i32_0 = arith.constant 0 : i32
    return %arg0, %c0_i32 : i32, i32
  }
  func.func @transform_1(%arg0: i32) -> (i32, i32) {
    %c0_i32 = arith.constant 0 : i32
    %c0_i32_0 = arith.constant 0 : i32
    %c0_i32_1 = arith.constant 0 : i32
    return %c0_i32, %c0_i32_0 : i32, i32
  }
  func.func @transform_2(%arg0: i32) -> (i32, i32) {
    %c0_i32 = arith.constant 0 : i32
    %c0_i32_0 = arith.constant 0 : i32
    %c0_i32_1 = arith.constant 0 : i32
    return %c0_i32, %c0_i32_0 : i32, i32
  }
  func.func @transform_3(%arg0: i32) -> (i32, i32) {
    %c0_i32 = arith.constant 0 : i32
    %c0_i32_0 = arith.constant 0 : i32
    return %arg0, %c0_i32 : i32, i32
  }
}

module attributes {stable_mosaic.version = 11 : i64} {
  func.func @_matmul_stats_kernel(%arg0: i32, %arg1: i32, %arg2: i32, %arg3: memref<32x256xbf16, #tpu.memory_space<vmem>>, %arg4: memref<256x128xbf16, #tpu.memory_space<vmem>>, %arg5: memref<32x128xbf16, #tpu.memory_space<vmem>>, %arg6: memref<8x128xf32, #tpu.memory_space<vmem>>, %arg7: memref<32x128xf32, #tpu.memory_space<vmem>>) attributes {dimension_semantics = [#tpu.dimension_semantics<parallel>, #tpu.dimension_semantics<parallel>, #tpu.dimension_semantics<arbitrary>], iteration_bounds = array<i64: 1, 1, 1>, scalar_prefetch = 0 : i64, scratch_operands = 1 : i64, tpu.core_type = #tpu.core_type<tc>, window_params = [{transform_indices = @transform_0, window_bounds = array<i64: 32, 256>}, {transform_indices = @transform_1, window_bounds = array<i64: 256, 128>}, {transform_indices = @transform_2, window_bounds = array<i64: 32, 128>}, {transform_indices = @transform_3, window_bounds = array<i64: 8, 128>}]} {
    %c0_i32 = arith.constant 0 : i32
    %0 = arith.cmpi eq, %arg2, %c0_i32 : i32
    %1 = arith.extui %0 : i1 to i32
    %c0_i32_0 = arith.constant 0 : i32
    %2 = arith.cmpi ne, %1, %c0_i32_0 : i32
    scf.if %2 {
      %cst_10 = arith.constant 0.000000e+00 : f32
      %12 = vector.broadcast %cst_10 : f32 to vector<32x128xf32>
      %c0_11 = arith.constant 0 : index
      %c0_12 = arith.constant 0 : index
      %13 = vector.load %arg7[%c0_11, %c0_12] : memref<32x128xf32, #tpu.memory_space<vmem>>, vector<32x128xf32>
      tpu.vector_store %arg7[%c0_11, %c0_12], %12 {strides = array<i32>} : memref<32x128xf32, #tpu.memory_space<vmem>>, vector<32x128xf32>,
    } else {
    }
    %c0 = arith.constant 0 : index
    %c0_1 = arith.constant 0 : index
    %3 = vector.load %arg7[%c0, %c0_1] : memref<32x128xf32, #tpu.memory_space<vmem>>, vector<32x128xf32>
    %c0_2 = arith.constant 0 : index
    %c0_3 = arith.constant 0 : index
    %4 = vector.load %arg3[%c0_2, %c0_3] : memref<32x256xbf16, #tpu.memory_space<vmem>>, vector<32x256xbf16>
    %c0_4 = arith.constant 0 : index
    %c0_5 = arith.constant 0 : index
    %5 = vector.load %arg4[%c0_4, %c0_5] : memref<256x128xbf16, #tpu.memory_space<vmem>>, vector<256x128xbf16>
    %cst = arith.constant dense<0.000000e+00> : vector<32x128xf32>
    %6 = tpu.matmul %4, %5, %cst {dimension_numbers = #tpu.dot_dimension_numbers<[1], [0], [0], [1], [0, 0, 1, 1], [], []>} : vector<32x256xbf16>, vector<256x128xbf16>, vector<32x128xf32> -> vector<32x128xf32>
    %7 = arith.addf %3, %6 : vector<32x128xf32>
    %c0_6 = arith.constant 0 : index
    %c0_7 = arith.constant 0 : index
    %8 = vector.load %arg7[%c0_6, %c0_7] : memref<32x128xf32, #tpu.memory_space<vmem>>, vector<32x128xf32>
    tpu.vector_store %arg7[%c0_6, %c0_7], %7 {strides = array<i32>} : memref<32x128xf32, #tpu.memory_space<vmem>>, vector<32x128xf32>,
    %c0_i32_8 = arith.constant 0 : i32
    %9 = arith.cmpi eq, %arg2, %c0_i32_8 : i32
    %10 = arith.extui %9 : i1 to i32
    %c0_i32_9 = arith.constant 0 : i32
    %11 = arith.cmpi ne, %10, %c0_i32_9 : i32
    scf.if %11 {
      %c0_10 = arith.constant 0 : index
      %c0_11 = arith.constant 0 : index
      %12 = vector.load %arg7[%c0_10, %c0_11] : memref<32x128xf32, #tpu.memory_space<vmem>>, vector<32x128xf32>
      %13 = arith.truncf %12 : vector<32x128xf32> to vector<32x128xbf16>
      %c0_12 = arith.constant 0 : index
      %c0_13 = arith.constant 0 : index
      %14 = vector.load %arg5[%c0_12, %c0_13] : memref<32x128xbf16, #tpu.memory_space<vmem>>, vector<32x128xbf16>
      tpu.vector_store %arg5[%c0_12, %c0_13], %13 {strides = array<i32>} : memref<32x128xbf16, #tpu.memory_space<vmem>>, vector<32x128xbf16>,
      %cst_14 = arith.constant 0.000000e+00 : f32
      %15 = vector.broadcast %cst_14 : f32 to vector<8x128xf32>
      %c0_15 = arith.constant 0 : index
      %c0_16 = arith.constant 0 : index
      %16 = vector.load %arg6[%c0_15, %c0_16] : memref<8x128xf32, #tpu.memory_space<vmem>>, vector<8x128xf32>
      tpu.vector_store %arg6[%c0_15, %c0_16], %15 {strides = array<i32>} : memref<8x128xf32, #tpu.memory_space<vmem>>, vector<8x128xf32>,
      %cst_17 = arith.constant dense<0.000000e+00> : vector<128xf32>
      %17 = vector.multi_reduction <add>, %12, %cst_17 [0] : vector<32x128xf32> to vector<128xf32>
      %18 = vector.shape_cast %17 : vector<128xf32> to vector<1x128xf32>
      %c0_18 = arith.constant 0 : index
      %c0_19 = arith.constant 0 : index
      %19 = vector.load %arg6[%c0_18, %c0_19] : memref<8x128xf32, #tpu.memory_space<vmem>>, vector<1x128xf32>
      tpu.vector_store %arg6[%c0_18, %c0_19], %18 {strides = array<i32>} : memref<8x128xf32, #tpu.memory_space<vmem>>, vector<1x128xf32>,
      %20 = arith.mulf %12, %12 : vector<32x128xf32>
      %cst_20 = arith.constant dense<0.000000e+00> : vector<128xf32>
      %21 = vector.multi_reduction <add>, %20, %cst_20 [0] : vector<32x128xf32> to vector<128xf32>
      %22 = vector.shape_cast %21 : vector<128xf32> to vector<1x128xf32>
      %c1 = arith.constant 1 : index
      %c0_21 = arith.constant 0 : index
      %23 = vector.load %arg6[%c1, %c0_21] : memref<8x128xf32, #tpu.memory_space<vmem>>, vector<1x128xf32>
      tpu.vector_store %arg6[%c1, %c0_21], %22 {strides = array<i32>} : memref<8x128xf32, #tpu.memory_space<vmem>>, vector<1x128xf32>,
    } else {
    }
    return
  }
  func.func @transform_0(%arg0: i32, %arg1: i32, %arg2: i32) -> (i32, i32) {
    %c0_i32 = arith.constant 0 : i32
    return %arg0, %arg2 : i32, i32
  }
  func.func @transform_1(%arg0: i32, %arg1: i32, %arg2: i32) -> (i32, i32) {
    %c0_i32 = arith.constant 0 : i32
    return %arg2, %arg1 : i32, i32
  }
  func.func @transform_2(%arg0: i32, %arg1: i32, %arg2: i32) -> (i32, i32) {
    %c0_i32 = arith.constant 0 : i32
    return %arg0, %arg1 : i32, i32
  }
  func.func @transform_3(%arg0: i32, %arg1: i32, %arg2: i32) -> (i32, i32) {
    %c0_i32 = arith.constant 0 : i32
    return %arg0, %arg1 : i32, i32
  }
}

module attributes {stable_mosaic.version = 11 : i64} {
  func.func @_bn_leaky_kernel(%arg0: i32, %arg1: memref<32x256xbf16, #tpu.memory_space<vmem>>, %arg2: memref<1x256xf32, #tpu.memory_space<vmem>>, %arg3: memref<1x256xf32, #tpu.memory_space<vmem>>, %arg4: memref<32x256xbf16, #tpu.memory_space<vmem>>) attributes {dimension_semantics = [#tpu.dimension_semantics<parallel>], iteration_bounds = array<i64: 1>, scalar_prefetch = 0 : i64, scratch_operands = 0 : i64, tpu.core_type = #tpu.core_type<tc>, window_params = [{transform_indices = @transform_0, window_bounds = array<i64: 32, 256>}, {pipeline_mode = #tpu.pipeline_mode<synchronous>, transform_indices = @transform_1, window_bounds = array<i64: 1, 256>}, {pipeline_mode = #tpu.pipeline_mode<synchronous>, transform_indices = @transform_2, window_bounds = array<i64: 1, 256>}, {transform_indices = @transform_3, window_bounds = array<i64: 32, 256>}]} {
    %c0 = arith.constant 0 : index
    %c0_0 = arith.constant 0 : index
    %0 = vector.load %arg1[%c0, %c0_0] : memref<32x256xbf16, #tpu.memory_space<vmem>>, vector<32x256xbf16>
    %1 = arith.extf %0 : vector<32x256xbf16> to vector<32x256xf32>
    %c0_1 = arith.constant 0 : index
    %c0_2 = arith.constant 0 : index
    %2 = vector.load %arg2[%c0_1, %c0_2] : memref<1x256xf32, #tpu.memory_space<vmem>>, vector<1x256xf32>
    %3 = vector.broadcast %2 : vector<1x256xf32> to vector<32x256xf32>
    %4 = arith.mulf %1, %3 : vector<32x256xf32>
    %c0_3 = arith.constant 0 : index
    %c0_4 = arith.constant 0 : index
    %5 = vector.load %arg3[%c0_3, %c0_4] : memref<1x256xf32, #tpu.memory_space<vmem>>, vector<1x256xf32>
    %6 = vector.broadcast %5 : vector<1x256xf32> to vector<32x256xf32>
    %7 = arith.addf %4, %6 : vector<32x256xf32>
    %cst = arith.constant 0.000000e+00 : f32
    %8 = vector.broadcast %cst : f32 to vector<32x256xf32>
    %9 = arith.cmpf oge, %7, %8 : vector<32x256xf32>
    %cst_5 = arith.constant 1.000000e-01 : f32
    %10 = vector.broadcast %cst_5 : f32 to vector<32x256xf32>
    %11 = arith.mulf %10, %7 : vector<32x256xf32>
    %12 = arith.select %9, %7, %11 : vector<32x256xi1>, vector<32x256xf32>
    %13 = arith.truncf %12 : vector<32x256xf32> to vector<32x256xbf16>
    %c0_6 = arith.constant 0 : index
    %c0_7 = arith.constant 0 : index
    %14 = vector.load %arg4[%c0_6, %c0_7] : memref<32x256xbf16, #tpu.memory_space<vmem>>, vector<32x256xbf16>
    tpu.vector_store %arg4[%c0_6, %c0_7], %13 {strides = array<i32>} : memref<32x256xbf16, #tpu.memory_space<vmem>>, vector<32x256xbf16>,
    return
  }
  func.func @transform_0(%arg0: i32) -> (i32, i32) {
    %c0_i32 = arith.constant 0 : i32
    %c0_i32_0 = arith.constant 0 : i32
    return %arg0, %c0_i32 : i32, i32
  }
  func.func @transform_1(%arg0: i32) -> (i32, i32) {
    %c0_i32 = arith.constant 0 : i32
    %c0_i32_0 = arith.constant 0 : i32
    %c0_i32_1 = arith.constant 0 : i32
    return %c0_i32, %c0_i32_0 : i32, i32
  }
  func.func @transform_2(%arg0: i32) -> (i32, i32) {
    %c0_i32 = arith.constant 0 : i32
    %c0_i32_0 = arith.constant 0 : i32
    %c0_i32_1 = arith.constant 0 : i32
    return %c0_i32, %c0_i32_0 : i32, i32
  }
  func.func @transform_3(%arg0: i32) -> (i32, i32) {
    %c0_i32 = arith.constant 0 : i32
    %c0_i32_0 = arith.constant 0 : i32
    return %arg0, %c0_i32 : i32, i32
  }
}

module attributes {stable_mosaic.version = 11 : i64} {
  func.func @_matmul_stats_kernel(%arg0: i32, %arg1: i32, %arg2: i32, %arg3: memref<32x384xbf16, #tpu.memory_space<vmem>>, %arg4: memref<384x256xbf16, #tpu.memory_space<vmem>>, %arg5: memref<32x256xbf16, #tpu.memory_space<vmem>>, %arg6: memref<8x256xf32, #tpu.memory_space<vmem>>, %arg7: memref<32x256xf32, #tpu.memory_space<vmem>>) attributes {dimension_semantics = [#tpu.dimension_semantics<parallel>, #tpu.dimension_semantics<parallel>, #tpu.dimension_semantics<arbitrary>], iteration_bounds = array<i64: 1, 1, 3>, scalar_prefetch = 0 : i64, scratch_operands = 1 : i64, tpu.core_type = #tpu.core_type<tc>, window_params = [{transform_indices = @transform_0, window_bounds = array<i64: 32, 384>}, {transform_indices = @transform_1, window_bounds = array<i64: 384, 256>}, {transform_indices = @transform_2, window_bounds = array<i64: 32, 256>}, {transform_indices = @transform_3, window_bounds = array<i64: 8, 256>}]} {
    %c0_i32 = arith.constant 0 : i32
    %0 = arith.cmpi eq, %arg2, %c0_i32 : i32
    %1 = arith.extui %0 : i1 to i32
    %c0_i32_0 = arith.constant 0 : i32
    %2 = arith.cmpi ne, %1, %c0_i32_0 : i32
    scf.if %2 {
      %cst_9 = arith.constant 0.000000e+00 : f32
      %12 = vector.broadcast %cst_9 : f32 to vector<32x256xf32>
      %c0_10 = arith.constant 0 : index
      %c0_11 = arith.constant 0 : index
      %13 = vector.load %arg7[%c0_10, %c0_11] : memref<32x256xf32, #tpu.memory_space<vmem>>, vector<32x256xf32>
      tpu.vector_store %arg7[%c0_10, %c0_11], %12 {strides = array<i32>} : memref<32x256xf32, #tpu.memory_space<vmem>>, vector<32x256xf32>,
    } else {
    }
    %c0 = arith.constant 0 : index
    %c0_1 = arith.constant 0 : index
    %3 = vector.load %arg7[%c0, %c0_1] : memref<32x256xf32, #tpu.memory_space<vmem>>, vector<32x256xf32>
    %c0_2 = arith.constant 0 : index
    %c0_3 = arith.constant 0 : index
    %4 = vector.load %arg3[%c0_2, %c0_3] : memref<32x384xbf16, #tpu.memory_space<vmem>>, vector<32x384xbf16>
    %c0_4 = arith.constant 0 : index
    %c0_5 = arith.constant 0 : index
    %5 = vector.load %arg4[%c0_4, %c0_5] : memref<384x256xbf16, #tpu.memory_space<vmem>>, vector<384x256xbf16>
    %cst = arith.constant dense<0.000000e+00> : vector<32x256xf32>
    %6 = tpu.matmul %4, %5, %cst {dimension_numbers = #tpu.dot_dimension_numbers<[1], [0], [0], [1], [0, 0, 1, 1], [], []>} : vector<32x384xbf16>, vector<384x256xbf16>, vector<32x256xf32> -> vector<32x256xf32>
    %7 = arith.addf %3, %6 : vector<32x256xf32>
    %c0_6 = arith.constant 0 : index
    %c0_7 = arith.constant 0 : index
    %8 = vector.load %arg7[%c0_6, %c0_7] : memref<32x256xf32, #tpu.memory_space<vmem>>, vector<32x256xf32>
    tpu.vector_store %arg7[%c0_6, %c0_7], %7 {strides = array<i32>} : memref<32x256xf32, #tpu.memory_space<vmem>>, vector<32x256xf32>,
    %c2_i32 = arith.constant 2 : i32
    %9 = arith.cmpi eq, %arg2, %c2_i32 : i32
    %10 = arith.extui %9 : i1 to i32
    %c0_i32_8 = arith.constant 0 : i32
    %11 = arith.cmpi ne, %10, %c0_i32_8 : i32
    scf.if %11 {
      %c0_9 = arith.constant 0 : index
      %c0_10 = arith.constant 0 : index
      %12 = vector.load %arg7[%c0_9, %c0_10] : memref<32x256xf32, #tpu.memory_space<vmem>>, vector<32x256xf32>
      %13 = arith.truncf %12 : vector<32x256xf32> to vector<32x256xbf16>
      %c0_11 = arith.constant 0 : index
      %c0_12 = arith.constant 0 : index
      %14 = vector.load %arg5[%c0_11, %c0_12] : memref<32x256xbf16, #tpu.memory_space<vmem>>, vector<32x256xbf16>
      tpu.vector_store %arg5[%c0_11, %c0_12], %13 {strides = array<i32>} : memref<32x256xbf16, #tpu.memory_space<vmem>>, vector<32x256xbf16>,
      %cst_13 = arith.constant 0.000000e+00 : f32
      %15 = vector.broadcast %cst_13 : f32 to vector<8x256xf32>
      %c0_14 = arith.constant 0 : index
      %c0_15 = arith.constant 0 : index
      %16 = vector.load %arg6[%c0_14, %c0_15] : memref<8x256xf32, #tpu.memory_space<vmem>>, vector<8x256xf32>
      tpu.vector_store %arg6[%c0_14, %c0_15], %15 {strides = array<i32>} : memref<8x256xf32, #tpu.memory_space<vmem>>, vector<8x256xf32>,
      %cst_16 = arith.constant dense<0.000000e+00> : vector<256xf32>
      %17 = vector.multi_reduction <add>, %12, %cst_16 [0] : vector<32x256xf32> to vector<256xf32>
      %18 = vector.shape_cast %17 : vector<256xf32> to vector<1x256xf32>
      %c0_17 = arith.constant 0 : index
      %c0_18 = arith.constant 0 : index
      %19 = vector.load %arg6[%c0_17, %c0_18] : memref<8x256xf32, #tpu.memory_space<vmem>>, vector<1x256xf32>
      tpu.vector_store %arg6[%c0_17, %c0_18], %18 {strides = array<i32>} : memref<8x256xf32, #tpu.memory_space<vmem>>, vector<1x256xf32>,
      %20 = arith.mulf %12, %12 : vector<32x256xf32>
      %cst_19 = arith.constant dense<0.000000e+00> : vector<256xf32>
      %21 = vector.multi_reduction <add>, %20, %cst_19 [0] : vector<32x256xf32> to vector<256xf32>
      %22 = vector.shape_cast %21 : vector<256xf32> to vector<1x256xf32>
      %c1 = arith.constant 1 : index
      %c0_20 = arith.constant 0 : index
      %23 = vector.load %arg6[%c1, %c0_20] : memref<8x256xf32, #tpu.memory_space<vmem>>, vector<1x256xf32>
      tpu.vector_store %arg6[%c1, %c0_20], %22 {strides = array<i32>} : memref<8x256xf32, #tpu.memory_space<vmem>>, vector<1x256xf32>,
    } else {
    }
    return
  }
  func.func @transform_0(%arg0: i32, %arg1: i32, %arg2: i32) -> (i32, i32) {
    %c0_i32 = arith.constant 0 : i32
    return %arg0, %arg2 : i32, i32
  }
  func.func @transform_1(%arg0: i32, %arg1: i32, %arg2: i32) -> (i32, i32) {
    %c0_i32 = arith.constant 0 : i32
    return %arg2, %arg1 : i32, i32
  }
  func.func @transform_2(%arg0: i32, %arg1: i32, %arg2: i32) -> (i32, i32) {
    %c0_i32 = arith.constant 0 : i32
    return %arg0, %arg1 : i32, i32
  }
  func.func @transform_3(%arg0: i32, %arg1: i32, %arg2: i32) -> (i32, i32) {
    %c0_i32 = arith.constant 0 : i32
    return %arg0, %arg1 : i32, i32
  }
}

module attributes {stable_mosaic.version = 11 : i64} {
  func.func @_matmul_stats_kernel(%arg0: i32, %arg1: i32, %arg2: i32, %arg3: memref<32x512xbf16, #tpu.memory_space<vmem>>, %arg4: memref<512x128xbf16, #tpu.memory_space<vmem>>, %arg5: memref<32x128xbf16, #tpu.memory_space<vmem>>, %arg6: memref<8x128xf32, #tpu.memory_space<vmem>>, %arg7: memref<32x128xf32, #tpu.memory_space<vmem>>) attributes {dimension_semantics = [#tpu.dimension_semantics<parallel>, #tpu.dimension_semantics<parallel>, #tpu.dimension_semantics<arbitrary>], iteration_bounds = array<i64: 1, 1, 1>, scalar_prefetch = 0 : i64, scratch_operands = 1 : i64, tpu.core_type = #tpu.core_type<tc>, window_params = [{transform_indices = @transform_0, window_bounds = array<i64: 32, 512>}, {transform_indices = @transform_1, window_bounds = array<i64: 512, 128>}, {transform_indices = @transform_2, window_bounds = array<i64: 32, 128>}, {transform_indices = @transform_3, window_bounds = array<i64: 8, 128>}]} {
    %c0_i32 = arith.constant 0 : i32
    %0 = arith.cmpi eq, %arg2, %c0_i32 : i32
    %1 = arith.extui %0 : i1 to i32
    %c0_i32_0 = arith.constant 0 : i32
    %2 = arith.cmpi ne, %1, %c0_i32_0 : i32
    scf.if %2 {
      %cst_10 = arith.constant 0.000000e+00 : f32
      %12 = vector.broadcast %cst_10 : f32 to vector<32x128xf32>
      %c0_11 = arith.constant 0 : index
      %c0_12 = arith.constant 0 : index
      %13 = vector.load %arg7[%c0_11, %c0_12] : memref<32x128xf32, #tpu.memory_space<vmem>>, vector<32x128xf32>
      tpu.vector_store %arg7[%c0_11, %c0_12], %12 {strides = array<i32>} : memref<32x128xf32, #tpu.memory_space<vmem>>, vector<32x128xf32>,
    } else {
    }
    %c0 = arith.constant 0 : index
    %c0_1 = arith.constant 0 : index
    %3 = vector.load %arg7[%c0, %c0_1] : memref<32x128xf32, #tpu.memory_space<vmem>>, vector<32x128xf32>
    %c0_2 = arith.constant 0 : index
    %c0_3 = arith.constant 0 : index
    %4 = vector.load %arg3[%c0_2, %c0_3] : memref<32x512xbf16, #tpu.memory_space<vmem>>, vector<32x512xbf16>
    %c0_4 = arith.constant 0 : index
    %c0_5 = arith.constant 0 : index
    %5 = vector.load %arg4[%c0_4, %c0_5] : memref<512x128xbf16, #tpu.memory_space<vmem>>, vector<512x128xbf16>
    %cst = arith.constant dense<0.000000e+00> : vector<32x128xf32>
    %6 = tpu.matmul %4, %5, %cst {dimension_numbers = #tpu.dot_dimension_numbers<[1], [0], [0], [1], [0, 0, 1, 1], [], []>} : vector<32x512xbf16>, vector<512x128xbf16>, vector<32x128xf32> -> vector<32x128xf32>
    %7 = arith.addf %3, %6 : vector<32x128xf32>
    %c0_6 = arith.constant 0 : index
    %c0_7 = arith.constant 0 : index
    %8 = vector.load %arg7[%c0_6, %c0_7] : memref<32x128xf32, #tpu.memory_space<vmem>>, vector<32x128xf32>
    tpu.vector_store %arg7[%c0_6, %c0_7], %7 {strides = array<i32>} : memref<32x128xf32, #tpu.memory_space<vmem>>, vector<32x128xf32>,
    %c0_i32_8 = arith.constant 0 : i32
    %9 = arith.cmpi eq, %arg2, %c0_i32_8 : i32
    %10 = arith.extui %9 : i1 to i32
    %c0_i32_9 = arith.constant 0 : i32
    %11 = arith.cmpi ne, %10, %c0_i32_9 : i32
    scf.if %11 {
      %c0_10 = arith.constant 0 : index
      %c0_11 = arith.constant 0 : index
      %12 = vector.load %arg7[%c0_10, %c0_11] : memref<32x128xf32, #tpu.memory_space<vmem>>, vector<32x128xf32>
      %13 = arith.truncf %12 : vector<32x128xf32> to vector<32x128xbf16>
      %c0_12 = arith.constant 0 : index
      %c0_13 = arith.constant 0 : index
      %14 = vector.load %arg5[%c0_12, %c0_13] : memref<32x128xbf16, #tpu.memory_space<vmem>>, vector<32x128xbf16>
      tpu.vector_store %arg5[%c0_12, %c0_13], %13 {strides = array<i32>} : memref<32x128xbf16, #tpu.memory_space<vmem>>, vector<32x128xbf16>,
      %cst_14 = arith.constant 0.000000e+00 : f32
      %15 = vector.broadcast %cst_14 : f32 to vector<8x128xf32>
      %c0_15 = arith.constant 0 : index
      %c0_16 = arith.constant 0 : index
      %16 = vector.load %arg6[%c0_15, %c0_16] : memref<8x128xf32, #tpu.memory_space<vmem>>, vector<8x128xf32>
      tpu.vector_store %arg6[%c0_15, %c0_16], %15 {strides = array<i32>} : memref<8x128xf32, #tpu.memory_space<vmem>>, vector<8x128xf32>,
      %cst_17 = arith.constant dense<0.000000e+00> : vector<128xf32>
      %17 = vector.multi_reduction <add>, %12, %cst_17 [0] : vector<32x128xf32> to vector<128xf32>
      %18 = vector.shape_cast %17 : vector<128xf32> to vector<1x128xf32>
      %c0_18 = arith.constant 0 : index
      %c0_19 = arith.constant 0 : index
      %19 = vector.load %arg6[%c0_18, %c0_19] : memref<8x128xf32, #tpu.memory_space<vmem>>, vector<1x128xf32>
      tpu.vector_store %arg6[%c0_18, %c0_19], %18 {strides = array<i32>} : memref<8x128xf32, #tpu.memory_space<vmem>>, vector<1x128xf32>,
      %20 = arith.mulf %12, %12 : vector<32x128xf32>
      %cst_20 = arith.constant dense<0.000000e+00> : vector<128xf32>
      %21 = vector.multi_reduction <add>, %20, %cst_20 [0] : vector<32x128xf32> to vector<128xf32>
      %22 = vector.shape_cast %21 : vector<128xf32> to vector<1x128xf32>
      %c1 = arith.constant 1 : index
      %c0_21 = arith.constant 0 : index
      %23 = vector.load %arg6[%c1, %c0_21] : memref<8x128xf32, #tpu.memory_space<vmem>>, vector<1x128xf32>
      tpu.vector_store %arg6[%c1, %c0_21], %22 {strides = array<i32>} : memref<8x128xf32, #tpu.memory_space<vmem>>, vector<1x128xf32>,
    } else {
    }
    return
  }
  func.func @transform_0(%arg0: i32, %arg1: i32, %arg2: i32) -> (i32, i32) {
    %c0_i32 = arith.constant 0 : i32
    return %arg0, %arg2 : i32, i32
  }
  func.func @transform_1(%arg0: i32, %arg1: i32, %arg2: i32) -> (i32, i32) {
    %c0_i32 = arith.constant 0 : i32
    return %arg2, %arg1 : i32, i32
  }
  func.func @transform_2(%arg0: i32, %arg1: i32, %arg2: i32) -> (i32, i32) {
    %c0_i32 = arith.constant 0 : i32
    return %arg0, %arg1 : i32, i32
  }
  func.func @transform_3(%arg0: i32, %arg1: i32, %arg2: i32) -> (i32, i32) {
    %c0_i32 = arith.constant 0 : i32
    return %arg0, %arg1 : i32, i32
  }
}

module attributes {stable_mosaic.version = 11 : i64} {
  func.func @_spp_tiled_kernel(%arg0: i32, %arg1: i32, %arg2: i32, %arg3: memref<1x16x16x128xbf16, #tpu.memory_space<vmem>>, %arg4: memref<1x4x4x128xbf16, #tpu.memory_space<vmem>>) attributes {dimension_semantics = [#tpu.dimension_semantics<parallel>, #tpu.dimension_semantics<parallel>, #tpu.dimension_semantics<arbitrary>], iteration_bounds = array<i64: 2, 1, 4>, scalar_prefetch = 0 : i64, scratch_operands = 0 : i64, tpu.core_type = #tpu.core_type<tc>, window_params = [{transform_indices = @transform_0, window_bounds = array<i64: 1, 16, 16, 128>}, {transform_indices = @transform_1, window_bounds = array<i64: 1, 4, 4, 128>}]} {
    %c0 = arith.constant 0 : index
    %c0_0 = arith.constant 0 : index
    %c0_1 = arith.constant 0 : index
    %c0_2 = arith.constant 0 : index
    %0 = vector.load %arg3[%c0, %c0_0, %c0_1, %c0_2] : memref<1x16x16x128xbf16, #tpu.memory_space<vmem>>, vector<1x16x16x128xbf16>
    %1 = arith.extf %0 : vector<1x16x16x128xbf16> to vector<1x16x16x128xf32>
    %c0_i32 = arith.constant 0 : i32
    %2 = arith.cmpi eq, %arg2, %c0_i32 : i32
    %3 = arith.extui %2 : i1 to i32
    %c0_i32_3 = arith.constant 0 : i32
    %4 = arith.cmpi ne, %3, %c0_i32_3 : i32
    scf.if %4 {
      %14 = vector.extract_strided_slice %1 {offsets = [0, 0, 0, 0], sizes = [1, 12, 16, 128], strides = [1, 1, 1, 1]} : vector<1x16x16x128xf32> to vector<1x12x16x128xf32>
      %15 = vector.extract_strided_slice %1 {offsets = [0, 1, 0, 0], sizes = [1, 12, 16, 128], strides = [1, 1, 1, 1]} : vector<1x16x16x128xf32> to vector<1x12x16x128xf32>
      %16 = arith.maximumf %14, %15 : vector<1x12x16x128xf32>
      %17 = vector.extract_strided_slice %1 {offsets = [0, 2, 0, 0], sizes = [1, 12, 16, 128], strides = [1, 1, 1, 1]} : vector<1x16x16x128xf32> to vector<1x12x16x128xf32>
      %18 = arith.maximumf %16, %17 : vector<1x12x16x128xf32>
      %19 = vector.extract_strided_slice %1 {offsets = [0, 3, 0, 0], sizes = [1, 12, 16, 128], strides = [1, 1, 1, 1]} : vector<1x16x16x128xf32> to vector<1x12x16x128xf32>
      %20 = arith.maximumf %18, %19 : vector<1x12x16x128xf32>
      %21 = vector.extract_strided_slice %1 {offsets = [0, 4, 0, 0], sizes = [1, 12, 16, 128], strides = [1, 1, 1, 1]} : vector<1x16x16x128xf32> to vector<1x12x16x128xf32>
      %22 = arith.maximumf %20, %21 : vector<1x12x16x128xf32>
      %23 = vector.extract_strided_slice %22 {offsets = [0, 0, 0, 0], sizes = [1, 12, 12, 128], strides = [1, 1, 1, 1]} : vector<1x12x16x128xf32> to vector<1x12x12x128xf32>
      %24 = vector.extract_strided_slice %22 {offsets = [0, 0, 1, 0], sizes = [1, 12, 12, 128], strides = [1, 1, 1, 1]} : vector<1x12x16x128xf32> to vector<1x12x12x128xf32>
      %25 = arith.maximumf %23, %24 : vector<1x12x12x128xf32>
      %26 = vector.extract_strided_slice %22 {offsets = [0, 0, 2, 0], sizes = [1, 12, 12, 128], strides = [1, 1, 1, 1]} : vector<1x12x16x128xf32> to vector<1x12x12x128xf32>
      %27 = arith.maximumf %25, %26 : vector<1x12x12x128xf32>
      %28 = vector.extract_strided_slice %22 {offsets = [0, 0, 3, 0], sizes = [1, 12, 12, 128], strides = [1, 1, 1, 1]} : vector<1x12x16x128xf32> to vector<1x12x12x128xf32>
      %29 = arith.maximumf %27, %28 : vector<1x12x12x128xf32>
      %30 = vector.extract_strided_slice %22 {offsets = [0, 0, 4, 0], sizes = [1, 12, 12, 128], strides = [1, 1, 1, 1]} : vector<1x12x16x128xf32> to vector<1x12x12x128xf32>
      %31 = arith.maximumf %29, %30 : vector<1x12x12x128xf32>
      %32 = vector.extract_strided_slice %31 {offsets = [0, 0, 0, 0], sizes = [1, 8, 12, 128], strides = [1, 1, 1, 1]} : vector<1x12x12x128xf32> to vector<1x8x12x128xf32>
      %33 = vector.extract_strided_slice %31 {offsets = [0, 1, 0, 0], sizes = [1, 8, 12, 128], strides = [1, 1, 1, 1]} : vector<1x12x12x128xf32> to vector<1x8x12x128xf32>
      %34 = arith.maximumf %32, %33 : vector<1x8x12x128xf32>
      %35 = vector.extract_strided_slice %31 {offsets = [0, 2, 0, 0], sizes = [1, 8, 12, 128], strides = [1, 1, 1, 1]} : vector<1x12x12x128xf32> to vector<1x8x12x128xf32>
      %36 = arith.maximumf %34, %35 : vector<1x8x12x128xf32>
      %37 = vector.extract_strided_slice %31 {offsets = [0, 3, 0, 0], sizes = [1, 8, 12, 128], strides = [1, 1, 1, 1]} : vector<1x12x12x128xf32> to vector<1x8x12x128xf32>
      %38 = arith.maximumf %36, %37 : vector<1x8x12x128xf32>
      %39 = vector.extract_strided_slice %31 {offsets = [0, 4, 0, 0], sizes = [1, 8, 12, 128], strides = [1, 1, 1, 1]} : vector<1x12x12x128xf32> to vector<1x8x12x128xf32>
      %40 = arith.maximumf %38, %39 : vector<1x8x12x128xf32>
      %41 = vector.extract_strided_slice %40 {offsets = [0, 0, 0, 0], sizes = [1, 8, 8, 128], strides = [1, 1, 1, 1]} : vector<1x8x12x128xf32> to vector<1x8x8x128xf32>
      %42 = vector.extract_strided_slice %40 {offsets = [0, 0, 1, 0], sizes = [1, 8, 8, 128], strides = [1, 1, 1, 1]} : vector<1x8x12x128xf32> to vector<1x8x8x128xf32>
      %43 = arith.maximumf %41, %42 : vector<1x8x8x128xf32>
      %44 = vector.extract_strided_slice %40 {offsets = [0, 0, 2, 0], sizes = [1, 8, 8, 128], strides = [1, 1, 1, 1]} : vector<1x8x12x128xf32> to vector<1x8x8x128xf32>
      %45 = arith.maximumf %43, %44 : vector<1x8x8x128xf32>
      %46 = vector.extract_strided_slice %40 {offsets = [0, 0, 3, 0], sizes = [1, 8, 8, 128], strides = [1, 1, 1, 1]} : vector<1x8x12x128xf32> to vector<1x8x8x128xf32>
      %47 = arith.maximumf %45, %46 : vector<1x8x8x128xf32>
      %48 = vector.extract_strided_slice %40 {offsets = [0, 0, 4, 0], sizes = [1, 8, 8, 128], strides = [1, 1, 1, 1]} : vector<1x8x12x128xf32> to vector<1x8x8x128xf32>
      %49 = arith.maximumf %47, %48 : vector<1x8x8x128xf32>
      %50 = vector.extract_strided_slice %49 {offsets = [0, 0, 0, 0], sizes = [1, 4, 8, 128], strides = [1, 1, 1, 1]} : vector<1x8x8x128xf32> to vector<1x4x8x128xf32>
      %51 = vector.extract_strided_slice %49 {offsets = [0, 1, 0, 0], sizes = [1, 4, 8, 128], strides = [1, 1, 1, 1]} : vector<1x8x8x128xf32> to vector<1x4x8x128xf32>
      %52 = arith.maximumf %50, %51 : vector<1x4x8x128xf32>
      %53 = vector.extract_strided_slice %49 {offsets = [0, 2, 0, 0], sizes = [1, 4, 8, 128], strides = [1, 1, 1, 1]} : vector<1x8x8x128xf32> to vector<1x4x8x128xf32>
      %54 = arith.maximumf %52, %53 : vector<1x4x8x128xf32>
      %55 = vector.extract_strided_slice %49 {offsets = [0, 3, 0, 0], sizes = [1, 4, 8, 128], strides = [1, 1, 1, 1]} : vector<1x8x8x128xf32> to vector<1x4x8x128xf32>
      %56 = arith.maximumf %54, %55 : vector<1x4x8x128xf32>
      %57 = vector.extract_strided_slice %49 {offsets = [0, 4, 0, 0], sizes = [1, 4, 8, 128], strides = [1, 1, 1, 1]} : vector<1x8x8x128xf32> to vector<1x4x8x128xf32>
      %58 = arith.maximumf %56, %57 : vector<1x4x8x128xf32>
      %59 = vector.extract_strided_slice %58 {offsets = [0, 0, 0, 0], sizes = [1, 4, 4, 128], strides = [1, 1, 1, 1]} : vector<1x4x8x128xf32> to vector<1x4x4x128xf32>
      %60 = vector.extract_strided_slice %58 {offsets = [0, 0, 1, 0], sizes = [1, 4, 4, 128], strides = [1, 1, 1, 1]} : vector<1x4x8x128xf32> to vector<1x4x4x128xf32>
      %61 = arith.maximumf %59, %60 : vector<1x4x4x128xf32>
      %62 = vector.extract_strided_slice %58 {offsets = [0, 0, 2, 0], sizes = [1, 4, 4, 128], strides = [1, 1, 1, 1]} : vector<1x4x8x128xf32> to vector<1x4x4x128xf32>
      %63 = arith.maximumf %61, %62 : vector<1x4x4x128xf32>
      %64 = vector.extract_strided_slice %58 {offsets = [0, 0, 3, 0], sizes = [1, 4, 4, 128], strides = [1, 1, 1, 1]} : vector<1x4x8x128xf32> to vector<1x4x4x128xf32>
      %65 = arith.maximumf %63, %64 : vector<1x4x4x128xf32>
      %66 = vector.extract_strided_slice %58 {offsets = [0, 0, 4, 0], sizes = [1, 4, 4, 128], strides = [1, 1, 1, 1]} : vector<1x4x8x128xf32> to vector<1x4x4x128xf32>
      %67 = arith.maximumf %65, %66 : vector<1x4x4x128xf32>
      %68 = arith.truncf %67 : vector<1x4x4x128xf32> to vector<1x4x4x128xbf16>
      %c0_7 = arith.constant 0 : index
      %c0_8 = arith.constant 0 : index
      %c0_9 = arith.constant 0 : index
      %c0_10 = arith.constant 0 : index
      %69 = vector.load %arg4[%c0_7, %c0_8, %c0_9, %c0_10] : memref<1x4x4x128xbf16, #tpu.memory_space<vmem>>, vector<1x4x4x128xbf16>
      tpu.vector_store %arg4[%c0_7, %c0_8, %c0_9, %c0_10], %68 {strides = array<i32>} : memref<1x4x4x128xbf16, #tpu.memory_space<vmem>>, vector<1x4x4x128xbf16>,
    } else {
    }
    %c1_i32 = arith.constant 1 : i32
    %5 = arith.cmpi eq, %arg2, %c1_i32 : i32
    %6 = arith.extui %5 : i1 to i32
    %c0_i32_4 = arith.constant 0 : i32
    %7 = arith.cmpi ne, %6, %c0_i32_4 : i32
    scf.if %7 {
      %14 = vector.extract_strided_slice %1 {offsets = [0, 0, 0, 0], sizes = [1, 12, 16, 128], strides = [1, 1, 1, 1]} : vector<1x16x16x128xf32> to vector<1x12x16x128xf32>
      %15 = vector.extract_strided_slice %1 {offsets = [0, 1, 0, 0], sizes = [1, 12, 16, 128], strides = [1, 1, 1, 1]} : vector<1x16x16x128xf32> to vector<1x12x16x128xf32>
      %16 = arith.maximumf %14, %15 : vector<1x12x16x128xf32>
      %17 = vector.extract_strided_slice %1 {offsets = [0, 2, 0, 0], sizes = [1, 12, 16, 128], strides = [1, 1, 1, 1]} : vector<1x16x16x128xf32> to vector<1x12x16x128xf32>
      %18 = arith.maximumf %16, %17 : vector<1x12x16x128xf32>
      %19 = vector.extract_strided_slice %1 {offsets = [0, 3, 0, 0], sizes = [1, 12, 16, 128], strides = [1, 1, 1, 1]} : vector<1x16x16x128xf32> to vector<1x12x16x128xf32>
      %20 = arith.maximumf %18, %19 : vector<1x12x16x128xf32>
      %21 = vector.extract_strided_slice %1 {offsets = [0, 4, 0, 0], sizes = [1, 12, 16, 128], strides = [1, 1, 1, 1]} : vector<1x16x16x128xf32> to vector<1x12x16x128xf32>
      %22 = arith.maximumf %20, %21 : vector<1x12x16x128xf32>
      %23 = vector.extract_strided_slice %22 {offsets = [0, 0, 0, 0], sizes = [1, 12, 12, 128], strides = [1, 1, 1, 1]} : vector<1x12x16x128xf32> to vector<1x12x12x128xf32>
      %24 = vector.extract_strided_slice %22 {offsets = [0, 0, 1, 0], sizes = [1, 12, 12, 128], strides = [1, 1, 1, 1]} : vector<1x12x16x128xf32> to vector<1x12x12x128xf32>
      %25 = arith.maximumf %23, %24 : vector<1x12x12x128xf32>
      %26 = vector.extract_strided_slice %22 {offsets = [0, 0, 2, 0], sizes = [1, 12, 12, 128], strides = [1, 1, 1, 1]} : vector<1x12x16x128xf32> to vector<1x12x12x128xf32>
      %27 = arith.maximumf %25, %26 : vector<1x12x12x128xf32>
      %28 = vector.extract_strided_slice %22 {offsets = [0, 0, 3, 0], sizes = [1, 12, 12, 128], strides = [1, 1, 1, 1]} : vector<1x12x16x128xf32> to vector<1x12x12x128xf32>
      %29 = arith.maximumf %27, %28 : vector<1x12x12x128xf32>
      %30 = vector.extract_strided_slice %22 {offsets = [0, 0, 4, 0], sizes = [1, 12, 12, 128], strides = [1, 1, 1, 1]} : vector<1x12x16x128xf32> to vector<1x12x12x128xf32>
      %31 = arith.maximumf %29, %30 : vector<1x12x12x128xf32>
      %32 = vector.extract_strided_slice %31 {offsets = [0, 0, 0, 0], sizes = [1, 8, 12, 128], strides = [1, 1, 1, 1]} : vector<1x12x12x128xf32> to vector<1x8x12x128xf32>
      %33 = vector.extract_strided_slice %31 {offsets = [0, 1, 0, 0], sizes = [1, 8, 12, 128], strides = [1, 1, 1, 1]} : vector<1x12x12x128xf32> to vector<1x8x12x128xf32>
      %34 = arith.maximumf %32, %33 : vector<1x8x12x128xf32>
      %35 = vector.extract_strided_slice %31 {offsets = [0, 2, 0, 0], sizes = [1, 8, 12, 128], strides = [1, 1, 1, 1]} : vector<1x12x12x128xf32> to vector<1x8x12x128xf32>
      %36 = arith.maximumf %34, %35 : vector<1x8x12x128xf32>
      %37 = vector.extract_strided_slice %31 {offsets = [0, 3, 0, 0], sizes = [1, 8, 12, 128], strides = [1, 1, 1, 1]} : vector<1x12x12x128xf32> to vector<1x8x12x128xf32>
      %38 = arith.maximumf %36, %37 : vector<1x8x12x128xf32>
      %39 = vector.extract_strided_slice %31 {offsets = [0, 4, 0, 0], sizes = [1, 8, 12, 128], strides = [1, 1, 1, 1]} : vector<1x12x12x128xf32> to vector<1x8x12x128xf32>
      %40 = arith.maximumf %38, %39 : vector<1x8x12x128xf32>
      %41 = vector.extract_strided_slice %40 {offsets = [0, 0, 0, 0], sizes = [1, 8, 8, 128], strides = [1, 1, 1, 1]} : vector<1x8x12x128xf32> to vector<1x8x8x128xf32>
      %42 = vector.extract_strided_slice %40 {offsets = [0, 0, 1, 0], sizes = [1, 8, 8, 128], strides = [1, 1, 1, 1]} : vector<1x8x12x128xf32> to vector<1x8x8x128xf32>
      %43 = arith.maximumf %41, %42 : vector<1x8x8x128xf32>
      %44 = vector.extract_strided_slice %40 {offsets = [0, 0, 2, 0], sizes = [1, 8, 8, 128], strides = [1, 1, 1, 1]} : vector<1x8x12x128xf32> to vector<1x8x8x128xf32>
      %45 = arith.maximumf %43, %44 : vector<1x8x8x128xf32>
      %46 = vector.extract_strided_slice %40 {offsets = [0, 0, 3, 0], sizes = [1, 8, 8, 128], strides = [1, 1, 1, 1]} : vector<1x8x12x128xf32> to vector<1x8x8x128xf32>
      %47 = arith.maximumf %45, %46 : vector<1x8x8x128xf32>
      %48 = vector.extract_strided_slice %40 {offsets = [0, 0, 4, 0], sizes = [1, 8, 8, 128], strides = [1, 1, 1, 1]} : vector<1x8x12x128xf32> to vector<1x8x8x128xf32>
      %49 = arith.maximumf %47, %48 : vector<1x8x8x128xf32>
      %50 = vector.extract_strided_slice %49 {offsets = [0, 2, 2, 0], sizes = [1, 4, 4, 128], strides = [1, 1, 1, 1]} : vector<1x8x8x128xf32> to vector<1x4x4x128xf32>
      %51 = arith.truncf %50 : vector<1x4x4x128xf32> to vector<1x4x4x128xbf16>
      %c0_7 = arith.constant 0 : index
      %c0_8 = arith.constant 0 : index
      %c0_9 = arith.constant 0 : index
      %c0_10 = arith.constant 0 : index
      %52 = vector.load %arg4[%c0_7, %c0_8, %c0_9, %c0_10] : memref<1x4x4x128xbf16, #tpu.memory_space<vmem>>, vector<1x4x4x128xbf16>
      tpu.vector_store %arg4[%c0_7, %c0_8, %c0_9, %c0_10], %51 {strides = array<i32>} : memref<1x4x4x128xbf16, #tpu.memory_space<vmem>>, vector<1x4x4x128xbf16>,
    } else {
    }
    %c2_i32 = arith.constant 2 : i32
    %8 = arith.cmpi eq, %arg2, %c2_i32 : i32
    %9 = arith.extui %8 : i1 to i32
    %c0_i32_5 = arith.constant 0 : i32
    %10 = arith.cmpi ne, %9, %c0_i32_5 : i32
    scf.if %10 {
      %14 = vector.extract_strided_slice %1 {offsets = [0, 0, 0, 0], sizes = [1, 12, 16, 128], strides = [1, 1, 1, 1]} : vector<1x16x16x128xf32> to vector<1x12x16x128xf32>
      %15 = vector.extract_strided_slice %1 {offsets = [0, 1, 0, 0], sizes = [1, 12, 16, 128], strides = [1, 1, 1, 1]} : vector<1x16x16x128xf32> to vector<1x12x16x128xf32>
      %16 = arith.maximumf %14, %15 : vector<1x12x16x128xf32>
      %17 = vector.extract_strided_slice %1 {offsets = [0, 2, 0, 0], sizes = [1, 12, 16, 128], strides = [1, 1, 1, 1]} : vector<1x16x16x128xf32> to vector<1x12x16x128xf32>
      %18 = arith.maximumf %16, %17 : vector<1x12x16x128xf32>
      %19 = vector.extract_strided_slice %1 {offsets = [0, 3, 0, 0], sizes = [1, 12, 16, 128], strides = [1, 1, 1, 1]} : vector<1x16x16x128xf32> to vector<1x12x16x128xf32>
      %20 = arith.maximumf %18, %19 : vector<1x12x16x128xf32>
      %21 = vector.extract_strided_slice %1 {offsets = [0, 4, 0, 0], sizes = [1, 12, 16, 128], strides = [1, 1, 1, 1]} : vector<1x16x16x128xf32> to vector<1x12x16x128xf32>
      %22 = arith.maximumf %20, %21 : vector<1x12x16x128xf32>
      %23 = vector.extract_strided_slice %22 {offsets = [0, 0, 0, 0], sizes = [1, 12, 12, 128], strides = [1, 1, 1, 1]} : vector<1x12x16x128xf32> to vector<1x12x12x128xf32>
      %24 = vector.extract_strided_slice %22 {offsets = [0, 0, 1, 0], sizes = [1, 12, 12, 128], strides = [1, 1, 1, 1]} : vector<1x12x16x128xf32> to vector<1x12x12x128xf32>
      %25 = arith.maximumf %23, %24 : vector<1x12x12x128xf32>
      %26 = vector.extract_strided_slice %22 {offsets = [0, 0, 2, 0], sizes = [1, 12, 12, 128], strides = [1, 1, 1, 1]} : vector<1x12x16x128xf32> to vector<1x12x12x128xf32>
      %27 = arith.maximumf %25, %26 : vector<1x12x12x128xf32>
      %28 = vector.extract_strided_slice %22 {offsets = [0, 0, 3, 0], sizes = [1, 12, 12, 128], strides = [1, 1, 1, 1]} : vector<1x12x16x128xf32> to vector<1x12x12x128xf32>
      %29 = arith.maximumf %27, %28 : vector<1x12x12x128xf32>
      %30 = vector.extract_strided_slice %22 {offsets = [0, 0, 4, 0], sizes = [1, 12, 12, 128], strides = [1, 1, 1, 1]} : vector<1x12x16x128xf32> to vector<1x12x12x128xf32>
      %31 = arith.maximumf %29, %30 : vector<1x12x12x128xf32>
      %32 = vector.extract_strided_slice %31 {offsets = [0, 4, 4, 0], sizes = [1, 4, 4, 128], strides = [1, 1, 1, 1]} : vector<1x12x12x128xf32> to vector<1x4x4x128xf32>
      %33 = arith.truncf %32 : vector<1x4x4x128xf32> to vector<1x4x4x128xbf16>
      %c0_7 = arith.constant 0 : index
      %c0_8 = arith.constant 0 : index
      %c0_9 = arith.constant 0 : index
      %c0_10 = arith.constant 0 : index
      %34 = vector.load %arg4[%c0_7, %c0_8, %c0_9, %c0_10] : memref<1x4x4x128xbf16, #tpu.memory_space<vmem>>, vector<1x4x4x128xbf16>
      tpu.vector_store %arg4[%c0_7, %c0_8, %c0_9, %c0_10], %33 {strides = array<i32>} : memref<1x4x4x128xbf16, #tpu.memory_space<vmem>>, vector<1x4x4x128xbf16>,
    } else {
    }
    %c3_i32 = arith.constant 3 : i32
    %11 = arith.cmpi eq, %arg2, %c3_i32 : i32
    %12 = arith.extui %11 : i1 to i32
    %c0_i32_6 = arith.constant 0 : i32
    %13 = arith.cmpi ne, %12, %c0_i32_6 : i32
    scf.if %13 {
      %14 = vector.extract_strided_slice %1 {offsets = [0, 6, 6, 0], sizes = [1, 4, 4, 128], strides = [1, 1, 1, 1]} : vector<1x16x16x128xf32> to vector<1x4x4x128xf32>
      %15 = arith.truncf %14 : vector<1x4x4x128xf32> to vector<1x4x4x128xbf16>
      %c0_7 = arith.constant 0 : index
      %c0_8 = arith.constant 0 : index
      %c0_9 = arith.constant 0 : index
      %c0_10 = arith.constant 0 : index
      %16 = vector.load %arg4[%c0_7, %c0_8, %c0_9, %c0_10] : memref<1x4x4x128xbf16, #tpu.memory_space<vmem>>, vector<1x4x4x128xbf16>
      tpu.vector_store %arg4[%c0_7, %c0_8, %c0_9, %c0_10], %15 {strides = array<i32>} : memref<1x4x4x128xbf16, #tpu.memory_space<vmem>>, vector<1x4x4x128xbf16>,
    } else {
    }
    return
  }
  func.func @transform_0(%arg0: i32, %arg1: i32, %arg2: i32) -> (i32, i32, i32, i32) {
    %c0_i32 = arith.constant 0 : i32
    %c0_i32_0 = arith.constant 0 : i32
    %c0_i32_1 = arith.constant 0 : i32
    return %arg0, %c0_i32, %c0_i32_0, %arg1 : i32, i32, i32, i32
  }
  func.func @transform_1(%arg0: i32, %arg1: i32, %arg2: i32) -> (i32, i32, i32, i32) {
    %c1_i32 = arith.constant 1 : i32
    %0 = arith.muli %arg2, %c1_i32 : i32
    %1 = arith.addi %0, %arg1 : i32
    %c0_i32 = arith.constant 0 : i32
    %c0_i32_0 = arith.constant 0 : i32
    %c0_i32_1 = arith.constant 0 : i32
    return %arg0, %c0_i32, %c0_i32_0, %1 : i32, i32, i32, i32
  }
}

module attributes {stable_mosaic.version = 11 : i64} {
  func.func @_matmul_stats_kernel(%arg0: i32, %arg1: i32, %arg2: i32, %arg3: memref<128x128xbf16, #tpu.memory_space<vmem>>, %arg4: memref<128x128xbf16, #tpu.memory_space<vmem>>, %arg5: memref<128x128xbf16, #tpu.memory_space<vmem>>, %arg6: memref<8x128xf32, #tpu.memory_space<vmem>>, %arg7: memref<128x128xf32, #tpu.memory_space<vmem>>) attributes {dimension_semantics = [#tpu.dimension_semantics<parallel>, #tpu.dimension_semantics<parallel>, #tpu.dimension_semantics<arbitrary>], iteration_bounds = array<i64: 1, 1, 1>, scalar_prefetch = 0 : i64, scratch_operands = 1 : i64, tpu.core_type = #tpu.core_type<tc>, window_params = [{transform_indices = @transform_0, window_bounds = array<i64: 128, 128>}, {transform_indices = @transform_1, window_bounds = array<i64: 128, 128>}, {transform_indices = @transform_2, window_bounds = array<i64: 128, 128>}, {transform_indices = @transform_3, window_bounds = array<i64: 8, 128>}]} {
    %c0_i32 = arith.constant 0 : i32
    %0 = arith.cmpi eq, %arg2, %c0_i32 : i32
    %1 = arith.extui %0 : i1 to i32
    %c0_i32_0 = arith.constant 0 : i32
    %2 = arith.cmpi ne, %1, %c0_i32_0 : i32
    scf.if %2 {
      %cst_10 = arith.constant 0.000000e+00 : f32
      %12 = vector.broadcast %cst_10 : f32 to vector<128x128xf32>
      %c0_11 = arith.constant 0 : index
      %c0_12 = arith.constant 0 : index
      %13 = vector.load %arg7[%c0_11, %c0_12] : memref<128x128xf32, #tpu.memory_space<vmem>>, vector<128x128xf32>
      tpu.vector_store %arg7[%c0_11, %c0_12], %12 {strides = array<i32>} : memref<128x128xf32, #tpu.memory_space<vmem>>, vector<128x128xf32>,
    } else {
    }
    %c0 = arith.constant 0 : index
    %c0_1 = arith.constant 0 : index
    %3 = vector.load %arg7[%c0, %c0_1] : memref<128x128xf32, #tpu.memory_space<vmem>>, vector<128x128xf32>
    %c0_2 = arith.constant 0 : index
    %c0_3 = arith.constant 0 : index
    %4 = vector.load %arg3[%c0_2, %c0_3] : memref<128x128xbf16, #tpu.memory_space<vmem>>, vector<128x128xbf16>
    %c0_4 = arith.constant 0 : index
    %c0_5 = arith.constant 0 : index
    %5 = vector.load %arg4[%c0_4, %c0_5] : memref<128x128xbf16, #tpu.memory_space<vmem>>, vector<128x128xbf16>
    %cst = arith.constant dense<0.000000e+00> : vector<128x128xf32>
    %6 = tpu.matmul %4, %5, %cst {dimension_numbers = #tpu.dot_dimension_numbers<[1], [0], [0], [1], [0, 0, 1, 1], [], []>} : vector<128x128xbf16>, vector<128x128xbf16>, vector<128x128xf32> -> vector<128x128xf32>
    %7 = arith.addf %3, %6 : vector<128x128xf32>
    %c0_6 = arith.constant 0 : index
    %c0_7 = arith.constant 0 : index
    %8 = vector.load %arg7[%c0_6, %c0_7] : memref<128x128xf32, #tpu.memory_space<vmem>>, vector<128x128xf32>
    tpu.vector_store %arg7[%c0_6, %c0_7], %7 {strides = array<i32>} : memref<128x128xf32, #tpu.memory_space<vmem>>, vector<128x128xf32>,
    %c0_i32_8 = arith.constant 0 : i32
    %9 = arith.cmpi eq, %arg2, %c0_i32_8 : i32
    %10 = arith.extui %9 : i1 to i32
    %c0_i32_9 = arith.constant 0 : i32
    %11 = arith.cmpi ne, %10, %c0_i32_9 : i32
    scf.if %11 {
      %c0_10 = arith.constant 0 : index
      %c0_11 = arith.constant 0 : index
      %12 = vector.load %arg7[%c0_10, %c0_11] : memref<128x128xf32, #tpu.memory_space<vmem>>, vector<128x128xf32>
      %13 = arith.truncf %12 : vector<128x128xf32> to vector<128x128xbf16>
      %c0_12 = arith.constant 0 : index
      %c0_13 = arith.constant 0 : index
      %14 = vector.load %arg5[%c0_12, %c0_13] : memref<128x128xbf16, #tpu.memory_space<vmem>>, vector<128x128xbf16>
      tpu.vector_store %arg5[%c0_12, %c0_13], %13 {strides = array<i32>} : memref<128x128xbf16, #tpu.memory_space<vmem>>, vector<128x128xbf16>,
      %cst_14 = arith.constant 0.000000e+00 : f32
      %15 = vector.broadcast %cst_14 : f32 to vector<8x128xf32>
      %c0_15 = arith.constant 0 : index
      %c0_16 = arith.constant 0 : index
      %16 = vector.load %arg6[%c0_15, %c0_16] : memref<8x128xf32, #tpu.memory_space<vmem>>, vector<8x128xf32>
      tpu.vector_store %arg6[%c0_15, %c0_16], %15 {strides = array<i32>} : memref<8x128xf32, #tpu.memory_space<vmem>>, vector<8x128xf32>,
      %cst_17 = arith.constant dense<0.000000e+00> : vector<128xf32>
      %17 = vector.multi_reduction <add>, %12, %cst_17 [0] : vector<128x128xf32> to vector<128xf32>
      %18 = vector.shape_cast %17 : vector<128xf32> to vector<1x128xf32>
      %c0_18 = arith.constant 0 : index
      %c0_19 = arith.constant 0 : index
      %19 = vector.load %arg6[%c0_18, %c0_19] : memref<8x128xf32, #tpu.memory_space<vmem>>, vector<1x128xf32>
      tpu.vector_store %arg6[%c0_18, %c0_19], %18 {strides = array<i32>} : memref<8x128xf32, #tpu.memory_space<vmem>>, vector<1x128xf32>,
      %20 = arith.mulf %12, %12 : vector<128x128xf32>
      %cst_20 = arith.constant dense<0.000000e+00> : vector<128xf32>
      %21 = vector.multi_reduction <add>, %20, %cst_20 [0] : vector<128x128xf32> to vector<128xf32>
      %22 = vector.shape_cast %21 : vector<128xf32> to vector<1x128xf32>
      %c1 = arith.constant 1 : index
      %c0_21 = arith.constant 0 : index
      %23 = vector.load %arg6[%c1, %c0_21] : memref<8x128xf32, #tpu.memory_space<vmem>>, vector<1x128xf32>
      tpu.vector_store %arg6[%c1, %c0_21], %22 {strides = array<i32>} : memref<8x128xf32, #tpu.memory_space<vmem>>, vector<1x128xf32>,
    } else {
    }
    return
  }
  func.func @transform_0(%arg0: i32, %arg1: i32, %arg2: i32) -> (i32, i32) {
    %c0_i32 = arith.constant 0 : i32
    return %arg0, %arg2 : i32, i32
  }
  func.func @transform_1(%arg0: i32, %arg1: i32, %arg2: i32) -> (i32, i32) {
    %c0_i32 = arith.constant 0 : i32
    return %arg2, %arg1 : i32, i32
  }
  func.func @transform_2(%arg0: i32, %arg1: i32, %arg2: i32) -> (i32, i32) {
    %c0_i32 = arith.constant 0 : i32
    return %arg0, %arg1 : i32, i32
  }
  func.func @transform_3(%arg0: i32, %arg1: i32, %arg2: i32) -> (i32, i32) {
    %c0_i32 = arith.constant 0 : i32
    return %arg0, %arg1 : i32, i32
  }
}

module attributes {stable_mosaic.version = 11 : i64} {
  func.func @_bn_leaky_kernel(%arg0: i32, %arg1: memref<128x128xbf16, #tpu.memory_space<vmem>>, %arg2: memref<1x128xf32, #tpu.memory_space<vmem>>, %arg3: memref<1x128xf32, #tpu.memory_space<vmem>>, %arg4: memref<128x128xbf16, #tpu.memory_space<vmem>>) attributes {dimension_semantics = [#tpu.dimension_semantics<parallel>], iteration_bounds = array<i64: 1>, scalar_prefetch = 0 : i64, scratch_operands = 0 : i64, tpu.core_type = #tpu.core_type<tc>, window_params = [{transform_indices = @transform_0, window_bounds = array<i64: 128, 128>}, {pipeline_mode = #tpu.pipeline_mode<synchronous>, transform_indices = @transform_1, window_bounds = array<i64: 1, 128>}, {pipeline_mode = #tpu.pipeline_mode<synchronous>, transform_indices = @transform_2, window_bounds = array<i64: 1, 128>}, {transform_indices = @transform_3, window_bounds = array<i64: 128, 128>}]} {
    %c0 = arith.constant 0 : index
    %c0_0 = arith.constant 0 : index
    %0 = vector.load %arg1[%c0, %c0_0] : memref<128x128xbf16, #tpu.memory_space<vmem>>, vector<128x128xbf16>
    %1 = arith.extf %0 : vector<128x128xbf16> to vector<128x128xf32>
    %c0_1 = arith.constant 0 : index
    %c0_2 = arith.constant 0 : index
    %2 = vector.load %arg2[%c0_1, %c0_2] : memref<1x128xf32, #tpu.memory_space<vmem>>, vector<1x128xf32>
    %3 = vector.broadcast %2 : vector<1x128xf32> to vector<128x128xf32>
    %4 = arith.mulf %1, %3 : vector<128x128xf32>
    %c0_3 = arith.constant 0 : index
    %c0_4 = arith.constant 0 : index
    %5 = vector.load %arg3[%c0_3, %c0_4] : memref<1x128xf32, #tpu.memory_space<vmem>>, vector<1x128xf32>
    %6 = vector.broadcast %5 : vector<1x128xf32> to vector<128x128xf32>
    %7 = arith.addf %4, %6 : vector<128x128xf32>
    %cst = arith.constant 0.000000e+00 : f32
    %8 = vector.broadcast %cst : f32 to vector<128x128xf32>
    %9 = arith.cmpf oge, %7, %8 : vector<128x128xf32>
    %cst_5 = arith.constant 1.000000e-01 : f32
    %10 = vector.broadcast %cst_5 : f32 to vector<128x128xf32>
    %11 = arith.mulf %10, %7 : vector<128x128xf32>
    %12 = arith.select %9, %7, %11 : vector<128x128xi1>, vector<128x128xf32>
    %13 = arith.truncf %12 : vector<128x128xf32> to vector<128x128xbf16>
    %c0_6 = arith.constant 0 : index
    %c0_7 = arith.constant 0 : index
    %14 = vector.load %arg4[%c0_6, %c0_7] : memref<128x128xbf16, #tpu.memory_space<vmem>>, vector<128x128xbf16>
    tpu.vector_store %arg4[%c0_6, %c0_7], %13 {strides = array<i32>} : memref<128x128xbf16, #tpu.memory_space<vmem>>, vector<128x128xbf16>,
    return
  }
  func.func @transform_0(%arg0: i32) -> (i32, i32) {
    %c0_i32 = arith.constant 0 : i32
    %c0_i32_0 = arith.constant 0 : i32
    return %arg0, %c0_i32 : i32, i32
  }
  func.func @transform_1(%arg0: i32) -> (i32, i32) {
    %c0_i32 = arith.constant 0 : i32
    %c0_i32_0 = arith.constant 0 : i32
    %c0_i32_1 = arith.constant 0 : i32
    return %c0_i32, %c0_i32_0 : i32, i32
  }
  func.func @transform_2(%arg0: i32) -> (i32, i32) {
    %c0_i32 = arith.constant 0 : i32
    %c0_i32_0 = arith.constant 0 : i32
    %c0_i32_1 = arith.constant 0 : i32
    return %c0_i32, %c0_i32_0 : i32, i32
  }
  func.func @transform_3(%arg0: i32) -> (i32, i32) {
    %c0_i32 = arith.constant 0 : i32
    %c0_i32_0 = arith.constant 0 : i32
    return %arg0, %c0_i32 : i32, i32
  }
}

module attributes {stable_mosaic.version = 11 : i64} {
  func.func @_matmul_stats_kernel(%arg0: i32, %arg1: i32, %arg2: i32, %arg3: memref<32x128xbf16, #tpu.memory_space<vmem>>, %arg4: memref<128x128xbf16, #tpu.memory_space<vmem>>, %arg5: memref<32x128xbf16, #tpu.memory_space<vmem>>, %arg6: memref<8x128xf32, #tpu.memory_space<vmem>>, %arg7: memref<32x128xf32, #tpu.memory_space<vmem>>) attributes {dimension_semantics = [#tpu.dimension_semantics<parallel>, #tpu.dimension_semantics<parallel>, #tpu.dimension_semantics<arbitrary>], iteration_bounds = array<i64: 1, 1, 1>, scalar_prefetch = 0 : i64, scratch_operands = 1 : i64, tpu.core_type = #tpu.core_type<tc>, window_params = [{transform_indices = @transform_0, window_bounds = array<i64: 32, 128>}, {transform_indices = @transform_1, window_bounds = array<i64: 128, 128>}, {transform_indices = @transform_2, window_bounds = array<i64: 32, 128>}, {transform_indices = @transform_3, window_bounds = array<i64: 8, 128>}]} {
    %c0_i32 = arith.constant 0 : i32
    %0 = arith.cmpi eq, %arg2, %c0_i32 : i32
    %1 = arith.extui %0 : i1 to i32
    %c0_i32_0 = arith.constant 0 : i32
    %2 = arith.cmpi ne, %1, %c0_i32_0 : i32
    scf.if %2 {
      %cst_10 = arith.constant 0.000000e+00 : f32
      %12 = vector.broadcast %cst_10 : f32 to vector<32x128xf32>
      %c0_11 = arith.constant 0 : index
      %c0_12 = arith.constant 0 : index
      %13 = vector.load %arg7[%c0_11, %c0_12] : memref<32x128xf32, #tpu.memory_space<vmem>>, vector<32x128xf32>
      tpu.vector_store %arg7[%c0_11, %c0_12], %12 {strides = array<i32>} : memref<32x128xf32, #tpu.memory_space<vmem>>, vector<32x128xf32>,
    } else {
    }
    %c0 = arith.constant 0 : index
    %c0_1 = arith.constant 0 : index
    %3 = vector.load %arg7[%c0, %c0_1] : memref<32x128xf32, #tpu.memory_space<vmem>>, vector<32x128xf32>
    %c0_2 = arith.constant 0 : index
    %c0_3 = arith.constant 0 : index
    %4 = vector.load %arg3[%c0_2, %c0_3] : memref<32x128xbf16, #tpu.memory_space<vmem>>, vector<32x128xbf16>
    %c0_4 = arith.constant 0 : index
    %c0_5 = arith.constant 0 : index
    %5 = vector.load %arg4[%c0_4, %c0_5] : memref<128x128xbf16, #tpu.memory_space<vmem>>, vector<128x128xbf16>
    %cst = arith.constant dense<0.000000e+00> : vector<32x128xf32>
    %6 = tpu.matmul %4, %5, %cst {dimension_numbers = #tpu.dot_dimension_numbers<[1], [0], [0], [1], [0, 0, 1, 1], [], []>} : vector<32x128xbf16>, vector<128x128xbf16>, vector<32x128xf32> -> vector<32x128xf32>
    %7 = arith.addf %3, %6 : vector<32x128xf32>
    %c0_6 = arith.constant 0 : index
    %c0_7 = arith.constant 0 : index
    %8 = vector.load %arg7[%c0_6, %c0_7] : memref<32x128xf32, #tpu.memory_space<vmem>>, vector<32x128xf32>
    tpu.vector_store %arg7[%c0_6, %c0_7], %7 {strides = array<i32>} : memref<32x128xf32, #tpu.memory_space<vmem>>, vector<32x128xf32>,
    %c0_i32_8 = arith.constant 0 : i32
    %9 = arith.cmpi eq, %arg2, %c0_i32_8 : i32
    %10 = arith.extui %9 : i1 to i32
    %c0_i32_9 = arith.constant 0 : i32
    %11 = arith.cmpi ne, %10, %c0_i32_9 : i32
    scf.if %11 {
      %c0_10 = arith.constant 0 : index
      %c0_11 = arith.constant 0 : index
      %12 = vector.load %arg7[%c0_10, %c0_11] : memref<32x128xf32, #tpu.memory_space<vmem>>, vector<32x128xf32>
      %13 = arith.truncf %12 : vector<32x128xf32> to vector<32x128xbf16>
      %c0_12 = arith.constant 0 : index
      %c0_13 = arith.constant 0 : index
      %14 = vector.load %arg5[%c0_12, %c0_13] : memref<32x128xbf16, #tpu.memory_space<vmem>>, vector<32x128xbf16>
      tpu.vector_store %arg5[%c0_12, %c0_13], %13 {strides = array<i32>} : memref<32x128xbf16, #tpu.memory_space<vmem>>, vector<32x128xbf16>,
      %cst_14 = arith.constant 0.000000e+00 : f32
      %15 = vector.broadcast %cst_14 : f32 to vector<8x128xf32>
      %c0_15 = arith.constant 0 : index
      %c0_16 = arith.constant 0 : index
      %16 = vector.load %arg6[%c0_15, %c0_16] : memref<8x128xf32, #tpu.memory_space<vmem>>, vector<8x128xf32>
      tpu.vector_store %arg6[%c0_15, %c0_16], %15 {strides = array<i32>} : memref<8x128xf32, #tpu.memory_space<vmem>>, vector<8x128xf32>,
      %cst_17 = arith.constant dense<0.000000e+00> : vector<128xf32>
      %17 = vector.multi_reduction <add>, %12, %cst_17 [0] : vector<32x128xf32> to vector<128xf32>
      %18 = vector.shape_cast %17 : vector<128xf32> to vector<1x128xf32>
      %c0_18 = arith.constant 0 : index
      %c0_19 = arith.constant 0 : index
      %19 = vector.load %arg6[%c0_18, %c0_19] : memref<8x128xf32, #tpu.memory_space<vmem>>, vector<1x128xf32>
      tpu.vector_store %arg6[%c0_18, %c0_19], %18 {strides = array<i32>} : memref<8x128xf32, #tpu.memory_space<vmem>>, vector<1x128xf32>,
      %20 = arith.mulf %12, %12 : vector<32x128xf32>
      %cst_20 = arith.constant dense<0.000000e+00> : vector<128xf32>
      %21 = vector.multi_reduction <add>, %20, %cst_20 [0] : vector<32x128xf32> to vector<128xf32>
      %22 = vector.shape_cast %21 : vector<128xf32> to vector<1x128xf32>
      %c1 = arith.constant 1 : index
      %c0_21 = arith.constant 0 : index
      %23 = vector.load %arg6[%c1, %c0_21] : memref<8x128xf32, #tpu.memory_space<vmem>>, vector<1x128xf32>
      tpu.vector_store %arg6[%c1, %c0_21], %22 {strides = array<i32>} : memref<8x128xf32, #tpu.memory_space<vmem>>, vector<1x128xf32>,
    } else {
    }
    return
  }
  func.func @transform_0(%arg0: i32, %arg1: i32, %arg2: i32) -> (i32, i32) {
    %c0_i32 = arith.constant 0 : i32
    return %arg0, %arg2 : i32, i32
  }
  func.func @transform_1(%arg0: i32, %arg1: i32, %arg2: i32) -> (i32, i32) {
    %c0_i32 = arith.constant 0 : i32
    return %arg2, %arg1 : i32, i32
  }
  func.func @transform_2(%arg0: i32, %arg1: i32, %arg2: i32) -> (i32, i32) {
    %c0_i32 = arith.constant 0 : i32
    return %arg0, %arg1 : i32, i32
  }
  func.func @transform_3(%arg0: i32, %arg1: i32, %arg2: i32) -> (i32, i32) {
    %c0_i32 = arith.constant 0 : i32
    return %arg0, %arg1 : i32, i32
  }
}

module attributes {stable_mosaic.version = 11 : i64} {
  func.func @_matmul_stats_kernel(%arg0: i32, %arg1: i32, %arg2: i32, %arg3: memref<128x640xbf16, #tpu.memory_space<vmem>>, %arg4: memref<640x128xbf16, #tpu.memory_space<vmem>>, %arg5: memref<128x128xbf16, #tpu.memory_space<vmem>>, %arg6: memref<8x128xf32, #tpu.memory_space<vmem>>, %arg7: memref<128x128xf32, #tpu.memory_space<vmem>>) attributes {dimension_semantics = [#tpu.dimension_semantics<parallel>, #tpu.dimension_semantics<parallel>, #tpu.dimension_semantics<arbitrary>], iteration_bounds = array<i64: 1, 1, 1>, scalar_prefetch = 0 : i64, scratch_operands = 1 : i64, tpu.core_type = #tpu.core_type<tc>, window_params = [{transform_indices = @transform_0, window_bounds = array<i64: 128, 640>}, {transform_indices = @transform_1, window_bounds = array<i64: 640, 128>}, {transform_indices = @transform_2, window_bounds = array<i64: 128, 128>}, {transform_indices = @transform_3, window_bounds = array<i64: 8, 128>}]} {
    %c0_i32 = arith.constant 0 : i32
    %0 = arith.cmpi eq, %arg2, %c0_i32 : i32
    %1 = arith.extui %0 : i1 to i32
    %c0_i32_0 = arith.constant 0 : i32
    %2 = arith.cmpi ne, %1, %c0_i32_0 : i32
    scf.if %2 {
      %cst_10 = arith.constant 0.000000e+00 : f32
      %12 = vector.broadcast %cst_10 : f32 to vector<128x128xf32>
      %c0_11 = arith.constant 0 : index
      %c0_12 = arith.constant 0 : index
      %13 = vector.load %arg7[%c0_11, %c0_12] : memref<128x128xf32, #tpu.memory_space<vmem>>, vector<128x128xf32>
      tpu.vector_store %arg7[%c0_11, %c0_12], %12 {strides = array<i32>} : memref<128x128xf32, #tpu.memory_space<vmem>>, vector<128x128xf32>,
    } else {
    }
    %c0 = arith.constant 0 : index
    %c0_1 = arith.constant 0 : index
    %3 = vector.load %arg7[%c0, %c0_1] : memref<128x128xf32, #tpu.memory_space<vmem>>, vector<128x128xf32>
    %c0_2 = arith.constant 0 : index
    %c0_3 = arith.constant 0 : index
    %4 = vector.load %arg3[%c0_2, %c0_3] : memref<128x640xbf16, #tpu.memory_space<vmem>>, vector<128x640xbf16>
    %c0_4 = arith.constant 0 : index
    %c0_5 = arith.constant 0 : index
    %5 = vector.load %arg4[%c0_4, %c0_5] : memref<640x128xbf16, #tpu.memory_space<vmem>>, vector<640x128xbf16>
    %cst = arith.constant dense<0.000000e+00> : vector<128x128xf32>
    %6 = tpu.matmul %4, %5, %cst {dimension_numbers = #tpu.dot_dimension_numbers<[1], [0], [0], [1], [0, 0, 1, 1], [], []>} : vector<128x640xbf16>, vector<640x128xbf16>, vector<128x128xf32> -> vector<128x128xf32>
    %7 = arith.addf %3, %6 : vector<128x128xf32>
    %c0_6 = arith.constant 0 : index
    %c0_7 = arith.constant 0 : index
    %8 = vector.load %arg7[%c0_6, %c0_7] : memref<128x128xf32, #tpu.memory_space<vmem>>, vector<128x128xf32>
    tpu.vector_store %arg7[%c0_6, %c0_7], %7 {strides = array<i32>} : memref<128x128xf32, #tpu.memory_space<vmem>>, vector<128x128xf32>,
    %c0_i32_8 = arith.constant 0 : i32
    %9 = arith.cmpi eq, %arg2, %c0_i32_8 : i32
    %10 = arith.extui %9 : i1 to i32
    %c0_i32_9 = arith.constant 0 : i32
    %11 = arith.cmpi ne, %10, %c0_i32_9 : i32
    scf.if %11 {
      %c0_10 = arith.constant 0 : index
      %c0_11 = arith.constant 0 : index
      %12 = vector.load %arg7[%c0_10, %c0_11] : memref<128x128xf32, #tpu.memory_space<vmem>>, vector<128x128xf32>
      %13 = arith.truncf %12 : vector<128x128xf32> to vector<128x128xbf16>
      %c0_12 = arith.constant 0 : index
      %c0_13 = arith.constant 0 : index
      %14 = vector.load %arg5[%c0_12, %c0_13] : memref<128x128xbf16, #tpu.memory_space<vmem>>, vector<128x128xbf16>
      tpu.vector_store %arg5[%c0_12, %c0_13], %13 {strides = array<i32>} : memref<128x128xbf16, #tpu.memory_space<vmem>>, vector<128x128xbf16>,
      %cst_14 = arith.constant 0.000000e+00 : f32
      %15 = vector.broadcast %cst_14 : f32 to vector<8x128xf32>
      %c0_15 = arith.constant 0 : index
      %c0_16 = arith.constant 0 : index
      %16 = vector.load %arg6[%c0_15, %c0_16] : memref<8x128xf32, #tpu.memory_space<vmem>>, vector<8x128xf32>
      tpu.vector_store %arg6[%c0_15, %c0_16], %15 {strides = array<i32>} : memref<8x128xf32, #tpu.memory_space<vmem>>, vector<8x128xf32>,
      %cst_17 = arith.constant dense<0.000000e+00> : vector<128xf32>
      %17 = vector.multi_reduction <add>, %12, %cst_17 [0] : vector<128x128xf32> to vector<128xf32>
      %18 = vector.shape_cast %17 : vector<128xf32> to vector<1x128xf32>
      %c0_18 = arith.constant 0 : index
      %c0_19 = arith.constant 0 : index
      %19 = vector.load %arg6[%c0_18, %c0_19] : memref<8x128xf32, #tpu.memory_space<vmem>>, vector<1x128xf32>
      tpu.vector_store %arg6[%c0_18, %c0_19], %18 {strides = array<i32>} : memref<8x128xf32, #tpu.memory_space<vmem>>, vector<1x128xf32>,
      %20 = arith.mulf %12, %12 : vector<128x128xf32>
      %cst_20 = arith.constant dense<0.000000e+00> : vector<128xf32>
      %21 = vector.multi_reduction <add>, %20, %cst_20 [0] : vector<128x128xf32> to vector<128xf32>
      %22 = vector.shape_cast %21 : vector<128xf32> to vector<1x128xf32>
      %c1 = arith.constant 1 : index
      %c0_21 = arith.constant 0 : index
      %23 = vector.load %arg6[%c1, %c0_21] : memref<8x128xf32, #tpu.memory_space<vmem>>, vector<1x128xf32>
      tpu.vector_store %arg6[%c1, %c0_21], %22 {strides = array<i32>} : memref<8x128xf32, #tpu.memory_space<vmem>>, vector<1x128xf32>,
    } else {
    }
    return
  }
  func.func @transform_0(%arg0: i32, %arg1: i32, %arg2: i32) -> (i32, i32) {
    %c0_i32 = arith.constant 0 : i32
    return %arg0, %arg2 : i32, i32
  }
  func.func @transform_1(%arg0: i32, %arg1: i32, %arg2: i32) -> (i32, i32) {
    %c0_i32 = arith.constant 0 : i32
    return %arg2, %arg1 : i32, i32
  }
  func.func @transform_2(%arg0: i32, %arg1: i32, %arg2: i32) -> (i32, i32) {
    %c0_i32 = arith.constant 0 : i32
    return %arg0, %arg1 : i32, i32
  }
  func.func @transform_3(%arg0: i32, %arg1: i32, %arg2: i32) -> (i32, i32) {
    %c0_i32 = arith.constant 0 : i32
    return %arg0, %arg1 : i32, i32
  }
}

module attributes {stable_mosaic.version = 11 : i64} {
  func.func @_matmul_stats_kernel(%arg0: i32, %arg1: i32, %arg2: i32, %arg3: memref<256x128xbf16, #tpu.memory_space<vmem>>, %arg4: memref<128x128xbf16, #tpu.memory_space<vmem>>, %arg5: memref<256x128xbf16, #tpu.memory_space<vmem>>, %arg6: memref<8x128xf32, #tpu.memory_space<vmem>>, %arg7: memref<256x128xf32, #tpu.memory_space<vmem>>) attributes {dimension_semantics = [#tpu.dimension_semantics<parallel>, #tpu.dimension_semantics<parallel>, #tpu.dimension_semantics<arbitrary>], iteration_bounds = array<i64: 2, 1, 1>, scalar_prefetch = 0 : i64, scratch_operands = 1 : i64, tpu.core_type = #tpu.core_type<tc>, window_params = [{transform_indices = @transform_0, window_bounds = array<i64: 256, 128>}, {transform_indices = @transform_1, window_bounds = array<i64: 128, 128>}, {transform_indices = @transform_2, window_bounds = array<i64: 256, 128>}, {transform_indices = @transform_3, window_bounds = array<i64: 8, 128>}]} {
    %c0_i32 = arith.constant 0 : i32
    %0 = arith.cmpi eq, %arg2, %c0_i32 : i32
    %1 = arith.extui %0 : i1 to i32
    %c0_i32_0 = arith.constant 0 : i32
    %2 = arith.cmpi ne, %1, %c0_i32_0 : i32
    scf.if %2 {
      %cst_10 = arith.constant 0.000000e+00 : f32
      %12 = vector.broadcast %cst_10 : f32 to vector<256x128xf32>
      %c0_11 = arith.constant 0 : index
      %c0_12 = arith.constant 0 : index
      %13 = vector.load %arg7[%c0_11, %c0_12] : memref<256x128xf32, #tpu.memory_space<vmem>>, vector<256x128xf32>
      tpu.vector_store %arg7[%c0_11, %c0_12], %12 {strides = array<i32>} : memref<256x128xf32, #tpu.memory_space<vmem>>, vector<256x128xf32>,
    } else {
    }
    %c0 = arith.constant 0 : index
    %c0_1 = arith.constant 0 : index
    %3 = vector.load %arg7[%c0, %c0_1] : memref<256x128xf32, #tpu.memory_space<vmem>>, vector<256x128xf32>
    %c0_2 = arith.constant 0 : index
    %c0_3 = arith.constant 0 : index
    %4 = vector.load %arg3[%c0_2, %c0_3] : memref<256x128xbf16, #tpu.memory_space<vmem>>, vector<256x128xbf16>
    %c0_4 = arith.constant 0 : index
    %c0_5 = arith.constant 0 : index
    %5 = vector.load %arg4[%c0_4, %c0_5] : memref<128x128xbf16, #tpu.memory_space<vmem>>, vector<128x128xbf16>
    %cst = arith.constant dense<0.000000e+00> : vector<256x128xf32>
    %6 = tpu.matmul %4, %5, %cst {dimension_numbers = #tpu.dot_dimension_numbers<[1], [0], [0], [1], [0, 0, 1, 1], [], []>} : vector<256x128xbf16>, vector<128x128xbf16>, vector<256x128xf32> -> vector<256x128xf32>
    %7 = arith.addf %3, %6 : vector<256x128xf32>
    %c0_6 = arith.constant 0 : index
    %c0_7 = arith.constant 0 : index
    %8 = vector.load %arg7[%c0_6, %c0_7] : memref<256x128xf32, #tpu.memory_space<vmem>>, vector<256x128xf32>
    tpu.vector_store %arg7[%c0_6, %c0_7], %7 {strides = array<i32>} : memref<256x128xf32, #tpu.memory_space<vmem>>, vector<256x128xf32>,
    %c0_i32_8 = arith.constant 0 : i32
    %9 = arith.cmpi eq, %arg2, %c0_i32_8 : i32
    %10 = arith.extui %9 : i1 to i32
    %c0_i32_9 = arith.constant 0 : i32
    %11 = arith.cmpi ne, %10, %c0_i32_9 : i32
    scf.if %11 {
      %c0_10 = arith.constant 0 : index
      %c0_11 = arith.constant 0 : index
      %12 = vector.load %arg7[%c0_10, %c0_11] : memref<256x128xf32, #tpu.memory_space<vmem>>, vector<256x128xf32>
      %13 = arith.truncf %12 : vector<256x128xf32> to vector<256x128xbf16>
      %c0_12 = arith.constant 0 : index
      %c0_13 = arith.constant 0 : index
      %14 = vector.load %arg5[%c0_12, %c0_13] : memref<256x128xbf16, #tpu.memory_space<vmem>>, vector<256x128xbf16>
      tpu.vector_store %arg5[%c0_12, %c0_13], %13 {strides = array<i32>} : memref<256x128xbf16, #tpu.memory_space<vmem>>, vector<256x128xbf16>,
      %cst_14 = arith.constant 0.000000e+00 : f32
      %15 = vector.broadcast %cst_14 : f32 to vector<8x128xf32>
      %c0_15 = arith.constant 0 : index
      %c0_16 = arith.constant 0 : index
      %16 = vector.load %arg6[%c0_15, %c0_16] : memref<8x128xf32, #tpu.memory_space<vmem>>, vector<8x128xf32>
      tpu.vector_store %arg6[%c0_15, %c0_16], %15 {strides = array<i32>} : memref<8x128xf32, #tpu.memory_space<vmem>>, vector<8x128xf32>,
      %cst_17 = arith.constant dense<0.000000e+00> : vector<128xf32>
      %17 = vector.multi_reduction <add>, %12, %cst_17 [0] : vector<256x128xf32> to vector<128xf32>
      %18 = vector.shape_cast %17 : vector<128xf32> to vector<1x128xf32>
      %c0_18 = arith.constant 0 : index
      %c0_19 = arith.constant 0 : index
      %19 = vector.load %arg6[%c0_18, %c0_19] : memref<8x128xf32, #tpu.memory_space<vmem>>, vector<1x128xf32>
      tpu.vector_store %arg6[%c0_18, %c0_19], %18 {strides = array<i32>} : memref<8x128xf32, #tpu.memory_space<vmem>>, vector<1x128xf32>,
      %20 = arith.mulf %12, %12 : vector<256x128xf32>
      %cst_20 = arith.constant dense<0.000000e+00> : vector<128xf32>
      %21 = vector.multi_reduction <add>, %20, %cst_20 [0] : vector<256x128xf32> to vector<128xf32>
      %22 = vector.shape_cast %21 : vector<128xf32> to vector<1x128xf32>
      %c1 = arith.constant 1 : index
      %c0_21 = arith.constant 0 : index
      %23 = vector.load %arg6[%c1, %c0_21] : memref<8x128xf32, #tpu.memory_space<vmem>>, vector<1x128xf32>
      tpu.vector_store %arg6[%c1, %c0_21], %22 {strides = array<i32>} : memref<8x128xf32, #tpu.memory_space<vmem>>, vector<1x128xf32>,
    } else {
    }
    return
  }
  func.func @transform_0(%arg0: i32, %arg1: i32, %arg2: i32) -> (i32, i32) {
    %c0_i32 = arith.constant 0 : i32
    return %arg0, %arg2 : i32, i32
  }
  func.func @transform_1(%arg0: i32, %arg1: i32, %arg2: i32) -> (i32, i32) {
    %c0_i32 = arith.constant 0 : i32
    return %arg2, %arg1 : i32, i32
  }
  func.func @transform_2(%arg0: i32, %arg1: i32, %arg2: i32) -> (i32, i32) {
    %c0_i32 = arith.constant 0 : i32
    return %arg0, %arg1 : i32, i32
  }
  func.func @transform_3(%arg0: i32, %arg1: i32, %arg2: i32) -> (i32, i32) {
    %c0_i32 = arith.constant 0 : i32
    return %arg0, %arg1 : i32, i32
  }
}

module attributes {stable_mosaic.version = 11 : i64} {
  func.func @_bn_leaky_kernel(%arg0: i32, %arg1: memref<256x128xbf16, #tpu.memory_space<vmem>>, %arg2: memref<1x128xf32, #tpu.memory_space<vmem>>, %arg3: memref<1x128xf32, #tpu.memory_space<vmem>>, %arg4: memref<256x128xbf16, #tpu.memory_space<vmem>>) attributes {dimension_semantics = [#tpu.dimension_semantics<parallel>], iteration_bounds = array<i64: 2>, scalar_prefetch = 0 : i64, scratch_operands = 0 : i64, tpu.core_type = #tpu.core_type<tc>, window_params = [{transform_indices = @transform_0, window_bounds = array<i64: 256, 128>}, {pipeline_mode = #tpu.pipeline_mode<synchronous>, transform_indices = @transform_1, window_bounds = array<i64: 1, 128>}, {pipeline_mode = #tpu.pipeline_mode<synchronous>, transform_indices = @transform_2, window_bounds = array<i64: 1, 128>}, {transform_indices = @transform_3, window_bounds = array<i64: 256, 128>}]} {
    %c0 = arith.constant 0 : index
    %c0_0 = arith.constant 0 : index
    %0 = vector.load %arg1[%c0, %c0_0] : memref<256x128xbf16, #tpu.memory_space<vmem>>, vector<256x128xbf16>
    %1 = arith.extf %0 : vector<256x128xbf16> to vector<256x128xf32>
    %c0_1 = arith.constant 0 : index
    %c0_2 = arith.constant 0 : index
    %2 = vector.load %arg2[%c0_1, %c0_2] : memref<1x128xf32, #tpu.memory_space<vmem>>, vector<1x128xf32>
    %3 = vector.broadcast %2 : vector<1x128xf32> to vector<256x128xf32>
    %4 = arith.mulf %1, %3 : vector<256x128xf32>
    %c0_3 = arith.constant 0 : index
    %c0_4 = arith.constant 0 : index
    %5 = vector.load %arg3[%c0_3, %c0_4] : memref<1x128xf32, #tpu.memory_space<vmem>>, vector<1x128xf32>
    %6 = vector.broadcast %5 : vector<1x128xf32> to vector<256x128xf32>
    %7 = arith.addf %4, %6 : vector<256x128xf32>
    %cst = arith.constant 0.000000e+00 : f32
    %8 = vector.broadcast %cst : f32 to vector<256x128xf32>
    %9 = arith.cmpf oge, %7, %8 : vector<256x128xf32>
    %cst_5 = arith.constant 1.000000e-01 : f32
    %10 = vector.broadcast %cst_5 : f32 to vector<256x128xf32>
    %11 = arith.mulf %10, %7 : vector<256x128xf32>
    %12 = arith.select %9, %7, %11 : vector<256x128xi1>, vector<256x128xf32>
    %13 = arith.truncf %12 : vector<256x128xf32> to vector<256x128xbf16>
    %c0_6 = arith.constant 0 : index
    %c0_7 = arith.constant 0 : index
    %14 = vector.load %arg4[%c0_6, %c0_7] : memref<256x128xbf16, #tpu.memory_space<vmem>>, vector<256x128xbf16>
    tpu.vector_store %arg4[%c0_6, %c0_7], %13 {strides = array<i32>} : memref<256x128xbf16, #tpu.memory_space<vmem>>, vector<256x128xbf16>,
    return
  }
  func.func @transform_0(%arg0: i32) -> (i32, i32) {
    %c0_i32 = arith.constant 0 : i32
    %c0_i32_0 = arith.constant 0 : i32
    return %arg0, %c0_i32 : i32, i32
  }
  func.func @transform_1(%arg0: i32) -> (i32, i32) {
    %c0_i32 = arith.constant 0 : i32
    %c0_i32_0 = arith.constant 0 : i32
    %c0_i32_1 = arith.constant 0 : i32
    return %c0_i32, %c0_i32_0 : i32, i32
  }
  func.func @transform_2(%arg0: i32) -> (i32, i32) {
    %c0_i32 = arith.constant 0 : i32
    %c0_i32_0 = arith.constant 0 : i32
    %c0_i32_1 = arith.constant 0 : i32
    return %c0_i32, %c0_i32_0 : i32, i32
  }
  func.func @transform_3(%arg0: i32) -> (i32, i32) {
    %c0_i32 = arith.constant 0 : i32
    %c0_i32_0 = arith.constant 0 : i32
    return %arg0, %c0_i32 : i32, i32
  }
}

module attributes {stable_mosaic.version = 11 : i64} {
  func.func @_matmul_stats_kernel(%arg0: i32, %arg1: i32, %arg2: i32, %arg3: memref<256x384xbf16, #tpu.memory_space<vmem>>, %arg4: memref<384x128xbf16, #tpu.memory_space<vmem>>, %arg5: memref<256x128xbf16, #tpu.memory_space<vmem>>, %arg6: memref<8x128xf32, #tpu.memory_space<vmem>>, %arg7: memref<256x128xf32, #tpu.memory_space<vmem>>) attributes {dimension_semantics = [#tpu.dimension_semantics<parallel>, #tpu.dimension_semantics<parallel>, #tpu.dimension_semantics<arbitrary>], iteration_bounds = array<i64: 2, 1, 1>, scalar_prefetch = 0 : i64, scratch_operands = 1 : i64, tpu.core_type = #tpu.core_type<tc>, window_params = [{transform_indices = @transform_0, window_bounds = array<i64: 256, 384>}, {transform_indices = @transform_1, window_bounds = array<i64: 384, 128>}, {transform_indices = @transform_2, window_bounds = array<i64: 256, 128>}, {transform_indices = @transform_3, window_bounds = array<i64: 8, 128>}]} {
    %c0_i32 = arith.constant 0 : i32
    %0 = arith.cmpi eq, %arg2, %c0_i32 : i32
    %1 = arith.extui %0 : i1 to i32
    %c0_i32_0 = arith.constant 0 : i32
    %2 = arith.cmpi ne, %1, %c0_i32_0 : i32
    scf.if %2 {
      %cst_10 = arith.constant 0.000000e+00 : f32
      %12 = vector.broadcast %cst_10 : f32 to vector<256x128xf32>
      %c0_11 = arith.constant 0 : index
      %c0_12 = arith.constant 0 : index
      %13 = vector.load %arg7[%c0_11, %c0_12] : memref<256x128xf32, #tpu.memory_space<vmem>>, vector<256x128xf32>
      tpu.vector_store %arg7[%c0_11, %c0_12], %12 {strides = array<i32>} : memref<256x128xf32, #tpu.memory_space<vmem>>, vector<256x128xf32>,
    } else {
    }
    %c0 = arith.constant 0 : index
    %c0_1 = arith.constant 0 : index
    %3 = vector.load %arg7[%c0, %c0_1] : memref<256x128xf32, #tpu.memory_space<vmem>>, vector<256x128xf32>
    %c0_2 = arith.constant 0 : index
    %c0_3 = arith.constant 0 : index
    %4 = vector.load %arg3[%c0_2, %c0_3] : memref<256x384xbf16, #tpu.memory_space<vmem>>, vector<256x384xbf16>
    %c0_4 = arith.constant 0 : index
    %c0_5 = arith.constant 0 : index
    %5 = vector.load %arg4[%c0_4, %c0_5] : memref<384x128xbf16, #tpu.memory_space<vmem>>, vector<384x128xbf16>
    %cst = arith.constant dense<0.000000e+00> : vector<256x128xf32>
    %6 = tpu.matmul %4, %5, %cst {dimension_numbers = #tpu.dot_dimension_numbers<[1], [0], [0], [1], [0, 0, 1, 1], [], []>} : vector<256x384xbf16>, vector<384x128xbf16>, vector<256x128xf32> -> vector<256x128xf32>
    %7 = arith.addf %3, %6 : vector<256x128xf32>
    %c0_6 = arith.constant 0 : index
    %c0_7 = arith.constant 0 : index
    %8 = vector.load %arg7[%c0_6, %c0_7] : memref<256x128xf32, #tpu.memory_space<vmem>>, vector<256x128xf32>
    tpu.vector_store %arg7[%c0_6, %c0_7], %7 {strides = array<i32>} : memref<256x128xf32, #tpu.memory_space<vmem>>, vector<256x128xf32>,
    %c0_i32_8 = arith.constant 0 : i32
    %9 = arith.cmpi eq, %arg2, %c0_i32_8 : i32
    %10 = arith.extui %9 : i1 to i32
    %c0_i32_9 = arith.constant 0 : i32
    %11 = arith.cmpi ne, %10, %c0_i32_9 : i32
    scf.if %11 {
      %c0_10 = arith.constant 0 : index
      %c0_11 = arith.constant 0 : index
      %12 = vector.load %arg7[%c0_10, %c0_11] : memref<256x128xf32, #tpu.memory_space<vmem>>, vector<256x128xf32>
      %13 = arith.truncf %12 : vector<256x128xf32> to vector<256x128xbf16>
      %c0_12 = arith.constant 0 : index
      %c0_13 = arith.constant 0 : index
      %14 = vector.load %arg5[%c0_12, %c0_13] : memref<256x128xbf16, #tpu.memory_space<vmem>>, vector<256x128xbf16>
      tpu.vector_store %arg5[%c0_12, %c0_13], %13 {strides = array<i32>} : memref<256x128xbf16, #tpu.memory_space<vmem>>, vector<256x128xbf16>,
      %cst_14 = arith.constant 0.000000e+00 : f32
      %15 = vector.broadcast %cst_14 : f32 to vector<8x128xf32>
      %c0_15 = arith.constant 0 : index
      %c0_16 = arith.constant 0 : index
      %16 = vector.load %arg6[%c0_15, %c0_16] : memref<8x128xf32, #tpu.memory_space<vmem>>, vector<8x128xf32>
      tpu.vector_store %arg6[%c0_15, %c0_16], %15 {strides = array<i32>} : memref<8x128xf32, #tpu.memory_space<vmem>>, vector<8x128xf32>,
      %cst_17 = arith.constant dense<0.000000e+00> : vector<128xf32>
      %17 = vector.multi_reduction <add>, %12, %cst_17 [0] : vector<256x128xf32> to vector<128xf32>
      %18 = vector.shape_cast %17 : vector<128xf32> to vector<1x128xf32>
      %c0_18 = arith.constant 0 : index
      %c0_19 = arith.constant 0 : index
      %19 = vector.load %arg6[%c0_18, %c0_19] : memref<8x128xf32, #tpu.memory_space<vmem>>, vector<1x128xf32>
      tpu.vector_store %arg6[%c0_18, %c0_19], %18 {strides = array<i32>} : memref<8x128xf32, #tpu.memory_space<vmem>>, vector<1x128xf32>,
      %20 = arith.mulf %12, %12 : vector<256x128xf32>
      %cst_20 = arith.constant dense<0.000000e+00> : vector<128xf32>
      %21 = vector.multi_reduction <add>, %20, %cst_20 [0] : vector<256x128xf32> to vector<128xf32>
      %22 = vector.shape_cast %21 : vector<128xf32> to vector<1x128xf32>
      %c1 = arith.constant 1 : index
      %c0_21 = arith.constant 0 : index
      %23 = vector.load %arg6[%c1, %c0_21] : memref<8x128xf32, #tpu.memory_space<vmem>>, vector<1x128xf32>
      tpu.vector_store %arg6[%c1, %c0_21], %22 {strides = array<i32>} : memref<8x128xf32, #tpu.memory_space<vmem>>, vector<1x128xf32>,
    } else {
    }
    return
  }
  func.func @transform_0(%arg0: i32, %arg1: i32, %arg2: i32) -> (i32, i32) {
    %c0_i32 = arith.constant 0 : i32
    return %arg0, %arg2 : i32, i32
  }
  func.func @transform_1(%arg0: i32, %arg1: i32, %arg2: i32) -> (i32, i32) {
    %c0_i32 = arith.constant 0 : i32
    return %arg2, %arg1 : i32, i32
  }
  func.func @transform_2(%arg0: i32, %arg1: i32, %arg2: i32) -> (i32, i32) {
    %c0_i32 = arith.constant 0 : i32
    return %arg0, %arg1 : i32, i32
  }
  func.func @transform_3(%arg0: i32, %arg1: i32, %arg2: i32) -> (i32, i32) {
    %c0_i32 = arith.constant 0 : i32
    return %arg0, %arg1 : i32, i32
  }
}

module attributes {stable_mosaic.version = 11 : i64} {
  func.func @_matmul_stats_kernel(%arg0: i32, %arg1: i32, %arg2: i32, %arg3: memref<128x384xbf16, #tpu.memory_space<vmem>>, %arg4: memref<384x128xbf16, #tpu.memory_space<vmem>>, %arg5: memref<128x128xbf16, #tpu.memory_space<vmem>>, %arg6: memref<8x128xf32, #tpu.memory_space<vmem>>, %arg7: memref<128x128xf32, #tpu.memory_space<vmem>>) attributes {dimension_semantics = [#tpu.dimension_semantics<parallel>, #tpu.dimension_semantics<parallel>, #tpu.dimension_semantics<arbitrary>], iteration_bounds = array<i64: 1, 1, 1>, scalar_prefetch = 0 : i64, scratch_operands = 1 : i64, tpu.core_type = #tpu.core_type<tc>, window_params = [{transform_indices = @transform_0, window_bounds = array<i64: 128, 384>}, {transform_indices = @transform_1, window_bounds = array<i64: 384, 128>}, {transform_indices = @transform_2, window_bounds = array<i64: 128, 128>}, {transform_indices = @transform_3, window_bounds = array<i64: 8, 128>}]} {
    %c0_i32 = arith.constant 0 : i32
    %0 = arith.cmpi eq, %arg2, %c0_i32 : i32
    %1 = arith.extui %0 : i1 to i32
    %c0_i32_0 = arith.constant 0 : i32
    %2 = arith.cmpi ne, %1, %c0_i32_0 : i32
    scf.if %2 {
      %cst_10 = arith.constant 0.000000e+00 : f32
      %12 = vector.broadcast %cst_10 : f32 to vector<128x128xf32>
      %c0_11 = arith.constant 0 : index
      %c0_12 = arith.constant 0 : index
      %13 = vector.load %arg7[%c0_11, %c0_12] : memref<128x128xf32, #tpu.memory_space<vmem>>, vector<128x128xf32>
      tpu.vector_store %arg7[%c0_11, %c0_12], %12 {strides = array<i32>} : memref<128x128xf32, #tpu.memory_space<vmem>>, vector<128x128xf32>,
    } else {
    }
    %c0 = arith.constant 0 : index
    %c0_1 = arith.constant 0 : index
    %3 = vector.load %arg7[%c0, %c0_1] : memref<128x128xf32, #tpu.memory_space<vmem>>, vector<128x128xf32>
    %c0_2 = arith.constant 0 : index
    %c0_3 = arith.constant 0 : index
    %4 = vector.load %arg3[%c0_2, %c0_3] : memref<128x384xbf16, #tpu.memory_space<vmem>>, vector<128x384xbf16>
    %c0_4 = arith.constant 0 : index
    %c0_5 = arith.constant 0 : index
    %5 = vector.load %arg4[%c0_4, %c0_5] : memref<384x128xbf16, #tpu.memory_space<vmem>>, vector<384x128xbf16>
    %cst = arith.constant dense<0.000000e+00> : vector<128x128xf32>
    %6 = tpu.matmul %4, %5, %cst {dimension_numbers = #tpu.dot_dimension_numbers<[1], [0], [0], [1], [0, 0, 1, 1], [], []>} : vector<128x384xbf16>, vector<384x128xbf16>, vector<128x128xf32> -> vector<128x128xf32>
    %7 = arith.addf %3, %6 : vector<128x128xf32>
    %c0_6 = arith.constant 0 : index
    %c0_7 = arith.constant 0 : index
    %8 = vector.load %arg7[%c0_6, %c0_7] : memref<128x128xf32, #tpu.memory_space<vmem>>, vector<128x128xf32>
    tpu.vector_store %arg7[%c0_6, %c0_7], %7 {strides = array<i32>} : memref<128x128xf32, #tpu.memory_space<vmem>>, vector<128x128xf32>,
    %c0_i32_8 = arith.constant 0 : i32
    %9 = arith.cmpi eq, %arg2, %c0_i32_8 : i32
    %10 = arith.extui %9 : i1 to i32
    %c0_i32_9 = arith.constant 0 : i32
    %11 = arith.cmpi ne, %10, %c0_i32_9 : i32
    scf.if %11 {
      %c0_10 = arith.constant 0 : index
      %c0_11 = arith.constant 0 : index
      %12 = vector.load %arg7[%c0_10, %c0_11] : memref<128x128xf32, #tpu.memory_space<vmem>>, vector<128x128xf32>
      %13 = arith.truncf %12 : vector<128x128xf32> to vector<128x128xbf16>
      %c0_12 = arith.constant 0 : index
      %c0_13 = arith.constant 0 : index
      %14 = vector.load %arg5[%c0_12, %c0_13] : memref<128x128xbf16, #tpu.memory_space<vmem>>, vector<128x128xbf16>
      tpu.vector_store %arg5[%c0_12, %c0_13], %13 {strides = array<i32>} : memref<128x128xbf16, #tpu.memory_space<vmem>>, vector<128x128xbf16>,
      %cst_14 = arith.constant 0.000000e+00 : f32
      %15 = vector.broadcast %cst_14 : f32 to vector<8x128xf32>
      %c0_15 = arith.constant 0 : index
      %c0_16 = arith.constant 0 : index
      %16 = vector.load %arg6[%c0_15, %c0_16] : memref<8x128xf32, #tpu.memory_space<vmem>>, vector<8x128xf32>
      tpu.vector_store %arg6[%c0_15, %c0_16], %15 {strides = array<i32>} : memref<8x128xf32, #tpu.memory_space<vmem>>, vector<8x128xf32>,
      %cst_17 = arith.constant dense<0.000000e+00> : vector<128xf32>
      %17 = vector.multi_reduction <add>, %12, %cst_17 [0] : vector<128x128xf32> to vector<128xf32>
      %18 = vector.shape_cast %17 : vector<128xf32> to vector<1x128xf32>
      %c0_18 = arith.constant 0 : index
      %c0_19 = arith.constant 0 : index
      %19 = vector.load %arg6[%c0_18, %c0_19] : memref<8x128xf32, #tpu.memory_space<vmem>>, vector<1x128xf32>
      tpu.vector_store %arg6[%c0_18, %c0_19], %18 {strides = array<i32>} : memref<8x128xf32, #tpu.memory_space<vmem>>, vector<1x128xf32>,
      %20 = arith.mulf %12, %12 : vector<128x128xf32>
      %cst_20 = arith.constant dense<0.000000e+00> : vector<128xf32>
      %21 = vector.multi_reduction <add>, %20, %cst_20 [0] : vector<128x128xf32> to vector<128xf32>
      %22 = vector.shape_cast %21 : vector<128xf32> to vector<1x128xf32>
      %c1 = arith.constant 1 : index
      %c0_21 = arith.constant 0 : index
      %23 = vector.load %arg6[%c1, %c0_21] : memref<8x128xf32, #tpu.memory_space<vmem>>, vector<1x128xf32>
      tpu.vector_store %arg6[%c1, %c0_21], %22 {strides = array<i32>} : memref<8x128xf32, #tpu.memory_space<vmem>>, vector<1x128xf32>,
    } else {
    }
    return
  }
  func.func @transform_0(%arg0: i32, %arg1: i32, %arg2: i32) -> (i32, i32) {
    %c0_i32 = arith.constant 0 : i32
    return %arg0, %arg2 : i32, i32
  }
  func.func @transform_1(%arg0: i32, %arg1: i32, %arg2: i32) -> (i32, i32) {
    %c0_i32 = arith.constant 0 : i32
    return %arg2, %arg1 : i32, i32
  }
  func.func @transform_2(%arg0: i32, %arg1: i32, %arg2: i32) -> (i32, i32) {
    %c0_i32 = arith.constant 0 : i32
    return %arg0, %arg1 : i32, i32
  }
  func.func @transform_3(%arg0: i32, %arg1: i32, %arg2: i32) -> (i32, i32) {
    %c0_i32 = arith.constant 0 : i32
    return %arg0, %arg1 : i32, i32
  }
}

module attributes {stable_mosaic.version = 11 : i64} {
  func.func @_matmul_bias_kernel(%arg0: i32, %arg1: i32, %arg2: i32, %arg3: memref<256x128xbf16, #tpu.memory_space<vmem>>, %arg4: memref<128x128xbf16, #tpu.memory_space<vmem>>, %arg5: memref<1x128xf32, #tpu.memory_space<vmem>>, %arg6: memref<256x128xf32, #tpu.memory_space<vmem>>, %arg7: memref<256x128xf32, #tpu.memory_space<vmem>>) attributes {dimension_semantics = [#tpu.dimension_semantics<parallel>, #tpu.dimension_semantics<parallel>, #tpu.dimension_semantics<arbitrary>], iteration_bounds = array<i64: 2, 1, 1>, scalar_prefetch = 0 : i64, scratch_operands = 1 : i64, tpu.core_type = #tpu.core_type<tc>, window_params = [{transform_indices = @transform_0, window_bounds = array<i64: 256, 128>}, {transform_indices = @transform_1, window_bounds = array<i64: 128, 128>}, {transform_indices = @transform_2, window_bounds = array<i64: 1, 128>}, {transform_indices = @transform_3, window_bounds = array<i64: 256, 128>}]} {
    %c0_i32 = arith.constant 0 : i32
    %0 = arith.cmpi eq, %arg2, %c0_i32 : i32
    %1 = arith.extui %0 : i1 to i32
    %c0_i32_0 = arith.constant 0 : i32
    %2 = arith.cmpi ne, %1, %c0_i32_0 : i32
    scf.if %2 {
      %cst_10 = arith.constant 0.000000e+00 : f32
      %12 = vector.broadcast %cst_10 : f32 to vector<256x128xf32>
      %c0_11 = arith.constant 0 : index
      %c0_12 = arith.constant 0 : index
      %13 = vector.load %arg7[%c0_11, %c0_12] : memref<256x128xf32, #tpu.memory_space<vmem>>, vector<256x128xf32>
      tpu.vector_store %arg7[%c0_11, %c0_12], %12 {strides = array<i32>} : memref<256x128xf32, #tpu.memory_space<vmem>>, vector<256x128xf32>,
    } else {
    }
    %c0 = arith.constant 0 : index
    %c0_1 = arith.constant 0 : index
    %3 = vector.load %arg7[%c0, %c0_1] : memref<256x128xf32, #tpu.memory_space<vmem>>, vector<256x128xf32>
    %c0_2 = arith.constant 0 : index
    %c0_3 = arith.constant 0 : index
    %4 = vector.load %arg3[%c0_2, %c0_3] : memref<256x128xbf16, #tpu.memory_space<vmem>>, vector<256x128xbf16>
    %c0_4 = arith.constant 0 : index
    %c0_5 = arith.constant 0 : index
    %5 = vector.load %arg4[%c0_4, %c0_5] : memref<128x128xbf16, #tpu.memory_space<vmem>>, vector<128x128xbf16>
    %cst = arith.constant dense<0.000000e+00> : vector<256x128xf32>
    %6 = tpu.matmul %4, %5, %cst {dimension_numbers = #tpu.dot_dimension_numbers<[1], [0], [0], [1], [0, 0, 1, 1], [], []>} : vector<256x128xbf16>, vector<128x128xbf16>, vector<256x128xf32> -> vector<256x128xf32>
    %7 = arith.addf %3, %6 : vector<256x128xf32>
    %c0_6 = arith.constant 0 : index
    %c0_7 = arith.constant 0 : index
    %8 = vector.load %arg7[%c0_6, %c0_7] : memref<256x128xf32, #tpu.memory_space<vmem>>, vector<256x128xf32>
    tpu.vector_store %arg7[%c0_6, %c0_7], %7 {strides = array<i32>} : memref<256x128xf32, #tpu.memory_space<vmem>>, vector<256x128xf32>,
    %c0_i32_8 = arith.constant 0 : i32
    %9 = arith.cmpi eq, %arg2, %c0_i32_8 : i32
    %10 = arith.extui %9 : i1 to i32
    %c0_i32_9 = arith.constant 0 : i32
    %11 = arith.cmpi ne, %10, %c0_i32_9 : i32
    scf.if %11 {
      %c0_10 = arith.constant 0 : index
      %c0_11 = arith.constant 0 : index
      %12 = vector.load %arg7[%c0_10, %c0_11] : memref<256x128xf32, #tpu.memory_space<vmem>>, vector<256x128xf32>
      %c0_12 = arith.constant 0 : index
      %c0_13 = arith.constant 0 : index
      %13 = vector.load %arg5[%c0_12, %c0_13] : memref<1x128xf32, #tpu.memory_space<vmem>>, vector<1x128xf32>
      %14 = vector.broadcast %13 : vector<1x128xf32> to vector<256x128xf32>
      %15 = arith.addf %12, %14 : vector<256x128xf32>
      %c0_14 = arith.constant 0 : index
      %c0_15 = arith.constant 0 : index
      %16 = vector.load %arg6[%c0_14, %c0_15] : memref<256x128xf32, #tpu.memory_space<vmem>>, vector<256x128xf32>
      tpu.vector_store %arg6[%c0_14, %c0_15], %15 {strides = array<i32>} : memref<256x128xf32, #tpu.memory_space<vmem>>, vector<256x128xf32>,
    } else {
    }
    return
  }
  func.func @transform_0(%arg0: i32, %arg1: i32, %arg2: i32) -> (i32, i32) {
    %c0_i32 = arith.constant 0 : i32
    return %arg0, %arg2 : i32, i32
  }
  func.func @transform_1(%arg0: i32, %arg1: i32, %arg2: i32) -> (i32, i32) {
    %c0_i32 = arith.constant 0 : i32
    return %arg2, %arg1 : i32, i32
  }
  func.func @transform_2(%arg0: i32, %arg1: i32, %arg2: i32) -> (i32, i32) {
    %c0_i32 = arith.constant 0 : i32
    %c0_i32_0 = arith.constant 0 : i32
    return %c0_i32, %arg1 : i32, i32
  }
  func.func @transform_3(%arg0: i32, %arg1: i32, %arg2: i32) -> (i32, i32) {
    %c0_i32 = arith.constant 0 : i32
    return %arg0, %arg1 : i32, i32
  }
}

module attributes {stable_mosaic.version = 11 : i64} {
  func.func @_matmul_bias_kernel(%arg0: i32, %arg1: i32, %arg2: i32, %arg3: memref<128x128xbf16, #tpu.memory_space<vmem>>, %arg4: memref<128x128xbf16, #tpu.memory_space<vmem>>, %arg5: memref<1x128xf32, #tpu.memory_space<vmem>>, %arg6: memref<128x128xf32, #tpu.memory_space<vmem>>, %arg7: memref<128x128xf32, #tpu.memory_space<vmem>>) attributes {dimension_semantics = [#tpu.dimension_semantics<parallel>, #tpu.dimension_semantics<parallel>, #tpu.dimension_semantics<arbitrary>], iteration_bounds = array<i64: 1, 1, 1>, scalar_prefetch = 0 : i64, scratch_operands = 1 : i64, tpu.core_type = #tpu.core_type<tc>, window_params = [{transform_indices = @transform_0, window_bounds = array<i64: 128, 128>}, {transform_indices = @transform_1, window_bounds = array<i64: 128, 128>}, {transform_indices = @transform_2, window_bounds = array<i64: 1, 128>}, {transform_indices = @transform_3, window_bounds = array<i64: 128, 128>}]} {
    %c0_i32 = arith.constant 0 : i32
    %0 = arith.cmpi eq, %arg2, %c0_i32 : i32
    %1 = arith.extui %0 : i1 to i32
    %c0_i32_0 = arith.constant 0 : i32
    %2 = arith.cmpi ne, %1, %c0_i32_0 : i32
    scf.if %2 {
      %cst_10 = arith.constant 0.000000e+00 : f32
      %12 = vector.broadcast %cst_10 : f32 to vector<128x128xf32>
      %c0_11 = arith.constant 0 : index
      %c0_12 = arith.constant 0 : index
      %13 = vector.load %arg7[%c0_11, %c0_12] : memref<128x128xf32, #tpu.memory_space<vmem>>, vector<128x128xf32>
      tpu.vector_store %arg7[%c0_11, %c0_12], %12 {strides = array<i32>} : memref<128x128xf32, #tpu.memory_space<vmem>>, vector<128x128xf32>,
    } else {
    }
    %c0 = arith.constant 0 : index
    %c0_1 = arith.constant 0 : index
    %3 = vector.load %arg7[%c0, %c0_1] : memref<128x128xf32, #tpu.memory_space<vmem>>, vector<128x128xf32>
    %c0_2 = arith.constant 0 : index
    %c0_3 = arith.constant 0 : index
    %4 = vector.load %arg3[%c0_2, %c0_3] : memref<128x128xbf16, #tpu.memory_space<vmem>>, vector<128x128xbf16>
    %c0_4 = arith.constant 0 : index
    %c0_5 = arith.constant 0 : index
    %5 = vector.load %arg4[%c0_4, %c0_5] : memref<128x128xbf16, #tpu.memory_space<vmem>>, vector<128x128xbf16>
    %cst = arith.constant dense<0.000000e+00> : vector<128x128xf32>
    %6 = tpu.matmul %4, %5, %cst {dimension_numbers = #tpu.dot_dimension_numbers<[1], [0], [0], [1], [0, 0, 1, 1], [], []>} : vector<128x128xbf16>, vector<128x128xbf16>, vector<128x128xf32> -> vector<128x128xf32>
    %7 = arith.addf %3, %6 : vector<128x128xf32>
    %c0_6 = arith.constant 0 : index
    %c0_7 = arith.constant 0 : index
    %8 = vector.load %arg7[%c0_6, %c0_7] : memref<128x128xf32, #tpu.memory_space<vmem>>, vector<128x128xf32>
    tpu.vector_store %arg7[%c0_6, %c0_7], %7 {strides = array<i32>} : memref<128x128xf32, #tpu.memory_space<vmem>>, vector<128x128xf32>,
    %c0_i32_8 = arith.constant 0 : i32
    %9 = arith.cmpi eq, %arg2, %c0_i32_8 : i32
    %10 = arith.extui %9 : i1 to i32
    %c0_i32_9 = arith.constant 0 : i32
    %11 = arith.cmpi ne, %10, %c0_i32_9 : i32
    scf.if %11 {
      %c0_10 = arith.constant 0 : index
      %c0_11 = arith.constant 0 : index
      %12 = vector.load %arg7[%c0_10, %c0_11] : memref<128x128xf32, #tpu.memory_space<vmem>>, vector<128x128xf32>
      %c0_12 = arith.constant 0 : index
      %c0_13 = arith.constant 0 : index
      %13 = vector.load %arg5[%c0_12, %c0_13] : memref<1x128xf32, #tpu.memory_space<vmem>>, vector<1x128xf32>
      %14 = vector.broadcast %13 : vector<1x128xf32> to vector<128x128xf32>
      %15 = arith.addf %12, %14 : vector<128x128xf32>
      %c0_14 = arith.constant 0 : index
      %c0_15 = arith.constant 0 : index
      %16 = vector.load %arg6[%c0_14, %c0_15] : memref<128x128xf32, #tpu.memory_space<vmem>>, vector<128x128xf32>
      tpu.vector_store %arg6[%c0_14, %c0_15], %15 {strides = array<i32>} : memref<128x128xf32, #tpu.memory_space<vmem>>, vector<128x128xf32>,
    } else {
    }
    return
  }
  func.func @transform_0(%arg0: i32, %arg1: i32, %arg2: i32) -> (i32, i32) {
    %c0_i32 = arith.constant 0 : i32
    return %arg0, %arg2 : i32, i32
  }
  func.func @transform_1(%arg0: i32, %arg1: i32, %arg2: i32) -> (i32, i32) {
    %c0_i32 = arith.constant 0 : i32
    return %arg2, %arg1 : i32, i32
  }
  func.func @transform_2(%arg0: i32, %arg1: i32, %arg2: i32) -> (i32, i32) {
    %c0_i32 = arith.constant 0 : i32
    %c0_i32_0 = arith.constant 0 : i32
    return %c0_i32, %arg1 : i32, i32
  }
  func.func @transform_3(%arg0: i32, %arg1: i32, %arg2: i32) -> (i32, i32) {
    %c0_i32 = arith.constant 0 : i32
    return %arg0, %arg1 : i32, i32
  }
}

module attributes {stable_mosaic.version = 11 : i64} {
  func.func @_matmul_stats_kernel(%arg0: i32, %arg1: i32, %arg2: i32, %arg3: memref<32x640xbf16, #tpu.memory_space<vmem>>, %arg4: memref<640x128xbf16, #tpu.memory_space<vmem>>, %arg5: memref<32x128xbf16, #tpu.memory_space<vmem>>, %arg6: memref<8x128xf32, #tpu.memory_space<vmem>>, %arg7: memref<32x128xf32, #tpu.memory_space<vmem>>) attributes {dimension_semantics = [#tpu.dimension_semantics<parallel>, #tpu.dimension_semantics<parallel>, #tpu.dimension_semantics<arbitrary>], iteration_bounds = array<i64: 1, 1, 1>, scalar_prefetch = 0 : i64, scratch_operands = 1 : i64, tpu.core_type = #tpu.core_type<tc>, window_params = [{transform_indices = @transform_0, window_bounds = array<i64: 32, 640>}, {transform_indices = @transform_1, window_bounds = array<i64: 640, 128>}, {transform_indices = @transform_2, window_bounds = array<i64: 32, 128>}, {transform_indices = @transform_3, window_bounds = array<i64: 8, 128>}]} {
    %c0_i32 = arith.constant 0 : i32
    %0 = arith.cmpi eq, %arg2, %c0_i32 : i32
    %1 = arith.extui %0 : i1 to i32
    %c0_i32_0 = arith.constant 0 : i32
    %2 = arith.cmpi ne, %1, %c0_i32_0 : i32
    scf.if %2 {
      %cst_10 = arith.constant 0.000000e+00 : f32
      %12 = vector.broadcast %cst_10 : f32 to vector<32x128xf32>
      %c0_11 = arith.constant 0 : index
      %c0_12 = arith.constant 0 : index
      %13 = vector.load %arg7[%c0_11, %c0_12] : memref<32x128xf32, #tpu.memory_space<vmem>>, vector<32x128xf32>
      tpu.vector_store %arg7[%c0_11, %c0_12], %12 {strides = array<i32>} : memref<32x128xf32, #tpu.memory_space<vmem>>, vector<32x128xf32>,
    } else {
    }
    %c0 = arith.constant 0 : index
    %c0_1 = arith.constant 0 : index
    %3 = vector.load %arg7[%c0, %c0_1] : memref<32x128xf32, #tpu.memory_space<vmem>>, vector<32x128xf32>
    %c0_2 = arith.constant 0 : index
    %c0_3 = arith.constant 0 : index
    %4 = vector.load %arg3[%c0_2, %c0_3] : memref<32x640xbf16, #tpu.memory_space<vmem>>, vector<32x640xbf16>
    %c0_4 = arith.constant 0 : index
    %c0_5 = arith.constant 0 : index
    %5 = vector.load %arg4[%c0_4, %c0_5] : memref<640x128xbf16, #tpu.memory_space<vmem>>, vector<640x128xbf16>
    %cst = arith.constant dense<0.000000e+00> : vector<32x128xf32>
    %6 = tpu.matmul %4, %5, %cst {dimension_numbers = #tpu.dot_dimension_numbers<[1], [0], [0], [1], [0, 0, 1, 1], [], []>} : vector<32x640xbf16>, vector<640x128xbf16>, vector<32x128xf32> -> vector<32x128xf32>
    %7 = arith.addf %3, %6 : vector<32x128xf32>
    %c0_6 = arith.constant 0 : index
    %c0_7 = arith.constant 0 : index
    %8 = vector.load %arg7[%c0_6, %c0_7] : memref<32x128xf32, #tpu.memory_space<vmem>>, vector<32x128xf32>
    tpu.vector_store %arg7[%c0_6, %c0_7], %7 {strides = array<i32>} : memref<32x128xf32, #tpu.memory_space<vmem>>, vector<32x128xf32>,
    %c0_i32_8 = arith.constant 0 : i32
    %9 = arith.cmpi eq, %arg2, %c0_i32_8 : i32
    %10 = arith.extui %9 : i1 to i32
    %c0_i32_9 = arith.constant 0 : i32
    %11 = arith.cmpi ne, %10, %c0_i32_9 : i32
    scf.if %11 {
      %c0_10 = arith.constant 0 : index
      %c0_11 = arith.constant 0 : index
      %12 = vector.load %arg7[%c0_10, %c0_11] : memref<32x128xf32, #tpu.memory_space<vmem>>, vector<32x128xf32>
      %13 = arith.truncf %12 : vector<32x128xf32> to vector<32x128xbf16>
      %c0_12 = arith.constant 0 : index
      %c0_13 = arith.constant 0 : index
      %14 = vector.load %arg5[%c0_12, %c0_13] : memref<32x128xbf16, #tpu.memory_space<vmem>>, vector<32x128xbf16>
      tpu.vector_store %arg5[%c0_12, %c0_13], %13 {strides = array<i32>} : memref<32x128xbf16, #tpu.memory_space<vmem>>, vector<32x128xbf16>,
      %cst_14 = arith.constant 0.000000e+00 : f32
      %15 = vector.broadcast %cst_14 : f32 to vector<8x128xf32>
      %c0_15 = arith.constant 0 : index
      %c0_16 = arith.constant 0 : index
      %16 = vector.load %arg6[%c0_15, %c0_16] : memref<8x128xf32, #tpu.memory_space<vmem>>, vector<8x128xf32>
      tpu.vector_store %arg6[%c0_15, %c0_16], %15 {strides = array<i32>} : memref<8x128xf32, #tpu.memory_space<vmem>>, vector<8x128xf32>,
      %cst_17 = arith.constant dense<0.000000e+00> : vector<128xf32>
      %17 = vector.multi_reduction <add>, %12, %cst_17 [0] : vector<32x128xf32> to vector<128xf32>
      %18 = vector.shape_cast %17 : vector<128xf32> to vector<1x128xf32>
      %c0_18 = arith.constant 0 : index
      %c0_19 = arith.constant 0 : index
      %19 = vector.load %arg6[%c0_18, %c0_19] : memref<8x128xf32, #tpu.memory_space<vmem>>, vector<1x128xf32>
      tpu.vector_store %arg6[%c0_18, %c0_19], %18 {strides = array<i32>} : memref<8x128xf32, #tpu.memory_space<vmem>>, vector<1x128xf32>,
      %20 = arith.mulf %12, %12 : vector<32x128xf32>
      %cst_20 = arith.constant dense<0.000000e+00> : vector<128xf32>
      %21 = vector.multi_reduction <add>, %20, %cst_20 [0] : vector<32x128xf32> to vector<128xf32>
      %22 = vector.shape_cast %21 : vector<128xf32> to vector<1x128xf32>
      %c1 = arith.constant 1 : index
      %c0_21 = arith.constant 0 : index
      %23 = vector.load %arg6[%c1, %c0_21] : memref<8x128xf32, #tpu.memory_space<vmem>>, vector<1x128xf32>
      tpu.vector_store %arg6[%c1, %c0_21], %22 {strides = array<i32>} : memref<8x128xf32, #tpu.memory_space<vmem>>, vector<1x128xf32>,
    } else {
    }
    return
  }
  func.func @transform_0(%arg0: i32, %arg1: i32, %arg2: i32) -> (i32, i32) {
    %c0_i32 = arith.constant 0 : i32
    return %arg0, %arg2 : i32, i32
  }
  func.func @transform_1(%arg0: i32, %arg1: i32, %arg2: i32) -> (i32, i32) {
    %c0_i32 = arith.constant 0 : i32
    return %arg2, %arg1 : i32, i32
  }
  func.func @transform_2(%arg0: i32, %arg1: i32, %arg2: i32) -> (i32, i32) {
    %c0_i32 = arith.constant 0 : i32
    return %arg0, %arg1 : i32, i32
  }
  func.func @transform_3(%arg0: i32, %arg1: i32, %arg2: i32) -> (i32, i32) {
    %c0_i32 = arith.constant 0 : i32
    return %arg0, %arg1 : i32, i32
  }
}

module attributes {stable_mosaic.version = 11 : i64} {
  func.func @_matmul_bias_kernel(%arg0: i32, %arg1: i32, %arg2: i32, %arg3: memref<32x256xbf16, #tpu.memory_space<vmem>>, %arg4: memref<256x128xbf16, #tpu.memory_space<vmem>>, %arg5: memref<1x128xf32, #tpu.memory_space<vmem>>, %arg6: memref<32x128xf32, #tpu.memory_space<vmem>>, %arg7: memref<32x128xf32, #tpu.memory_space<vmem>>) attributes {dimension_semantics = [#tpu.dimension_semantics<parallel>, #tpu.dimension_semantics<parallel>, #tpu.dimension_semantics<arbitrary>], iteration_bounds = array<i64: 1, 1, 1>, scalar_prefetch = 0 : i64, scratch_operands = 1 : i64, tpu.core_type = #tpu.core_type<tc>, window_params = [{transform_indices = @transform_0, window_bounds = array<i64: 32, 256>}, {transform_indices = @transform_1, window_bounds = array<i64: 256, 128>}, {transform_indices = @transform_2, window_bounds = array<i64: 1, 128>}, {transform_indices = @transform_3, window_bounds = array<i64: 32, 128>}]} {
    %c0_i32 = arith.constant 0 : i32
    %0 = arith.cmpi eq, %arg2, %c0_i32 : i32
    %1 = arith.extui %0 : i1 to i32
    %c0_i32_0 = arith.constant 0 : i32
    %2 = arith.cmpi ne, %1, %c0_i32_0 : i32
    scf.if %2 {
      %cst_10 = arith.constant 0.000000e+00 : f32
      %12 = vector.broadcast %cst_10 : f32 to vector<32x128xf32>
      %c0_11 = arith.constant 0 : index
      %c0_12 = arith.constant 0 : index
      %13 = vector.load %arg7[%c0_11, %c0_12] : memref<32x128xf32, #tpu.memory_space<vmem>>, vector<32x128xf32>
      tpu.vector_store %arg7[%c0_11, %c0_12], %12 {strides = array<i32>} : memref<32x128xf32, #tpu.memory_space<vmem>>, vector<32x128xf32>,
    } else {
    }
    %c0 = arith.constant 0 : index
    %c0_1 = arith.constant 0 : index
    %3 = vector.load %arg7[%c0, %c0_1] : memref<32x128xf32, #tpu.memory_space<vmem>>, vector<32x128xf32>
    %c0_2 = arith.constant 0 : index
    %c0_3 = arith.constant 0 : index
    %4 = vector.load %arg3[%c0_2, %c0_3] : memref<32x256xbf16, #tpu.memory_space<vmem>>, vector<32x256xbf16>
    %c0_4 = arith.constant 0 : index
    %c0_5 = arith.constant 0 : index
    %5 = vector.load %arg4[%c0_4, %c0_5] : memref<256x128xbf16, #tpu.memory_space<vmem>>, vector<256x128xbf16>
    %cst = arith.constant dense<0.000000e+00> : vector<32x128xf32>
    %6 = tpu.matmul %4, %5, %cst {dimension_numbers = #tpu.dot_dimension_numbers<[1], [0], [0], [1], [0, 0, 1, 1], [], []>} : vector<32x256xbf16>, vector<256x128xbf16>, vector<32x128xf32> -> vector<32x128xf32>
    %7 = arith.addf %3, %6 : vector<32x128xf32>
    %c0_6 = arith.constant 0 : index
    %c0_7 = arith.constant 0 : index
    %8 = vector.load %arg7[%c0_6, %c0_7] : memref<32x128xf32, #tpu.memory_space<vmem>>, vector<32x128xf32>
    tpu.vector_store %arg7[%c0_6, %c0_7], %7 {strides = array<i32>} : memref<32x128xf32, #tpu.memory_space<vmem>>, vector<32x128xf32>,
    %c0_i32_8 = arith.constant 0 : i32
    %9 = arith.cmpi eq, %arg2, %c0_i32_8 : i32
    %10 = arith.extui %9 : i1 to i32
    %c0_i32_9 = arith.constant 0 : i32
    %11 = arith.cmpi ne, %10, %c0_i32_9 : i32
    scf.if %11 {
      %c0_10 = arith.constant 0 : index
      %c0_11 = arith.constant 0 : index
      %12 = vector.load %arg7[%c0_10, %c0_11] : memref<32x128xf32, #tpu.memory_space<vmem>>, vector<32x128xf32>
      %c0_12 = arith.constant 0 : index
      %c0_13 = arith.constant 0 : index
      %13 = vector.load %arg5[%c0_12, %c0_13] : memref<1x128xf32, #tpu.memory_space<vmem>>, vector<1x128xf32>
      %14 = vector.broadcast %13 : vector<1x128xf32> to vector<32x128xf32>
      %15 = arith.addf %12, %14 : vector<32x128xf32>
      %c0_14 = arith.constant 0 : index
      %c0_15 = arith.constant 0 : index
      %16 = vector.load %arg6[%c0_14, %c0_15] : memref<32x128xf32, #tpu.memory_space<vmem>>, vector<32x128xf32>
      tpu.vector_store %arg6[%c0_14, %c0_15], %15 {strides = array<i32>} : memref<32x128xf32, #tpu.memory_space<vmem>>, vector<32x128xf32>,
    } else {
    }
    return
  }
  func.func @transform_0(%arg0: i32, %arg1: i32, %arg2: i32) -> (i32, i32) {
    %c0_i32 = arith.constant 0 : i32
    return %arg0, %arg2 : i32, i32
  }
  func.func @transform_1(%arg0: i32, %arg1: i32, %arg2: i32) -> (i32, i32) {
    %c0_i32 = arith.constant 0 : i32
    return %arg2, %arg1 : i32, i32
  }
  func.func @transform_2(%arg0: i32, %arg1: i32, %arg2: i32) -> (i32, i32) {
    %c0_i32 = arith.constant 0 : i32
    %c0_i32_0 = arith.constant 0 : i32
    return %c0_i32, %arg1 : i32, i32
  }
  func.func @transform_3(%arg0: i32, %arg1: i32, %arg2: i32) -> (i32, i32) {
    %c0_i32 = arith.constant 0 : i32
    return %arg0, %arg1 : i32, i32
  }
}

</mosaic_0001>

<bundles_post_ra>
// kernel: _lambda_.75
= control target key start
LH: loop header
LB: loop body
LE: loop exit
PB: predicated region body
PF: predicated region fallthrough
CT: control target
= control target key end

     0   :  { %s148_s0 = inlined_call_operand.vmem [shape: bf16[32,128], index: 0, kind: input, shape index: {}]   ;;  %s149_s1 = inlined_call_operand.vmem [shape: f32[1,128], index: 1, kind: input, shape index: {}]   ;;  %s150_s2 = inlined_call_operand.vmem [shape: f32[1,128], index: 2, kind: input, shape index: {}]   ;;  %s151_s3 = inlined_call_operand.vmem [shape: bf16[32,128], index: 3, kind: output, shape index: {}]  }
   0x1   :  { %v91_v0 = vld [vmem:[%s148_s0] sm:$0xff]   ;;  %v108_v4 = vld [vmem:[%s148_s0 + $0x8] sm:$0xff]  }
   0x2   :  { %v80_v1 = vld [vmem:[%s149_s1] ss:$0 sm:$0xff]  ;;  %v92_v2 = vunpack.c.l.bf16 %v91_v0  ;;  %v93_v3 = vunpack.c.h.bf16 %v91_v0  ;;  %v96_v6 = vunpack.c.l.bf16 %v108_v4  ;;  %v97_v7 = vunpack.c.h.bf16 %v108_v4 }
   0x3   :  { %v81_v5 = vld [vmem:[%s150_s2] ss:$0 sm:$0xff] }
   0x4   :  { %v29_v8 = vmul.f32 %v92_v2, %v80_v1  ;;  %v30_v9 = vmul.f32 %v93_v3, %v80_v1  ;;  %v31_v10 = vmul.f32 %v96_v6, %v80_v1  ;;  %v32_v11 = vmul.f32 %v97_v7, %v80_v1 }
   0x6   :  { %v40_v12 = vadd.f32 %v81_v5, %v29_v8  ;;  %v41_v13 = vadd.f32 %v81_v5, %v30_v9  ;;  %v42_v14 = vadd.f32 %v81_v5, %v31_v10  ;;  %v43_v15 = vadd.f32 %v81_v5, %v32_v11 }
   0x8   :  { %vm44_vm0 = vcmp.ge.f32.partialorder %v40_v12, 0.0  ;;  %vm45_vm1 = vcmp.ge.f32.partialorder %v41_v13, 0.0  ;;  %v48_v16 = vmul.f32 0.1, %v40_v12  ;;  %v49_v17 = vmul.f32 0.1, %v41_v13 }
   0x9   :  { %vm46_vm2 = vcmp.ge.f32.partialorder %v42_v14, 0.0  ;;  %vm47_vm3 = vcmp.ge.f32.partialorder %v43_v15, 0.0  ;;  %v50_v18 = vmul.f32 0.1, %v42_v14  ;;  %v51_v19 = vmul.f32 0.1, %v43_v15 }
   0xa   :  { %v52_v20 = vsel %vm44_vm0, %v40_v12, %v48_v16  ;;  %v53_v21 = vsel %vm45_vm1, %v41_v13, %v49_v17 }
   0xb   :  { %v101_v22 = vpack.c.bf16 %v53_v21, %v52_v20  ;;  %v54_v23 = vsel %vm46_vm2, %v42_v14, %v50_v18  ;;  %v55_v24 = vsel %vm47_vm3, %v43_v15, %v51_v19 }
   0xc   :  { %v106_v25 = vpack.c.bf16 %v55_v24, %v54_v23 }
   0xd   :  { %102 = vst [vmem:[%s151_s3] sm:$0xff] %v101_v22  }
   0xe   :  { %109 = vst [vmem:[%s151_s3 + $0x8] sm:$0xff] %v106_v25  }

// kernel: _lambda_.74
= control target key start
LH: loop header
LB: loop body
LE: loop exit
PB: predicated region body
PF: predicated region fallthrough
CT: control target
= control target key end

     0   :  { %v401_v20 = vmov 0.0   ;;  %s497_s1 = inlined_call_operand.vmem [shape: bf16[256,128], index: 1, kind: input, shape index: {}]   ;;  %s498_s0 = inlined_call_operand.vmem [shape: bf16[32,256], index: 0, kind: input, shape index: {}]   ;;  %s499_s3 = inlined_call_operand.vmem [shape: f32[8,128], index: 3, kind: output, shape index: {1}]   ;;  %s500_s2 = inlined_call_operand.vmem [shape: bf16[32,128], index: 2, kind: output, shape index: {0}]  }
   0x1   :  { %v379_v0 = vld [vmem:[%s497_s1 + $0x40] sm:$0xff]   ;;  %v381_v2 = vld [vmem:[%s497_s1 + $0x48] sm:$0xff]   ;;  %v383_v4 = vld [vmem:[%s497_s1 + $0x50] sm:$0xff]   ;;  %262 = vst [vmem:[%s499_s3] sm:$0xff] %v401_v20 }
   0x2   :  { %v380_v1 = vld [vmem:[%s497_s1] sm:$0xff]   ;;  %334 = vmatprep.subr.bf16.mxu0 %v379_v0  ;;  %362 = vmatprep.subr.bf16.mxu1 %v379_v0  ;;  %v382_v3 = vld [vmem:[%s497_s1 + $0x8] sm:$0xff]   ;;  %v384_v5 = vld [vmem:[%s497_s1 + $0x10] sm:$0xff]  }
   0x3   :  { %335 = vmatpush3.bf16.msra.mxu0 %v380_v1  ;;  %370 = vmatpush3.bf16.msra.mxu1 %v380_v1  ;;  %v385_v6 = vld [vmem:[%s497_s1 + $0x58] sm:$0xff]   ;;  %v387_v8 = vld [vmem:[%s497_s1 + $0x60] sm:$0xff]   ;;  %v389_v10 = vld [vmem:[%s497_s1 + $0x68] sm:$0xff]  }
   0x4   :  { %336 = vmatprep.subr.bf16.mxu0 %v381_v2  ;;  %363 = vmatprep.subr.bf16.mxu1 %v381_v2  ;;  %v386_v7 = vld [vmem:[%s497_s1 + $0x18] sm:$0xff]   ;;  %v388_v9 = vld [vmem:[%s497_s1 + $0x20] sm:$0xff]   ;;  %v390_v13 = vld [vmem:[%s497_s1 + $0x28] sm:$0xff]  }
   0x5   :  { %v397_v11 = vld [vmem:[%s498_s0 + $0x4] ss:$8 sps:$4 sm:$0xff]   ;;  %v400_v12 = vld [vmem:[%s498_s0 + $0x14] ss:$8 sps:$4 sm:$0xff]   ;;  %v395_v18 = vld [vmem:[%s498_s0] ss:$8 sps:$4 sm:$0xff]  }
   0x6   :  { %v391_v14 = vld [vmem:[%s497_s1 + $0x70] sm:$0xff]   ;;  %210 = vmatprep.mubr.bf16.mxu0 %v397_v11  ;;  %218 = vmatprep.mubr.bf16.mxu1 %v400_v12  ;;  %v393_v16 = vld [vmem:[%s497_s1 + $0x78] sm:$0xff]  }
   0x7   :  { %337 = vmatpush3.bf16.msra.mxu0 %v382_v3  ;;  %371 = vmatpush3.bf16.msra.mxu1 %v382_v3  ;;  %v392_v15 = vld [vmem:[%s497_s1 + $0x30] sm:$0xff]   ;;  %v394_v17 = vld [vmem:[%s497_s1 + $0x38] sm:$0xff]  }
   0x8   :  { %338 = vmatprep.subr.bf16.mxu0 %v383_v4  ;;  %364 = vmatprep.subr.bf16.mxu1 %v383_v4  ;;  %v398_v19 = vld [vmem:[%s498_s0 + $0x10] ss:$8 sps:$4 sm:$0xff]  }
   0xb   :  { %339 = vmatpush3.bf16.msra.mxu0 %v384_v5  ;;  %372 = vmatpush3.bf16.msra.mxu1 %v384_v5 }
   0xc   :  { %340 = vmatprep.subr.bf16.mxu0 %v385_v6  ;;  %365 = vmatprep.subr.bf16.mxu1 %v385_v6 }
   0xf   :  { %341 = vmatpush3.bf16.msra.mxu0 %v386_v7  ;;  %373 = vmatpush3.bf16.msra.mxu1 %v386_v7 }
  0x10   :  { %342 = vmatprep.subr.bf16.mxu0 %v387_v8  ;;  %366 = vmatprep.subr.bf16.mxu1 %v387_v8 }
  0x13   :  { %343 = vmatpush3.bf16.msra.mxu0 %v388_v9  ;;  %374 = vmatpush3.bf16.msra.mxu1 %v388_v9 }
  0x14   :  { %344 = vmatprep.subr.bf16.mxu0 %v389_v10  ;;  %367 = vmatprep.subr.bf16.mxu1 %v389_v10 }
  0x17   :  { %345 = vmatpush3.bf16.msra.mxu0 %v390_v13  ;;  %375 = vmatpush3.bf16.msra.mxu1 %v390_v13 }
  0x18   :  { %346 = vmatprep.subr.bf16.mxu0 %v391_v14  ;;  %368 = vmatprep.subr.bf16.mxu1 %v391_v14 }
  0x1b   :  { %347 = vmatpush3.bf16.msra.mxu0 %v392_v15  ;;  %376 = vmatpush3.bf16.msra.mxu1 %v392_v15 }
  0x1c   :  { %348 = vmatprep.subr.bf16.mxu0 %v393_v16  ;;  %369 = vmatprep.subr.bf16.mxu1 %v393_v16 }
  0x1f   :  { %349 = vmatpush3.bf16.msra.mxu0 %v394_v17  ;;  %377 = vmatpush3.bf16.msra.mxu1 %v394_v17 }
  0x22   :  { %211 = vmatmul.mubr.bf16.vlgmr.msra.gmra.mrb[0].mxu0 %v395_v18  ;;  %219 = vmatmul.mubr.bf16.vlgmr.msra.gmra.mrb[0].mxu1 %v398_v19 }
  0xf5   :  { %v350_v21 = vpop.f32.mrb[0].mxu0  ;;  %v356_v22 = vpop.f32.mrb[0].mxu1 }
  0xf6   :  { %v351_v23 = vpop.f32.mrb[1].mxu0  ;;  %v357_v24 = vpop.f32.mrb[1].mxu1 }
  0xf7   :  { %v352_v25 = vadd.f32 %v351_v23, %v350_v21  ;;  %v353_v26 = vpop.f32.mrb[2].mxu0  ;;  %v358_v27 = vadd.f32 %v357_v24, %v356_v22  ;;  %v359_v28 = vpop.f32.mrb[2].mxu1 }
  0xf8   :  { %v354_v29 = vpop.f32.mrb[3].mxu0  ;;  %v360_v30 = vpop.f32.mrb[3].mxu1 }
  0xf9   :  { %v355_v31 = vadd.f32 %v354_v29, %v353_v26  ;;  %v361_v32 = vadd.f32 %v360_v30, %v359_v28  ;;  %v273_v33 = vmul.f32 %v352_v25, %v352_v25  ;;  %v275_v34 = vmul.f32 %v358_v27, %v358_v27 }
  0xfb   :  { %v326_v35 = vpack.c.bf16 %v355_v31, %v352_v25  ;;  %v263_v36 = vadd.f32 %v355_v31, %v352_v25  ;;  %v274_v37 = vmul.f32 %v355_v31, %v355_v31  ;;  %v331_v38 = vpack.c.bf16 %v361_v32, %v358_v27 }
  0xfc   :  { %v276_v42 = vmul.f32 %v361_v32, %v361_v32 }
  0xfd   :  { %327 = vst [vmem:[%s500_s2] sm:$0xff] %v326_v35   ;;  %v277_v39 = vadd.f32 %v274_v37, %v273_v33  ;;  %333 = vst [vmem:[%s500_s2 + $0x8] sm:$0xff] %v331_v38   ;;  %v264_v40 = vadd.f32 %v358_v27, %v263_v36 }
  0xff   :  { %v265_v41 = vadd.f32 %v361_v32, %v264_v40  ;;  %v278_v43 = vadd.f32 %v277_v39, %v275_v34 }
 0x101   :  { %v266_v44 = vrot.slane %v265_v41, 4  ;;  %v279_v45 = vadd.f32 %v278_v43, %v276_v42 }
 0x103   :  { %v267_v46 = vadd.f32 %v266_v44, %v265_v41  ;;  %v280_v47 = vrot.slane %v279_v45, 4 }
 0x105   :  { %v268_v48 = vrot.slane %v267_v46, 2  ;;  %v281_v49 = vadd.f32 %v280_v47, %v279_v45 }
 0x107   :  { %v269_v50 = vadd.f32 %v268_v48, %v267_v46  ;;  %v282_v51 = vrot.slane %v281_v49, 2 }
 0x109   :  { %v270_v52 = vrot.slane %v269_v50, 1  ;;  %v283_v53 = vadd.f32 %v282_v51, %v281_v49 }
 0x10b   :  { %v271_v54 = vadd.f32 %v270_v52, %v269_v50  ;;  %v284_v55 = vrot.slane %v283_v53, 1 }
 0x10d   :  { %272 = vst [vmem:[%s499_s3] sm:$0x1] %v271_v54  ;;  %v285_v56 = vadd.f32 %v284_v55, %v283_v53 }
 0x10f   :  { %286 = vst [vmem:[%s499_s3 + $0x1] sm:$0x1] %v285_v56 }

// kernel: _lambda_.77
= control target key start
LH: loop header
LB: loop body
LE: loop exit
PB: predicated region body
PF: predicated region fallthrough
CT: control target
= control target key end

     0   :  { %v28_v0 = vlaneseq  ;;  %s180_s0 = inlined_call_operand.vmem [shape: bf16[32,256], index: 0, kind: input, shape index: {}]   ;;  %s181_s1 = inlined_call_operand.vmem [shape: f32[1,256], index: 1, kind: input, shape index: {}]   ;;  %s182_s2 = inlined_call_operand.vmem [shape: f32[1,256], index: 2, kind: input, shape index: {}]   ;;  %s183_s3 = inlined_call_operand.vmem [shape: bf16[32,256], index: 3, kind: output, shape index: {}]  }
   0x1   :  { %v14_v1 = vld [vmem:[%s180_s0] sm:$0xff]  ;;  %v15_v3 = vld [vmem:[%s180_s0 + $0x8] sm:$0xff]  ;;  %v16_v4 = vld [vmem:[%s180_s0 + $0x10] sm:$0xff] }
   0x2   :  { %v29_v2 = vshrl.u32 %v28_v0, 7  ;;  %v17_v5 = vld [vmem:[%s180_s0 + $0x18] sm:$0xff]  ;;  %v18_v6 = vunpack.c.l.bf16 %v14_v1  ;;  %v19_v7 = vunpack.c.h.bf16 %v14_v1  ;;  %v26_v8 = vld [vmem:[%s181_s1] sm:$0x3]  ;;  %v20_v12 = vunpack.c.l.bf16 %v15_v3 }
   0x3   :  { %v46_v9 = vld [vmem:[%s182_s2] sm:$0x3]  ;;  %v21_v13 = vunpack.c.h.bf16 %v15_v3  ;;  %v22_v14 = vunpack.c.l.bf16 %v16_v4  ;;  %v23_v15 = vunpack.c.h.bf16 %v16_v4  ;;  %v24_v16 = vunpack.c.l.bf16 %v17_v5 }
   0x4   :  { %v30_v10 = vsub.s32 0, %v29_v2  ;;  %v34_v11 = vsub.s32 1, %v29_v2  ;;  %v25_v17 = vunpack.c.h.bf16 %v17_v5 }
   0x6   :  { %v31_v18 = vrot.slane %v26_v8, %v30_v10  ;;  %v35_v19 = vrot.slane %v26_v8, %v34_v11  ;;  %v51_v20 = vrot.slane %v46_v9, %v30_v10  ;;  %v55_v21 = vrot.slane %v46_v9, %v34_v11 }
   0x8   :  { %v38_v22 = vmul.f32 %v31_v18, %v18_v6  ;;  %v39_v23 = vmul.f32 %v35_v19, %v19_v7  ;;  %v40_v24 = vmul.f32 %v31_v18, %v20_v12  ;;  %v41_v25 = vmul.f32 %v35_v19, %v21_v13 }
   0x9   :  { %v42_v26 = vmul.f32 %v31_v18, %v22_v14  ;;  %v43_v27 = vmul.f32 %v35_v19, %v23_v15  ;;  %v44_v28 = vmul.f32 %v31_v18, %v24_v16  ;;  %v45_v29 = vmul.f32 %v35_v19, %v25_v17 }
   0xa   :  { %v58_v30 = vadd.f32 %v51_v20, %v38_v22  ;;  %v59_v31 = vadd.f32 %v55_v21, %v39_v23  ;;  %v60_v32 = vadd.f32 %v51_v20, %v40_v24  ;;  %v61_v33 = vadd.f32 %v55_v21, %v41_v25 }
   0xb   :  { %v62_v34 = vadd.f32 %v51_v20, %v42_v26  ;;  %v63_v35 = vadd.f32 %v55_v21, %v43_v27  ;;  %v64_v36 = vadd.f32 %v51_v20, %v44_v28  ;;  %v65_v37 = vadd.f32 %v55_v21, %v45_v29 }
   0xc   :  { %vm66_vm0 = vcmp.ge.f32.partialorder %v58_v30, 0.0  ;;  %vm67_vm1 = vcmp.ge.f32.partialorder %v59_v31, 0.0  ;;  %v74_v38 = vmul.f32 0.1, %v58_v30  ;;  %v75_v39 = vmul.f32 0.1, %v59_v31 }
   0xd   :  { %vm68_vm2 = vcmp.ge.f32.partialorder %v60_v32, 0.0  ;;  %vm69_vm3 = vcmp.ge.f32.partialorder %v61_v33, 0.0  ;;  %v76_v40 = vmul.f32 0.1, %v60_v32  ;;  %v77_v41 = vmul.f32 0.1, %v61_v33 }
   0xe   :  { %v82_v42 = vsel %vm66_vm0, %v58_v30, %v74_v38  ;;  %v83_v43 = vsel %vm67_vm1, %v59_v31, %v75_v39  ;;  %vm70_vm4 = vcmp.ge.f32.partialorder %v62_v34, 0.0  ;;  %vm71_vm5 = vcmp.ge.f32.partialorder %v63_v35, 0.0 }
   0xf   :  { %v126_v44 = vpack.c.bf16 %v83_v43, %v82_v42  ;;  %v84_v45 = vsel %vm68_vm2, %v60_v32, %v76_v40  ;;  %v85_v46 = vsel %vm69_vm3, %v61_v33, %v77_v41  ;;  %v78_v47 = vmul.f32 0.1, %v62_v34 }
  0x10   :  { %v127_v48 = vpack.c.bf16 %v85_v46, %v84_v45  ;;  %v79_v49 = vmul.f32 0.1, %v63_v35  ;;  %vm72_vm6 = vcmp.ge.f32.partialorder %v64_v36, 0.0  ;;  %vm73_vm7 = vcmp.ge.f32.partialorder %v65_v37, 0.0 }
  0x11   :  { %114 = vst [vmem:[%s183_s3] sm:$0xff] %v126_v44  ;;  %v86_v50 = vsel %vm70_vm4, %v62_v34, %v78_v47  ;;  %v80_v51 = vmul.f32 0.1, %v64_v36  ;;  %v81_v52 = vmul.f32 0.1, %v65_v37 }
  0x12   :  { %115 = vst [vmem:[%s183_s3 + $0x8] sm:$0xff] %v127_v48  ;;  %v87_v53 = vsel %vm71_vm5, %v63_v35, %v79_v49 }
  0x13   :  { %v128_v54 = vpack.c.bf16 %v87_v53, %v86_v50  ;;  %v88_v55 = vsel %vm72_vm6, %v64_v36, %v80_v51  ;;  %v89_v56 = vsel %vm73_vm7, %v65_v37, %v81_v52 }
  0x14   :  { %v129_v57 = vpack.c.bf16 %v89_v56, %v88_v55 }
  0x15   :  { %116 = vst [vmem:[%s183_s3 + $0x10] sm:$0xff] %v128_v54 }
  0x16   :  { %117 = vst [vmem:[%s183_s3 + $0x18] sm:$0xff] %v129_v57 }

// kernel: _lambda_.76
= control target key start
LH: loop header
LB: loop body
LE: loop exit
PB: predicated region body
PF: predicated region fallthrough
CT: control target
= control target key end

     0   :  { %s1369_s12 = smov 0   ;;  %s1371_s13 = smov 0   ;;  %s1520_s0 = inlined_call_operand.vmem [shape: bf16[32,1152], index: 0, kind: input, shape index: {}]   ;;  %s1521_s1 = inlined_call_operand.vmem [shape: bf16[1152,256], index: 1, kind: input, shape index: {}]   ;;  %s1522_s2 = inlined_call_operand.vmem [shape: bf16[32,256], index: 2, kind: output, shape index: {0}]   ;;  %s1523_s3 = inlined_call_operand.vmem [shape: f32[8,256], index: 3, kind: output, shape index: {1}]  }
   0x1   :  { %s1373_s14 = smov 0   ;;  %s1375_s15 = smov 0  }
   0x2   :  { %s1377_s16 = smov 0  }
   0x3 LB: > { %s26_s17 = sadd.s32 1, %s1339_s15  ;;  %p49_p1 = scmp.ne.s32.totalorder %s1331_s13, %s1327_s12  ;;  %s1343_s16 = sphi %s1377_s16, %s14_s16   ;;  %s1339_s15 = sphi %s1375_s15, %s1527_s15   ;;  %s1335_s14 = sphi %s1373_s14, %s1526_s14   ;;  %s1331_s13 = sphi %s1371_s13, %s1525_s13   ;;  %s1327_s12 = sphi %s1369_s12, %s1524_s12  }
   0x4   : > { %p27_p0 = scmp.ge.s32.totalorder %s26_s17, 3  ;;  %p50_p2 = scmp.eq.s32.totalorder %s1343_s16, 0 }
   0x5   : > { %s42_s19 = sadd.s32 1, %s1331_s13  ;;  %p1085_p5 = scmp.ge.s32.totalorder %s1343_s16, 3 }
   0x6   : > { %s1529_s17 = smov (%p27_p0, %s26_s17), 0  ;;  %p51_p3 = por %p50_p2, %p49_p1 }
   0x7   : > { %s38_s18 = ssub.s32 %s1339_s15, %s1529_s17  ;;  %159 = sbr.rel (%p1085_p5) target bundleno = 23 (0x17), region = 16 }
   0x8   : > { %p40_p4 = scmp.eq.s32.totalorder %s38_s18, 0 }
   0xa   : > { %s1404_s20 = scalar_select %p40_p4, %s1331_s13, %s42_s19  }
   0xe   : > { %162 = sbr.rel (!%p51_p3) target bundleno = 23 (0x17), region = 20  ;;  %s164_s21 = sand.u32 (%p51_p3), 1, %s1331_s13  }
   0xf   : > { %s1165_s22 = smul.u32 (%p51_p3), 12, %s1339_s15 }
  0x10   : > { %s1179_s23 = smul.u32 (%p51_p3), 48, %s164_s21 }
  0x11   : > { %s172_s26 = scalar_lea.vmem (%p51_p3), %s1520_s0, %s1165_s22 }
  0x12   : > { %v187_v0 = vld [vmem:[%s172_s26] sm:$0xff] (%p51_p3)  ;;  %v191_v2 = vld [vmem:[%s172_s26 + $0x48] sm:$0xff] (%p51_p3)  ;;  %s166_s27 = scalar_lea.vmem (%p51_p3), [#allocation3], %s1179_s23  ;;  %v1091_v6 = vld [vmem:[%s172_s26 + $0x50] sm:$0xf] (%p51_p3) }
  0x13   : > { %v189_v1 = vld [vmem:[%s172_s26 + $0x24] sm:$0xff] (%p51_p3)  ;;  %188 = vst [vmem:[%s166_s27] sm:$0xff] (%p51_p3), %v187_v0  ;;  %192 = vst [vmem:[%s166_s27 + $0x18] sm:$0xff] (%p51_p3), %v191_v2  ;;  %v193_v3 = vld [vmem:[%s172_s26 + $0x6c] sm:$0xff] (%p51_p3) }
  0x14   : > { %190 = vst [vmem:[%s166_s27 + $0xc] sm:$0xff] (%p51_p3), %v189_v1  ;;  %v1087_v4 = vld [vmem:[%s172_s26 + $0x8] sm:$0xf] (%p51_p3)  ;;  %v1089_v5 = vld [vmem:[%s172_s26 + $0x2c] sm:$0xf] (%p51_p3)  ;;  %194 = vst [vmem:[%s166_s27 + $0x24] sm:$0xff] (%p51_p3), %v193_v3 }
  0x15   : > { %1088 = vst [vmem:[%s166_s27 + $0x8] sm:$0xf] %v1087_v4  ;;  %1090 = vst [vmem:[%s166_s27 + $0x14] sm:$0xf] %v1089_v5  ;;  %v1093_v7 = vld [vmem:[%s172_s26 + $0x74] sm:$0xf] }
  0x16   : > { %1092 = vst [vmem:[%s166_s27 + $0x20] sm:$0xf] %v1091_v6  ;;  %1094 = vst [vmem:[%s166_s27 + $0x2c] sm:$0xf] %v1093_v7 }
  0x17 PF: > { %p1095_p6 = scmp.ge.s32.totalorder %s1343_s16, 1  ;;  %p229_p7 = scmp.lt.s32.totalorder %s1343_s16, 4 }
  0x19   : > { %p230_p8 = pnand %p1095_p6, %p229_p7 }
  0x1a   : > { %s236_s28 = sand.u32 (!%p230_p8), 1, %s1327_s12   ;;  %s285_s29 = smul.u32 (!%p230_p8), 48, %s1335_s14 }
  0x1b   : > { %233 = sbr.rel (%p230_p8) target bundleno = 364 (0x16c), region = 50  ;;  %p1098_p10 = scmp.ne.s32.totalorder (!%p230_p8), %s1335_s14, 0 }
  0x1c   : > { %s1180_s30 = smul.u32 (!%p230_p8), 48, %s236_s28  ;;  %p287_p9 = scmp.lt.s32.totalorder (!%p230_p8), %s285_s29, 143 }
  0x1e   : > { %s1421_s8 = scalar_lea.vmem (!%p230_p8), [#allocation3], %s1180_s30 }
  0x22   : > { %s1531_s29 = smov (!%p287_p9, %s285_s29), 143  ;;  %323 = sbr.rel (%p1098_p10) target bundleno = 41 (0x29), region = 58 }
  0x23   : > { %s1166_s4 = sshll.u32 %s1531_s29, 3  ;;  %v1345_v8 = vmov (!%p1098_p10), 0.0  }
  0x24   : > { %s1419_s7 = scalar_lea.vmem %s1521_s1, %s1166_s4  ;;  %324 = vst [vmem:[#allocation2] sm:$0xff] (!%p1098_p10), %v1345_v8  ;;  %325 = vst [vmem:[#allocation2 + $0x8] sm:$0xff] (!%p1098_p10), %v1345_v8 }
  0x25   : > { %326 = vst [vmem:[#allocation2 + $0x10] sm:$0xff] (!%p1098_p10), %v1345_v8  ;;  %327 = vst [vmem:[#allocation2 + $0x18] sm:$0xff] (!%p1098_p10), %v1345_v8 }
  0x26   : > { %328 = vst [vmem:[#allocation2 + $0x20] sm:$0xff] (!%p1098_p10), %v1345_v8  ;;  %329 = vst [vmem:[#allocation2 + $0x28] sm:$0xff] (!%p1098_p10), %v1345_v8 }
  0x27   : > { %330 = vst [vmem:[#allocation2 + $0x30] sm:$0xff] (!%p1098_p10), %v1345_v8  ;;  %331 = vst [vmem:[#allocation2 + $0x38] sm:$0xff] (!%p1098_p10), %v1345_v8 }
  0x29 PF: > { %v1225_v9 = vld [vmem:[%s1419_s7 + $0x4] ss:$8 sps:$4 sm:$0xff]   ;;  %v1227_v10 = vld [vmem:[%s1419_s7] ss:$8 sps:$4 sm:$0xff]   ;;  %v1346_v11 = vmov 0   ;;  %p1153_p11 = scmp.ne.s32.totalorder %s1335_s14, 2 }
  0x2a   : > { %753 = vmatprep.mubr.bf16.mxu0 %v1346_v11  ;;  %668 = vmatprep.subr.bf16.mxu1 %v1225_v9  ;;  %v1228_v12 = vld [vmem:[%s1419_s7 + $0x14] ss:$8 sps:$4 sm:$0xff]   ;;  %v1230_v13 = vld [vmem:[%s1419_s7 + $0x10] ss:$8 sps:$4 sm:$0xff]   ;;  %v1231_v14 = vld [vmem:[%s1419_s7 + $0x24] ss:$8 sps:$4 sm:$0xff]  }
  0x2b   : > { %669 = vmatpush1.bf16.msra.mxu1 %v1227_v10  ;;  %v1233_v15 = vld [vmem:[%s1419_s7 + $0x20] ss:$8 sps:$4 sm:$0xff]   ;;  %v1234_v16 = vld [vmem:[%s1419_s7 + $0x34] ss:$8 sps:$4 sm:$0xff]   ;;  %v1236_v17 = vld [vmem:[%s1419_s7 + $0x30] ss:$8 sps:$4 sm:$0xff]  }
  0x2c   : > { %670 = vmatprep.subr.bf16.mxu1 %v1228_v12  ;;  %v1249_v18 = vld [vmem:[%s1419_s7 + $0x104] ss:$8 sps:$4 sm:$0xff]   ;;  %v1251_v19 = vld [vmem:[%s1419_s7 + $0x100] ss:$8 sps:$4 sm:$0xff]   ;;  %v1255_v21 = vld [vmem:[%s1419_s7 + $0x114] ss:$8 sps:$4 sm:$0xff]  }
  0x2d   : > { %v1237_v20 = vld [vmem:[%s1419_s7 + $0x44] ss:$8 sps:$4 sm:$0xff]   ;;  %721 = vmatprep.subr.bf16.mxu0 %v1249_v18  ;;  %v1257_v22 = vld [vmem:[%s1419_s7 + $0x110] ss:$8 sps:$4 sm:$0xff]   ;;  %v1239_v23 = vld [vmem:[%s1419_s7 + $0x40] ss:$8 sps:$4 sm:$0xff]  }
  0x2e   : > { %722 = vmatpush1.bf16.msra.mxu0 %v1251_v19  ;;  %v1240_v24 = vld [vmem:[%s1419_s7 + $0x54] ss:$8 sps:$4 sm:$0xff]   ;;  %v1261_v25 = vld [vmem:[%s1419_s7 + $0x124] ss:$8 sps:$4 sm:$0xff]   ;;  %v1263_v26 = vld [vmem:[%s1419_s7 + $0x120] ss:$8 sps:$4 sm:$0xff]  }
  0x2f   : > { %671 = vmatpush1.bf16.msra.mxu1 %v1230_v13  ;;  %723 = vmatprep.subr.bf16.mxu0 %v1255_v21  ;;  %v1242_v27 = vld [vmem:[%s1419_s7 + $0x50] ss:$8 sps:$4 sm:$0xff]   ;;  %v1267_v28 = vld [vmem:[%s1419_s7 + $0x134] ss:$8 sps:$4 sm:$0xff]   ;;  %v1243_v29 = vld [vmem:[%s1419_s7 + $0x64] ss:$8 sps:$4 sm:$0xff]  }
  0x30   : > { %672 = vmatprep.subr.bf16.mxu1 %v1231_v14  ;;  %v1269_v30 = vld [vmem:[%s1419_s7 + $0x130] ss:$8 sps:$4 sm:$0xff]   ;;  %v1245_v31 = vld [vmem:[%s1419_s7 + $0x60] ss:$8 sps:$4 sm:$0xff]   ;;  %v1273_v32 = vld [vmem:[%s1419_s7 + $0x144] ss:$8 sps:$4 sm:$0xff]  }
  0x31   : > { %v1246_v33 = vld [vmem:[%s1419_s7 + $0x74] ss:$8 sps:$4 sm:$0xff]   ;;  %v1275_v34 = vld [vmem:[%s1419_s7 + $0x140] ss:$8 sps:$4 sm:$0xff]   ;;  %v1248_v35 = vld [vmem:[%s1419_s7 + $0x70] ss:$8 sps:$4 sm:$0xff]  }
  0x32   : > { %724 = vmatpush1.bf16.msra.mxu0 %v1257_v22  ;;  %v1279_v36 = vld [vmem:[%s1419_s7 + $0x154] ss:$8 sps:$4 sm:$0xff]   ;;  %v1252_v37 = vld [vmem:[%s1419_s7 + $0x84] ss:$8 sps:$4 sm:$0xff]   ;;  %v1281_v38 = vld [vmem:[%s1419_s7 + $0x150] ss:$8 sps:$4 sm:$0xff]  }
  0x33   : > { %673 = vmatpush1.bf16.msra.mxu1 %v1233_v15  ;;  %725 = vmatprep.subr.bf16.mxu0 %v1261_v25  ;;  %v1254_v39 = vld [vmem:[%s1419_s7 + $0x80] ss:$8 sps:$4 sm:$0xff]   ;;  %v1285_v40 = vld [vmem:[%s1419_s7 + $0x164] ss:$8 sps:$4 sm:$0xff]   ;;  %v1258_v41 = vld [vmem:[%s1419_s7 + $0x94] ss:$8 sps:$4 sm:$0xff]  }
  0x34   : > { %674 = vmatprep.subr.bf16.mxu1 %v1234_v16  ;;  %v1260_v42 = vld [vmem:[%s1419_s7 + $0x90] ss:$8 sps:$4 sm:$0xff]   ;;  %v1287_v43 = vld [vmem:[%s1419_s7 + $0x160] ss:$8 sps:$4 sm:$0xff]   ;;  %v1291_v45 = vld [vmem:[%s1419_s7 + $0x174] ss:$8 sps:$4 sm:$0xff]  }
  0x35   : > { %v1300_v44 = vld [vmem:[%s1421_s8 + $0x4] ss:$12 sps:$4 sm:$0xff]   ;;  %v1297_v50 = vld [vmem:[%s1421_s8 + $0x8] ss:$12 sps:$4 sm:$0xff]   ;;  %v1301_v55 = vld [vmem:[%s1421_s8 + $0x20] ss:$12 sps:$4 sm:$0xff]  }
  0x36   : > { %726 = vmatpush1.bf16.msra.mxu0 %v1263_v26  ;;  %v1264_v46 = vld [vmem:[%s1419_s7 + $0xa4] ss:$8 sps:$4 sm:$0xff]   ;;  %700 = vmatprep.mubr.bf16.mxu1 %v1300_v44  ;;  %v1293_v47 = vld [vmem:[%s1419_s7 + $0x170] ss:$8 sps:$4 sm:$0xff]   ;;  %v1266_v48 = vld [vmem:[%s1419_s7 + $0xa0] ss:$8 sps:$4 sm:$0xff]  }
  0x37   : > { %675 = vmatpush1.bf16.msra.mxu1 %v1236_v17  ;;  %727 = vmatprep.subr.bf16.mxu0 %v1267_v28  ;;  %v1270_v49 = vld [vmem:[%s1419_s7 + $0xb4] ss:$8 sps:$4 sm:$0xff]   ;;  %v1272_v51 = vld [vmem:[%s1419_s7 + $0xb0] ss:$8 sps:$4 sm:$0xff]   ;;  %v1276_v52 = vld [vmem:[%s1419_s7 + $0xc4] ss:$8 sps:$4 sm:$0xff]  }
  0x38   : > { %676 = vmatprep.subr.bf16.mxu1 %v1237_v20  ;;  %v1278_v53 = vld [vmem:[%s1419_s7 + $0xc0] ss:$8 sps:$4 sm:$0xff]   ;;  %v1282_v54 = vld [vmem:[%s1419_s7 + $0xd4] ss:$8 sps:$4 sm:$0xff]   ;;  %v1284_v56 = vld [vmem:[%s1419_s7 + $0xd0] ss:$8 sps:$4 sm:$0xff]  }
  0x39   : > { %v1288_v57 = vld [vmem:[%s1419_s7 + $0xe4] ss:$8 sps:$4 sm:$0xff]   ;;  %v1290_v58 = vld [vmem:[%s1419_s7 + $0xe0] ss:$8 sps:$4 sm:$0xff]   ;;  %v1294_v59 = vld [vmem:[%s1419_s7 + $0xf4] ss:$8 sps:$4 sm:$0xff]  }
  0x3a   : > { %728 = vmatpush1.bf16.msra.mxu0 %v1269_v30  ;;  %v1296_v60 = vld [vmem:[%s1419_s7 + $0xf0] ss:$8 sps:$4 sm:$0xff]   ;;  %v332_v8 = vld [vmem:[#allocation2] sm:$0xff] }
  0x3b   : > { %677 = vmatpush1.bf16.msra.mxu1 %v1239_v23  ;;  %729 = vmatprep.subr.bf16.mxu0 %v1273_v32  ;;  %v1298_v61 = vld [vmem:[%s1421_s8] ss:$12 sps:$4 sm:$0xff]   ;;  %v1302_v62 = vld [vmem:[%s1421_s8 + $0x1c] ss:$12 sps:$4 sm:$0xff]   ;;  %v1304_v63 = vld [vmem:[%s1421_s8 + $0x18] ss:$12 sps:$4 sm:$0xff]  }
  0x3c   : > { %678 = vmatprep.subr.bf16.mxu1 %v1240_v24  ;;  %v334_v14 = vld [vmem:[#allocation2 + $0x10] sm:$0xff]  ;;  %v335_v18 = vld [vmem:[#allocation2 + $0x18] sm:$0xff]  ;;  %v336_v24 = vld [vmem:[#allocation2 + $0x20] sm:$0xff] }
  0x3d   : > { %v338_v30 = vld [vmem:[#allocation2 + $0x30] sm:$0xff] }
  0x3e   : > { %730 = vmatpush1.bf16.msra.mxu0 %v1275_v34  ;;  %v339_v34 = vld [vmem:[#allocation2 + $0x38] sm:$0xff] }
  0x3f   : > { %679 = vmatpush1.bf16.msra.mxu1 %v1242_v27  ;;  %731 = vmatprep.subr.bf16.mxu0 %v1279_v36  ;;  %v337_v27 = vld [vmem:[#allocation2 + $0x28] sm:$0xff] }
  0x40   : > { %680 = vmatprep.subr.bf16.mxu1 %v1243_v29 }
  0x42   : > { %732 = vmatpush1.bf16.msra.mxu0 %v1281_v38 }
  0x43   : > { %681 = vmatpush1.bf16.msra.mxu1 %v1245_v31  ;;  %733 = vmatprep.subr.bf16.mxu0 %v1285_v40 }
  0x44   : > { %682 = vmatprep.subr.bf16.mxu1 %v1246_v33 }
  0x46   : > { %734 = vmatpush1.bf16.msra.mxu0 %v1287_v43  ;;  %v1347_v43 = vmov (!%p1153_p11), 0.0  }
  0x47   : > { %683 = vmatpush1.bf16.msra.mxu1 %v1248_v35  ;;  %735 = vmatprep.subr.bf16.mxu0 %v1291_v45  ;;  %830 = vst [vmem:[%s1523_s3] sm:$0xff] (!%p1153_p11), %v1347_v43  ;;  %831 = vst [vmem:[%s1523_s3 + $0x8] sm:$0xff] (!%p1153_p11), %v1347_v43 }
  0x48   : > { %684 = vmatprep.subr.bf16.mxu1 %v1252_v37 }
  0x4a   : > { %736 = vmatpush1.bf16.msra.mxu0 %v1293_v47 }
  0x4b   : > { %685 = vmatpush1.bf16.msra.mxu1 %v1254_v39 }
  0x4c   : > { %686 = vmatprep.subr.bf16.mxu1 %v1258_v41 }
  0x4d   : > { %754 = vmatmul.mubr.bf16.vlgmr.msra.gmra.mrb[0].mxu0 %v1297_v50 }
  0x4e   : > { %763 = vmatprep.mubr.bf16.mxu0 %v1346_v11  ;;  %v333_v11 = vld [vmem:[#allocation2 + $0x8] sm:$0xff] }
  0x4f   : > { %687 = vmatpush1.bf16.msra.mxu1 %v1260_v42 }
  0x50   : > { %688 = vmatprep.subr.bf16.mxu1 %v1264_v46 }
  0x53   : > { %689 = vmatpush1.bf16.msra.mxu1 %v1266_v48 }
  0x54   : > { %690 = vmatprep.subr.bf16.mxu1 %v1270_v49 }
  0x55   : > { %764 = vmatmul.mubr.bf16.gmra.mrb[4].mxu0 %v1301_v55 }
  0x57   : > { %691 = vmatpush1.bf16.msra.mxu1 %v1272_v51 }
  0x58   : > { %692 = vmatprep.subr.bf16.mxu1 %v1276_v52 }
  0x5b   : > { %693 = vmatpush1.bf16.msra.mxu1 %v1278_v53 }
  0x5c   : > { %694 = vmatprep.subr.bf16.mxu1 %v1282_v54 }
  0x5f   : > { %695 = vmatpush1.bf16.msra.mxu1 %v1284_v56 }
  0x60   : > { %696 = vmatprep.subr.bf16.mxu1 %v1288_v57 }
  0x63   : > { %697 = vmatpush1.bf16.msra.mxu1 %v1290_v58 }
  0x64   : > { %698 = vmatprep.subr.bf16.mxu1 %v1294_v59 }
  0x67   : > { %699 = vmatpush1.bf16.msra.mxu1 %v1296_v60 }
  0x6a   : > { %701 = vmatmul.mubr.bf16.vlgmr.msra.gmra.mrb[0].mxu1 %v1298_v61 }
  0x6b   : > { %710 = vmatprep.mubr.bf16.mxu1 %v1302_v62 }
  0x72   : > { %711 = vmatmul.mubr.bf16.gmra.mrb[4].mxu1 %v1304_v63 }
 0x120   : > { %v755_v0 = vpop.f32.mrb[0].mxu0 }
 0x121   : > { %v757_v1 = vpop.f32.mrb[1].mxu0 }
 0x122   : > { %v759_v2 = vpop.f32.mrb[2].mxu0 }
 0x123   : > { %v761_v3 = vpop.f32.mrb[3].mxu0 }
 0x128   : > { %v765_v4 = vpop.f32.mrb[4].mxu0 }
 0x129   : > { %v767_v5 = vpop.f32.mrb[5].mxu0 }
 0x12a   : > { %v769_v6 = vpop.f32.mrb[6].mxu0 }
 0x12b   : > { %v771_v7 = vpop.f32.mrb[7].mxu0 }
 0x13d   : > { %v702_v9 = vpop.f32.mrb[0].mxu1 }
 0x13e   : > { %v756_v10 = vadd.f32 %v755_v0, %v702_v9  ;;  %v704_v12 = vpop.f32.mrb[1].mxu1 }
 0x13f   : > { %v758_v13 = vadd.f32 %v757_v1, %v704_v12  ;;  %v706_v15 = vpop.f32.mrb[2].mxu1  ;;  %v856_v12 = vlaneseq (!%p1153_p11) }
 0x140   : > { %v774_v16 = vadd.f32 %v756_v10, %v332_v8  ;;  %v760_v17 = vadd.f32 %v759_v2, %v706_v15  ;;  %v708_v19 = vpop.f32.mrb[3].mxu1 }
 0x141   : > { %v775_v20 = vadd.f32 %v758_v13, %v333_v11  ;;  %v762_v21 = vadd.f32 %v761_v3, %v708_v19  ;;  %vm870_vm0 = vcmp.lt.s32.totalorder (!%p1153_p11), %v856_v12, 256 }
 0x142   : > { %782 = vst [vmem:[#allocation2] sm:$0xff] %v774_v16  ;;  %v776_v22 = vadd.f32 %v760_v17, %v334_v14  ;;  %v1348_v16 = vmov (!%p1153_p11), 1966171168  }
 0x143   : > { %783 = vst [vmem:[#allocation2 + $0x8] sm:$0xff] %v775_v20  ;;  %v777_v23 = vadd.f32 %v762_v21, %v335_v18  ;;  %v854_v17 = vunpack.c.l.s4 (!%p1153_p11), %v1348_v16 }
 0x144   : > { %784 = vst [vmem:[#allocation2 + $0x10] sm:$0xff] %v776_v22 }
 0x145   : > { %785 = vst [vmem:[#allocation2 + $0x18] sm:$0xff] %v777_v23  ;;  %v712_v25 = vpop.f32.mrb[4].mxu1  ;;  %v857_v23 = vshrl.u32 (!%p1153_p11), %v856_v12, 7 }
 0x146   : > { %v766_v26 = vadd.f32 %v765_v4, %v712_v25  ;;  %v714_v28 = vpop.f32.mrb[5].mxu1 }
 0x147   : > { %v768_v29 = vadd.f32 %v767_v5, %v714_v28  ;;  %v716_v31 = vpop.f32.mrb[6].mxu1  ;;  %793 = sbr.rel (%p1153_p11) target bundleno = 364 (0x16c), region = 62 }
 0x148   : > { %v778_v32 = vadd.f32 %v766_v26, %v336_v24  ;;  %v770_v33 = vadd.f32 %v769_v6, %v716_v31  ;;  %v718_v35 = vpop.f32.mrb[7].mxu1 }
 0x149   : > { %v779_v36 = vadd.f32 %v768_v29, %v337_v27  ;;  %v772_v37 = vadd.f32 %v771_v7, %v718_v35  ;;  %v794_v40 = vld [vmem:[#allocation2] sm:$0xff] (!%p1153_p11)  ;;  %v855_v27 = vunpack.c.0.s8 (!%p1153_p11), %v854_v17 }
 0x14a   : > { %786 = vst [vmem:[#allocation2 + $0x20] sm:$0xff] %v778_v32  ;;  %v780_v38 = vadd.f32 %v770_v33, %v338_v30  ;;  %v795_v41 = vld [vmem:[#allocation2 + $0x8] sm:$0xff] (!%p1153_p11)  ;;  %v874_v45 = vmul.f32 (!%p1153_p11), %v794_v40, %v794_v40 }
 0x14b   : > { %787 = vst [vmem:[#allocation2 + $0x28] sm:$0xff] %v779_v36  ;;  %v781_v39 = vadd.f32 %v772_v37, %v339_v34  ;;  %v796_v42 = vld [vmem:[#allocation2 + $0x10] sm:$0xff] (!%p1153_p11)  ;;  %v1167_v44 = vpack.c.bf16 (!%p1153_p11), %v795_v41, %v794_v40  ;;  %v875_v46 = vmul.f32 (!%p1153_p11), %v795_v41, %v795_v41  ;;  %v858_v36 = vsub.s32 (!%p1153_p11), %v855_v27, %v857_v23 }
 0x14c   : > { %788 = vst [vmem:[#allocation2 + $0x30] sm:$0xff] %v780_v38  ;;  %v797_v47 = vld [vmem:[#allocation2 + $0x18] sm:$0xff] (!%p1153_p11)  ;;  %v832_v48 = vadd.f32 (!%p1153_p11), %v796_v42, %v794_v40  ;;  %v876_v53 = vmul.f32 (!%p1153_p11), %v796_v42, %v796_v42 }
 0x14d   : > { %789 = vst [vmem:[#allocation2 + $0x38] sm:$0xff] %v781_v39  ;;  %v1168_v51 = vpack.c.bf16 (!%p1153_p11), %v797_v47, %v796_v42  ;;  %v841_v52 = vadd.f32 (!%p1153_p11), %v797_v47, %v795_v41  ;;  %v877_v54 = vmul.f32 (!%p1153_p11), %v797_v47, %v797_v47  ;;  %826 = vst [vmem:[%s1522_s2] sm:$0xff] (!%p1153_p11), %v1167_v44 }
 0x14e   : > { %v882_v61 = vadd.f32 %v876_v53, %v874_v45 }
 0x14f   : > { %827 = vst [vmem:[%s1522_s2 + $0x8] sm:$0xff] %v1168_v51  ;;  %v891_v62 = vadd.f32 %v877_v54, %v875_v46 }
 0x151   : > { %v798_v49 = vld [vmem:[#allocation2 + $0x20] sm:$0xff] }
 0x152   : > { %v799_v50 = vld [vmem:[#allocation2 + $0x28] sm:$0xff]  ;;  %v833_v58 = vadd.f32 %v832_v48, %v798_v49  ;;  %v878_v59 = vmul.f32 %v798_v49, %v798_v49 }
 0x153   : > { %v800_v55 = vld [vmem:[#allocation2 + $0x30] sm:$0xff]  ;;  %v1169_v57 = vpack.c.bf16 %v799_v50, %v798_v49  ;;  %v879_v60 = vmul.f32 %v799_v50, %v799_v50  ;;  %v842_v63 = vadd.f32 %v841_v52, %v799_v50 }
 0x154   : > { %v801_v56 = vld [vmem:[#allocation2 + $0x38] sm:$0xff]  ;;  %v834_v1 = vadd.f32 %v833_v58, %v800_v55  ;;  %v880_v2 = vmul.f32 %v800_v55, %v800_v55  ;;  %v883_v4 = vadd.f32 %v882_v61, %v878_v59 }
 0x155   : > { %v1170_v0 = vpack.c.bf16 %v801_v56, %v800_v55  ;;  %828 = vst [vmem:[%s1522_s2 + $0x10] sm:$0xff] %v1169_v57  ;;  %v881_v3 = vmul.f32 %v801_v56, %v801_v56  ;;  %v892_v5 = vadd.f32 %v891_v62, %v879_v60  ;;  %v843_v6 = vadd.f32 %v842_v63, %v801_v56 }
 0x156   : > { %v835_v7 = vrot.slane %v834_v1, 4  ;;  %v884_v9 = vadd.f32 %v883_v4, %v880_v2 }
 0x157   : > { %829 = vst [vmem:[%s1522_s2 + $0x18] sm:$0xff] %v1170_v0  ;;  %v844_v8 = vrot.slane %v843_v6, 4  ;;  %v893_v10 = vadd.f32 %v892_v5, %v881_v3 }
 0x158   : > { %v836_v11 = vadd.f32 %v835_v7, %v834_v1  ;;  %v885_v14 = vrot.slane %v884_v9, 4 }
 0x159   : > { %v845_v13 = vadd.f32 %v844_v8, %v843_v6  ;;  %v894_v15 = vrot.slane %v893_v10, 4 }
 0x15a   : > { %v837_v18 = vrot.slane %v836_v11, 2  ;;  %v886_v20 = vadd.f32 %v885_v14, %v884_v9 }
 0x15b   : > { %v846_v19 = vrot.slane %v845_v13, 2  ;;  %v895_v21 = vadd.f32 %v894_v15, %v893_v10 }
 0x15c   : > { %v838_v22 = vadd.f32 %v837_v18, %v836_v11  ;;  %v887_v25 = vrot.slane %v886_v20, 2 }
 0x15d   : > { %v847_v24 = vadd.f32 %v846_v19, %v845_v13  ;;  %v896_v26 = vrot.slane %v895_v21, 2 }
 0x15e   : > { %v839_v28 = vrot.slane %v838_v22, 1  ;;  %v888_v30 = vadd.f32 %v887_v25, %v886_v20 }
 0x15f   : > { %v848_v29 = vrot.slane %v847_v24, 1  ;;  %v897_v31 = vadd.f32 %v896_v26, %v895_v21 }
 0x160   : > { %v840_v32 = vadd.f32 %v839_v28, %v838_v22  ;;  %v889_v34 = vrot.slane %v888_v30, 1 }
 0x161   : > { %v849_v33 = vadd.f32 %v848_v29, %v847_v24  ;;  %v898_v35 = vrot.slane %v897_v31, 1 }
 0x162   : > { %v890_v37 = vadd.f32 %v889_v34, %v888_v30 }
 0x163   : > { %v899_v38 = vadd.f32 %v898_v35, %v897_v31  ;;  %v852_v39 = vcombine.low %v840_v32, %v849_v33 }
 0x165   : > { %v859_v40 = vrot.slane %v852_v39, %v858_v36  ;;  %v902_v41 = vcombine.low %v890_v37, %v899_v38 }
 0x167   : > { %v866_v42 = vrot.slane %v859_v40, %v858_v36  ;;  %v909_v43 = vrot.slane %v902_v41, %v858_v36 }
 0x169   : > { %872 = vst.msk [vmem:[%s1523_s3] ss:$8 sm:$0x3] %vm870_vm0, %v866_v42  ;;  %v916_v44 = vrot.slane %v909_v43, %v858_v36 }
 0x16b   : > { %1158 = vst.msk [vmem:[%s1523_s3 + $0x1] ss:$8 sm:$0x3] %vm870_vm0, %v916_v44 }
 0x16c PF: > { %s14_s16 = sadd.s32 1, %s1343_s16   ;;  %s1524_s12 = smov %s1331_s13 }
 0x16d   : > { %p11_p12 = scmp.ge.s32.totalorder %s14_s16, 5   ;;  %s1525_s13 = smov %s1404_s20 }
 0x16e   : > { %s1526_s14 = smov %s1339_s15  ;;  %s1527_s15 = smov %s1529_s17 }
 0x16f   :  { %13 = sbr.rel (!%p11_p12) target bundleno = 3 (0x3), region = 119 }

// kernel: _lambda_.81
= control target key start
LH: loop header
LB: loop body
LE: loop exit
PB: predicated region body
PF: predicated region fallthrough
CT: control target
= control target key end

     0   :  { %v656_v40 = vmov 0.0   ;;  %s812_s1 = inlined_call_operand.vmem [shape: bf16[512,128], index: 1, kind: input, shape index: {}]   ;;  %s813_s0 = inlined_call_operand.vmem [shape: bf16[32,512], index: 0, kind: input, shape index: {}]   ;;  %s814_s3 = inlined_call_operand.vmem [shape: f32[8,128], index: 3, kind: output, shape index: {1}]   ;;  %s815_s2 = inlined_call_operand.vmem [shape: bf16[32,128], index: 2, kind: output, shape index: {0}]  }
   0x1   :  { %v612_v0 = vld [vmem:[%s812_s1 + $0x40] sm:$0xff]   ;;  %v616_v4 = vld [vmem:[%s812_s1 + $0x48] sm:$0xff]   ;;  %v620_v8 = vld [vmem:[%s812_s1 + $0x50] sm:$0xff]   ;;  %463 = vst [vmem:[%s814_s3] sm:$0xff] %v656_v40 }
   0x2   :  { %v613_v1 = vld [vmem:[%s812_s1 + $0xc0] sm:$0xff]   ;;  %555 = vmatprep.subr.bf16.mxu0 %v612_v0  ;;  %v617_v5 = vld [vmem:[%s812_s1 + $0xc8] sm:$0xff]   ;;  %v621_v9 = vld [vmem:[%s812_s1 + $0xd0] sm:$0xff]  }
   0x3   :  { %v614_v2 = vld [vmem:[%s812_s1] sm:$0xff]   ;;  %583 = vmatprep.subr.bf16.mxu1 %v613_v1  ;;  %v618_v6 = vld [vmem:[%s812_s1 + $0x8] sm:$0xff]   ;;  %v622_v10 = vld [vmem:[%s812_s1 + $0x10] sm:$0xff]  }
   0x4   :  { %v615_v3 = vld [vmem:[%s812_s1 + $0x80] sm:$0xff]   ;;  %556 = vmatpush3.bf16.msra.mxu0 %v614_v2  ;;  %v619_v7 = vld [vmem:[%s812_s1 + $0x88] sm:$0xff]   ;;  %v623_v11 = vld [vmem:[%s812_s1 + $0x90] sm:$0xff]  }
   0x5   :  { %584 = vmatpush3.bf16.msra.mxu1 %v615_v3  ;;  %557 = vmatprep.subr.bf16.mxu0 %v616_v4  ;;  %v624_v12 = vld [vmem:[%s812_s1 + $0x58] sm:$0xff]   ;;  %v628_v16 = vld [vmem:[%s812_s1 + $0x60] sm:$0xff]   ;;  %v632_v20 = vld [vmem:[%s812_s1 + $0x68] sm:$0xff]  }
   0x6   :  { %585 = vmatprep.subr.bf16.mxu1 %v617_v5  ;;  %v625_v13 = vld [vmem:[%s812_s1 + $0xd8] sm:$0xff]   ;;  %v629_v17 = vld [vmem:[%s812_s1 + $0xe0] sm:$0xff]   ;;  %v633_v21 = vld [vmem:[%s812_s1 + $0xe8] sm:$0xff]  }
   0x7   :  { %v626_v14 = vld [vmem:[%s812_s1 + $0x18] sm:$0xff]   ;;  %v630_v18 = vld [vmem:[%s812_s1 + $0x20] sm:$0xff]   ;;  %v634_v22 = vld [vmem:[%s812_s1 + $0x28] sm:$0xff]  }
   0x8   :  { %558 = vmatpush3.bf16.msra.mxu0 %v618_v6  ;;  %v627_v15 = vld [vmem:[%s812_s1 + $0x98] sm:$0xff]   ;;  %v631_v19 = vld [vmem:[%s812_s1 + $0xa0] sm:$0xff]   ;;  %v635_v23 = vld [vmem:[%s812_s1 + $0xa8] sm:$0xff]  }
   0x9   :  { %586 = vmatpush3.bf16.msra.mxu1 %v619_v7  ;;  %559 = vmatprep.subr.bf16.mxu0 %v620_v8  ;;  %v636_v24 = vld [vmem:[%s812_s1 + $0x70] sm:$0xff]   ;;  %v640_v28 = vld [vmem:[%s812_s1 + $0x78] sm:$0xff]  }
   0xa   :  { %587 = vmatprep.subr.bf16.mxu1 %v621_v9  ;;  %v637_v25 = vld [vmem:[%s812_s1 + $0xf0] sm:$0xff]   ;;  %v641_v29 = vld [vmem:[%s812_s1 + $0xf8] sm:$0xff]  }
   0xb   :  { %v638_v26 = vld [vmem:[%s812_s1 + $0x30] sm:$0xff]   ;;  %v642_v30 = vld [vmem:[%s812_s1 + $0x38] sm:$0xff]  }
   0xc   :  { %560 = vmatpush3.bf16.msra.mxu0 %v622_v10  ;;  %v639_v27 = vld [vmem:[%s812_s1 + $0xb0] sm:$0xff]   ;;  %v643_v31 = vld [vmem:[%s812_s1 + $0xb8] sm:$0xff]  }
   0xd   :  { %588 = vmatpush3.bf16.msra.mxu1 %v623_v11  ;;  %561 = vmatprep.subr.bf16.mxu0 %v624_v12  ;;  %v644_v32 = vld [vmem:[%s813_s0] ss:$16 sps:$4 sm:$0xff]   ;;  %v646_v33 = vld [vmem:[%s813_s0 + $0x4] ss:$16 sps:$4 sm:$0xff]   ;;  %v647_v34 = vld [vmem:[%s813_s0 + $0x8] ss:$16 sps:$4 sm:$0xff]  }
   0xe   :  { %589 = vmatprep.subr.bf16.mxu1 %v625_v13  ;;  %v649_v35 = vld [vmem:[%s813_s0 + $0xc] ss:$16 sps:$4 sm:$0xff]   ;;  %362 = vmatprep.mubr.bf16.mxu0 %v646_v33  ;;  %v650_v36 = vld [vmem:[%s813_s0 + $0x24] ss:$16 sps:$4 sm:$0xff]   ;;  %v654_v38 = vld [vmem:[%s813_s0 + $0x20] ss:$16 sps:$4 sm:$0xff]  }
   0xf   :  { %411 = vmatprep.mubr.bf16.mxu1 %v649_v35  ;;  %v652_v37 = vld [vmem:[%s813_s0 + $0x2c] ss:$16 sps:$4 sm:$0xff]   ;;  %v655_v39 = vld [vmem:[%s813_s0 + $0x28] ss:$16 sps:$4 sm:$0xff]  }
  0x10   :  { %562 = vmatpush3.bf16.msra.mxu0 %v626_v14 }
  0x11   :  { %590 = vmatpush3.bf16.msra.mxu1 %v627_v15  ;;  %563 = vmatprep.subr.bf16.mxu0 %v628_v16 }
  0x12   :  { %591 = vmatprep.subr.bf16.mxu1 %v629_v17 }
  0x14   :  { %564 = vmatpush3.bf16.msra.mxu0 %v630_v18 }
  0x15   :  { %592 = vmatpush3.bf16.msra.mxu1 %v631_v19  ;;  %565 = vmatprep.subr.bf16.mxu0 %v632_v20 }
  0x16   :  { %593 = vmatprep.subr.bf16.mxu1 %v633_v21 }
  0x18   :  { %566 = vmatpush3.bf16.msra.mxu0 %v634_v22 }
  0x19   :  { %594 = vmatpush3.bf16.msra.mxu1 %v635_v23  ;;  %567 = vmatprep.subr.bf16.mxu0 %v636_v24 }
  0x1a   :  { %595 = vmatprep.subr.bf16.mxu1 %v637_v25 }
  0x1c   :  { %568 = vmatpush3.bf16.msra.mxu0 %v638_v26 }
  0x1d   :  { %596 = vmatpush3.bf16.msra.mxu1 %v639_v27  ;;  %569 = vmatprep.subr.bf16.mxu0 %v640_v28 }
  0x1e   :  { %597 = vmatprep.subr.bf16.mxu1 %v641_v29 }
  0x20   :  { %570 = vmatpush3.bf16.msra.mxu0 %v642_v30 }
  0x21   :  { %598 = vmatpush3.bf16.msra.mxu1 %v643_v31 }
  0x23   :  { %363 = vmatmul.mubr.bf16.vlgmr.msra.gmra.mrb[0].mxu0 %v644_v32 }
  0x24   :  { %412 = vmatmul.mubr.bf16.vlgmr.msra.gmra.mrb[0].mxu1 %v647_v34  ;;  %370 = vmatprep.mubr.bf16.mxu0 %v650_v36 }
  0x25   :  { %419 = vmatprep.mubr.bf16.mxu1 %v652_v37 }
  0x2b   :  { %371 = vmatmul.mubr.bf16.gmra.mrb[4].mxu0 %v654_v38 }
  0x2c   :  { %420 = vmatmul.mubr.bf16.gmra.mrb[4].mxu1 %v655_v39 }
  0xf6   :  { %v571_v41 = vpop.f32.mrb[0].mxu0 }
  0xf7   :  { %v599_v42 = vpop.f32.mrb[0].mxu1  ;;  %v572_v43 = vpop.f32.mrb[1].mxu0 }
  0xf8   :  { %v573_v44 = vadd.f32 %v572_v43, %v571_v41  ;;  %v600_v45 = vpop.f32.mrb[1].mxu1  ;;  %v574_v46 = vpop.f32.mrb[2].mxu0 }
  0xf9   :  { %v601_v47 = vadd.f32 %v600_v45, %v599_v42  ;;  %v602_v48 = vpop.f32.mrb[2].mxu1  ;;  %v575_v49 = vpop.f32.mrb[3].mxu0 }
  0xfa   :  { %v576_v50 = vadd.f32 %v575_v49, %v574_v46  ;;  %v603_v51 = vpop.f32.mrb[3].mxu1 }
  0xfb   :  { %v414_v52 = vadd.f32 %v601_v47, %v573_v44  ;;  %v604_v53 = vadd.f32 %v603_v51, %v602_v48 }
  0xfd   :  { %v417_v54 = vadd.f32 %v604_v53, %v576_v50  ;;  %v474_v56 = vmul.f32 %v414_v52, %v414_v52 }
  0xfe   :  { %v577_v55 = vpop.f32.mrb[4].mxu0 }
  0xff   :  { %v547_v57 = vpack.c.bf16 %v417_v54, %v414_v52  ;;  %v464_v58 = vadd.f32 %v417_v54, %v414_v52  ;;  %v475_v59 = vmul.f32 %v417_v54, %v417_v54  ;;  %v605_v60 = vpop.f32.mrb[4].mxu1  ;;  %v578_v61 = vpop.f32.mrb[5].mxu0 }
 0x100   :  { %v579_v62 = vadd.f32 %v578_v61, %v577_v55  ;;  %v606_v63 = vpop.f32.mrb[5].mxu1  ;;  %v580_v0 = vpop.f32.mrb[6].mxu0 }
 0x101   :  { %548 = vst [vmem:[%s815_s2] sm:$0xff] %v547_v57   ;;  %v478_v1 = vadd.f32 %v475_v59, %v474_v56  ;;  %v607_v2 = vadd.f32 %v606_v63, %v605_v60  ;;  %v608_v3 = vpop.f32.mrb[6].mxu1  ;;  %v581_v4 = vpop.f32.mrb[7].mxu0 }
 0x102   :  { %v582_v5 = vadd.f32 %v581_v4, %v580_v0  ;;  %v609_v6 = vpop.f32.mrb[7].mxu1 }
 0x103   :  { %v422_v7 = vadd.f32 %v607_v2, %v579_v62  ;;  %v610_v8 = vadd.f32 %v609_v6, %v608_v3 }
 0x105   :  { %v465_v9 = vadd.f32 %v464_v58, %v422_v7  ;;  %v476_v10 = vmul.f32 %v422_v7, %v422_v7  ;;  %v425_v11 = vadd.f32 %v610_v8, %v582_v5 }
 0x107   :  { %v479_v12 = vadd.f32 %v478_v1, %v476_v10  ;;  %v552_v13 = vpack.c.bf16 %v425_v11, %v422_v7  ;;  %v466_v14 = vadd.f32 %v465_v9, %v425_v11  ;;  %v477_v15 = vmul.f32 %v425_v11, %v425_v11 }
 0x109   :  { %554 = vst [vmem:[%s815_s2 + $0x8] sm:$0xff] %v552_v13   ;;  %v467_v16 = vrot.slane %v466_v14, 4  ;;  %v480_v17 = vadd.f32 %v479_v12, %v477_v15 }
 0x10b   :  { %v468_v18 = vadd.f32 %v467_v16, %v466_v14  ;;  %v481_v19 = vrot.slane %v480_v17, 4 }
 0x10d   :  { %v469_v20 = vrot.slane %v468_v18, 2  ;;  %v482_v21 = vadd.f32 %v481_v19, %v480_v17 }
 0x10f   :  { %v470_v22 = vadd.f32 %v469_v20, %v468_v18  ;;  %v483_v23 = vrot.slane %v482_v21, 2 }
 0x111   :  { %v471_v24 = vrot.slane %v470_v22, 1  ;;  %v484_v25 = vadd.f32 %v483_v23, %v482_v21 }
 0x113   :  { %v472_v26 = vadd.f32 %v471_v24, %v470_v22  ;;  %v485_v27 = vrot.slane %v484_v25, 1 }
 0x115   :  { %473 = vst [vmem:[%s814_s3] sm:$0x1] %v472_v26  ;;  %v486_v28 = vadd.f32 %v485_v27, %v484_v25 }
 0x117   :  { %487 = vst [vmem:[%s814_s3 + $0x1] sm:$0x1] %v486_v28 }

// kernel: _lambda_.90
= control target key start
LH: loop header
LB: loop body
LE: loop exit
PB: predicated region body
PF: predicated region fallthrough
CT: control target
= control target key end

     0   :  { %s455_s0 = inlined_call_operand.vmem [shape: bf16[128,128], index: 0, kind: input, shape index: {}]   ;;  %s456_s1 = inlined_call_operand.vmem [shape: f32[1,128], index: 1, kind: input, shape index: {}]   ;;  %s457_s2 = inlined_call_operand.vmem [shape: f32[1,128], index: 2, kind: input, shape index: {}]   ;;  %s458_s3 = inlined_call_operand.vmem [shape: bf16[128,128], index: 3, kind: output, shape index: {}]  }
   0x1   :  { %v259_v0 = vld [vmem:[%s455_s0] sm:$0xff]   ;;  %v330_v4 = vld [vmem:[%s455_s0 + $0x8] sm:$0xff]   ;;  %v331_v5 = vld [vmem:[%s455_s0 + $0x10] sm:$0xff]  }
   0x2   :  { %v370_v1 = vld [vmem:[%s456_s1] ss:$0 sm:$0xff]  ;;  %v260_v2 = vunpack.c.l.bf16 %v259_v0  ;;  %v261_v3 = vunpack.c.h.bf16 %v259_v0  ;;  %v332_v6 = vld [vmem:[%s455_s0 + $0x18] sm:$0xff]   ;;  %v264_v8 = vunpack.c.l.bf16 %v330_v4  ;;  %v265_v9 = vunpack.c.h.bf16 %v330_v4  ;;  %v334_v35 = vld [vmem:[%s455_s0 + $0x28] sm:$0xff]  }
   0x3   :  { %v384_v7 = vld [vmem:[%s457_s2] ss:$0 sm:$0xff]  ;;  %v268_v10 = vunpack.c.l.bf16 %v331_v5  ;;  %v269_v11 = vunpack.c.h.bf16 %v331_v5  ;;  %v272_v14 = vunpack.c.l.bf16 %v332_v6  ;;  %v273_v15 = vunpack.c.h.bf16 %v332_v6  ;;  %v335_v48 = vld [vmem:[%s455_s0 + $0x30] sm:$0xff]   ;;  %v336_v4 = vld [vmem:[%s455_s0 + $0x38] sm:$0xff]  }
   0x4   :  { %v53_v12 = vmul.f32 %v260_v2, %v370_v1  ;;  %v54_v13 = vmul.f32 %v261_v3, %v370_v1  ;;  %v55_v16 = vmul.f32 %v264_v8, %v370_v1  ;;  %v56_v17 = vmul.f32 %v265_v9, %v370_v1  ;;  %v333_v34 = vld [vmem:[%s455_s0 + $0x20] sm:$0xff]  }
   0x5   :  { %v57_v18 = vmul.f32 %v268_v10, %v370_v1  ;;  %v58_v19 = vmul.f32 %v269_v11, %v370_v1  ;;  %v59_v22 = vmul.f32 %v272_v14, %v370_v1  ;;  %v60_v23 = vmul.f32 %v273_v15, %v370_v1 }
   0x6   :  { %v76_v20 = vadd.f32 %v384_v7, %v53_v12  ;;  %v77_v21 = vadd.f32 %v384_v7, %v54_v13  ;;  %v78_v24 = vadd.f32 %v384_v7, %v55_v16  ;;  %v79_v25 = vadd.f32 %v384_v7, %v56_v17 }
   0x7   :  { %v80_v26 = vadd.f32 %v384_v7, %v57_v18  ;;  %v81_v27 = vadd.f32 %v384_v7, %v58_v19  ;;  %v82_v42 = vadd.f32 %v384_v7, %v59_v22  ;;  %v83_v43 = vadd.f32 %v384_v7, %v60_v23 }
   0x8   :  { %vm92_vm0 = vcmp.ge.f32.partialorder %v76_v20, 0.0  ;;  %vm93_vm1 = vcmp.ge.f32.partialorder %v77_v21, 0.0  ;;  %v108_v28 = vmul.f32 0.1, %v76_v20  ;;  %v109_v29 = vmul.f32 0.1, %v77_v21 }
   0x9   :  { %vm94_vm2 = vcmp.ge.f32.partialorder %v78_v24, 0.0  ;;  %vm95_vm3 = vcmp.ge.f32.partialorder %v79_v25, 0.0  ;;  %v110_v30 = vmul.f32 0.1, %v78_v24  ;;  %v111_v31 = vmul.f32 0.1, %v79_v25 }
   0xa   :  { %v124_v32 = vsel %vm92_vm0, %v76_v20, %v108_v28  ;;  %v125_v33 = vsel %vm93_vm1, %v77_v21, %v109_v29  ;;  %vm96_vm4 = vcmp.ge.f32.partialorder %v80_v26, 0.0  ;;  %vm97_vm5 = vcmp.ge.f32.partialorder %v81_v27, 0.0 }
   0xb   :  { %v293_v36 = vpack.c.bf16 %v125_v33, %v124_v32  ;;  %v126_v37 = vsel %vm94_vm2, %v78_v24, %v110_v30  ;;  %v127_v38 = vsel %vm95_vm3, %v79_v25, %v111_v31  ;;  %v112_v39 = vmul.f32 0.1, %v80_v26 }
   0xc   :  { %v298_v40 = vpack.c.bf16 %v127_v38, %v126_v37  ;;  %v113_v41 = vmul.f32 0.1, %v81_v27  ;;  %v276_v45 = vunpack.c.l.bf16 %v333_v34  ;;  %v277_v46 = vunpack.c.h.bf16 %v333_v34 }
   0xd   :  { %294 = vst [vmem:[%s458_s3] sm:$0xff] %v293_v36   ;;  %v128_v44 = vsel %vm96_vm4, %v80_v26, %v112_v39  ;;  %v280_v47 = vunpack.c.l.bf16 %v334_v35  ;;  %vm98_vm6 = vcmp.ge.f32.partialorder %v82_v42, 0.0  ;;  %vm99_vm7 = vcmp.ge.f32.partialorder %v83_v43, 0.0 }
   0xe   :  { %337 = vst [vmem:[%s458_s3 + $0x8] sm:$0xff] %v298_v40   ;;  %v129_v49 = vsel %vm97_vm5, %v81_v27, %v113_v41  ;;  %v114_v50 = vmul.f32 0.1, %v82_v42  ;;  %v115_v52 = vmul.f32 0.1, %v83_v43  ;;  %v61_v53 = vmul.f32 %v276_v45, %v370_v1 }
   0xf   :  { %v303_v51 = vpack.c.bf16 %v129_v49, %v128_v44  ;;  %v62_v54 = vmul.f32 %v277_v46, %v370_v1  ;;  %v281_v56 = vunpack.c.h.bf16 %v334_v35  ;;  %v63_v57 = vmul.f32 %v280_v47, %v370_v1 }
  0x10   :  { %v130_v55 = vsel %vm98_vm6, %v82_v42, %v114_v50  ;;  %v284_v58 = vunpack.c.l.bf16 %v335_v48  ;;  %v131_v59 = vsel %vm99_vm7, %v83_v43, %v115_v52  ;;  %v84_v60 = vadd.f32 %v384_v7, %v61_v53 }
  0x11   :  { %338 = vst [vmem:[%s458_s3 + $0x10] sm:$0xff] %v303_v51   ;;  %v85_v61 = vadd.f32 %v384_v7, %v62_v54  ;;  %v285_v62 = vunpack.c.h.bf16 %v335_v48  ;;  %v308_v63 = vpack.c.bf16 %v131_v59, %v130_v55  ;;  %v64_v0 = vmul.f32 %v281_v56, %v370_v1 }
  0x12   :  { %v86_v2 = vadd.f32 %v384_v7, %v63_v57  ;;  %v65_v3 = vmul.f32 %v284_v58, %v370_v1  ;;  %vm100_vm8 = vcmp.ge.f32.partialorder %v84_v60, 0.0  ;;  %v116_v5 = vmul.f32 0.1, %v84_v60 }
  0x13   :  { %vm101_vm9 = vcmp.ge.f32.partialorder %v85_v61, 0.0  ;;  %v117_v6 = vmul.f32 0.1, %v85_v61  ;;  %339 = vst [vmem:[%s458_s3 + $0x18] sm:$0xff] %v308_v63   ;;  %v87_v8 = vadd.f32 %v384_v7, %v64_v0  ;;  %v66_v10 = vmul.f32 %v285_v62, %v370_v1 }
  0x14   :  { %vm102_vm10 = vcmp.ge.f32.partialorder %v86_v2, 0.0  ;;  %v118_v9 = vmul.f32 0.1, %v86_v2  ;;  %v132_v11 = vsel %vm100_vm8, %v84_v60, %v116_v5  ;;  %v88_v13 = vadd.f32 %v384_v7, %v65_v3 }
  0x15   :  { %v133_v12 = vsel %vm101_vm9, %v85_v61, %v117_v6  ;;  %v288_v14 = vunpack.c.l.bf16 %v336_v4  ;;  %vm103_vm11 = vcmp.ge.f32.partialorder %v87_v8, 0.0  ;;  %v119_v16 = vmul.f32 0.1, %v87_v8 }
  0x16   :  { %v313_v15 = vpack.c.bf16 %v133_v12, %v132_v11  ;;  %v134_v17 = vsel %vm102_vm10, %v86_v2, %v118_v9  ;;  %v89_v18 = vadd.f32 %v384_v7, %v66_v10  ;;  %vm104_vm12 = vcmp.ge.f32.partialorder %v88_v13, 0.0 }
  0x17   :  { %v120_v19 = vmul.f32 0.1, %v88_v13  ;;  %v289_v20 = vunpack.c.h.bf16 %v336_v4  ;;  %v135_v21 = vsel %vm103_vm11, %v87_v8, %v119_v16  ;;  %v67_v22 = vmul.f32 %v288_v14, %v370_v1 }
  0x18   :  { %340 = vst [vmem:[%s458_s3 + $0x20] sm:$0xff] %v313_v15   ;;  %v318_v23 = vpack.c.bf16 %v135_v21, %v134_v17  ;;  %vm105_vm13 = vcmp.ge.f32.partialorder %v89_v18, 0.0  ;;  %v121_v24 = vmul.f32 0.1, %v89_v18 }
  0x19   :  { %v136_v25 = vsel %vm104_vm12, %v88_v13, %v120_v19  ;;  %v68_v26 = vmul.f32 %v289_v20, %v370_v1  ;;  %v90_v27 = vadd.f32 %v384_v7, %v67_v22 }
  0x1a   :  { %341 = vst [vmem:[%s458_s3 + $0x28] sm:$0xff] %v318_v23   ;;  %v137_v28 = vsel %vm105_vm13, %v89_v18, %v121_v24 }
  0x1b   :  { %v323_v29 = vpack.c.bf16 %v137_v28, %v136_v25  ;;  %v91_v30 = vadd.f32 %v384_v7, %v68_v26  ;;  %vm106_vm14 = vcmp.ge.f32.partialorder %v90_v27, 0.0  ;;  %v122_v31 = vmul.f32 0.1, %v90_v27 }
  0x1d   :  { %342 = vst [vmem:[%s458_s3 + $0x30] sm:$0xff] %v323_v29   ;;  %vm107_vm15 = vcmp.ge.f32.partialorder %v91_v30, 0.0  ;;  %v123_v32 = vmul.f32 0.1, %v91_v30  ;;  %v138_v33 = vsel %vm106_vm14, %v90_v27, %v122_v31 }
  0x1f   :  { %v139_v1 = vsel %vm107_vm15, %v91_v30, %v123_v32 }
  0x20   :  { %v328_v34 = vpack.c.bf16 %v139_v1, %v138_v33 }
  0x22   :  { %343 = vst [vmem:[%s458_s3 + $0x38] sm:$0xff] %v328_v34  }

// kernel: _lambda_.89
= control target key start
LH: loop header
LB: loop body
LE: loop exit
PB: predicated region body
PF: predicated region fallthrough
CT: control target
= control target key end

     0   :  { %v651_v16 = vmov 0.0   ;;  %s753_s1 = inlined_call_operand.vmem [shape: bf16[128,128], index: 1, kind: input, shape index: {}]   ;;  %s754_s0 = inlined_call_operand.vmem [shape: bf16[128,128], index: 0, kind: input, shape index: {}]   ;;  %s755_s3 = inlined_call_operand.vmem [shape: f32[8,128], index: 3, kind: output, shape index: {1}]   ;;  %s756_s2 = inlined_call_operand.vmem [shape: bf16[128,128], index: 2, kind: output, shape index: {0}]  }
   0x1   :  { %v635_v0 = vld [vmem:[%s753_s1] sm:$0xff]   ;;  %v636_v1 = vld [vmem:[%s753_s1 + $0x8] sm:$0xff]   ;;  %v637_v2 = vld [vmem:[%s753_s1 + $0x10] sm:$0xff]   ;;  %406 = vst [vmem:[%s755_s3] sm:$0xff] %v651_v16 }
   0x2   :  { %586 = vmatprep.subr.bf16.mxu0 %v635_v0  ;;  %618 = vmatprep.subr.bf16.mxu1 %v635_v0  ;;  %v638_v3 = vld [vmem:[%s753_s1 + $0x18] sm:$0xff]   ;;  %v643_v4 = vld [vmem:[%s754_s0] sm:$0xff]   ;;  %v640_v7 = vld [vmem:[%s753_s1 + $0x28] sm:$0xff]  }
   0x3   :  { %587 = vmatpush3.bf16.msra.mxu0 %v635_v0  ;;  %626 = vmatpush3.bf16.msra.mxu1 %v635_v0  ;;  %v639_v5 = vld [vmem:[%s753_s1 + $0x20] sm:$0xff]   ;;  %v641_v8 = vld [vmem:[%s753_s1 + $0x30] sm:$0xff]   ;;  %v642_v9 = vld [vmem:[%s753_s1 + $0x38] sm:$0xff]  }
   0x4   :  { %588 = vmatprep.subr.bf16.mxu0 %v636_v1  ;;  %619 = vmatprep.subr.bf16.mxu1 %v636_v1  ;;  %v647_v6 = vld [vmem:[%s754_s0 + $0x20] sm:$0xff]   ;;  %v644_v10 = vld [vmem:[%s754_s0 + $0x8] sm:$0xff]   ;;  %v645_v12 = vld [vmem:[%s754_s0 + $0x10] sm:$0xff]  }
   0x5   :  { %602 = vmatprep.mubr.bf16.mxu0 %v643_v4  ;;  %610 = vmatprep.mubr.bf16.mxu1 %v647_v6  ;;  %v648_v11 = vld [vmem:[%s754_s0 + $0x28] sm:$0xff]   ;;  %v649_v13 = vld [vmem:[%s754_s0 + $0x30] sm:$0xff]   ;;  %v646_v14 = vld [vmem:[%s754_s0 + $0x18] sm:$0xff]  }
   0x6   :  { %v650_v15 = vld [vmem:[%s754_s0 + $0x38] sm:$0xff]  }
   0x7   :  { %589 = vmatpush3.bf16.msra.mxu0 %v636_v1  ;;  %627 = vmatpush3.bf16.msra.mxu1 %v636_v1 }
   0x8   :  { %590 = vmatprep.subr.bf16.mxu0 %v637_v2  ;;  %620 = vmatprep.subr.bf16.mxu1 %v637_v2 }
   0xb   :  { %591 = vmatpush3.bf16.msra.mxu0 %v637_v2  ;;  %628 = vmatpush3.bf16.msra.mxu1 %v637_v2 }
   0xc   :  { %592 = vmatprep.subr.bf16.mxu0 %v638_v3  ;;  %621 = vmatprep.subr.bf16.mxu1 %v638_v3 }
   0xf   :  { %593 = vmatpush3.bf16.msra.mxu0 %v638_v3  ;;  %629 = vmatpush3.bf16.msra.mxu1 %v638_v3 }
  0x10   :  { %594 = vmatprep.subr.bf16.mxu0 %v639_v5  ;;  %622 = vmatprep.subr.bf16.mxu1 %v639_v5 }
  0x13   :  { %595 = vmatpush3.bf16.msra.mxu0 %v639_v5  ;;  %630 = vmatpush3.bf16.msra.mxu1 %v639_v5 }
  0x14   :  { %596 = vmatprep.subr.bf16.mxu0 %v640_v7  ;;  %623 = vmatprep.subr.bf16.mxu1 %v640_v7 }
  0x17   :  { %597 = vmatpush3.bf16.msra.mxu0 %v640_v7  ;;  %631 = vmatpush3.bf16.msra.mxu1 %v640_v7 }
  0x18   :  { %598 = vmatprep.subr.bf16.mxu0 %v641_v8  ;;  %624 = vmatprep.subr.bf16.mxu1 %v641_v8 }
  0x1b   :  { %599 = vmatpush3.bf16.msra.mxu0 %v641_v8  ;;  %632 = vmatpush3.bf16.msra.mxu1 %v641_v8 }
  0x1c   :  { %600 = vmatprep.subr.bf16.mxu0 %v642_v9  ;;  %625 = vmatprep.subr.bf16.mxu1 %v642_v9 }
  0x1f   :  { %601 = vmatpush3.bf16.msra.mxu0 %v642_v9  ;;  %633 = vmatpush3.bf16.msra.mxu1 %v642_v9 }
  0x22   :  { %603 = vmatmul.mubr.bf16.vlgmr.msra.gmra.mrb[0].mxu0 %v644_v10  ;;  %611 = vmatmul.mubr.bf16.vlgmr.msra.gmra.mrb[0].mxu1 %v648_v11 }
  0x23   :  { %606 = vmatprep.mubr.bf16.mxu0 %v645_v12  ;;  %614 = vmatprep.mubr.bf16.mxu1 %v649_v13 }
  0x2a   :  { %607 = vmatmul.mubr.bf16.gmra.mrb[4].mxu0 %v646_v14  ;;  %615 = vmatmul.mubr.bf16.gmra.mrb[4].mxu1 %v650_v15 }
  0xf5   :  { %v604_v17 = vpop.f32.mrb[0].mxu0  ;;  %v612_v18 = vpop.f32.mrb[0].mxu1 }
  0xf6   :  { %v212_v19 = vpop.f32.mrb[1].mxu0  ;;  %v244_v20 = vpop.f32.mrb[1].mxu1  ;;  %v431_v32 = vmul.f32 %v604_v17, %v604_v17  ;;  %v439_v4 = vmul.f32 %v612_v18, %v612_v18 }
  0xf7   :  { %v605_v21 = vpop.f32.mrb[2].mxu0  ;;  %v613_v22 = vpop.f32.mrb[2].mxu1  ;;  %v429_v23 = vmul.f32 %v212_v19, %v212_v19  ;;  %v437_v62 = vmul.f32 %v244_v20, %v244_v20 }
  0xf8   :  { %v531_v24 = vpack.c.bf16 %v605_v21, %v604_v17  ;;  %v215_v25 = vpop.f32.mrb[3].mxu0  ;;  %v551_v26 = vpack.c.bf16 %v613_v22, %v612_v18  ;;  %v247_v27 = vpop.f32.mrb[3].mxu1  ;;  %v432_v35 = vmul.f32 %v605_v21, %v605_v21  ;;  %v440_v7 = vmul.f32 %v613_v22, %v613_v22 }
  0xf9   :  { %v526_v28 = vpack.c.bf16 %v215_v25, %v212_v19  ;;  %v407_v29 = vadd.f32 %v215_v25, %v212_v19  ;;  %v430_v30 = vmul.f32 %v215_v25, %v215_v25  ;;  %v546_v31 = vpack.c.bf16 %v247_v27, %v244_v20 }
  0xfa   :  { %563 = vst [vmem:[%s756_s2 + $0x8] sm:$0xff] %v531_v24   ;;  %567 = vst [vmem:[%s756_s2 + $0x28] sm:$0xff] %v551_v26   ;;  %v438_v3 = vmul.f32 %v247_v27, %v247_v27 }
  0xfb   :  { %527 = vst [vmem:[%s756_s2] sm:$0xff] %v526_v28   ;;  %v408_v33 = vadd.f32 %v604_v17, %v407_v29  ;;  %v445_v34 = vadd.f32 %v430_v30, %v429_v23  ;;  %566 = vst [vmem:[%s756_s2 + $0x20] sm:$0xff] %v546_v31  }
  0xfd   :  { %v446_v36 = vadd.f32 %v445_v34, %v431_v32  ;;  %v608_v37 = vpop.f32.mrb[4].mxu0  ;;  %v409_v38 = vadd.f32 %v605_v21, %v408_v33  ;;  %v616_v39 = vpop.f32.mrb[4].mxu1 }
  0xfe   :  { %v228_v40 = vpop.f32.mrb[5].mxu0  ;;  %v260_v41 = vpop.f32.mrb[5].mxu1  ;;  %v435_v56 = vmul.f32 %v608_v37, %v608_v37  ;;  %v443_v16 = vmul.f32 %v616_v39, %v616_v39 }
  0xff   :  { %v410_v42 = vadd.f32 %v409_v38, %v228_v40  ;;  %v433_v43 = vmul.f32 %v228_v40, %v228_v40  ;;  %v447_v44 = vadd.f32 %v446_v36, %v432_v35  ;;  %v609_v45 = vpop.f32.mrb[6].mxu0  ;;  %v617_v46 = vpop.f32.mrb[6].mxu1  ;;  %v441_v10 = vmul.f32 %v260_v41, %v260_v41 }
 0x100   :  { %v541_v47 = vpack.c.bf16 %v609_v45, %v608_v37  ;;  %v231_v48 = vpop.f32.mrb[7].mxu0  ;;  %v561_v49 = vpack.c.bf16 %v617_v46, %v616_v39  ;;  %v263_v50 = vpop.f32.mrb[7].mxu1  ;;  %v436_v59 = vmul.f32 %v609_v45, %v609_v45 }
 0x101   :  { %v448_v51 = vadd.f32 %v447_v44, %v433_v43  ;;  %v536_v52 = vpack.c.bf16 %v231_v48, %v228_v40  ;;  %v411_v53 = vadd.f32 %v410_v42, %v231_v48  ;;  %v434_v54 = vmul.f32 %v231_v48, %v231_v48 }
 0x102   :  { %565 = vst [vmem:[%s756_s2 + $0x18] sm:$0xff] %v541_v47   ;;  %569 = vst [vmem:[%s756_s2 + $0x38] sm:$0xff] %v561_v49   ;;  %v556_v55 = vpack.c.bf16 %v263_v50, %v260_v41  ;;  %v442_v15 = vmul.f32 %v263_v50, %v263_v50 }
 0x103   :  { %564 = vst [vmem:[%s756_s2 + $0x10] sm:$0xff] %v536_v52   ;;  %v412_v57 = vadd.f32 %v608_v37, %v411_v53  ;;  %v449_v58 = vadd.f32 %v448_v51, %v434_v54 }
 0x104   :  { %568 = vst [vmem:[%s756_s2 + $0x30] sm:$0xff] %v556_v55  }
 0x105   :  { %v450_v60 = vadd.f32 %v449_v58, %v435_v56  ;;  %v413_v61 = vadd.f32 %v609_v45, %v412_v57 }
 0x107   :  { %v414_v63 = vadd.f32 %v413_v61, %v244_v20  ;;  %v451_v0 = vadd.f32 %v450_v60, %v436_v59  ;;  %v444_v20 = vmul.f32 %v617_v46, %v617_v46 }
 0x109   :  { %v452_v1 = vadd.f32 %v451_v0, %v437_v62  ;;  %v415_v2 = vadd.f32 %v414_v63, %v247_v27 }
 0x10b   :  { %v416_v5 = vadd.f32 %v612_v18, %v415_v2  ;;  %v453_v6 = vadd.f32 %v452_v1, %v438_v3 }
 0x10d   :  { %v454_v8 = vadd.f32 %v453_v6, %v439_v4  ;;  %v417_v9 = vadd.f32 %v613_v22, %v416_v5 }
 0x10f   :  { %v418_v11 = vadd.f32 %v417_v9, %v260_v41  ;;  %v455_v12 = vadd.f32 %v454_v8, %v440_v7 }
 0x111   :  { %v456_v13 = vadd.f32 %v455_v12, %v441_v10  ;;  %v419_v14 = vadd.f32 %v418_v11, %v263_v50 }
 0x113   :  { %v420_v17 = vadd.f32 %v616_v39, %v419_v14  ;;  %v457_v19 = vadd.f32 %v456_v13, %v442_v15 }
 0x115   :  { %v421_v21 = vadd.f32 %v617_v46, %v420_v17  ;;  %v458_v23 = vadd.f32 %v457_v19, %v443_v16 }
 0x117   :  { %v422_v24 = vrot.slane %v421_v21, 4  ;;  %v459_v25 = vadd.f32 %v458_v23, %v444_v20 }
 0x119   :  { %v423_v26 = vadd.f32 %v422_v24, %v421_v21  ;;  %v460_v18 = vrot.slane %v459_v25, 4 }
 0x11b   :  { %v424_v27 = vrot.slane %v423_v26, 2  ;;  %v461_v28 = vadd.f32 %v460_v18, %v459_v25 }
 0x11d   :  { %v425_v29 = vadd.f32 %v424_v27, %v423_v26  ;;  %v462_v22 = vrot.slane %v461_v28, 2 }
 0x11f   :  { %v426_v30 = vrot.slane %v425_v29, 1  ;;  %v463_v31 = vadd.f32 %v462_v22, %v461_v28 }
 0x121   :  { %v427_v32 = vadd.f32 %v426_v30, %v425_v29  ;;  %v464_v33 = vrot.slane %v463_v31, 1 }
 0x123   :  { %428 = vst [vmem:[%s755_s3] sm:$0x1] %v427_v32  ;;  %v465_v34 = vadd.f32 %v464_v33, %v463_v31 }
 0x125   :  { %466 = vst [vmem:[%s755_s3 + $0x1] sm:$0x1] %v465_v34 }

// kernel: _lambda_.87
= control target key start
LH: loop header
LB: loop body
LE: loop exit
PB: predicated region body
PF: predicated region fallthrough
CT: control target
= control target key end

     0   :  { %v293_v10 = vmov 0.0   ;;  %s359_s1 = inlined_call_operand.vmem [shape: bf16[128,128], index: 1, kind: input, shape index: {}]   ;;  %s360_s0 = inlined_call_operand.vmem [shape: bf16[32,128], index: 0, kind: input, shape index: {}]   ;;  %s361_s3 = inlined_call_operand.vmem [shape: f32[8,128], index: 3, kind: output, shape index: {1}]   ;;  %s362_s2 = inlined_call_operand.vmem [shape: bf16[32,128], index: 2, kind: output, shape index: {0}]  }
   0x1   :  { %v283_v0 = vld [vmem:[%s359_s1] sm:$0xff]   ;;  %v284_v1 = vld [vmem:[%s359_s1 + $0x8] sm:$0xff]   ;;  %v285_v2 = vld [vmem:[%s359_s1 + $0x10] sm:$0xff]   ;;  %190 = vst [vmem:[%s361_s3] sm:$0xff] %v293_v10 }
   0x2   :  { %262 = vmatprep.subr.bf16.mxu0 %v283_v0  ;;  %v286_v3 = vld [vmem:[%s359_s1 + $0x18] sm:$0xff]   ;;  %v291_v4 = vld [vmem:[%s360_s0] sm:$0xff]   ;;  %v288_v6 = vld [vmem:[%s359_s1 + $0x28] sm:$0xff]  }
   0x3   :  { %263 = vmatpush3.bf16.msra.mxu0 %v283_v0  ;;  %278 = vmatprep.mubr.bf16.mxu0 %v291_v4  ;;  %v287_v5 = vld [vmem:[%s359_s1 + $0x20] sm:$0xff]   ;;  %v289_v7 = vld [vmem:[%s359_s1 + $0x30] sm:$0xff]   ;;  %v290_v8 = vld [vmem:[%s359_s1 + $0x38] sm:$0xff]  }
   0x4   :  { %264 = vmatprep.subr.bf16.mxu0 %v284_v1  ;;  %v292_v9 = vld [vmem:[%s360_s0 + $0x8] sm:$0xff]  }
   0x7   :  { %265 = vmatpush3.bf16.msra.mxu0 %v284_v1 }
   0x8   :  { %266 = vmatprep.subr.bf16.mxu0 %v285_v2 }
   0xb   :  { %267 = vmatpush3.bf16.msra.mxu0 %v285_v2 }
   0xc   :  { %268 = vmatprep.subr.bf16.mxu0 %v286_v3 }
   0xf   :  { %269 = vmatpush3.bf16.msra.mxu0 %v286_v3 }
  0x10   :  { %270 = vmatprep.subr.bf16.mxu0 %v287_v5 }
  0x13   :  { %271 = vmatpush3.bf16.msra.mxu0 %v287_v5 }
  0x14   :  { %272 = vmatprep.subr.bf16.mxu0 %v288_v6 }
  0x17   :  { %273 = vmatpush3.bf16.msra.mxu0 %v288_v6 }
  0x18   :  { %274 = vmatprep.subr.bf16.mxu0 %v289_v7 }
  0x1b   :  { %275 = vmatpush3.bf16.msra.mxu0 %v289_v7 }
  0x1c   :  { %276 = vmatprep.subr.bf16.mxu0 %v290_v8 }
  0x1f   :  { %277 = vmatpush3.bf16.msra.mxu0 %v290_v8 }
  0x22   :  { %279 = vmatmul.mubr.bf16.vlgmr.msra.gmra.mrb[0].mxu0 %v292_v9 }
  0xf5   :  { %v280_v11 = vpop.f32.mrb[0].mxu0 }
  0xf6   :  { %v140_v12 = vpop.f32.mrb[1].mxu0  ;;  %v203_v20 = vmul.f32 %v280_v11, %v280_v11 }
  0xf7   :  { %v281_v13 = vpop.f32.mrb[2].mxu0  ;;  %v201_v16 = vmul.f32 %v140_v12, %v140_v12 }
  0xf8   :  { %v249_v14 = vpack.c.bf16 %v281_v13, %v280_v11  ;;  %v143_v15 = vpop.f32.mrb[3].mxu0  ;;  %v204_v23 = vmul.f32 %v281_v13, %v281_v13 }
  0xf9   :  { %v244_v17 = vpack.c.bf16 %v143_v15, %v140_v12  ;;  %v191_v18 = vadd.f32 %v143_v15, %v140_v12  ;;  %v202_v19 = vmul.f32 %v143_v15, %v143_v15 }
  0xfa   :  { %251 = vst [vmem:[%s362_s2 + $0x8] sm:$0xff] %v249_v14  }
  0xfb   :  { %245 = vst [vmem:[%s362_s2] sm:$0xff] %v244_v17   ;;  %v192_v21 = vadd.f32 %v280_v11, %v191_v18  ;;  %v205_v22 = vadd.f32 %v202_v19, %v201_v16 }
  0xfd   :  { %v193_v24 = vadd.f32 %v281_v13, %v192_v21  ;;  %v206_v25 = vadd.f32 %v205_v22, %v203_v20 }
  0xff   :  { %v194_v26 = vrot.slane %v193_v24, 4  ;;  %v207_v27 = vadd.f32 %v206_v25, %v204_v23 }
 0x101   :  { %v195_v28 = vadd.f32 %v194_v26, %v193_v24  ;;  %v208_v29 = vrot.slane %v207_v27, 4 }
 0x103   :  { %v196_v30 = vrot.slane %v195_v28, 2  ;;  %v209_v31 = vadd.f32 %v208_v29, %v207_v27 }
 0x105   :  { %v197_v32 = vadd.f32 %v196_v30, %v195_v28  ;;  %v210_v33 = vrot.slane %v209_v31, 2 }
 0x107   :  { %v198_v34 = vrot.slane %v197_v32, 1  ;;  %v211_v35 = vadd.f32 %v210_v33, %v209_v31 }
 0x109   :  { %v199_v36 = vadd.f32 %v198_v34, %v197_v32  ;;  %v212_v37 = vrot.slane %v211_v35, 1 }
 0x10b   :  { %200 = vst [vmem:[%s361_s3] sm:$0x1] %v199_v36  ;;  %v213_v38 = vadd.f32 %v212_v37, %v211_v35 }
 0x10d   :  { %214 = vst [vmem:[%s361_s3 + $0x1] sm:$0x1] %v213_v38 }

// kernel: _lambda_.80
= control target key start
LH: loop header
LB: loop body
LE: loop exit
PB: predicated region body
PF: predicated region fallthrough
CT: control target
= control target key end

     0   :  { %s2134_s6 = smov 0   ;;  %s2136_s7 = smov 0   ;;  %s3460_s0 = inlined_call_operand.vmem [shape: bf16[2,16,16,128], index: 0, kind: input, shape index: {}]   ;;  %s3461_s1 = inlined_call_operand.vmem [shape: bf16[2,4,4,512], index: 1, kind: output, shape index: {}]  }
   0x1   :  { %s2138_s8 = smov 0   ;;  %s2140_s9 = smov 0  }
   0x2   :  { %s2142_s10 = smov 0   ;;  %s2144_s11 = smov 0  }
   0x3   :  { %s2146_s12 = smov 0  }
   0x4 LB: > { %s23_s13 = sadd.s32 1, %s2111_s10  ;;  %s30_s14 = sadd.s32 1, %s2115_s11  ;;  %s2119_s12 = sphi %s2146_s12, %s11_s12   ;;  %s2115_s11 = sphi %s2144_s11, %s3720_s11   ;;  %s2111_s10 = sphi %s2142_s10, %s3719_s10   ;;  %s2107_s9 = sphi %s2140_s9, %s3718_s9   ;;  %s2103_s8 = sphi %s2138_s8, %s3717_s8   ;;  %s2099_s7 = sphi %s2136_s7, %s3716_s7   ;;  %s2095_s6 = sphi %s2134_s6, %s3715_s6  }
   0x5   : > { %p24_p0 = scmp.ge.s32.totalorder %s23_s13, 4  ;;  %s1913_s15 = sadd.s32 4294967295, %s2119_s12  }
   0x6   : > { %p79_p1 = scmp.ne.s32.totalorder %s2099_s7, %s2095_s6  ;;  %p80_p2 = scmp.eq.s32.totalorder %s1913_s15, 7 }
   0x7   : > { %s3722_s13 = smov (%p24_p0, %s23_s13), 0  ;;  %s3724_s14 = smov (!%p24_p0, %s30_s14), %s2115_s11 }
   0x8   : > { %s65_s16 = ssub.s32 %s2111_s10, %s3722_s13  ;;  %p32_p3 = scmp.ge.s32.totalorder %s3724_s14, 2 }
   0x9   : > { %p1917_p4 = scmp.ge.s32.totalorder %s2119_s12, 1  ;;  %p2180_p5 = por %p80_p2, %p79_p1 }
   0xa   : > { %p115_p6 = scmp.lt.s32.totalorder %s2119_s12, 9  ;;  %s3726_s14 = smov (%p32_p3, %s3724_s14), 0 }
   0xb   : > { %s64_s18 = ssub.s32 %s2115_s11, %s3726_s14  ;;  %s69_s20 = sadd.s32 1, %s2099_s7 }
   0xc   : > { %p116_p7 = pnand %p1917_p4, %p115_p6  ;;  %s66_s19 = sor.u32 %s65_s16, %s64_s18 }
   0xd   : > { %p67_p8 = scmp.eq.s32.totalorder %s66_s19, 0 }
   0xe   : > { %119 = sbr.rel (%p116_p7) target bundleno = 369 (0x171), region = 24 }
   0xf   : > { %s2191_s21 = scalar_select %p67_p8, %s2099_s7, %s69_s20  }
  0x15   : > { %s134_s22 = sand.u32 1, %s2095_s6   ;;  %p137_p9 = scmp.lt.s32.totalorder %s2107_s9, 1 }
  0x16   : > { %s2195_s23 = sshll.u32 %s134_s22, 3  ;;  %p1921_p10 = scmp.ne.s32.totalorder %s2103_s8, 0 }
  0x17   : > { %s138_s24 = scalar_select %p137_p9, %s2107_s9, 1 }
  0x18   : > { %s2304_s29 = scalar_lea.vmem [#allocation2], %s2195_s23 }
  0x19   : > { %s1946_s25 = sshll.u32 %s138_s24, 7 }
  0x1a   : > { %s2201_s28 = scalar_lea.vmem %s3460_s0, %s1946_s25 }
  0x1b   : > { %v1948_v0 = vld [vmem:[%s2201_s28] sm:$0xff]   ;;  %v1995_v1 = vld [vmem:[%s2201_s28 + $0x8] sm:$0xff]   ;;  %v1996_v2 = vld [vmem:[%s2201_s28 + $0x10] sm:$0xff]  }
  0x1c   : > { %v1949_v3 = vunpack.c.l.bf16 %v1948_v0  ;;  %v1950_v4 = vunpack.c.h.bf16 %v1948_v0  ;;  %v1953_v5 = vunpack.c.l.bf16 %v1995_v1  ;;  %v1954_v6 = vunpack.c.h.bf16 %v1995_v1  ;;  %v1997_v7 = vld [vmem:[%s2201_s28 + $0x18] sm:$0xff]   ;;  %v1998_v8 = vld [vmem:[%s2201_s28 + $0x20] sm:$0xff]   ;;  %v1999_v9 = vld [vmem:[%s2201_s28 + $0x28] sm:$0xff]  }
  0x1d   : > { %v2209_v10 = vunpack.c.l.bf16 %v1996_v2  ;;  %v2211_v11 = vunpack.c.h.bf16 %v1996_v2  ;;  %v2213_v12 = vunpack.c.l.bf16 %v1997_v7  ;;  %v2215_v13 = vunpack.c.h.bf16 %v1997_v7  ;;  %v2218_v14 = vld [vmem:[%s2201_s28 + $0x30] sm:$0xf]  ;;  %v2221_v15 = vld [vmem:[%s2201_s28 + $0x34] sm:$0xf]  ;;  %v2224_v16 = vld [vmem:[%s2201_s28 + $0x38] sm:$0xf] }
  0x1e   : > { %3575 = vst [vmem:[#allocation7_spill] sm:$0xff] %v2218_v14  ;;  %3576 = vst [vmem:[#allocation8_spill] sm:$0xff] %v2221_v15  ;;  %v2226_v17 = vunpack.c.l.bf16 %v1998_v8  ;;  %v2228_v18 = vunpack.c.h.bf16 %v1998_v8  ;;  %v2230_v19 = vunpack.c.l.bf16 %v1999_v9  ;;  %v2232_v20 = vunpack.c.h.bf16 %v1999_v9  ;;  %v2235_v21 = vld [vmem:[%s2201_s28 + $0x3c] sm:$0xf]  ;;  %v2238_v22 = vld [vmem:[%s2201_s28 + $0x40] sm:$0xf] }
  0x1f   : > { %3571 = vst [vmem:[#allocation3_spill] sm:$0xff] %v2209_v10  ;;  %3572 = vst [vmem:[#allocation4_spill] sm:$0xff] %v2211_v11  ;;  %v2241_v23 = vld [vmem:[%s2201_s28 + $0x44] sm:$0xf]  ;;  %v2244_v24 = vld [vmem:[%s2201_s28 + $0x48] sm:$0xf]  ;;  %v2251_v27 = vunpack.c.l.bf16 %v2218_v14  ;;  %v2254_v28 = vunpack.c.l.bf16 %v2221_v15  ;;  %v2257_v29 = vunpack.c.l.bf16 %v2224_v16  ;;  %v2260_v30 = vunpack.c.l.bf16 %v2235_v21 }
  0x20   : > { %3573 = vst [vmem:[#allocation5_spill] sm:$0xff] %v2213_v12  ;;  %3574 = vst [vmem:[#allocation6_spill] sm:$0xff] %v2215_v13  ;;  %v2247_v25 = vld [vmem:[%s2201_s28 + $0x4c] sm:$0xf]  ;;  %v2000_v26 = vld [vmem:[%s2201_s28 + $0x50] sm:$0xff]   ;;  %v2270_v36 = vunpack.c.l.bf16 %v2238_v22  ;;  %v2273_v37 = vunpack.c.l.bf16 %v2241_v23  ;;  %v2298_v50 = vunpack.c.l.bf16 %v2244_v24 }
  0x21   : > { %3577 = vst [vmem:[#allocation9_spill] sm:$0xff] %v2224_v16  ;;  %3578 = vst [vmem:[#allocation10_spill] sm:$0xff] %v2226_v17  ;;  %v2262_v31 = vunpack.c.l.bf16 %v2000_v26  ;;  %v2264_v32 = vunpack.c.h.bf16 %v2000_v26  ;;  %v2001_v33 = vld [vmem:[%s2201_s28 + $0x58] sm:$0xff]   ;;  %v2002_v34 = vld [vmem:[%s2201_s28 + $0x60] sm:$0xff]   ;;  %v2301_v51 = vunpack.c.l.bf16 %v2247_v25 }
  0x22   : > { %3579 = vst [vmem:[#allocation11_spill] sm:$0xff] %v2228_v18  ;;  %3580 = vst [vmem:[#allocation12_spill] sm:$0xff] %v2230_v19  ;;  %v2003_v35 = vld [vmem:[%s2201_s28 + $0x68] sm:$0xff]   ;;  %v2275_v38 = vunpack.c.l.bf16 %v2001_v33  ;;  %v2277_v39 = vunpack.c.h.bf16 %v2001_v33  ;;  %v2279_v40 = vunpack.c.l.bf16 %v2002_v34  ;;  %v2281_v41 = vunpack.c.h.bf16 %v2002_v34  ;;  %v2284_v42 = vld [vmem:[%s2201_s28 + $0x70] sm:$0xff]  }
  0x23   : > { %3581 = vst [vmem:[#allocation13_spill] sm:$0xff] %v2232_v20  ;;  %3582 = vst [vmem:[#allocation14_spill] sm:$0xff] %v2235_v21  ;;  %v2287_v43 = vld [vmem:[%s2201_s28 + $0x78] sm:$0xff]   ;;  %v2289_v44 = vunpack.c.l.bf16 %v2003_v35  ;;  %v2291_v45 = vunpack.c.h.bf16 %v2003_v35 }
  0x24   : > { %3583 = vst [vmem:[#allocation15_spill] sm:$0xff] %v2238_v22  ;;  %3584 = vst [vmem:[#allocation16_spill] sm:$0xff] %v2241_v23 }
  0x25   : > { %3585 = vst [vmem:[#allocation17_spill] sm:$0xff] %v2244_v24  ;;  %3586 = vst [vmem:[#allocation18_spill] sm:$0xff] %v2247_v25 }
  0x26   : > { %3587 = vst [vmem:[#allocation19_spill] sm:$0xff] %v2251_v27  ;;  %3588 = vst [vmem:[#allocation20_spill] sm:$0xff] %v2254_v28 }
  0x27   : > { %3589 = vst [vmem:[#allocation21_spill] sm:$0xff] %v2257_v29  ;;  %3590 = vst [vmem:[#allocation22_spill] sm:$0xff] %v2260_v30  ;;  %213 = sbr.rel (%p1921_p10) target bundleno = 203 (0xcb), region = 28 }
  0x28   : > { %3591 = vst [vmem:[#allocation23_spill] sm:$0xff] %v2262_v31  ;;  %3592 = vst [vmem:[#allocation24_spill] sm:$0xff] %v2264_v32 }
  0x29   : > { %3593 = vst [vmem:[#allocation25_spill] sm:$0xff] %v2270_v36  ;;  %3594 = vst [vmem:[#allocation26_spill] sm:$0xff] %v2273_v37 }
  0x2a   : > { %3595 = vst [vmem:[#allocation27_spill] sm:$0xff] %v2275_v38  ;;  %3596 = vst [vmem:[#allocation28_spill] sm:$0xff] %v2277_v39 }
  0x2b   : > { %3597 = vst [vmem:[#allocation29_spill] sm:$0xff] %v2279_v40  ;;  %3598 = vst [vmem:[#allocation30_spill] sm:$0xff] %v2281_v41 }
  0x2c   : > { %3599 = vst [vmem:[#allocation31_spill] sm:$0xff] %v2289_v44  ;;  %3600 = vst [vmem:[#allocation32_spill] sm:$0xff] %v2291_v45 }
  0x2d   : > { %3601 = vst [vmem:[#allocation33_spill] sm:$0xff] %v2298_v50  ;;  %3602 = vst [vmem:[#allocation34_spill] sm:$0xff] %v2301_v51 }
  0x2e   : > { %v214_v52 = vmax.f32 %v1949_v3, %v1953_v5  ;;  %v215_v53 = vmax.f32 %v1950_v4, %v1954_v6  ;;  %v216_v54 = vmax.f32 %v1953_v5, %v2209_v10  ;;  %v217_v55 = vmax.f32 %v1954_v6, %v2211_v11 }
  0x2f   : > { %v218_v56 = vmax.f32 %v2209_v10, %v2213_v12  ;;  %v219_v57 = vmax.f32 %v2211_v11, %v2215_v13  ;;  %v220_v58 = vmax.f32 %v2213_v12, %v2226_v17  ;;  %v221_v59 = vmax.f32 %v2215_v13, %v2228_v18 }
  0x30   : > { %v222_v60 = vmax.f32 %v2226_v17, %v2230_v19  ;;  %v223_v61 = vmax.f32 %v2228_v18, %v2232_v20  ;;  %v224_v62 = vmax.f32 %v2230_v19, %v2251_v27  ;;  %v225_v63 = vmax.f32 %v2232_v20, %v2254_v28 }
  0x31   : > { %v226_v0 = vmax.f32 %v2251_v27, %v2257_v29  ;;  %v227_v1 = vmax.f32 %v2254_v28, %v2260_v30  ;;  %v228_v2 = vmax.f32 %v2257_v29, %v2270_v36  ;;  %v229_v3 = vmax.f32 %v2260_v30, %v2273_v37 }
  0x32   : > { %v230_v4 = vmax.f32 %v2270_v36, %v2298_v50  ;;  %v231_v5 = vmax.f32 %v2273_v37, %v2301_v51  ;;  %v232_v6 = vmax.f32 %v2298_v50, %v2262_v31  ;;  %v233_v7 = vmax.f32 %v2301_v51, %v2264_v32 }
  0x33   : > { %v234_v8 = vmax.f32 %v2262_v31, %v2275_v38  ;;  %v235_v9 = vmax.f32 %v2264_v32, %v2277_v39  ;;  %v236_v26 = vmax.f32 %v2275_v38, %v2279_v40  ;;  %v237_v33 = vmax.f32 %v2277_v39, %v2281_v41 }
  0x34   : > { %v238_v34 = vmax.f32 %v214_v52, %v2209_v10  ;;  %v239_v35 = vmax.f32 %v215_v53, %v2211_v11  ;;  %v240_v49 = vmax.f32 %v216_v54, %v2213_v12  ;;  %v241_v48 = vmax.f32 %v217_v55, %v2215_v13 }
  0x35   : > { %v242_v47 = vmax.f32 %v218_v56, %v2226_v17  ;;  %v243_v46 = vmax.f32 %v219_v57, %v2228_v18  ;;  %v244_v24 = vmax.f32 %v220_v58, %v2230_v19  ;;  %v245_v25 = vmax.f32 %v221_v59, %v2232_v20 }
  0x36   : > { %v246_v22 = vmax.f32 %v222_v60, %v2251_v27  ;;  %v247_v23 = vmax.f32 %v223_v61, %v2254_v28  ;;  %v248_v52 = vmax.f32 %v224_v62, %v2257_v29  ;;  %v249_v53 = vmax.f32 %v225_v63, %v2260_v30 }
  0x37   : > { %v250_v54 = vmax.f32 %v226_v0, %v2270_v36  ;;  %v251_v55 = vmax.f32 %v227_v1, %v2273_v37  ;;  %v252_v56 = vmax.f32 %v228_v2, %v2298_v50  ;;  %v253_v57 = vmax.f32 %v229_v3, %v2301_v51 }
  0x38   : > { %v254_v58 = vmax.f32 %v230_v4, %v2262_v31  ;;  %v255_v59 = vmax.f32 %v231_v5, %v2264_v32  ;;  %v256_v60 = vmax.f32 %v232_v6, %v2275_v38  ;;  %v257_v61 = vmax.f32 %v233_v7, %v2277_v39 }
  0x39   : > { %v258_v62 = vmax.f32 %v234_v8, %v2279_v40  ;;  %v259_v63 = vmax.f32 %v235_v9, %v2281_v41  ;;  %v260_v0 = vmax.f32 %v236_v26, %v2289_v44  ;;  %v261_v1 = vmax.f32 %v237_v33, %v2291_v45 }
  0x3a   : > { %v262_v2 = vmax.f32 %v238_v34, %v2213_v12  ;;  %v263_v3 = vmax.f32 %v239_v35, %v2215_v13  ;;  %v264_v4 = vmax.f32 %v240_v49, %v2226_v17  ;;  %v265_v5 = vmax.f32 %v241_v48, %v2228_v18 }
  0x3b   : > { %v266_v6 = vmax.f32 %v242_v47, %v2230_v19  ;;  %v267_v7 = vmax.f32 %v243_v46, %v2232_v20  ;;  %v268_v8 = vmax.f32 %v244_v24, %v2251_v27  ;;  %v269_v9 = vmax.f32 %v245_v25, %v2254_v28 }
  0x3c   : > { %v270_v26 = vmax.f32 %v246_v22, %v2257_v29  ;;  %v271_v33 = vmax.f32 %v247_v23, %v2260_v30  ;;  %v272_v34 = vmax.f32 %v248_v52, %v2270_v36  ;;  %v273_v35 = vmax.f32 %v249_v53, %v2273_v37 }
  0x3d   : > { %v274_v49 = vmax.f32 %v250_v54, %v2298_v50  ;;  %v275_v48 = vmax.f32 %v251_v55, %v2301_v51  ;;  %v276_v47 = vmax.f32 %v252_v56, %v2262_v31  ;;  %v277_v46 = vmax.f32 %v253_v57, %v2264_v32 }
  0x3e   : > { %v278_v24 = vmax.f32 %v254_v58, %v2275_v38  ;;  %v279_v25 = vmax.f32 %v255_v59, %v2277_v39  ;;  %v280_v22 = vmax.f32 %v256_v60, %v2279_v40  ;;  %v281_v23 = vmax.f32 %v257_v61, %v2281_v41 }
  0x3f   : > { %v282_v52 = vmax.f32 %v258_v62, %v2289_v44  ;;  %v283_v53 = vmax.f32 %v259_v63, %v2291_v45  ;;  %v3603_v54 = vunpack.c.l.bf16 %v2284_v42  ;;  %v3604_v55 = vunpack.c.h.bf16 %v2284_v42 }
  0x40   : > { %v2400_v57 = vmax.f32 %v262_v2, %v2226_v17  ;;  %v2403_v58 = vmax.f32 %v263_v3, %v2228_v18  ;;  %v2406_v59 = vmax.f32 %v264_v4, %v2230_v19  ;;  %v2409_v60 = vmax.f32 %v265_v5, %v2232_v20 }
  0x41   : > { %v284_v16 = vmax.f32 %v260_v0, %v3603_v54  ;;  %v285_v56 = vmax.f32 %v261_v1, %v3604_v55  ;;  %v2412_v61 = vmax.f32 %v266_v6, %v2251_v27  ;;  %v2415_v62 = vmax.f32 %v267_v7, %v2254_v28 }
  0x42   : > { %v2418_v63 = vmax.f32 %v268_v8, %v2257_v29  ;;  %v2421_v0 = vmax.f32 %v269_v9, %v2260_v30  ;;  %v2424_v1 = vmax.f32 %v270_v26, %v2270_v36  ;;  %v2427_v2 = vmax.f32 %v271_v33, %v2273_v37 }
  0x43   : > { %3605 = vst [vmem:[#allocation35_spill] sm:$0xff] %v2412_v61  ;;  %3606 = vst [vmem:[#allocation36_spill] sm:$0xff] %v2415_v62  ;;  %v2430_v3 = vmax.f32 %v272_v34, %v2298_v50  ;;  %v2433_v4 = vmax.f32 %v273_v35, %v2301_v51  ;;  %v2436_v5 = vmax.f32 %v274_v49, %v2262_v31  ;;  %v3621_v35 = vmov %v3603_v54 }
  0x44   : > { %3607 = vst [vmem:[#allocation37_spill] sm:$0xff] %v2418_v63  ;;  %3608 = vst [vmem:[#allocation38_spill] sm:$0xff] %v2421_v0  ;;  %v2439_v6 = vmax.f32 %v275_v48, %v2264_v32  ;;  %v2442_v7 = vmax.f32 %v276_v47, %v2275_v38  ;;  %v2445_v8 = vmax.f32 %v277_v46, %v2277_v39  ;;  %v3623_v48 = vmov %v3604_v55 }
  0x45   : > { %3609 = vst [vmem:[#allocation39_spill] sm:$0xff] %v2424_v1  ;;  %3610 = vst [vmem:[#allocation40_spill] sm:$0xff] %v2427_v2  ;;  %v2448_v9 = vmax.f32 %v278_v24, %v2279_v40  ;;  %v2451_v26 = vmax.f32 %v279_v25, %v2281_v41  ;;  %v2454_v33 = vmax.f32 %v280_v22, %v2289_v44  ;;  %v3625_v46 = vunpack.c.l.bf16 %v2287_v43 }
  0x46   : > { %3611 = vst [vmem:[#allocation41_spill] sm:$0xff] %v2430_v3  ;;  %3612 = vst [vmem:[#allocation42_spill] sm:$0xff] %v2433_v4  ;;  %v2457_v34 = vmax.f32 %v281_v23, %v2291_v45  ;;  %v2461_v49 = vmax.f32 %v282_v52, %v3621_v35  ;;  %v2465_v47 = vmax.f32 %v283_v53, %v3623_v48  ;;  %v3627_v25 = vunpack.c.h.bf16 %v2287_v43 }
  0x47   : > { %3613 = vst [vmem:[#allocation43_spill] sm:$0xff] %v2436_v5  ;;  %3614 = vst [vmem:[#allocation44_spill] sm:$0xff] %v2439_v6  ;;  %v2469_v24 = vmax.f32 %v284_v16, %v3625_v46  ;;  %vm334_vm0 = vcmask 1046528   ;;  %v335_v22 = vrot.slane %v2400_v57, 1  ;;  %v336_v23 = vrot.slane %v2403_v58, 1 }
  0x48   : > { %3615 = vst [vmem:[#allocation45_spill] sm:$0xff] %v2442_v7  ;;  %3616 = vst [vmem:[#allocation46_spill] sm:$0xff] %v2445_v8  ;;  %v2473_v54 = vmax.f32 %v285_v56, %v3627_v25  ;;  %v338_v52 = vrot.slane %v2406_v59, 1  ;;  %v339_v55 = vrot.slane %v2409_v60, 1  ;;  %v341_v42 = vrot.slane %v2412_v61, 1 }
  0x49   : > { %3617 = vst [vmem:[#allocation47_spill] sm:$0xff] %v2448_v9  ;;  %3618 = vst [vmem:[#allocation48_spill] sm:$0xff] %v2451_v26  ;;  %v342_v53 = vrot.slane %v2415_v62, 1  ;;  %v344_v16 = vrot.slane %v2418_v63, 1  ;;  %v2483_v35 = vsel %vm334_vm0, %v335_v22, %v336_v23  ;;  %v345_v43 = vrot.slane %v2421_v0, 1 }
  0x4a   : > { %3619 = vst [vmem:[#allocation49_spill] sm:$0xff] %v2454_v33  ;;  %3620 = vst [vmem:[#allocation50_spill] sm:$0xff] %v2457_v34  ;;  %v347_v56 = vrot.slane %v2424_v1, 1  ;;  %v348_v48 = vrot.slane %v2427_v2, 1  ;;  %v2489_v46 = vsel %vm334_vm0, %v338_v52, %v339_v55  ;;  %v350_v21 = vrot.slane %v2430_v3, 1 }
  0x4b   : > { %3622 = vst [vmem:[#allocation51_spill] sm:$0xff] %v2461_v49  ;;  %3624 = vst [vmem:[#allocation52_spill] sm:$0xff] %v2465_v47  ;;  %v2492_v25 = vsel %vm334_vm0, %v341_v42, %v342_v53  ;;  %v351_v14 = vrot.slane %v2433_v4, 1  ;;  %v2497_v15 = vsel %vm334_vm0, %v344_v16, %v345_v43  ;;  %v353_v45 = vrot.slane %v2436_v5, 1 }
  0x4c   : > { %3626 = vst [vmem:[#allocation53_spill] sm:$0xff] %v2469_v24  ;;  %3628 = vst [vmem:[#allocation54_spill] sm:$0xff] %v2473_v54  ;;  %v2500_v22 = vsel %vm334_vm0, %v347_v56, %v348_v48  ;;  %v354_v44 = vrot.slane %v2439_v6, 1  ;;  %v356_v42 = vrot.slane %v2442_v7, 1  ;;  %v357_v41 = vrot.slane %v2445_v8, 1 }
  0x4d   : > { %v2505_v52 = vsel %vm334_vm0, %v350_v21, %v351_v14  ;;  %v359_v40 = vrot.slane %v2448_v9, 1  ;;  %v360_v16 = vrot.slane %v2451_v26, 1  ;;  %v362_v56 = vrot.slane %v2454_v33, 1 }
  0x4e   : > { %v2511_v39 = vsel %vm334_vm0, %v353_v45, %v354_v44  ;;  %v363_v38 = vrot.slane %v2457_v34, 1  ;;  %v2517_v32 = vsel %vm334_vm0, %v356_v42, %v357_v41  ;;  %v365_v21 = vrot.slane %v2461_v49, 1 }
  0x4f   : > { %v366_v31 = vrot.slane %v2465_v47, 1  ;;  %v368_v51 = vrot.slane %v2469_v24, 1  ;;  %v2523_v50 = vsel %vm334_vm0, %v359_v40, %v360_v16  ;;  %v369_v37 = vrot.slane %v2473_v54, 1 }
  0x50   : > { %v2526_v45 = vsel %vm334_vm0, %v362_v56, %v363_v38  ;;  %v395_v36 = vmax.f32 %v2400_v57, %v2483_v35  ;;  %v396_v30 = vmax.f32 %v2403_v58, %v336_v23  ;;  %v397_v29 = vmax.f32 %v2406_v59, %v2489_v46 }
  0x51   : > { %v2532_v42 = vsel %vm334_vm0, %v365_v21, %v366_v31  ;;  %v2538_v28 = vmax.f32 %v2409_v60, %v339_v55  ;;  %v2541_v40 = vsel %vm334_vm0, %v368_v51, %v369_v37  ;;  %v399_v56 = vmax.f32 %v2412_v61, %v2492_v25 }
  0x52   : > { %v400_v27 = vmax.f32 %v2415_v62, %v342_v53  ;;  %v401_v35 = vmax.f32 %v2418_v63, %v2497_v15  ;;  %v402_v21 = vmax.f32 %v2421_v0, %v345_v43  ;;  %v403_v23 = vmax.f32 %v2424_v1, %v2500_v22 }
  0x53   : > { %v404_v46 = vmax.f32 %v2427_v2, %v348_v48  ;;  %v405_v55 = vmax.f32 %v2430_v3, %v2505_v52  ;;  %v406_v51 = vmax.f32 %v2433_v4, %v351_v14  ;;  %v407_v25 = vmax.f32 %v2436_v5, %v2511_v39 }
  0x54   : > { %v408_v53 = vmax.f32 %v2439_v6, %v354_v44  ;;  %v409_v15 = vmax.f32 %v2442_v7, %v2517_v32  ;;  %v410_v43 = vmax.f32 %v2445_v8, %v357_v41  ;;  %v411_v22 = vmax.f32 %v2448_v9, %v2523_v50 }
  0x55   : > { %v412_v48 = vmax.f32 %v2451_v26, %v360_v16  ;;  %v413_v52 = vmax.f32 %v2454_v33, %v2526_v45  ;;  %v414_v14 = vmax.f32 %v2457_v34, %v363_v38  ;;  %v415_v39 = vmax.f32 %v2461_v49, %v2532_v42 }
  0x56   : > { %v416_v44 = vmax.f32 %v2465_v47, %v366_v31  ;;  %v417_v32 = vmax.f32 %v2469_v24, %v2541_v40  ;;  %v418_v41 = vmax.f32 %v2473_v54, %v369_v37  ;;  %vm419_vm1 = vcmask 1045504  }
  0x57   : > { %v420_v50 = vrot.slane %v2400_v57, 2  ;;  %v421_v16 = vrot.slane %v2403_v58, 2  ;;  %v423_v20 = vrot.slane %v2406_v59, 2  ;;  %v424_v45 = vrot.slane %v2409_v60, 2 }
  0x58   : > { %v426_v38 = vrot.slane %v2412_v61, 2  ;;  %v427_v42 = vrot.slane %v2415_v62, 2  ;;  %v429_v19 = vrot.slane %v2418_v63, 2  ;;  %v430_v40 = vrot.slane %v2421_v0, 2 }
  0x59   : > { %v422_v31 = vsel %vm419_vm1, %v420_v50, %v421_v16  ;;  %v432_v37 = vrot.slane %v2424_v1, 2  ;;  %v425_v18 = vsel %vm419_vm1, %v423_v20, %v424_v45  ;;  %v433_v11 = vrot.slane %v2427_v2, 2 }
  0x5a   : > { %v428_v17 = vsel %vm419_vm1, %v426_v38, %v427_v42  ;;  %v435_v13 = vrot.slane %v2430_v3, 2  ;;  %v431_v10 = vsel %vm419_vm1, %v429_v19, %v430_v40  ;;  %v436_v12 = vrot.slane %v2433_v4, 2 }
  0x5b   : > { %v438_v50 = vrot.slane %v2436_v5, 2  ;;  %v439_v63 = vrot.slane %v2439_v6, 2  ;;  %v434_v0 = vsel %vm419_vm1, %v432_v37, %v433_v11  ;;  %v441_v1 = vrot.slane %v2442_v7, 2 }
  0x5c   : > { %v442_v20 = vrot.slane %v2445_v8, 2  ;;  %v444_v38 = vrot.slane %v2448_v9, 2  ;;  %v437_v2 = vsel %vm419_vm1, %v435_v13, %v436_v12  ;;  %v445_v19 = vrot.slane %v2451_v26, 2 }
  0x5d   : > { %v440_v3 = vsel %vm419_vm1, %v438_v50, %v439_v63  ;;  %v447_v4 = vrot.slane %v2454_v33, 2  ;;  %v448_v6 = vrot.slane %v2457_v34, 2  ;;  %v450_v37 = vrot.slane %v2461_v49, 2 }
  0x5e   : > { %v443_v5 = vsel %vm419_vm1, %v441_v1, %v442_v20  ;;  %v451_v7 = vrot.slane %v2465_v47, 2  ;;  %v446_v8 = vsel %vm419_vm1, %v444_v38, %v445_v19  ;;  %v453_v9 = vrot.slane %v2469_v24, 2 }
  0x5f   : > { %v454_v13 = vrot.slane %v2473_v54, 2  ;;  %v2606_v62 = vmax.f32 %v395_v36, %v422_v31  ;;  %v449_v50 = vsel %vm419_vm1, %v447_v4, %v448_v6  ;;  %v481_v26 = vmax.f32 %v396_v30, %v421_v16 }
  0x60   : > { %v452_v33 = vsel %vm419_vm1, %v450_v37, %v451_v7  ;;  %v2610_v1 = vmax.f32 %v397_v29, %v425_v18  ;;  %v483_v49 = vmax.f32 %v2538_v28, %v424_v45  ;;  %v2614_v47 = vmax.f32 %v399_v56, %v428_v17  ;;  %v3639_v45 = vld [vmem:[#allocation45_spill] sm:$0xff] }
  0x61   : > { %v455_v34 = vsel %vm419_vm1, %v453_v9, %v454_v13  ;;  %v485_v38 = vmax.f32 %v400_v27, %v427_v42  ;;  %v2616_v61 = vmax.f32 %v401_v35, %v431_v10  ;;  %v487_v24 = vmax.f32 %v402_v21, %v430_v40  ;;  %v3630_v35 = vld [vmem:[#allocation36_spill] sm:$0xff]  ;;  %v3640_v40 = vld [vmem:[#allocation46_spill] sm:$0xff] }
  0x62   : > { %v2618_v54 = vmax.f32 %v403_v23, %v434_v0  ;;  %v489_v36 = vmax.f32 %v404_v46, %v433_v11  ;;  %v2620_v31 = vmax.f32 %v405_v55, %v437_v2  ;;  %v491_v4 = vmax.f32 %v406_v51, %v436_v12  ;;  %v3632_v23 = vld [vmem:[#allocation38_spill] sm:$0xff] }
  0x63   : > { %v2622_v37 = vmax.f32 %v407_v25, %v440_v3  ;;  %v493_v18 = vmax.f32 %v408_v53, %v439_v63  ;;  %v2624_v29 = vmax.f32 %v409_v15, %v443_v5  ;;  %v495_v30 = vmax.f32 %v410_v43, %v442_v20  ;;  %v3629_v5 = vld [vmem:[#allocation35_spill] sm:$0xff]  ;;  %v3634_v25 = vld [vmem:[#allocation40_spill] sm:$0xff]  ;;  %v3635_v15 = vld [vmem:[#allocation41_spill] sm:$0xff] }
  0x64   : > { %v2626_v9 = vmax.f32 %v411_v22, %v446_v8  ;;  %v497_v17 = vmax.f32 %v412_v48, %v445_v19  ;;  %v2628_v28 = vmax.f32 %v413_v52, %v449_v50  ;;  %v499_v10 = vmax.f32 %v414_v14, %v448_v6  ;;  %v3631_v6 = vld [vmem:[#allocation37_spill] sm:$0xff]  ;;  %v3636_v52 = vld [vmem:[#allocation42_spill] sm:$0xff] }
  0x65   : > { %v2630_v27 = vmax.f32 %v415_v39, %v452_v33  ;;  %v501_v0 = vmax.f32 %v416_v44, %v451_v7  ;;  %v2632_v56 = vmax.f32 %v417_v32, %v455_v34  ;;  %v503_v11 = vmax.f32 %v418_v41, %v454_v13  ;;  %v3633_v34 = vld [vmem:[#allocation39_spill] sm:$0xff]  ;;  %v3638_v41 = vld [vmem:[#allocation44_spill] sm:$0xff] }
  0x66   : > { %vm504_vm2 = vcmask 1044480   ;;  %v505_v12 = vrot.slane %v2400_v57, 3  ;;  %v506_v63 = vrot.slane %v2403_v58, 3  ;;  %v508_v2 = vrot.slane %v2406_v59, 3  ;;  %v3637_v39 = vld [vmem:[#allocation43_spill] sm:$0xff] }
  0x67   : > { %v509_v3 = vrot.slane %v2409_v60, 3  ;;  %v511_v8 = vrot.slane %v3629_v5, 3  ;;  %v512_v21 = vrot.slane %v3630_v35, 3  ;;  %v514_v33 = vrot.slane %v3631_v6, 3  ;;  %v3641_v13 = vld [vmem:[#allocation47_spill] sm:$0xff] }
  0x68   : > { %v515_v7 = vrot.slane %v3632_v23, 3  ;;  %v517_v46 = vrot.slane %v3633_v34, 3  ;;  %v2644_v55 = vsel %vm504_vm2, %v505_v12, %v506_v63  ;;  %v518_v53 = vrot.slane %v3634_v25, 3  ;;  %v3642_v12 = vld [vmem:[#allocation48_spill] sm:$0xff] }
  0x69   : > { %v2647_v51 = vsel %vm504_vm2, %v508_v2, %v509_v3  ;;  %v520_v43 = vrot.slane %v3635_v15, 3  ;;  %v2652_v22 = vsel %vm504_vm2, %v511_v8, %v512_v21  ;;  %v521_v14 = vrot.slane %v3636_v52, 3  ;;  %v3643_v8 = vld [vmem:[#allocation49_spill] sm:$0xff] }
  0x6a   : > { %v2655_v48 = vsel %vm504_vm2, %v514_v33, %v515_v7  ;;  %v523_v44 = vrot.slane %v3637_v39, 3  ;;  %v2660_v32 = vsel %vm504_vm2, %v517_v46, %v518_v53  ;;  %v524_v16 = vrot.slane %v3638_v41, 3  ;;  %v3644_v41 = vld [vmem:[#allocation50_spill] sm:$0xff] }
  0x6b   : > { %v526_v42 = vrot.slane %v3639_v45, 3  ;;  %v527_v20 = vrot.slane %v3640_v40, 3  ;;  %v2666_v19 = vsel %vm504_vm2, %v520_v43, %v521_v14  ;;  %v529_v50 = vrot.slane %v3641_v13, 3  ;;  %v3645_v45 = vld [vmem:[#allocation51_spill] sm:$0xff]  ;;  %v3646_v43 = vld [vmem:[#allocation52_spill] sm:$0xff]  ;;  %v3647_v13 = vld [vmem:[#allocation53_spill] sm:$0xff] }
  0x6c   : > { %v530_v2 = vrot.slane %v3642_v12, 3  ;;  %v532_v33 = vrot.slane %v3643_v8, 3  ;;  %v2672_v39 = vsel %vm504_vm2, %v523_v44, %v524_v16  ;;  %v533_v52 = vrot.slane %v3644_v41, 3  ;;  %v3648_v12 = vld [vmem:[#allocation54_spill] sm:$0xff] }
  0x6d   : > { %v2675_v46 = vsel %vm504_vm2, %v526_v42, %v527_v20  ;;  %v535_v15 = vrot.slane %v3645_v45, 3  ;;  %v536_v25 = vrot.slane %v3646_v43, 3  ;;  %v538_v34 = vrot.slane %v3647_v13, 3 }
  0x6e   : > { %v2680_v40 = vsel %vm504_vm2, %v529_v50, %v530_v2  ;;  %v539_v23 = vrot.slane %v3648_v12, 3  ;;  %v2686_v8 = vsel %vm504_vm2, %v532_v33, %v533_v52  ;;  %v565_v44 = vmax.f32 %v2606_v62, %v2644_v55 }
  0x6f   : > { %v566_v42 = vmax.f32 %v481_v26, %v506_v63  ;;  %v567_v41 = vmax.f32 %v2610_v1, %v2647_v51  ;;  %v2693_v45 = vsel %vm504_vm2, %v535_v15, %v536_v25  ;;  %v568_v43 = vmax.f32 %v483_v49, %v509_v3  ;;  %v3649_v3 = vld [vmem:[#allocation37_spill] sm:$0xff] }
  0x70   : > { %v2696_v50 = vsel %vm504_vm2, %v538_v34, %v539_v23  ;;  %v569_v12 = vmax.f32 %v2614_v47, %v2652_v22  ;;  %v570_v13 = vmax.f32 %v485_v38, %v512_v21  ;;  %v571_v33 = vmax.f32 %v2616_v61, %v2655_v48  ;;  %v3655_v22 = vld [vmem:[#allocation43_spill] sm:$0xff] }
  0x71   : > { %v572_v6 = vmax.f32 %v487_v24, %v515_v7  ;;  %v573_v62 = vmax.f32 %v2618_v54, %v2660_v32  ;;  %v574_v26 = vmax.f32 %v489_v36, %v518_v53  ;;  %v575_v63 = vmax.f32 %v2620_v31, %v2666_v19  ;;  %v3652_v7 = vld [vmem:[#allocation40_spill] sm:$0xff]  ;;  %v3654_v53 = vld [vmem:[#allocation42_spill] sm:$0xff] }
  0x72   : > { %v576_v55 = vmax.f32 %v491_v4, %v521_v14  ;;  %v577_v34 = vmax.f32 %v2622_v37, %v2672_v39  ;;  %v578_v49 = vmax.f32 %v493_v18, %v524_v16  ;;  %v579_v47 = vmax.f32 %v2624_v29, %v2675_v46  ;;  %v3657_v39 = vld [vmem:[#allocation45_spill] sm:$0xff] }
  0x73   : > { %v580_v38 = vmax.f32 %v495_v30, %v527_v20  ;;  %v581_v61 = vmax.f32 %v2626_v9, %v2680_v40  ;;  %v582_v24 = vmax.f32 %v497_v17, %v530_v2  ;;  %v583_v54 = vmax.f32 %v2628_v28, %v2686_v8  ;;  %v3659_v20 = vld [vmem:[#allocation47_spill] sm:$0xff]  ;;  %v3660_v2 = vld [vmem:[#allocation48_spill] sm:$0xff] }
  0x74   : > { %v584_v36 = vmax.f32 %v499_v10, %v533_v52  ;;  %v585_v31 = vmax.f32 %v2630_v27, %v2693_v45  ;;  %v586_v4 = vmax.f32 %v501_v0, %v536_v25  ;;  %v587_v37 = vmax.f32 %v2632_v56, %v2696_v50  ;;  %v3650_v0 = vld [vmem:[#allocation38_spill] sm:$0xff]  ;;  %v3653_v25 = vld [vmem:[#allocation41_spill] sm:$0xff]  ;;  %v3656_v52 = vld [vmem:[#allocation44_spill] sm:$0xff] }
  0x75   : > { %v588_v18 = vmax.f32 %v503_v11, %v539_v23  ;;  %vm589_vm3 = vcmask 1043456   ;;  %v590_v29 = vrot.slane %v2400_v57, 4  ;;  %v591_v30 = vrot.slane %v2403_v58, 4  ;;  %v3651_v23 = vld [vmem:[#allocation39_spill] sm:$0xff]  ;;  %v3658_v45 = vld [vmem:[#allocation46_spill] sm:$0xff]  ;;  %v3661_v50 = vld [vmem:[#allocation49_spill] sm:$0xff] }
  0x76   : > { %v593_v9 = vrot.slane %v2406_v59, 4  ;;  %v594_v17 = vrot.slane %v2409_v60, 4  ;;  %v596_v28 = vrot.slane %v3629_v5, 4  ;;  %v597_v10 = vrot.slane %v3630_v35, 4 }
  0x77   : > { %v599_v27 = vrot.slane %v3649_v3, 4  ;;  %v600_v21 = vrot.slane %v3650_v0, 4  ;;  %v592_v56 = vsel %vm589_vm3, %v590_v29, %v591_v30  ;;  %v602_v57 = vrot.slane %v3651_v23, 4  ;;  %v3663_v3 = vld [vmem:[#allocation51_spill] sm:$0xff] }
  0x78   : > { %v595_v11 = vsel %vm589_vm3, %v593_v9, %v594_v17  ;;  %v603_v58 = vrot.slane %v3652_v7, 4  ;;  %v598_v59 = vsel %vm589_vm3, %v596_v28, %v597_v10  ;;  %v605_v5 = vrot.slane %v3653_v25, 4  ;;  %v3662_v9 = vld [vmem:[#allocation50_spill] sm:$0xff]  ;;  %v3665_v25 = vld [vmem:[#allocation53_spill] sm:$0xff] }
  0x79   : > { %v601_v60 = vsel %vm589_vm3, %v599_v27, %v600_v21  ;;  %v606_v35 = vrot.slane %v3654_v53, 4  ;;  %v608_v48 = vrot.slane %v3655_v22, 4  ;;  %v609_v14 = vrot.slane %v3656_v52, 4  ;;  %v3666_v22 = vld [vmem:[#allocation54_spill] sm:$0xff] }
  0x7a   : > { %v604_v15 = vsel %vm589_vm3, %v602_v57, %v603_v58  ;;  %v611_v32 = vrot.slane %v3657_v39, 4  ;;  %v612_v40 = vrot.slane %v3658_v45, 4  ;;  %v614_v19 = vrot.slane %v3659_v20, 4  ;;  %v3664_v57 = vld [vmem:[#allocation52_spill] sm:$0xff] }
  0x7b   : > { %v607_v16 = vsel %vm589_vm3, %v605_v5, %v606_v35  ;;  %v615_v8 = vrot.slane %v3660_v2, 4  ;;  %v610_v46 = vsel %vm589_vm3, %v608_v48, %v609_v14  ;;  %v617_v29 = vrot.slane %v3661_v50, 4 }
  0x7c   : > { %v618_v28 = vrot.slane %v3662_v9, 4  ;;  %v620_v27 = vrot.slane %v3663_v3, 4  ;;  %v613_v0 = vsel %vm589_vm3, %v611_v32, %v612_v40  ;;  %v621_v7 = vrot.slane %v3664_v57, 4 }
  0x7d   : > { %v616_v23 = vsel %vm589_vm3, %v614_v19, %v615_v8  ;;  %v623_v5 = vrot.slane %v3665_v25, 4  ;;  %v624_v52 = vrot.slane %v3666_v22, 4  ;;  %v650_v39 = vmax.f32 %v565_v44, %v592_v56 }
  0x7e   : > { %v619_v53 = vsel %vm589_vm3, %v617_v29, %v618_v28  ;;  %v651_v48 = vmax.f32 %v566_v42, %v591_v30  ;;  %v622_v45 = vsel %vm589_vm3, %v620_v27, %v621_v7  ;;  %v652_v20 = vmax.f32 %v567_v41, %v595_v11 }
  0x7f   : > { %v653_v2 = vmax.f32 %v568_v43, %v594_v17  ;;  %v654_v32 = vmax.f32 %v569_v12, %v598_v59  ;;  %v625_v19 = vsel %vm589_vm3, %v623_v5, %v624_v52  ;;  %v655_v50 = vmax.f32 %v570_v13, %v597_v10 }
  0x80   : > { %v2757_v9 = vmax.f32 %v571_v33, %v601_v60  ;;  %v2759_v3 = vmax.f32 %v572_v6, %v600_v21  ;;  %v2761_v29 = vmax.f32 %v573_v62, %v604_v15  ;;  %v2763_v57 = vmax.f32 %v574_v26, %v603_v58 }
  0x81   : > { %v2765_v44 = vmax.f32 %v575_v63, %v607_v16  ;;  %v2767_v42 = vmax.f32 %v576_v55, %v606_v35  ;;  %v2769_v30 = vmax.f32 %v577_v34, %v610_v46  ;;  %v2771_v1 = vmax.f32 %v578_v49, %v609_v14 }
  0x82   : > { %v2773_v51 = vmax.f32 %v579_v47, %v613_v0  ;;  %v2775_v41 = vmax.f32 %v580_v38, %v612_v40  ;;  %v2777_v13 = vmax.f32 %v581_v61, %v616_v23  ;;  %v2779_v6 = vmax.f32 %v582_v24, %v615_v8 }
  0x83   : > { %v2781_v12 = vmax.f32 %v583_v54, %v619_v53  ;;  %v2783_v43 = vmax.f32 %v584_v36, %v618_v28  ;;  %v2785_v33 = vmax.f32 %v585_v31, %v622_v45  ;;  %v2787_v62 = vmax.f32 %v586_v4, %v621_v7 }
  0x84   : > { %v2789_v26 = vmax.f32 %v587_v37, %v625_v19  ;;  %v2791_v63 = vmax.f32 %v588_v18, %v624_v52  ;;  %v674_v55 = vmax.f32 %v650_v39, %v652_v20  ;;  %v675_v34 = vmax.f32 %v651_v48, %v653_v2 }
  0x85   : > { %v676_v49 = vmax.f32 %v652_v20, %v654_v32  ;;  %v677_v47 = vmax.f32 %v653_v2, %v655_v50  ;;  %v678_v38 = vmax.f32 %v654_v32, %v2757_v9  ;;  %v679_v61 = vmax.f32 %v655_v50, %v2759_v3 }
  0x86   : > { %v680_v24 = vmax.f32 %v2757_v9, %v2761_v29  ;;  %v681_v54 = vmax.f32 %v2759_v3, %v2763_v57  ;;  %v682_v36 = vmax.f32 %v2761_v29, %v2765_v44  ;;  %v683_v31 = vmax.f32 %v2763_v57, %v2767_v42 }
  0x87   : > { %v684_v4 = vmax.f32 %v2765_v44, %v2769_v30  ;;  %v685_v37 = vmax.f32 %v2767_v42, %v2771_v1  ;;  %v686_v18 = vmax.f32 %v2769_v30, %v2773_v51  ;;  %v687_v17 = vmax.f32 %v2771_v1, %v2775_v41 }
  0x88   : > { %v688_v10 = vmax.f32 %v2773_v51, %v2777_v13  ;;  %v689_v21 = vmax.f32 %v2775_v41, %v2779_v6  ;;  %v690_v56 = vmax.f32 %v674_v55, %v654_v32  ;;  %v691_v11 = vmax.f32 %v675_v34, %v655_v50 }
  0x89   : > { %v692_v58 = vmax.f32 %v676_v49, %v2757_v9  ;;  %v693_v59 = vmax.f32 %v677_v47, %v2759_v3  ;;  %v694_v60 = vmax.f32 %v678_v38, %v2761_v29  ;;  %v695_v35 = vmax.f32 %v679_v61, %v2763_v57 }
  0x8a   : > { %v696_v15 = vmax.f32 %v680_v24, %v2765_v44  ;;  %v697_v14 = vmax.f32 %v681_v54, %v2767_v42  ;;  %v698_v16 = vmax.f32 %v682_v36, %v2769_v30  ;;  %v699_v40 = vmax.f32 %v683_v31, %v2771_v1 }
  0x8b   : > { %v700_v8 = vmax.f32 %v684_v4, %v2773_v51  ;;  %v701_v46 = vmax.f32 %v685_v37, %v2775_v41  ;;  %v702_v28 = vmax.f32 %v686_v18, %v2777_v13  ;;  %v703_v27 = vmax.f32 %v687_v17, %v2779_v6 }
  0x8c   : > { %v704_v0 = vmax.f32 %v688_v10, %v2781_v12  ;;  %v705_v23 = vmax.f32 %v689_v21, %v2783_v43  ;;  %v706_v7 = vmax.f32 %v690_v56, %v2757_v9  ;;  %v707_v25 = vmax.f32 %v691_v11, %v2759_v3 }
  0x8d   : > { %v708_v5 = vmax.f32 %v692_v58, %v2761_v29  ;;  %v709_v53 = vmax.f32 %v693_v59, %v2763_v57  ;;  %v710_v22 = vmax.f32 %v694_v60, %v2765_v44  ;;  %v711_v52 = vmax.f32 %v695_v35, %v2767_v42 }
  0x8e   : > { %v712_v39 = vmax.f32 %v696_v15, %v2769_v30  ;;  %v713_v48 = vmax.f32 %v697_v14, %v2771_v1  ;;  %v714_v45 = vmax.f32 %v698_v16, %v2773_v51  ;;  %v715_v20 = vmax.f32 %v699_v40, %v2775_v41 }
  0x8f   : > { %v716_v2 = vmax.f32 %v700_v8, %v2777_v13  ;;  %v717_v32 = vmax.f32 %v701_v46, %v2779_v6  ;;  %v718_v19 = vmax.f32 %v702_v28, %v2781_v12  ;;  %v719_v50 = vmax.f32 %v703_v27, %v2783_v43 }
  0x90   : > { %v720_v9 = vmax.f32 %v704_v0, %v2785_v33  ;;  %v721_v3 = vmax.f32 %v705_v23, %v2787_v62  ;;  %v2846_v55 = vmax.f32 %v706_v7, %v2761_v29  ;;  %v2849_v34 = vmax.f32 %v707_v25, %v2763_v57 }
  0x91   : > { %v2852_v49 = vmax.f32 %v708_v5, %v2765_v44  ;;  %v2855_v47 = vmax.f32 %v709_v53, %v2767_v42  ;;  %v2858_v38 = vmax.f32 %v710_v22, %v2769_v30  ;;  %v2861_v61 = vmax.f32 %v711_v52, %v2771_v1 }
  0x92   : > { %v2864_v24 = vmax.f32 %v712_v39, %v2773_v51  ;;  %v2867_v29 = vmax.f32 %v713_v48, %v2775_v41  ;;  %v2870_v57 = vmax.f32 %v714_v45, %v2777_v13  ;;  %v2873_v44 = vmax.f32 %v715_v20, %v2779_v6 }
  0x93   : > { %v2876_v42 = vmax.f32 %v716_v2, %v2781_v12  ;;  %v2879_v30 = vmax.f32 %v717_v32, %v2783_v43  ;;  %v2882_v1 = vmax.f32 %v718_v19, %v2785_v33  ;;  %v2885_v51 = vmax.f32 %v719_v50, %v2787_v62 }
  0x94   : > { %v2888_v41 = vmax.f32 %v720_v9, %v2789_v26  ;;  %v2891_v13 = vmax.f32 %v721_v3, %v2791_v63  ;;  %v754_v6 = vrot.slane %v2846_v55, 1  ;;  %v755_v12 = vrot.slane %v2849_v34, 1 }
  0x95   : > { %v757_v54 = vrot.slane %v2852_v49, 1  ;;  %v758_v43 = vrot.slane %v2855_v47, 1  ;;  %v760_v33 = vrot.slane %v2858_v38, 1  ;;  %v761_v36 = vrot.slane %v2861_v61, 1 }
  0x96   : > { %v763_v62 = vrot.slane %v2864_v24, 1  ;;  %v764_v26 = vrot.slane %v2867_v29, 1  ;;  %v756_v31 = vsel %vm334_vm0, %v754_v6, %v755_v12  ;;  %v766_v4 = vrot.slane %v2870_v57, 1 }
  0x97   : > { %v759_v63 = vsel %vm334_vm0, %v757_v54, %v758_v43  ;;  %v767_v37 = vrot.slane %v2873_v44, 1  ;;  %v762_v18 = vsel %vm334_vm0, %v760_v33, %v761_v36  ;;  %v769_v10 = vrot.slane %v2876_v42, 1 }
  0x98   : > { %v765_v17 = vsel %vm334_vm0, %v763_v62, %v764_v26  ;;  %v770_v21 = vrot.slane %v2879_v30, 1  ;;  %v772_v11 = vrot.slane %v2882_v1, 1  ;;  %v773_v58 = vrot.slane %v2885_v51, 1 }
  0x99   : > { %v768_v56 = vsel %vm334_vm0, %v766_v4, %v767_v37  ;;  %v775_v59 = vrot.slane %v2888_v41, 1  ;;  %v776_v35 = vrot.slane %v2891_v13, 1  ;;  %v786_v15 = vmax.f32 %v2846_v55, %v756_v31 }
  0x9a   : > { %v771_v60 = vsel %vm334_vm0, %v769_v10, %v770_v21  ;;  %v787_v14 = vmax.f32 %v2852_v49, %v759_v63  ;;  %v774_v16 = vsel %vm334_vm0, %v772_v11, %v773_v58  ;;  %v788_v40 = vmax.f32 %v2858_v38, %v762_v18 }
  0x9b   : > { %v789_v8 = vmax.f32 %v2864_v24, %v765_v17  ;;  %v790_v46 = vmax.f32 %v2870_v57, %v768_v56  ;;  %v777_v28 = vsel %vm334_vm0, %v775_v59, %v776_v35  ;;  %v791_v27 = vmax.f32 %v2876_v42, %v771_v60 }
  0x9c   : > { %v792_v0 = vmax.f32 %v2882_v1, %v774_v16  ;;  %v794_v23 = vrot.slane %v2846_v55, 2  ;;  %v793_v7 = vmax.f32 %v2888_v41, %v777_v28  ;;  %v795_v25 = vrot.slane %v2849_v34, 2 }
  0x9d   : > { %v797_v5 = vrot.slane %v2852_v49, 2  ;;  %v798_v53 = vrot.slane %v2855_v47, 2  ;;  %v800_v22 = vrot.slane %v2858_v38, 2  ;;  %v801_v52 = vrot.slane %v2861_v61, 2 }
  0x9e   : > { %v803_v39 = vrot.slane %v2864_v24, 2  ;;  %v804_v48 = vrot.slane %v2867_v29, 2  ;;  %v796_v45 = vsel %vm419_vm1, %v794_v23, %v795_v25  ;;  %v806_v2 = vrot.slane %v2870_v57, 2 }
  0x9f   : > { %v799_v20 = vsel %vm419_vm1, %v797_v5, %v798_v53  ;;  %v807_v32 = vrot.slane %v2873_v44, 2  ;;  %v802_v19 = vsel %vm419_vm1, %v800_v22, %v801_v52  ;;  %v809_v9 = vrot.slane %v2876_v42, 2 }
  0xa0   : > { %v805_v50 = vsel %vm419_vm1, %v803_v39, %v804_v48  ;;  %v810_v3 = vrot.slane %v2879_v30, 2  ;;  %v812_v12 = vrot.slane %v2882_v1, 2  ;;  %v813_v54 = vrot.slane %v2885_v51, 2 }
  0xa1   : > { %v808_v6 = vsel %vm419_vm1, %v806_v2, %v807_v32  ;;  %v815_v43 = vrot.slane %v2888_v41, 2  ;;  %v816_v36 = vrot.slane %v2891_v13, 2  ;;  %v2947_v62 = vmax.f32 %v786_v15, %v796_v45 }
  0xa2   : > { %v811_v33 = vsel %vm419_vm1, %v809_v9, %v810_v3  ;;  %v2949_v26 = vmax.f32 %v787_v14, %v799_v20  ;;  %v814_v31 = vsel %vm419_vm1, %v812_v12, %v813_v54  ;;  %v2952_v63 = vmax.f32 %v788_v40, %v802_v19 }
  0xa3   : > { %v2954_v4 = vmax.f32 %v789_v8, %v805_v50  ;;  %v2956_v37 = vmax.f32 %v790_v46, %v808_v6  ;;  %v817_v18 = vsel %vm419_vm1, %v815_v43, %v816_v36  ;;  %v2959_v17 = vmax.f32 %v791_v27, %v811_v33 }
  0xa4   : > { %v2961_v10 = vmax.f32 %v792_v0, %v814_v31  ;;  %v834_v21 = vrot.slane %v2846_v55, 3  ;;  %v2964_v56 = vmax.f32 %v793_v7, %v817_v18  ;;  %v835_v11 = vrot.slane %v2849_v34, 3 }
  0xa5   : > { %v837_v58 = vrot.slane %v2852_v49, 3  ;;  %v838_v59 = vrot.slane %v2855_v47, 3  ;;  %v840_v60 = vrot.slane %v2858_v38, 3  ;;  %v841_v35 = vrot.slane %v2861_v61, 3 }
  0xa6   : > { %v843_v15 = vrot.slane %v2864_v24, 3  ;;  %v844_v14 = vrot.slane %v2867_v29, 3  ;;  %v836_v16 = vsel %vm504_vm2, %v834_v21, %v835_v11  ;;  %v846_v8 = vrot.slane %v2870_v57, 3 }
  0xa7   : > { %v839_v40 = vsel %vm504_vm2, %v837_v58, %v838_v59  ;;  %v847_v46 = vrot.slane %v2873_v44, 3  ;;  %v842_v28 = vsel %vm504_vm2, %v840_v60, %v841_v35  ;;  %v849_v0 = vrot.slane %v2876_v42, 3 }
  0xa8   : > { %v845_v27 = vsel %vm504_vm2, %v843_v15, %v844_v14  ;;  %v850_v23 = vrot.slane %v2879_v30, 3  ;;  %v852_v25 = vrot.slane %v2882_v1, 3  ;;  %v853_v5 = vrot.slane %v2885_v51, 3 }
  0xa9   : > { %v848_v7 = vsel %vm504_vm2, %v846_v8, %v847_v46  ;;  %v855_v53 = vrot.slane %v2888_v41, 3  ;;  %v856_v52 = vrot.slane %v2891_v13, 3  ;;  %v866_v39 = vmax.f32 %v2947_v62, %v836_v16 }
  0xaa   : > { %v851_v22 = vsel %vm504_vm2, %v849_v0, %v850_v23  ;;  %v867_v48 = vmax.f32 %v2949_v26, %v839_v40  ;;  %v854_v45 = vsel %vm504_vm2, %v852_v25, %v853_v5  ;;  %v868_v20 = vmax.f32 %v2952_v63, %v842_v28 }
  0xab   : > { %v869_v2 = vmax.f32 %v2954_v4, %v845_v27  ;;  %v870_v32 = vmax.f32 %v2956_v37, %v848_v7  ;;  %v857_v19 = vsel %vm504_vm2, %v855_v53, %v856_v52  ;;  %v871_v50 = vmax.f32 %v2959_v17, %v851_v22 }
  0xac   : > { %v872_v9 = vmax.f32 %v2961_v10, %v854_v45  ;;  %v874_v3 = vrot.slane %v2846_v55, 4  ;;  %v873_v6 = vmax.f32 %v2964_v56, %v857_v19  ;;  %v875_v12 = vrot.slane %v2849_v34, 4 }
  0xad   : > { %v877_v54 = vrot.slane %v2852_v49, 4  ;;  %v878_v43 = vrot.slane %v2855_v47, 4  ;;  %v880_v33 = vrot.slane %v2858_v38, 4  ;;  %v881_v36 = vrot.slane %v2861_v61, 4 }
  0xae   : > { %v883_v62 = vrot.slane %v2864_v24, 4  ;;  %v884_v26 = vrot.slane %v2867_v29, 4  ;;  %v876_v31 = vsel %vm589_vm3, %v874_v3, %v875_v12  ;;  %v886_v63 = vrot.slane %v2870_v57, 4 }
  0xaf   : > { %v879_v55 = vsel %vm589_vm3, %v877_v54, %v878_v43  ;;  %v887_v34 = vrot.slane %v2873_v44, 4  ;;  %v882_v49 = vsel %vm589_vm3, %v880_v33, %v881_v36  ;;  %v889_v38 = vrot.slane %v2876_v42, 4 }
  0xb0   : > { %v885_v47 = vsel %vm589_vm3, %v883_v62, %v884_v26  ;;  %v890_v61 = vrot.slane %v2879_v30, 4  ;;  %v892_v29 = vrot.slane %v2882_v1, 4  ;;  %v893_v4 = vrot.slane %v2885_v51, 4 }
  0xb1   : > { %v888_v24 = vsel %vm589_vm3, %v886_v63, %v887_v34  ;;  %v895_v37 = vrot.slane %v2888_v41, 4  ;;  %v896_v44 = vrot.slane %v2891_v13, 4  ;;  %v906_v18 = vmax.f32 %v866_v39, %v876_v31 }
  0xb2   : > { %v891_v57 = vsel %vm589_vm3, %v889_v38, %v890_v61  ;;  %v907_v17 = vmax.f32 %v867_v48, %v879_v55  ;;  %v894_v10 = vsel %vm589_vm3, %v892_v29, %v893_v4  ;;  %v908_v21 = vmax.f32 %v868_v20, %v882_v49 }
  0xb3   : > { %v909_v42 = vmax.f32 %v869_v2, %v885_v47  ;;  %v910_v56 = vmax.f32 %v870_v32, %v888_v24  ;;  %v897_v30 = vsel %vm589_vm3, %v895_v37, %v896_v44  ;;  %v911_v11 = vmax.f32 %v871_v50, %v891_v57 }
  0xb4   : > { %v914_v58 = vmax.f32 %v906_v18, %v907_v17  ;;  %v912_v1 = vmax.f32 %v872_v9, %v894_v10  ;;  %v915_v59 = vmax.f32 %v907_v17, %v908_v21  ;;  %v913_v35 = vmax.f32 %v873_v6, %v897_v30 }
  0xb5   : > { %v916_v51 = vmax.f32 %v908_v21, %v909_v42  ;;  %v917_v60 = vmax.f32 %v909_v42, %v910_v56 }
  0xb6   : > { %v918_v41 = vmax.f32 %v914_v58, %v908_v21  ;;  %v919_v15 = vmax.f32 %v915_v59, %v909_v42 }
  0xb7   : > { %v920_v14 = vmax.f32 %v916_v51, %v910_v56  ;;  %v921_v13 = vmax.f32 %v917_v60, %v911_v11 }
  0xb8   : > { %v922_v16 = vmax.f32 %v918_v41, %v909_v42  ;;  %v923_v40 = vmax.f32 %v919_v15, %v910_v56 }
  0xb9   : > { %v924_v8 = vmax.f32 %v920_v14, %v911_v11  ;;  %v925_v46 = vmax.f32 %v921_v13, %v912_v1 }
  0xba   : > { %v926_v28 = vmax.f32 %v922_v16, %v910_v56  ;;  %v927_v27 = vmax.f32 %v923_v40, %v911_v11 }
  0xbb   : > { %v928_v0 = vmax.f32 %v924_v8, %v912_v1  ;;  %v929_v23 = vmax.f32 %v925_v46, %v913_v35 }
  0xbc   : > { %v934_v7 = vrot.slane %v926_v28, 1  ;;  %v946_v25 = vrot.slane %v926_v28, 2  ;;  %v958_v5 = vrot.slane %v926_v28, 3  ;;  %v970_v53 = vrot.slane %v926_v28, 4 }
  0xbd   : > { %v935_v22 = vrot.slane %v927_v27, 1  ;;  %v936_v52 = vrot.slane %v928_v0, 1  ;;  %v937_v39 = vrot.slane %v929_v23, 1  ;;  %v947_v48 = vrot.slane %v927_v27, 2 }
  0xbe   : > { %v942_v45 = vmax.f32 %v926_v28, %v934_v7  ;;  %v948_v20 = vrot.slane %v928_v0, 2  ;;  %v949_v2 = vrot.slane %v929_v23, 2  ;;  %v959_v32 = vrot.slane %v927_v27, 3 }
  0xbf   : > { %v943_v19 = vmax.f32 %v927_v27, %v935_v22  ;;  %v944_v50 = vmax.f32 %v928_v0, %v936_v52  ;;  %v945_v9 = vmax.f32 %v929_v23, %v937_v39  ;;  %v960_v3 = vrot.slane %v928_v0, 3 }
  0xc0   : > { %v954_v6 = vmax.f32 %v942_v45, %v946_v25  ;;  %v961_v12 = vrot.slane %v929_v23, 3  ;;  %v971_v54 = vrot.slane %v927_v27, 4  ;;  %v972_v43 = vrot.slane %v928_v0, 4 }
  0xc1   : > { %v955_v33 = vmax.f32 %v943_v19, %v947_v48  ;;  %v956_v36 = vmax.f32 %v944_v50, %v948_v20  ;;  %v957_v62 = vmax.f32 %v945_v9, %v949_v2  ;;  %v973_v26 = vrot.slane %v929_v23, 4 }
  0xc2   : > { %v966_v31 = vmax.f32 %v954_v6, %v958_v5 }
  0xc3   : > { %v967_v55 = vmax.f32 %v955_v33, %v959_v32  ;;  %v968_v63 = vmax.f32 %v956_v36, %v960_v3  ;;  %v969_v34 = vmax.f32 %v957_v62, %v961_v12 }
  0xc4   : > { %v978_v49 = vmax.f32 %v966_v31, %v970_v53 }
  0xc5   : > { %v979_v47 = vmax.f32 %v967_v55, %v971_v54  ;;  %v980_v38 = vmax.f32 %v968_v63, %v972_v43  ;;  %v981_v61 = vmax.f32 %v969_v34, %v973_v26 }
  0xc6   : > { %v982_v24 = vpack.c.bf16 %v978_v49, %v978_v49 }
  0xc7   : > { %v983_v29 = vpack.c.bf16 %v979_v47, %v979_v47  ;;  %v984_v4 = vpack.c.bf16 %v980_v38, %v980_v38  ;;  %v985_v37 = vpack.c.bf16 %v981_v61, %v981_v61 }
  0xc8   : > { %986 = vst [vmem:[%s2304_s29] sm:$0x3] %v982_v24 }
  0xc9   : > { %987 = vst [vmem:[%s2304_s29 + $0x2] sm:$0x3] %v983_v29  ;;  %988 = vst [vmem:[%s2304_s29 + $0x4] sm:$0x3] %v984_v4 }
  0xca   : > { %989 = vst [vmem:[%s2304_s29 + $0x6] sm:$0x3] %v985_v37 }
  0xcb PF: > { %p1922_p11 = scmp.ne.s32.totalorder %s2103_s8, 1 }
  0xcc   : > { %v3667_v57 = vld [vmem:[#allocation5_spill] sm:$0xff] (!%p1922_p11)  ;;  %v3668_v44 = vld [vmem:[#allocation3_spill] sm:$0xff] (!%p1922_p11)  ;;  %v3669_v17 = vld [vmem:[#allocation6_spill] sm:$0xff] (!%p1922_p11)  ;;  %vm1074_vm4 = vcmask (!%p1922_p11), 1046528   ;;  %vm1131_vm5 = vcmask (!%p1922_p11), 1045504   ;;  %vm1188_vm6 = vcmask (!%p1922_p11), 1044480  }
  0xcd   : > { %993 = sbr.rel (%p1922_p11) target bundleno = 300 (0x12c), region = 32  ;;  %v994_v18 = vmax.f32 (!%p1922_p11), %v3668_v44, %v3667_v57  ;;  %v3670_v10 = vld [vmem:[#allocation4_spill] sm:$0xff] (!%p1922_p11)  ;;  %v3671_v42 = vld [vmem:[#allocation10_spill] sm:$0xff] (!%p1922_p11)  ;;  %v3672_v30 = vld [vmem:[#allocation11_spill] sm:$0xff] (!%p1922_p11)  ;;  %vm1245_vm7 = vcmask (!%p1922_p11), 1043456   ;;  %vm1462_vm8 = vcmask (!%p1922_p11), 1040384  }
  0xce   : > { %v995_v21 = vmax.f32 (!%p1922_p11), %v3670_v10, %v3669_v17  ;;  %v996_v56 = vmax.f32 (!%p1922_p11), %v3667_v57, %v3671_v42  ;;  %v997_v11 = vmax.f32 (!%p1922_p11), %v3669_v17, %v3672_v30  ;;  %v3673_v58 = vld [vmem:[#allocation12_spill] sm:$0xff] (!%p1922_p11)  ;;  %v3674_v59 = vld [vmem:[#allocation13_spill] sm:$0xff] (!%p1922_p11)  ;;  %v3675_v60 = vld [vmem:[#allocation19_spill] sm:$0xff] (!%p1922_p11)  ;;  %vm1463_vm9 = vcmask (!%p1922_p11), 1042434  }
  0xcf   : > { %v998_v1 = vmax.f32 (!%p1922_p11), %v3671_v42, %v3673_v58  ;;  %v999_v51 = vmax.f32 (!%p1922_p11), %v3672_v30, %v3674_v59  ;;  %v1000_v41 = vmax.f32 (!%p1922_p11), %v3673_v58, %v3675_v60  ;;  %v3676_v35 = vld [vmem:[#allocation20_spill] sm:$0xff] (!%p1922_p11)  ;;  %v3677_v14 = vld [vmem:[#allocation21_spill] sm:$0xff] (!%p1922_p11)  ;;  %v3678_v16 = vld [vmem:[#allocation22_spill] sm:$0xff] (!%p1922_p11)  ;;  %v1010_v39 = vmax.f32 (!%p1922_p11), %v994_v18, %v3671_v42 }
  0xd0   : > { %v1001_v15 = vmax.f32 (!%p1922_p11), %v3674_v59, %v3676_v35  ;;  %v1002_v13 = vmax.f32 (!%p1922_p11), %v3675_v60, %v3677_v14  ;;  %v1003_v40 = vmax.f32 (!%p1922_p11), %v3676_v35, %v3678_v16  ;;  %v3679_v8 = vld [vmem:[#allocation25_spill] sm:$0xff] (!%p1922_p11)  ;;  %v3680_v28 = vld [vmem:[#allocation26_spill] sm:$0xff] (!%p1922_p11)  ;;  %v3683_v5 = vld [vmem:[#allocation23_spill] sm:$0xff] (!%p1922_p11)  ;;  %v1011_v48 = vmax.f32 (!%p1922_p11), %v995_v21, %v3672_v30 }
  0xd1   : > { %v1004_v46 = vmax.f32 (!%p1922_p11), %v3677_v14, %v3679_v8  ;;  %v1005_v27 = vmax.f32 (!%p1922_p11), %v3678_v16, %v3680_v28  ;;  %v3681_v0 = vld [vmem:[#allocation33_spill] sm:$0xff] (!%p1922_p11)  ;;  %v3682_v7 = vld [vmem:[#allocation34_spill] sm:$0xff] (!%p1922_p11)  ;;  %v3684_v22 = vld [vmem:[#allocation24_spill] sm:$0xff] (!%p1922_p11)  ;;  %v1012_v45 = vmax.f32 (!%p1922_p11), %v996_v56, %v3673_v58  ;;  %v1013_v20 = vmax.f32 (!%p1922_p11), %v997_v11, %v3674_v59 }
  0xd2   : > { %v1006_v23 = vmax.f32 (!%p1922_p11), %v3679_v8, %v3681_v0  ;;  %v1007_v25 = vmax.f32 (!%p1922_p11), %v3680_v28, %v3682_v7  ;;  %v1008_v53 = vmax.f32 (!%p1922_p11), %v3681_v0, %v3683_v5  ;;  %v1009_v52 = vmax.f32 (!%p1922_p11), %v3682_v7, %v3684_v22  ;;  %v3685_v33 = vld [vmem:[#allocation27_spill] sm:$0xff] (!%p1922_p11)  ;;  %v3686_v62 = vld [vmem:[#allocation28_spill] sm:$0xff] (!%p1922_p11)  ;;  %v3687_v18 = vld [vmem:[#allocation29_spill] sm:$0xff] (!%p1922_p11) }
  0xd3   : > { %v1014_v2 = vmax.f32 (!%p1922_p11), %v998_v1, %v3675_v60  ;;  %v1015_v32 = vmax.f32 (!%p1922_p11), %v999_v51, %v3676_v35  ;;  %v1016_v19 = vmax.f32 (!%p1922_p11), %v1000_v41, %v3677_v14  ;;  %v1017_v50 = vmax.f32 (!%p1922_p11), %v1001_v15, %v3678_v16  ;;  %v3688_v10 = vld [vmem:[#allocation30_spill] sm:$0xff] (!%p1922_p11)  ;;  %vm1464_vm11 = vmor (!%p1922_p11), %vm1462_vm8, %vm1463_vm9 }
  0xd4   : > { %v1018_v9 = vmax.f32 %v1002_v13, %v3679_v8  ;;  %v1019_v3 = vmax.f32 %v1003_v40, %v3680_v28  ;;  %v1020_v6 = vmax.f32 %v1004_v46, %v3681_v0  ;;  %v1021_v12 = vmax.f32 %v1005_v27, %v3682_v7 }
  0xd5   : > { %v1022_v54 = vmax.f32 %v1006_v23, %v3683_v5  ;;  %v1023_v43 = vmax.f32 %v1007_v25, %v3684_v22  ;;  %v1024_v36 = vmax.f32 %v1008_v53, %v3685_v33  ;;  %v1025_v26 = vmax.f32 %v1009_v52, %v3686_v62 }
  0xd6   : > { %v1026_v31 = vmax.f32 %v1010_v39, %v3673_v58  ;;  %v1027_v55 = vmax.f32 %v1011_v48, %v3674_v59  ;;  %v1028_v63 = vmax.f32 %v1012_v45, %v3675_v60  ;;  %v1029_v34 = vmax.f32 %v1013_v20, %v3676_v35 }
  0xd7   : > { %v1030_v49 = vmax.f32 %v1014_v2, %v3677_v14  ;;  %v1031_v47 = vmax.f32 %v1015_v32, %v3678_v16  ;;  %v1032_v38 = vmax.f32 %v1016_v19, %v3679_v8  ;;  %v1033_v61 = vmax.f32 %v1017_v50, %v3680_v28 }
  0xd8   : > { %v1034_v24 = vmax.f32 %v1018_v9, %v3681_v0  ;;  %v1035_v29 = vmax.f32 %v1019_v3, %v3682_v7  ;;  %v1036_v4 = vmax.f32 %v1020_v6, %v3683_v5  ;;  %v1037_v37 = vmax.f32 %v1021_v12, %v3684_v22 }
  0xd9   : > { %v1038_v57 = vmax.f32 %v1022_v54, %v3685_v33  ;;  %v1039_v44 = vmax.f32 %v1023_v43, %v3686_v62  ;;  %v1040_v17 = vmax.f32 %v1024_v36, %v3687_v18  ;;  %v1041_v21 = vmax.f32 %v1025_v26, %v3688_v10 }
  0xda   : > { %v3091_v42 = vmax.f32 %v1026_v31, %v3675_v60  ;;  %v3094_v56 = vmax.f32 %v1027_v55, %v3676_v35  ;;  %v3097_v30 = vmax.f32 %v1028_v63, %v3677_v14  ;;  %v3100_v11 = vmax.f32 %v1029_v34, %v3678_v16  ;;  %v3689_v16 = vld [vmem:[#allocation31_spill] sm:$0xff] }
  0xdb   : > { %v3103_v58 = vmax.f32 %v1030_v49, %v3679_v8  ;;  %v3106_v1 = vmax.f32 %v1031_v47, %v3680_v28  ;;  %v3109_v59 = vmax.f32 %v1032_v38, %v3681_v0  ;;  %v3112_v51 = vmax.f32 %v1033_v61, %v3682_v7  ;;  %v3690_v8 = vld [vmem:[#allocation32_spill] sm:$0xff] }
  0xdc   : > { %v3115_v60 = vmax.f32 %v1034_v24, %v3683_v5  ;;  %v3118_v41 = vmax.f32 %v1035_v29, %v3684_v22  ;;  %v3121_v35 = vmax.f32 %v1036_v4, %v3685_v33  ;;  %v3124_v15 = vmax.f32 %v1037_v37, %v3686_v62 }
  0xdd   : > { %v3127_v14 = vmax.f32 %v1038_v57, %v3687_v18  ;;  %v3130_v13 = vmax.f32 %v1039_v44, %v3688_v10  ;;  %v3133_v40 = vmax.f32 %v1040_v17, %v3689_v16  ;;  %v3136_v46 = vmax.f32 %v1041_v21, %v3690_v8 }
  0xde   : > { %v1075_v28 = vrot.slane %v3091_v42, 1  ;;  %v1076_v27 = vrot.slane %v3094_v56, 1  ;;  %v1078_v0 = vrot.slane %v3097_v30, 1  ;;  %v1079_v23 = vrot.slane %v3100_v11, 1 }
  0xdf   : > { %v1081_v7 = vrot.slane %v3103_v58, 1  ;;  %v1082_v25 = vrot.slane %v3106_v1, 1  ;;  %v1084_v5 = vrot.slane %v3109_v59, 1  ;;  %v1085_v22 = vrot.slane %v3112_v51, 1 }
  0xe0   : > { %v1077_v53 = vsel %vm1074_vm4, %v1075_v28, %v1076_v27  ;;  %v1087_v52 = vrot.slane %v3115_v60, 1  ;;  %v1088_v39 = vrot.slane %v3118_v41, 1  ;;  %v1080_v48 = vsel %vm1074_vm4, %v1078_v0, %v1079_v23 }
  0xe1   : > { %v1083_v45 = vsel %vm1074_vm4, %v1081_v7, %v1082_v25  ;;  %v1090_v20 = vrot.slane %v3121_v35, 1  ;;  %v1091_v2 = vrot.slane %v3124_v15, 1  ;;  %v1086_v32 = vsel %vm1074_vm4, %v1084_v5, %v1085_v22 }
  0xe2   : > { %v1089_v19 = vsel %vm1074_vm4, %v1087_v52, %v1088_v39  ;;  %v1093_v50 = vrot.slane %v3127_v14, 1  ;;  %v1094_v9 = vrot.slane %v3130_v13, 1  ;;  %v1096_v6 = vrot.slane %v3133_v40, 1 }
  0xe3   : > { %v1092_v3 = vsel %vm1074_vm4, %v1090_v20, %v1091_v2  ;;  %v1097_v12 = vrot.slane %v3136_v46, 1  ;;  %v1115_v54 = vmax.f32 %v3091_v42, %v1077_v53  ;;  %v1116_v33 = vmax.f32 %v3094_v56, %v1076_v27 }
  0xe4   : > { %v1095_v43 = vsel %vm1074_vm4, %v1093_v50, %v1094_v9  ;;  %v1117_v36 = vmax.f32 %v3097_v30, %v1080_v48  ;;  %v1118_v62 = vmax.f32 %v3100_v11, %v1079_v23  ;;  %v1119_v31 = vmax.f32 %v3103_v58, %v1083_v45 }
  0xe5   : > { %v1098_v26 = vsel %vm1074_vm4, %v1096_v6, %v1097_v12  ;;  %v1120_v55 = vmax.f32 %v3106_v1, %v1082_v25  ;;  %v1121_v63 = vmax.f32 %v3109_v59, %v1086_v32  ;;  %v1122_v34 = vmax.f32 %v3112_v51, %v1085_v22 }
  0xe6   : > { %v1123_v49 = vmax.f32 %v3115_v60, %v1089_v19  ;;  %v1124_v47 = vmax.f32 %v3118_v41, %v1088_v39  ;;  %v1125_v38 = vmax.f32 %v3121_v35, %v1092_v3  ;;  %v1126_v61 = vmax.f32 %v3124_v15, %v1091_v2 }
  0xe7   : > { %v1127_v24 = vmax.f32 %v3127_v14, %v1095_v43  ;;  %v1128_v29 = vmax.f32 %v3130_v13, %v1094_v9  ;;  %v1129_v4 = vmax.f32 %v3133_v40, %v1098_v26  ;;  %v1130_v37 = vmax.f32 %v3136_v46, %v1097_v12 }
  0xe8   : > { %v1132_v57 = vrot.slane %v3091_v42, 2  ;;  %v1133_v44 = vrot.slane %v3094_v56, 2  ;;  %v1135_v18 = vrot.slane %v3097_v30, 2  ;;  %v1136_v17 = vrot.slane %v3100_v11, 2 }
  0xe9   : > { %v1138_v10 = vrot.slane %v3103_v58, 2  ;;  %v1139_v21 = vrot.slane %v3106_v1, 2  ;;  %v1141_v8 = vrot.slane %v3109_v59, 2  ;;  %v1142_v28 = vrot.slane %v3112_v51, 2 }
  0xea   : > { %v1134_v16 = vsel %vm1131_vm5, %v1132_v57, %v1133_v44  ;;  %v1144_v27 = vrot.slane %v3115_v60, 2  ;;  %v1137_v0 = vsel %vm1131_vm5, %v1135_v18, %v1136_v17  ;;  %v1145_v7 = vrot.slane %v3118_v41, 2 }
  0xeb   : > { %v1140_v23 = vsel %vm1131_vm5, %v1138_v10, %v1139_v21  ;;  %v1147_v25 = vrot.slane %v3121_v35, 2  ;;  %v1143_v5 = vsel %vm1131_vm5, %v1141_v8, %v1142_v28  ;;  %v1148_v53 = vrot.slane %v3124_v15, 2 }
  0xec   : > { %v1150_v22 = vrot.slane %v3127_v14, 2  ;;  %v1151_v52 = vrot.slane %v3130_v13, 2  ;;  %v1146_v39 = vsel %vm1131_vm5, %v1144_v27, %v1145_v7  ;;  %v1153_v48 = vrot.slane %v3133_v40, 2 }
  0xed   : > { %v1154_v45 = vrot.slane %v3136_v46, 2  ;;  %v3199_v20 = vmax.f32 %v1115_v54, %v1134_v16  ;;  %v1149_v2 = vsel %vm1131_vm5, %v1147_v25, %v1148_v53  ;;  %v1173_v19 = vmax.f32 %v1116_v33, %v1133_v44 }
  0xee   : > { %v1152_v32 = vsel %vm1131_vm5, %v1150_v22, %v1151_v52  ;;  %v3203_v50 = vmax.f32 %v1117_v36, %v1137_v0  ;;  %v1175_v3 = vmax.f32 %v1118_v62, %v1136_v17  ;;  %v3206_v6 = vmax.f32 %v1119_v31, %v1140_v23 }
  0xef   : > { %v1155_v9 = vsel %vm1131_vm5, %v1153_v48, %v1154_v45  ;;  %v1177_v12 = vmax.f32 %v1120_v55, %v1139_v21  ;;  %v3208_v43 = vmax.f32 %v1121_v63, %v1143_v5  ;;  %v1179_v26 = vmax.f32 %v1122_v34, %v1142_v28 }
  0xf0   : > { %v3210_v57 = vmax.f32 %v1123_v49, %v1146_v39  ;;  %v1181_v54 = vmax.f32 %v1124_v47, %v1145_v7  ;;  %v3212_v18 = vmax.f32 %v1125_v38, %v1149_v2  ;;  %v1183_v10 = vmax.f32 %v1126_v61, %v1148_v53 }
  0xf1   : > { %v3214_v16 = vmax.f32 %v1127_v24, %v1152_v32  ;;  %v1185_v33 = vmax.f32 %v1128_v29, %v1151_v52  ;;  %v3216_v36 = vmax.f32 %v1129_v4, %v1155_v9  ;;  %v1187_v44 = vmax.f32 %v1130_v37, %v1154_v45 }
  0xf2   : > { %v1189_v62 = vrot.slane %v3091_v42, 3  ;;  %v1190_v31 = vrot.slane %v3094_v56, 3  ;;  %v1192_v55 = vrot.slane %v3097_v30, 3  ;;  %v1193_v63 = vrot.slane %v3100_v11, 3 }
  0xf3   : > { %v1195_v34 = vrot.slane %v3103_v58, 3  ;;  %v1196_v49 = vrot.slane %v3106_v1, 3  ;;  %v1198_v47 = vrot.slane %v3109_v59, 3  ;;  %v1199_v38 = vrot.slane %v3112_v51, 3 }
  0xf4   : > { %v1201_v61 = vrot.slane %v3115_v60, 3  ;;  %v1191_v24 = vsel %vm1188_vm6, %v1189_v62, %v1190_v31  ;;  %v1194_v29 = vsel %vm1188_vm6, %v1192_v55, %v1193_v63  ;;  %v1202_v4 = vrot.slane %v3118_v41, 3 }
  0xf5   : > { %v1204_v37 = vrot.slane %v3121_v35, 3  ;;  %v1197_v17 = vsel %vm1188_vm6, %v1195_v34, %v1196_v49  ;;  %v1200_v21 = vsel %vm1188_vm6, %v1198_v47, %v1199_v38  ;;  %v1205_v8 = vrot.slane %v3124_v15, 3 }
  0xf6   : > { %v1207_v28 = vrot.slane %v3127_v14, 3  ;;  %v1203_v27 = vsel %vm1188_vm6, %v1201_v61, %v1202_v4  ;;  %v1208_v0 = vrot.slane %v3130_v13, 3  ;;  %v1210_v23 = vrot.slane %v3133_v40, 3 }
  0xf7   : > { %v1211_v7 = vrot.slane %v3136_v46, 3  ;;  %v1206_v25 = vsel %vm1188_vm6, %v1204_v37, %v1205_v8  ;;  %v1229_v5 = vmax.f32 %v3199_v20, %v1191_v24  ;;  %v1230_v53 = vmax.f32 %v1173_v19, %v1190_v31 }
  0xf8   : > { %v1231_v22 = vmax.f32 %v3203_v50, %v1194_v29  ;;  %v1209_v52 = vsel %vm1188_vm6, %v1207_v28, %v1208_v0  ;;  %v1232_v48 = vmax.f32 %v1175_v3, %v1193_v63  ;;  %v1233_v45 = vmax.f32 %v3206_v6, %v1197_v17 }
  0xf9   : > { %v1212_v39 = vsel %vm1188_vm6, %v1210_v23, %v1211_v7  ;;  %v1234_v2 = vmax.f32 %v1177_v12, %v1196_v49  ;;  %v1235_v32 = vmax.f32 %v3208_v43, %v1200_v21  ;;  %v1236_v9 = vmax.f32 %v1179_v26, %v1199_v38 }
  0xfa   : > { %v1237_v62 = vmax.f32 %v3210_v57, %v1203_v27  ;;  %v1238_v55 = vmax.f32 %v1181_v54, %v1202_v4  ;;  %v1239_v34 = vmax.f32 %v3212_v18, %v1206_v25  ;;  %v1240_v20 = vmax.f32 %v1183_v10, %v1205_v8 }
  0xfb   : > { %v1241_v19 = vmax.f32 %v3214_v16, %v1209_v52  ;;  %v1242_v50 = vmax.f32 %v1185_v33, %v1208_v0  ;;  %v1243_v31 = vmax.f32 %v3216_v36, %v1212_v39  ;;  %v1244_v47 = vmax.f32 %v1187_v44, %v1211_v7 }
  0xfc   : > { %v1246_v3 = vrot.slane %v3091_v42, 4  ;;  %v1247_v6 = vrot.slane %v3094_v56, 4  ;;  %v1249_v12 = vrot.slane %v3097_v30, 4  ;;  %v1250_v43 = vrot.slane %v3100_v11, 4 }
  0xfd   : > { %v1252_v26 = vrot.slane %v3103_v58, 4  ;;  %v1253_v57 = vrot.slane %v3106_v1, 4  ;;  %v1255_v54 = vrot.slane %v3109_v59, 4  ;;  %v1256_v18 = vrot.slane %v3112_v51, 4 }
  0xfe   : > { %v1248_v10 = vsel %vm1245_vm7, %v1246_v3, %v1247_v6  ;;  %v1251_v16 = vsel %vm1245_vm7, %v1249_v12, %v1250_v43  ;;  %v1258_v42 = vrot.slane %v3115_v60, 4  ;;  %v1259_v56 = vrot.slane %v3118_v41, 4 }
  0xff   : > { %v1254_v30 = vsel %vm1245_vm7, %v1252_v26, %v1253_v57  ;;  %v1257_v11 = vsel %vm1245_vm7, %v1255_v54, %v1256_v18  ;;  %v1261_v58 = vrot.slane %v3121_v35, 4  ;;  %v1262_v1 = vrot.slane %v3124_v15, 4 }
 0x100   : > { %v1260_v59 = vsel %vm1245_vm7, %v1258_v42, %v1259_v56  ;;  %v1264_v51 = vrot.slane %v3127_v14, 4  ;;  %v1265_v33 = vrot.slane %v3130_v13, 4  ;;  %v1267_v36 = vrot.slane %v3133_v40, 4 }
 0x101   : > { %v1263_v60 = vsel %vm1245_vm7, %v1261_v58, %v1262_v1  ;;  %v1268_v41 = vrot.slane %v3136_v46, 4  ;;  %v1286_v44 = vmax.f32 %v1229_v5, %v1248_v10  ;;  %v1287_v63 = vmax.f32 %v1230_v53, %v1247_v6 }
 0x102   : > { %v1266_v49 = vsel %vm1245_vm7, %v1264_v51, %v1265_v33  ;;  %v1288_v38 = vmax.f32 %v1231_v22, %v1251_v16  ;;  %v1289_v35 = vmax.f32 %v1232_v48, %v1250_v43  ;;  %v1290_v61 = vmax.f32 %v1233_v45, %v1254_v30 }
 0x103   : > { %v1269_v15 = vsel %vm1245_vm7, %v1267_v36, %v1268_v41  ;;  %v1291_v24 = vmax.f32 %v1234_v2, %v1253_v57  ;;  %v1292_v29 = vmax.f32 %v1235_v32, %v1257_v11  ;;  %v1293_v14 = vmax.f32 %v1236_v9, %v1256_v18 }
 0x104   : > { %v1294_v4 = vmax.f32 %v1237_v62, %v1260_v59  ;;  %v1295_v13 = vmax.f32 %v1238_v55, %v1259_v56  ;;  %v1296_v37 = vmax.f32 %v1239_v34, %v1263_v60  ;;  %v1297_v40 = vmax.f32 %v1240_v20, %v1262_v1 }
 0x105   : > { %v1298_v17 = vmax.f32 %v1241_v19, %v1266_v49  ;;  %v1299_v21 = vmax.f32 %v1242_v50, %v1265_v33  ;;  %v1300_v8 = vmax.f32 %v1243_v31, %v1269_v15  ;;  %v1301_v46 = vmax.f32 %v1244_v47, %v1268_v41 }
 0x106   : > { %v1302_v28 = vmax.f32 %v1286_v44, %v1288_v38  ;;  %v1303_v27 = vmax.f32 %v1287_v63, %v1289_v35  ;;  %v1304_v0 = vmax.f32 %v1288_v38, %v1290_v61  ;;  %v1305_v23 = vmax.f32 %v1289_v35, %v1291_v24 }
 0x107   : > { %v1306_v7 = vmax.f32 %v1290_v61, %v1292_v29  ;;  %v1307_v25 = vmax.f32 %v1291_v24, %v1293_v14  ;;  %v1308_v5 = vmax.f32 %v1292_v29, %v1294_v4  ;;  %v1309_v53 = vmax.f32 %v1293_v14, %v1295_v13 }
 0x108   : > { %v1310_v22 = vmax.f32 %v1302_v28, %v1290_v61  ;;  %v1311_v52 = vmax.f32 %v1303_v27, %v1291_v24  ;;  %v1312_v39 = vmax.f32 %v1304_v0, %v1292_v29  ;;  %v1313_v48 = vmax.f32 %v1305_v23, %v1293_v14 }
 0x109   : > { %v1314_v45 = vmax.f32 %v1306_v7, %v1294_v4  ;;  %v1315_v2 = vmax.f32 %v1307_v25, %v1295_v13  ;;  %v1316_v32 = vmax.f32 %v1308_v5, %v1296_v37  ;;  %v1317_v9 = vmax.f32 %v1309_v53, %v1297_v40 }
 0x10a   : > { %v1318_v62 = vmax.f32 %v1310_v22, %v1292_v29  ;;  %v1319_v55 = vmax.f32 %v1311_v52, %v1293_v14  ;;  %v1320_v34 = vmax.f32 %v1312_v39, %v1294_v4  ;;  %v1321_v20 = vmax.f32 %v1313_v48, %v1295_v13 }
 0x10b   : > { %v1322_v19 = vmax.f32 %v1314_v45, %v1296_v37  ;;  %v1323_v50 = vmax.f32 %v1315_v2, %v1297_v40  ;;  %v1324_v31 = vmax.f32 %v1316_v32, %v1298_v17  ;;  %v1325_v47 = vmax.f32 %v1317_v9, %v1299_v21 }
 0x10c   : > { %v3274_v3 = vmax.f32 %v1318_v62, %v1294_v4  ;;  %v1327_v6 = vmax.f32 %v1319_v55, %v1295_v13  ;;  %v3276_v12 = vmax.f32 %v1320_v34, %v1296_v37  ;;  %v3278_v43 = vmax.f32 %v1321_v20, %v1297_v40 }
 0x10d   : > { %v3280_v26 = vmax.f32 %v1322_v19, %v1298_v17  ;;  %v3282_v57 = vmax.f32 %v1323_v50, %v1299_v21  ;;  %v3284_v54 = vmax.f32 %v1324_v31, %v1300_v8  ;;  %v3286_v18 = vmax.f32 %v1325_v47, %v1301_v46 }
 0x10e   : > { %v1342_v10 = vrot.slane %v3274_v3, 1  ;;  %v1343_v16 = vrot.slane %v1327_v6, 1  ;;  %v1345_v42 = vrot.slane %v3276_v12, 1  ;;  %v1346_v56 = vrot.slane %v3278_v43, 1 }
 0x10f   : > { %v1348_v30 = vrot.slane %v3280_v26, 1  ;;  %v1349_v11 = vrot.slane %v3282_v57, 1  ;;  %v1351_v58 = vrot.slane %v3284_v54, 1  ;;  %v1352_v1 = vrot.slane %v3286_v18, 1 }
 0x110   : > { %v1344_v59 = vsel %vm1074_vm4, %v1342_v10, %v1343_v16  ;;  %v1347_v51 = vsel %vm1074_vm4, %v1345_v42, %v1346_v56  ;;  %v1362_v33 = vrot.slane %v3274_v3, 2  ;;  %v1363_v36 = vrot.slane %v1327_v6, 2 }
 0x111   : > { %v1350_v60 = vsel %vm1074_vm4, %v1348_v30, %v1349_v11  ;;  %v1353_v41 = vsel %vm1074_vm4, %v1351_v58, %v1352_v1  ;;  %v1358_v44 = vmax.f32 %v3274_v3, %v1344_v59  ;;  %v1359_v63 = vmax.f32 %v3276_v12, %v1347_v51 }
 0x112   : > { %v1360_v49 = vmax.f32 %v3280_v26, %v1350_v60  ;;  %v1361_v38 = vmax.f32 %v3284_v54, %v1353_v41  ;;  %v1364_v35 = vsel %vm1131_vm5, %v1362_v33, %v1363_v36  ;;  %v1365_v61 = vrot.slane %v3276_v12, 2 }
 0x113   : > { %v1366_v15 = vrot.slane %v3278_v43, 2  ;;  %v1368_v24 = vrot.slane %v3280_v26, 2  ;;  %v1369_v29 = vrot.slane %v3282_v57, 2  ;;  %v1371_v14 = vrot.slane %v3284_v54, 2 }
 0x114   : > { %v1372_v4 = vrot.slane %v3286_v18, 2  ;;  %v1378_v13 = vmax.f32 %v1358_v44, %v1364_v35  ;;  %v1382_v37 = vrot.slane %v3274_v3, 3  ;;  %v1383_v40 = vrot.slane %v1327_v6, 3 }
 0x115   : > { %v1367_v17 = vsel %vm1131_vm5, %v1365_v61, %v1366_v15  ;;  %v1370_v21 = vsel %vm1131_vm5, %v1368_v24, %v1369_v29  ;;  %v1385_v8 = vrot.slane %v3276_v12, 3  ;;  %v1386_v46 = vrot.slane %v3278_v43, 3 }
 0x116   : > { %v1373_v28 = vsel %vm1131_vm5, %v1371_v14, %v1372_v4  ;;  %v1379_v27 = vmax.f32 %v1359_v63, %v1367_v17  ;;  %v1380_v0 = vmax.f32 %v1360_v49, %v1370_v21  ;;  %v1384_v23 = vsel %vm1188_vm6, %v1382_v37, %v1383_v40 }
 0x117   : > { %v1381_v7 = vmax.f32 %v1361_v38, %v1373_v28  ;;  %v1387_v25 = vsel %vm1188_vm6, %v1385_v8, %v1386_v46  ;;  %v1388_v5 = vrot.slane %v3280_v26, 3  ;;  %v1389_v53 = vrot.slane %v3282_v57, 3 }
 0x118   : > { %v1391_v22 = vrot.slane %v3284_v54, 3  ;;  %v1392_v52 = vrot.slane %v3286_v18, 3  ;;  %v1398_v39 = vmax.f32 %v1378_v13, %v1384_v23  ;;  %v1399_v48 = vmax.f32 %v1379_v27, %v1387_v25 }
 0x119   : > { %v1390_v45 = vsel %vm1188_vm6, %v1388_v5, %v1389_v53  ;;  %v1402_v2 = vrot.slane %v3274_v3, 4  ;;  %v1403_v32 = vrot.slane %v1327_v6, 4  ;;  %v1405_v9 = vrot.slane %v3276_v12, 4 }
 0x11a   : > { %v1393_v62 = vsel %vm1188_vm6, %v1391_v22, %v1392_v52  ;;  %v1400_v55 = vmax.f32 %v1380_v0, %v1390_v45  ;;  %v1406_v34 = vrot.slane %v3278_v43, 4  ;;  %v1408_v20 = vrot.slane %v3280_v26, 4 }
 0x11b   : > { %v1401_v19 = vmax.f32 %v1381_v7, %v1393_v62  ;;  %v1404_v50 = vsel %vm1245_vm7, %v1402_v2, %v1403_v32  ;;  %v1409_v31 = vrot.slane %v3282_v57, 4  ;;  %v1411_v47 = vrot.slane %v3284_v54, 4 }
 0x11c   : > { %v1407_v10 = vsel %vm1245_vm7, %v1405_v9, %v1406_v34  ;;  %v1412_v3 = vrot.slane %v3286_v18, 4  ;;  %v1418_v6 = vmax.f32 %v1398_v39, %v1404_v50  ;;  %v2121_v42 = vmov 1983009808  }
 0x11d   : > { %v1410_v12 = vsel %vm1245_vm7, %v1408_v20, %v1409_v31  ;;  %v1419_v16 = vmax.f32 %v1399_v48, %v1407_v10  ;;  %v1431_v56 = vunpack.c.l.s4 %v2121_v42  ;;  %v1433_v43 = vlaneseq }
 0x11e   : > { %v1413_v26 = vsel %vm1245_vm7, %v1411_v47, %v1412_v3  ;;  %v1420_v30 = vmax.f32 %v1400_v55, %v1410_v12  ;;  %v1422_v11 = vpack.c.bf16 %v1418_v6, %v1418_v6  ;;  %vm1465_vm10 = vcmask 1044484  }
 0x11f   : > { %v1421_v58 = vmax.f32 %v1401_v19, %v1413_v26  ;;  %v1423_v57 = vpack.c.bf16 %v1419_v16, %v1419_v16  ;;  %v1432_v1 = vunpack.c.0.s8 %v1431_v56  ;;  %v1434_v54 = vshrl.u32 %v1433_v43, 7  ;;  %vm1466_vm13 = vmor %vm1464_vm11, %vm1465_vm10 }
 0x120   : > { %v1424_v59 = vpack.c.bf16 %v1420_v30, %v1420_v30  ;;  %vm1467_vm12 = vcmask 1046534  }
 0x121   : > { %v1425_v18 = vpack.c.bf16 %v1421_v58, %v1421_v58  ;;  %v1435_v51 = vsub.s32 %v1432_v1, %v1434_v54  ;;  %vm1468_vm14 = vmor %vm1466_vm13, %vm1467_vm12 }
 0x123   : > { %v1436_v33 = vrot.slane %v1422_v11, %v1435_v51  ;;  %v1444_v36 = vrot.slane %v1423_v57, %v1435_v51  ;;  %v1452_v60 = vrot.slane %v1424_v59, %v1435_v51  ;;  %v1460_v41 = vrot.slane %v1425_v18, %v1435_v51 }
 0x125   : > { %v1437_v44 = vcombine.high %v1436_v33, %v1436_v33  ;;  %v1445_v63 = vcombine.high %v1444_v36, %v1444_v36  ;;  %v1453_v49 = vcombine.high %v1452_v60, %v1452_v60  ;;  %v1461_v38 = vcombine.high %v1460_v41, %v1460_v41 }
 0x126   : > { %v1923_v35 = vrot.slane %v1436_v33, 9  ;;  %v1924_v61 = vrot.slane %v1444_v36, 9  ;;  %v1925_v15 = vrot.slane %v1452_v60, 9  ;;  %v1926_v24 = vrot.slane %v1460_v41, 9 }
 0x127   : > { %v1471_v29 = vrot.slane %v1437_v44, 7  ;;  %v1475_v14 = vrot.slane %v1445_v63, 7  ;;  %v1479_v4 = vrot.slane %v1453_v49, 7  ;;  %v1483_v13 = vrot.slane %v1461_v38, 7 }
 0x129   : > { %v1472_v37 = vsel %vm1468_vm14, %v1923_v35, %v1471_v29  ;;  %v1476_v40 = vsel %vm1468_vm14, %v1924_v61, %v1475_v14  ;;  %v1480_v17 = vsel %vm1468_vm14, %v1925_v15, %v1479_v4  ;;  %v1484_v21 = vsel %vm1468_vm14, %v1926_v24, %v1483_v13 }
 0x12a   : > { %1489 = vst [vmem:[%s2304_s29] sm:$0x3] %v1472_v37  ;;  %1490 = vst [vmem:[%s2304_s29 + $0x2] sm:$0x3] %v1476_v40 }
 0x12b   : > { %1491 = vst [vmem:[%s2304_s29 + $0x4] sm:$0x3] %v1480_v17  ;;  %1492 = vst [vmem:[%s2304_s29 + $0x6] sm:$0x3] %v1484_v21 }
 0x12c PF: > { %p1927_p12 = scmp.ne.s32.totalorder %s2103_s8, 2 }
 0x12d   : > { %v3691_v8 = vld [vmem:[#allocation12_spill] sm:$0xff] (!%p1927_p12)  ;;  %v3692_v46 = vld [vmem:[#allocation10_spill] sm:$0xff] (!%p1927_p12)  ;;  %v3693_v27 = vld [vmem:[#allocation13_spill] sm:$0xff] (!%p1927_p12)  ;;  %vm1537_vm15 = vcmask (!%p1927_p12), 1046528   ;;  %vm1558_vm0 = vcmask (!%p1927_p12), 1045504   ;;  %vm1579_vm1 = vcmask (!%p1927_p12), 1044480   ;;  %v1632_v7 = vlaneseq (!%p1927_p12) }
 0x12e   : > { %1496 = sbr.rel (%p1927_p12) target bundleno = 343 (0x157), region = 36  ;;  %v1497_v28 = vmax.f32 (!%p1927_p12), %v3692_v46, %v3691_v8  ;;  %v3694_v0 = vld [vmem:[#allocation11_spill] sm:$0xff] (!%p1927_p12)  ;;  %vm1600_vm2 = vcmask (!%p1927_p12), 1043456   ;;  %v3696_v53 = vld [vmem:[#allocation20_spill] sm:$0xff] (!%p1927_p12)  ;;  %v2122_v52 = vmov (!%p1927_p12), 1983009808  }
 0x12f   : > { %v1498_v23 = vmax.f32 (!%p1927_p12), %v3694_v0, %v3693_v27  ;;  %v3695_v25 = vld [vmem:[#allocation19_spill] sm:$0xff] (!%p1927_p12)  ;;  %v1630_v39 = vunpack.c.l.s4 (!%p1927_p12), %v2122_v52  ;;  %v1633_v45 = vshrl.u32 (!%p1927_p12), %v1632_v7, 7  ;;  %v1500_v2 = vmax.f32 (!%p1927_p12), %v3693_v27, %v3696_v53  ;;  %v3697_v32 = vld [vmem:[#allocation21_spill] sm:$0xff] (!%p1927_p12)  ;;  %v3698_v62 = vld [vmem:[#allocation22_spill] sm:$0xff] (!%p1927_p12) }
 0x130   : > { %v1505_v5 = vmax.f32 (!%p1927_p12), %v1497_v28, %v3695_v25  ;;  %v1499_v48 = vmax.f32 (!%p1927_p12), %v3691_v8, %v3695_v25  ;;  %v1501_v9 = vmax.f32 (!%p1927_p12), %v3695_v25, %v3697_v32  ;;  %v1502_v55 = vmax.f32 (!%p1927_p12), %v3696_v53, %v3698_v62  ;;  %v3699_v47 = vld [vmem:[#allocation25_spill] sm:$0xff] (!%p1927_p12)  ;;  %v3700_v3 = vld [vmem:[#allocation26_spill] sm:$0xff] (!%p1927_p12)  ;;  %v3703_v24 = vld [vmem:[#allocation23_spill] sm:$0xff] (!%p1927_p12) }
 0x131   : > { %v1506_v22 = vmax.f32 (!%p1927_p12), %v1498_v23, %v3696_v53  ;;  %v1631_v19 = vunpack.c.0.s8 (!%p1927_p12), %v1630_v39  ;;  %v1508_v31 = vmax.f32 (!%p1927_p12), %v1500_v2, %v3698_v62  ;;  %v1503_v12 = vmax.f32 (!%p1927_p12), %v3697_v32, %v3699_v47  ;;  %v3701_v30 = vld [vmem:[#allocation33_spill] sm:$0xff] (!%p1927_p12)  ;;  %v3702_v58 = vld [vmem:[#allocation34_spill] sm:$0xff] (!%p1927_p12)  ;;  %v3704_v0 = vld [vmem:[#allocation24_spill] sm:$0xff] (!%p1927_p12) }
 0x132   : > { %v1513_v34 = vmax.f32 (!%p1927_p12), %v1505_v5, %v3697_v32  ;;  %v1507_v50 = vmax.f32 (!%p1927_p12), %v1499_v48, %v3697_v32  ;;  %v1509_v10 = vmax.f32 (!%p1927_p12), %v1501_v9, %v3699_v47  ;;  %v1510_v6 = vmax.f32 (!%p1927_p12), %v1502_v55, %v3700_v3 }
 0x133   : > { %v1514_v20 = vmax.f32 (!%p1927_p12), %v1506_v22, %v3698_v62  ;;  %v3365_v56 = vsub.s32 (!%p1927_p12), %v1631_v19, %v1633_v45  ;;  %v1516_v26 = vmax.f32 (!%p1927_p12), %v1508_v31, %v3700_v3  ;;  %v1504_v1 = vmax.f32 (!%p1927_p12), %v3698_v62, %v3700_v3 }
 0x134   : > { %v1521_v16 = vmax.f32 (!%p1927_p12), %v1513_v34, %v3699_v47  ;;  %v1515_v43 = vmax.f32 (!%p1927_p12), %v1507_v50, %v3699_v47  ;;  %v1517_v11 = vmax.f32 (!%p1927_p12), %v1509_v10, %v3701_v30  ;;  %v1518_v57 = vmax.f32 (!%p1927_p12), %v1510_v6, %v3702_v58 }
 0x135   : > { %v1522_v42 = vmax.f32 %v1514_v20, %v3700_v3  ;;  %v1524_v38 = vmax.f32 %v1516_v26, %v3702_v58  ;;  %v1511_v10 = vmax.f32 %v1503_v12, %v3701_v30  ;;  %v1512_v3 = vmax.f32 %v1504_v1, %v3702_v58 }
 0x136   : > { %v1538_v54 = vrot.slane %v1521_v16, 1  ;;  %v1559_v18 = vrot.slane %v1521_v16, 2  ;;  %v1580_v33 = vrot.slane %v1521_v16, 3  ;;  %v1601_v60 = vrot.slane %v1521_v16, 4 }
 0x137   : > { %v1539_v59 = vrot.slane %v1522_v42, 1  ;;  %v1560_v51 = vrot.slane %v1522_v42, 2  ;;  %v1581_v36 = vrot.slane %v1522_v42, 3  ;;  %v1602_v41 = vrot.slane %v1522_v42, 4 }
 0x138   : > { %v1523_v49 = vmax.f32 %v1515_v43, %v3701_v30  ;;  %v1525_v29 = vmax.f32 %v1517_v11, %v3703_v24  ;;  %v1542_v4 = vrot.slane %v1524_v38, 1  ;;  %v1563_v37 = vrot.slane %v1524_v38, 2 }
 0x139   : > { %v1540_v44 = vsel %vm1537_vm15, %v1538_v54, %v1539_v59  ;;  %v1561_v63 = vsel %vm1558_vm0, %v1559_v18, %v1560_v51  ;;  %v1582_v61 = vsel %vm1579_vm1, %v1580_v33, %v1581_v36  ;;  %v1603_v15 = vsel %vm1600_vm2, %v1601_v60, %v1602_v41  ;;  %v3705_v18 = vld [vmem:[#allocation27_spill] sm:$0xff]  ;;  %v3706_v33 = vld [vmem:[#allocation28_spill] sm:$0xff] }
 0x13a   : > { %v1554_v35 = vmax.f32 %v1521_v16, %v1540_v44  ;;  %v1541_v14 = vrot.slane %v1523_v49, 1  ;;  %v1562_v13 = vrot.slane %v1523_v49, 2  ;;  %v1583_v17 = vrot.slane %v1523_v49, 3 }
 0x13b   : > { %v1584_v21 = vrot.slane %v1524_v38, 3  ;;  %v1604_v8 = vrot.slane %v1523_v49, 4  ;;  %v1605_v27 = vrot.slane %v1524_v38, 4  ;;  %v1526_v23 = vmax.f32 %v1518_v57, %v3704_v0 }
 0x13c   : > { %v1575_v40 = vmax.f32 %v1554_v35, %v1561_v63  ;;  %v1543_v46 = vsel %vm1537_vm15, %v1541_v14, %v1542_v4  ;;  %v1564_v28 = vsel %vm1558_vm0, %v1562_v13, %v1563_v37  ;;  %v1544_v53 = vrot.slane %v1525_v29, 1 }
 0x13d   : > { %v1555_v25 = vmax.f32 %v1523_v49, %v1543_v46  ;;  %v1585_v5 = vsel %vm1579_vm1, %v1583_v17, %v1584_v21  ;;  %v1606_v22 = vsel %vm1600_vm2, %v1604_v8, %v1605_v27  ;;  %v1545_v52 = vrot.slane %v1526_v23, 1 }
 0x13e   : > { %v1596_v7 = vmax.f32 %v1575_v40, %v1582_v61  ;;  %v1565_v39 = vrot.slane %v1525_v29, 2  ;;  %v1566_v48 = vrot.slane %v1526_v23, 2  ;;  %v1586_v32 = vrot.slane %v1525_v29, 3 }
 0x13f   : > { %v1576_v2 = vmax.f32 %v1555_v25, %v1564_v28  ;;  %v1587_v9 = vrot.slane %v1526_v23, 3  ;;  %v1546_v62 = vsel %vm1537_vm15, %v1544_v53, %v1545_v52  ;;  %v1607_v34 = vrot.slane %v1525_v29, 4 }
 0x140   : > { %v1617_v45 = vmax.f32 %v1596_v7, %v1603_v15  ;;  %v1567_v55 = vsel %vm1558_vm0, %v1565_v39, %v1566_v48  ;;  %v1608_v20 = vrot.slane %v1526_v23, 4  ;;  %v1556_v31 = vmax.f32 %v1525_v29, %v1546_v62 }
 0x141   : > { %v1597_v50 = vmax.f32 %v1576_v2, %v1585_v5  ;;  %v1588_v47 = vsel %vm1579_vm1, %v1586_v32, %v1587_v9  ;;  %v1519_v26 = vmax.f32 %v1511_v10, %v3703_v24  ;;  %v1520_v11 = vmax.f32 %v1512_v3, %v3704_v0 }
 0x142   : > { %v1621_v19 = vpack.c.bf16 %v1617_v45, %v1617_v45  ;;  %v1577_v42 = vmax.f32 %v1556_v31, %v1567_v55  ;;  %v1609_v43 = vsel %vm1600_vm2, %v1607_v34, %v1608_v20 }
 0x143   : > { %v1618_v16 = vmax.f32 %v1597_v50, %v1606_v22  ;;  %v1527_v51 = vmax.f32 %v1519_v26, %v3705_v18  ;;  %v1528_v36 = vmax.f32 %v1520_v11, %v3706_v33 }
 0x144   : > { %v1635_v6 = vrot.slane %v1621_v19, %v3365_v56  ;;  %v1598_v59 = vmax.f32 %v1577_v42, %v1588_v47 }
 0x145   : > { %v1622_v54 = vpack.c.bf16 %v1618_v16, %v1618_v16  ;;  %v1547_v58 = vrot.slane %v1527_v51, 1  ;;  %v1548_v1 = vrot.slane %v1528_v36, 1  ;;  %v1568_v60 = vrot.slane %v1527_v51, 2 }
 0x146   : > { %v1636_v57 = vcombine.high %v1635_v6, %v1635_v6  ;;  %v1619_v30 = vmax.f32 %v1598_v59, %v1609_v43  ;;  %v1569_v41 = vrot.slane %v1528_v36, 2  ;;  %v1589_v49 = vrot.slane %v1527_v51, 3 }
 0x147   : > { %v1643_v12 = vrot.slane %v1622_v54, %v3365_v56  ;;  %v1590_v38 = vrot.slane %v1528_v36, 3  ;;  %v1549_v35 = vsel %vm1537_vm15, %v1547_v58, %v1548_v1  ;;  %v1610_v15 = vrot.slane %v1527_v51, 4 }
 0x148   : > { %1665 = vst [vmem:[%s2304_s29] sm:$0x3] %v1636_v57  ;;  %v1623_v63 = vpack.c.bf16 %v1619_v30, %v1619_v30  ;;  %v1570_v61 = vsel %vm1558_vm0, %v1568_v60, %v1569_v41  ;;  %v1611_v24 = vrot.slane %v1528_v36, 4  ;;  %v1557_v14 = vmax.f32 %v1527_v51, %v1549_v35 }
 0x149   : > { %v1644_v44 = vcombine.high %v1643_v12, %v1643_v12  ;;  %v1591_v4 = vsel %vm1579_vm1, %v1589_v49, %v1590_v38 }
 0x14a   : > { %v1651_v29 = vrot.slane %v1623_v63, %v3365_v56  ;;  %v1578_v37 = vmax.f32 %v1557_v14, %v1570_v61  ;;  %v1612_v40 = vsel %vm1600_vm2, %v1610_v15, %v1611_v24 }
 0x14b   : > { %1666 = vst [vmem:[%s2304_s29 + $0x2] sm:$0x3] %v1644_v44 }
 0x14c   : > { %v1652_v13 = vcombine.high %v1651_v29, %v1651_v29  ;;  %v1599_v17 = vmax.f32 %v1578_v37, %v1591_v4 }
 0x14e   : > { %1667 = vst [vmem:[%s2304_s29 + $0x4] sm:$0x3] %v1652_v13  ;;  %v1620_v21 = vmax.f32 %v1599_v17, %v1612_v40 }
 0x150   : > { %v1624_v8 = vpack.c.bf16 %v1620_v21, %v1620_v21 }
 0x152   : > { %v1659_v46 = vrot.slane %v1624_v8, %v3365_v56 }
 0x154   : > { %v1660_v28 = vcombine.high %v1659_v46, %v1659_v46 }
 0x156   : > { %1668 = vst [vmem:[%s2304_s29 + $0x6] sm:$0x3] %v1660_v28 }
 0x157 PF: > { %p1928_p13 = scmp.ne.s32.totalorder %s2103_s8, 3 }
 0x158   : > { %v1685_v27 = vlaneseq (!%p1928_p13)  ;;  %v2123_v0 = vmov (!%p1928_p13), 1983009808   ;;  %vm1745_vm3 = vcmask (!%p1928_p13), 1040384   ;;  %vm1746_vm4 = vcmask (!%p1928_p13), 1042434   ;;  %v3707_v7 = vld [vmem:[#allocation8_spill] sm:$0xff] (!%p1928_p13)  ;;  %v3708_v25 = vld [vmem:[#allocation7_spill] sm:$0xff] (!%p1928_p13) }
 0x159   : > { %1672 = sbr.rel (%p1928_p13) target bundleno = 360 (0x168), region = 40  ;;  %v1683_v23 = vunpack.c.l.s4 (!%p1928_p13), %v2123_v0  ;;  %v1929_v5 = vcombine.low (!%p1928_p13), %v3708_v25, %v3707_v7  ;;  %v1933_v53 = vcombine.low (!%p1928_p13), %v3707_v7, %v3707_v7  ;;  %vm1748_vm5 = vcmask (!%p1928_p13), 1044484   ;;  %v3709_v56 = vld [vmem:[#allocation14_spill] sm:$0xff] (!%p1928_p13)  ;;  %v3710_v39 = vld [vmem:[#allocation9_spill] sm:$0xff] (!%p1928_p13)  ;;  %vm1747_vm6 = vmor (!%p1928_p13), %vm1745_vm3, %vm1746_vm4 }
 0x15a   : > { %v1686_v22 = vshrl.u32 (!%p1928_p13), %v1685_v27, 7  ;;  %v1930_v48 = vcombine.low (!%p1928_p13), %v3710_v39, %v3709_v56  ;;  %v1934_v45 = vcombine.low (!%p1928_p13), %v3709_v56, %v3709_v56  ;;  %v3711_v2 = vld [vmem:[#allocation16_spill] sm:$0xff] (!%p1928_p13)  ;;  %v3712_v32 = vld [vmem:[#allocation15_spill] sm:$0xff] (!%p1928_p13)  ;;  %v3713_v55 = vld [vmem:[#allocation18_spill] sm:$0xff] (!%p1928_p13)  ;;  %vm1750_vm7 = vcmask (!%p1928_p13), 1046534  }
 0x15b   : > { %v1684_v52 = vunpack.c.0.s8 (!%p1928_p13), %v1683_v23  ;;  %v1931_v9 = vcombine.low (!%p1928_p13), %v3712_v32, %v3711_v2  ;;  %v1935_v62 = vcombine.low (!%p1928_p13), %v3711_v2, %v3711_v2  ;;  %v3714_v34 = vld [vmem:[#allocation17_spill] sm:$0xff] (!%p1928_p13)  ;;  %v1936_v19 = vcombine.low (!%p1928_p13), %v3713_v55, %v3713_v55  ;;  %vm1749_vm8 = vmor (!%p1928_p13), %vm1747_vm6, %vm1748_vm5 }
 0x15c   : > { %v1932_v20 = vcombine.low (!%p1928_p13), %v3714_v34, %v3713_v55  ;;  %vm1751_vm9 = vmor (!%p1928_p13), %vm1749_vm8, %vm1750_vm7 }
 0x15d   : > { %v1687_v50 = vsub.s32 (!%p1928_p13), %v1684_v52, %v1686_v22 }
 0x15f   : > { %v1688_v31 = vrot.slane (!%p1928_p13), %v1929_v5, %v1687_v50  ;;  %v1695_v47 = vrot.slane (!%p1928_p13), %v1933_v53, %v1687_v50  ;;  %v1704_v10 = vrot.slane (!%p1928_p13), %v1930_v48, %v1687_v50  ;;  %v1711_v3 = vrot.slane (!%p1928_p13), %v1934_v45, %v1687_v50 }
 0x160   : > { %v1720_v6 = vrot.slane %v1931_v9, %v1687_v50  ;;  %v1727_v16 = vrot.slane %v1935_v62, %v1687_v50  ;;  %v1736_v42 = vrot.slane %v1932_v20, %v1687_v50  ;;  %v1743_v43 = vrot.slane %v1936_v19, %v1687_v50 }
 0x161   : > { %v1696_v26 = vcombine.high %v1688_v31, %v1688_v31  ;;  %v1754_v11 = vrot.slane %v1695_v47, 7  ;;  %v1712_v57 = vcombine.high %v1704_v10, %v1704_v10  ;;  %v1758_v54 = vrot.slane %v1711_v3, 7 }
 0x162   : > { %v1728_v59 = vcombine.high %v1720_v6, %v1720_v6  ;;  %v1762_v18 = vrot.slane %v1727_v16, 7  ;;  %v1744_v51 = vcombine.high %v1736_v42, %v1736_v42  ;;  %v1766_v33 = vrot.slane %v1743_v43, 7 }
 0x163   : > { %v1937_v36 = vrot.slane %v1696_v26, 9  ;;  %v1938_v12 = vrot.slane %v1712_v57, 9 }
 0x164   : > { %v1939_v30 = vrot.slane %v1728_v59, 9  ;;  %v1940_v58 = vrot.slane %v1744_v51, 9 }
 0x165   : > { %v1755_v1 = vsel %vm1751_vm9, %v1937_v36, %v1754_v11  ;;  %v1759_v60 = vsel %vm1751_vm9, %v1938_v12, %v1758_v54 }
 0x166   : > { %1772 = vst [vmem:[%s2304_s29] sm:$0x3] %v1755_v1  ;;  %1773 = vst [vmem:[%s2304_s29 + $0x2] sm:$0x3] %v1759_v60  ;;  %v1763_v41 = vsel %vm1751_vm9, %v1939_v30, %v1762_v18  ;;  %v1767_v44 = vsel %vm1751_vm9, %v1940_v58, %v1766_v33 }
 0x167   : > { %1774 = vst [vmem:[%s2304_s29 + $0x4] sm:$0x3] %v1763_v41  ;;  %1775 = vst [vmem:[%s2304_s29 + $0x6] sm:$0x3] %v1767_v44 }
 0x168 PF: > { %1782 = sbr.rel (!%p2180_p5) target bundleno = 369 (0x171), region = 44  ;;  %s1942_s30 = sshll.u32 (%p2180_p5), %s2107_s9, 4 }
 0x169   : > { %s1785_s2 = sadd.s32 (%p2180_p5), %s2103_s8, %s1942_s30 }
 0x16a   : > { %s1943_s3 = sshll.u32 (%p2180_p5), %s1785_s2, 1 }
 0x16b   : > { %s1787_s6 = scalar_lea.vmem (%p2180_p5), %s3461_s1, %s1943_s3 }
 0x16d   : > { %v1803_v63 = vld [vmem:[%s2304_s29] sm:$0x3] (%p2180_p5)  ;;  %v1805_v49 = vld [vmem:[%s2304_s29 + $0x2] sm:$0x3] (%p2180_p5) }
 0x16e   : > { %v1807_v38 = vld [vmem:[%s2304_s29 + $0x4] sm:$0x3] (%p2180_p5)  ;;  %v1809_v35 = vld [vmem:[%s2304_s29 + $0x6] sm:$0x3] (%p2180_p5)  ;;  %1804 = vst [vmem:[%s1787_s6] sm:$0x3] (%p2180_p5), %v1803_v63 }
 0x16f   : > { %1806 = vst [vmem:[%s1787_s6 + $0x8] sm:$0x3] %v1805_v49  ;;  %1808 = vst [vmem:[%s1787_s6 + $0x10] sm:$0x3] %v1807_v38 }
 0x170   : > { %1810 = vst [vmem:[%s1787_s6 + $0x18] sm:$0x3] %v1809_v35 }
 0x171 PF: > { %s11_s12 = sadd.s32 1, %s2119_s12   ;;  %s3715_s6 = smov %s2099_s7 }
 0x172   : > { %p8_p0 = scmp.ge.s32.totalorder %s11_s12, 10   ;;  %s3716_s7 = smov %s2191_s21 }
 0x173   : > { %s3717_s8 = smov %s2111_s10  ;;  %s3718_s9 = smov %s2115_s11 }
 0x174   : > { %s3719_s10 = smov %s3722_s13  ;;  %s3720_s11 = smov %s3726_s14 }
 0x175   :  { %10 = sbr.rel (!%p8_p0) target bundleno = 4 (0x4), region = 111 }

// kernel: _lambda_.93
= control target key start
LH: loop header
LB: loop body
LE: loop exit
PB: predicated region body
PF: predicated region fallthrough
CT: control target
= control target key end

     0   :  { %s1904_s1 = inlined_call_operand.vmem [shape: bf16[640,128], index: 1, kind: input, shape index: {}]   ;;  %s1905_s0 = inlined_call_operand.vmem [shape: bf16[128,640], index: 0, kind: input, shape index: {}]   ;;  %s1906_s3 = inlined_call_operand.vmem [shape: f32[8,128], index: 3, kind: output, shape index: {1}]   ;;  %s1907_s2 = inlined_call_operand.vmem [shape: bf16[128,128], index: 2, kind: output, shape index: {0}]  }
   0x1   :  { %v1469_v0 = vld [vmem:[%s1904_s1 + $0x40] sm:$0xff]   ;;  %v1473_v4 = vld [vmem:[%s1904_s1 + $0x48] sm:$0xff]   ;;  %v1477_v8 = vld [vmem:[%s1904_s1 + $0x50] sm:$0xff]  }
   0x2   :  { %v1470_v1 = vld [vmem:[%s1904_s1 + $0xc0] sm:$0xff]   ;;  %1276 = vmatprep.subr.bf16.mxu0 %v1469_v0  ;;  %v1474_v5 = vld [vmem:[%s1904_s1 + $0xc8] sm:$0xff]   ;;  %v1478_v9 = vld [vmem:[%s1904_s1 + $0xd0] sm:$0xff]  }
   0x3   :  { %v1471_v2 = vld [vmem:[%s1904_s1] sm:$0xff]   ;;  %1340 = vmatprep.subr.bf16.mxu1 %v1470_v1  ;;  %v1475_v6 = vld [vmem:[%s1904_s1 + $0x8] sm:$0xff]   ;;  %v1479_v10 = vld [vmem:[%s1904_s1 + $0x10] sm:$0xff]  }
   0x4   :  { %v1472_v3 = vld [vmem:[%s1904_s1 + $0x80] sm:$0xff]   ;;  %1277 = vmatpush3.bf16.msra.mxu0 %v1471_v2  ;;  %v1476_v7 = vld [vmem:[%s1904_s1 + $0x88] sm:$0xff]   ;;  %v1480_v11 = vld [vmem:[%s1904_s1 + $0x90] sm:$0xff]  }
   0x5   :  { %1341 = vmatpush3.bf16.msra.mxu1 %v1472_v3  ;;  %1278 = vmatprep.subr.bf16.mxu0 %v1473_v4  ;;  %v1481_v12 = vld [vmem:[%s1904_s1 + $0x58] sm:$0xff]   ;;  %v1485_v16 = vld [vmem:[%s1904_s1 + $0x60] sm:$0xff]   ;;  %v1489_v20 = vld [vmem:[%s1904_s1 + $0x68] sm:$0xff]  }
   0x6   :  { %1342 = vmatprep.subr.bf16.mxu1 %v1474_v5  ;;  %v1482_v13 = vld [vmem:[%s1904_s1 + $0xd8] sm:$0xff]   ;;  %v1486_v17 = vld [vmem:[%s1904_s1 + $0xe0] sm:$0xff]   ;;  %v1490_v21 = vld [vmem:[%s1904_s1 + $0xe8] sm:$0xff]  }
   0x7   :  { %v1483_v14 = vld [vmem:[%s1904_s1 + $0x18] sm:$0xff]   ;;  %v1487_v18 = vld [vmem:[%s1904_s1 + $0x20] sm:$0xff]   ;;  %v1491_v22 = vld [vmem:[%s1904_s1 + $0x28] sm:$0xff]  }
   0x8   :  { %1279 = vmatpush3.bf16.msra.mxu0 %v1475_v6  ;;  %v1484_v15 = vld [vmem:[%s1904_s1 + $0x98] sm:$0xff]   ;;  %v1488_v19 = vld [vmem:[%s1904_s1 + $0xa0] sm:$0xff]   ;;  %v1492_v23 = vld [vmem:[%s1904_s1 + $0xa8] sm:$0xff]  }
   0x9   :  { %1343 = vmatpush3.bf16.msra.mxu1 %v1476_v7  ;;  %1280 = vmatprep.subr.bf16.mxu0 %v1477_v8  ;;  %v1493_v24 = vld [vmem:[%s1904_s1 + $0x70] sm:$0xff]   ;;  %v1497_v28 = vld [vmem:[%s1904_s1 + $0x78] sm:$0xff]   ;;  %v1506_v35 = vld [vmem:[%s1905_s0 + $0xc] ss:$20 sps:$4 sm:$0xff]  }
   0xa   :  { %1344 = vmatprep.subr.bf16.mxu1 %v1478_v9  ;;  %v1494_v25 = vld [vmem:[%s1904_s1 + $0xf0] sm:$0xff]   ;;  %v1498_v29 = vld [vmem:[%s1904_s1 + $0xf8] sm:$0xff]   ;;  %v1507_v36 = vld [vmem:[%s1904_s1 + $0x100] sm:$0xff]   ;;  %755 = vmatprep.mubr.bf16.mxu1 %v1506_v35 }
   0xb   :  { %v1495_v26 = vld [vmem:[%s1904_s1 + $0x30] sm:$0xff]   ;;  %v1499_v30 = vld [vmem:[%s1904_s1 + $0x38] sm:$0xff]   ;;  %v1508_v37 = vld [vmem:[%s1905_s0 + $0x2c] ss:$20 sps:$4 sm:$0xff]  }
   0xc   :  { %1281 = vmatpush3.bf16.msra.mxu0 %v1479_v10  ;;  %v1496_v27 = vld [vmem:[%s1904_s1 + $0xb0] sm:$0xff]   ;;  %v1500_v31 = vld [vmem:[%s1904_s1 + $0xb8] sm:$0xff]   ;;  %v1514_v39 = vld [vmem:[%s1904_s1 + $0x108] sm:$0xff]  }
   0xd   :  { %1345 = vmatpush3.bf16.msra.mxu1 %v1480_v11  ;;  %1282 = vmatprep.subr.bf16.mxu0 %v1481_v12  ;;  %v1501_v32 = vld [vmem:[%s1905_s0] ss:$20 sps:$4 sm:$0xff]   ;;  %v1503_v33 = vld [vmem:[%s1905_s0 + $0x4] ss:$20 sps:$4 sm:$0xff]   ;;  %v1504_v34 = vld [vmem:[%s1905_s0 + $0x8] ss:$20 sps:$4 sm:$0xff]  }
   0xe   :  { %1346 = vmatprep.subr.bf16.mxu1 %v1482_v13  ;;  %658 = vmatprep.mubr.bf16.mxu0 %v1503_v33  ;;  %v1510_v38 = vld [vmem:[%s1905_s0 + $0x34] ss:$20 sps:$4 sm:$0xff]   ;;  %v1513_v41 = vld [vmem:[%s1905_s0 + $0x30] ss:$20 sps:$4 sm:$0xff]   ;;  %v1528_v45 = vld [vmem:[%s1904_s1 + $0x118] sm:$0xff]  }
   0xf   :  { %v1512_v40 = vld [vmem:[%s1905_s0 + $0x28] ss:$20 sps:$4 sm:$0xff]   ;;  %v1521_v44 = vld [vmem:[%s1904_s1 + $0x110] sm:$0xff]   ;;  %v1520_v47 = vld [vmem:[%s1905_s0 + $0x58] ss:$20 sps:$4 sm:$0xff]  }
  0x10   :  { %1283 = vmatpush3.bf16.msra.mxu0 %v1483_v14  ;;  %v1515_v42 = vld [vmem:[%s1905_s0 + $0x54] ss:$20 sps:$4 sm:$0xff]   ;;  %v1517_v43 = vld [vmem:[%s1905_s0 + $0x5c] ss:$20 sps:$4 sm:$0xff]   ;;  %v1524_v49 = vld [vmem:[%s1905_s0 + $0x84] ss:$20 sps:$4 sm:$0xff]  }
  0x11   :  { %1347 = vmatpush3.bf16.msra.mxu1 %v1484_v15  ;;  %1284 = vmatprep.subr.bf16.mxu0 %v1485_v16  ;;  %v1519_v46 = vld [vmem:[%s1905_s0 + $0x50] ss:$20 sps:$4 sm:$0xff]   ;;  %v1542_v51 = vld [vmem:[%s1904_s1 + $0x128] sm:$0xff]   ;;  %v1527_v53 = vld [vmem:[%s1905_s0 + $0x80] ss:$20 sps:$4 sm:$0xff]   ;;  %v1565_v16 = vmov 0.0  }
  0x12   :  { %1348 = vmatprep.subr.bf16.mxu1 %v1486_v17  ;;  %v1522_v48 = vld [vmem:[%s1905_s0 + $0x7c] ss:$20 sps:$4 sm:$0xff]   ;;  %v1535_v50 = vld [vmem:[%s1904_s1 + $0x120] sm:$0xff]   ;;  %v1526_v52 = vld [vmem:[%s1905_s0 + $0x78] ss:$20 sps:$4 sm:$0xff]   ;;  %1048 = vst [vmem:[%s1906_s3] sm:$0xff] %v1565_v16 }
  0x13   :  { %v1529_v54 = vld [vmem:[%s1905_s0 + $0xa4] ss:$20 sps:$4 sm:$0xff]   ;;  %v1549_v55 = vld [vmem:[%s1904_s1 + $0x130] sm:$0xff]   ;;  %v1531_v56 = vld [vmem:[%s1905_s0 + $0xac] ss:$20 sps:$4 sm:$0xff]  }
  0x14   :  { %1285 = vmatpush3.bf16.msra.mxu0 %v1487_v18  ;;  %v1556_v57 = vld [vmem:[%s1904_s1 + $0x138] sm:$0xff]   ;;  %v1533_v58 = vld [vmem:[%s1905_s0 + $0xa0] ss:$20 sps:$4 sm:$0xff]   ;;  %v1541_v63 = vld [vmem:[%s1905_s0 + $0xd0] ss:$20 sps:$4 sm:$0xff]  }
  0x15   :  { %1349 = vmatpush3.bf16.msra.mxu1 %v1488_v19  ;;  %1286 = vmatprep.subr.bf16.mxu0 %v1489_v20  ;;  %v1534_v59 = vld [vmem:[%s1905_s0 + $0xa8] ss:$20 sps:$4 sm:$0xff]   ;;  %v1536_v60 = vld [vmem:[%s1905_s0 + $0xcc] ss:$20 sps:$4 sm:$0xff]   ;;  %v1547_v2 = vld [vmem:[%s1905_s0 + $0xf0] ss:$20 sps:$4 sm:$0xff]  }
  0x16   :  { %1350 = vmatprep.subr.bf16.mxu1 %v1490_v21  ;;  %v1538_v61 = vld [vmem:[%s1905_s0 + $0xd4] ss:$20 sps:$4 sm:$0xff]   ;;  %v1545_v1 = vld [vmem:[%s1905_s0 + $0xfc] ss:$20 sps:$4 sm:$0xff]   ;;  %v1548_v3 = vld [vmem:[%s1905_s0 + $0xf8] ss:$20 sps:$4 sm:$0xff]  }
  0x17   :  { %v1540_v62 = vld [vmem:[%s1905_s0 + $0xc8] ss:$20 sps:$4 sm:$0xff]   ;;  %v1552_v5 = vld [vmem:[%s1905_s0 + $0x124] ss:$20 sps:$4 sm:$0xff]   ;;  %v1555_v7 = vld [vmem:[%s1905_s0 + $0x120] ss:$20 sps:$4 sm:$0xff]  }
  0x18   :  { %1287 = vmatpush3.bf16.msra.mxu0 %v1491_v22  ;;  %v1543_v0 = vld [vmem:[%s1905_s0 + $0xf4] ss:$20 sps:$4 sm:$0xff]   ;;  %v1550_v4 = vld [vmem:[%s1905_s0 + $0x11c] ss:$20 sps:$4 sm:$0xff]   ;;  %v1554_v6 = vld [vmem:[%s1905_s0 + $0x118] ss:$20 sps:$4 sm:$0xff]  }
  0x19   :  { %1351 = vmatpush3.bf16.msra.mxu1 %v1492_v23  ;;  %1288 = vmatprep.subr.bf16.mxu0 %v1493_v24  ;;  %v1557_v8 = vld [vmem:[%s1905_s0 + $0x10] ss:$20 sps:$4 sm:$0xff]   ;;  %v1559_v10 = vld [vmem:[%s1905_s0 + $0x38] ss:$20 sps:$4 sm:$0xff]   ;;  %v1561_v12 = vld [vmem:[%s1905_s0 + $0x60] ss:$20 sps:$4 sm:$0xff]  }
  0x1a   :  { %1352 = vmatprep.subr.bf16.mxu1 %v1494_v25  ;;  %v1558_v9 = vld [vmem:[%s1905_s0 + $0xb0] ss:$20 sps:$4 sm:$0xff]   ;;  %v1560_v11 = vld [vmem:[%s1905_s0 + $0xd8] ss:$20 sps:$4 sm:$0xff]   ;;  %v1562_v13 = vld [vmem:[%s1905_s0 + $0x100] ss:$20 sps:$4 sm:$0xff]  }
  0x1b   :  { %v1563_v14 = vld [vmem:[%s1905_s0 + $0x88] ss:$20 sps:$4 sm:$0xff]  }
  0x1c   :  { %1289 = vmatpush3.bf16.msra.mxu0 %v1495_v26  ;;  %v1564_v15 = vld [vmem:[%s1905_s0 + $0x128] ss:$20 sps:$4 sm:$0xff]  }
  0x1d   :  { %1353 = vmatpush3.bf16.msra.mxu1 %v1496_v27  ;;  %1290 = vmatprep.subr.bf16.mxu0 %v1497_v28 }
  0x1e   :  { %1354 = vmatprep.subr.bf16.mxu1 %v1498_v29 }
  0x20   :  { %1291 = vmatpush3.bf16.msra.mxu0 %v1499_v30 }
  0x21   :  { %1355 = vmatpush3.bf16.msra.mxu1 %v1500_v31  ;;  %1420 = vmatprep.subr.bf16.mxu0 %v1507_v36 }
  0x22   :  { %1452 = vmatprep.subr.bf16.mxu1 %v1507_v36 }
  0x23   :  { %659 = vmatmul.mubr.bf16.vlgmr.msra.gmra.mrb[0].mxu0 %v1501_v32 }
  0x24   :  { %756 = vmatmul.mubr.bf16.vlgmr.msra.gmra.mrb[0].mxu1 %v1504_v34  ;;  %1421 = vmatpush3.bf16.msra.mxu0 %v1507_v36 }
  0x25   :  { %666 = vmatprep.mubr.bf16.mxu0 %v1508_v37  ;;  %763 = vmatprep.mubr.bf16.mxu1 %v1510_v38 }
  0x26   :  { %1460 = vmatpush3.bf16.msra.mxu1 %v1507_v36  ;;  %1422 = vmatprep.subr.bf16.mxu0 %v1514_v39 }
  0x27   :  { %1453 = vmatprep.subr.bf16.mxu1 %v1514_v39 }
  0x28   :  { %1423 = vmatpush3.bf16.msra.mxu0 %v1514_v39 }
  0x29   :  { %1424 = vmatprep.subr.bf16.mxu0 %v1521_v44 }
  0x2a   :  { %1461 = vmatpush3.bf16.msra.mxu1 %v1514_v39 }
  0x2b   :  { %667 = vmatmul.mubr.bf16.gmra.mrb[4].mxu0 %v1512_v40  ;;  %1454 = vmatprep.subr.bf16.mxu1 %v1521_v44 }
  0x2c   :  { %764 = vmatmul.mubr.bf16.gmra.mrb[4].mxu1 %v1513_v41  ;;  %674 = vmatprep.mubr.bf16.mxu0 %v1515_v42 }
  0x2d   :  { %771 = vmatprep.mubr.bf16.mxu1 %v1517_v43  ;;  %1425 = vmatpush3.bf16.msra.mxu0 %v1521_v44 }
  0x2e   :  { %1426 = vmatprep.subr.bf16.mxu0 %v1528_v45  ;;  %1462 = vmatpush3.bf16.msra.mxu1 %v1521_v44 }
  0x2f   :  { %1455 = vmatprep.subr.bf16.mxu1 %v1528_v45 }
  0x31   :  { %1427 = vmatpush3.bf16.msra.mxu0 %v1528_v45 }
  0x32   :  { %1428 = vmatprep.subr.bf16.mxu0 %v1535_v50  ;;  %1463 = vmatpush3.bf16.msra.mxu1 %v1528_v45 }
  0x33   :  { %675 = vmatmul.mubr.bf16.gmra.mrb[8].mxu0 %v1519_v46  ;;  %1456 = vmatprep.subr.bf16.mxu1 %v1535_v50 }
  0x34   :  { %772 = vmatmul.mubr.bf16.gmra.mrb[8].mxu1 %v1520_v47  ;;  %682 = vmatprep.mubr.bf16.mxu0 %v1522_v48 }
  0x35   :  { %779 = vmatprep.mubr.bf16.mxu1 %v1524_v49  ;;  %1429 = vmatpush3.bf16.msra.mxu0 %v1535_v50 }
  0x36   :  { %1430 = vmatprep.subr.bf16.mxu0 %v1542_v51  ;;  %1464 = vmatpush3.bf16.msra.mxu1 %v1535_v50 }
  0x37   :  { %1457 = vmatprep.subr.bf16.mxu1 %v1542_v51 }
  0x39   :  { %1431 = vmatpush3.bf16.msra.mxu0 %v1542_v51 }
  0x3a   :  { %1432 = vmatprep.subr.bf16.mxu0 %v1549_v55  ;;  %1465 = vmatpush3.bf16.msra.mxu1 %v1542_v51 }
  0x3b   :  { %683 = vmatmul.mubr.bf16.gmra.mrb[12].mxu0 %v1526_v52  ;;  %1458 = vmatprep.subr.bf16.mxu1 %v1549_v55 }
  0x3c   :  { %780 = vmatmul.mubr.bf16.gmra.mrb[12].mxu1 %v1527_v53  ;;  %690 = vmatprep.mubr.bf16.mxu0 %v1529_v54 }
  0x3d   :  { %787 = vmatprep.mubr.bf16.mxu1 %v1531_v56  ;;  %1433 = vmatpush3.bf16.msra.mxu0 %v1549_v55 }
  0x3e   :  { %1434 = vmatprep.subr.bf16.mxu0 %v1556_v57  ;;  %1466 = vmatpush3.bf16.msra.mxu1 %v1549_v55 }
  0x3f   :  { %1459 = vmatprep.subr.bf16.mxu1 %v1556_v57 }
  0x41   :  { %1435 = vmatpush3.bf16.msra.mxu0 %v1556_v57 }
  0x42   :  { %1467 = vmatpush3.bf16.msra.mxu1 %v1556_v57 }
  0x43   :  { %691 = vmatmul.mubr.bf16.gmra.mrb[16].mxu0 %v1533_v58 }
  0x44   :  { %788 = vmatmul.mubr.bf16.gmra.mrb[16].mxu1 %v1534_v59  ;;  %698 = vmatprep.mubr.bf16.mxu0 %v1536_v60 }
  0x45   :  { %795 = vmatprep.mubr.bf16.mxu1 %v1538_v61 }
  0x4b   :  { %699 = vmatmul.mubr.bf16.gmra.mrb[20].mxu0 %v1540_v62 }
  0x4c   :  { %796 = vmatmul.mubr.bf16.gmra.mrb[20].mxu1 %v1541_v63  ;;  %706 = vmatprep.mubr.bf16.mxu0 %v1543_v0 }
  0x4d   :  { %803 = vmatprep.mubr.bf16.mxu1 %v1545_v1 }
  0x53   :  { %707 = vmatmul.mubr.bf16.gmra.mrb[24].mxu0 %v1547_v2 }
  0x54   :  { %804 = vmatmul.mubr.bf16.gmra.mrb[24].mxu1 %v1548_v3  ;;  %714 = vmatprep.mubr.bf16.mxu0 %v1550_v4 }
  0x55   :  { %811 = vmatprep.mubr.bf16.mxu1 %v1552_v5 }
  0x5b   :  { %715 = vmatmul.mubr.bf16.gmra.mrb[28].mxu0 %v1554_v6 }
  0x5c   :  { %812 = vmatmul.mubr.bf16.gmra.mrb[28].mxu1 %v1555_v7  ;;  %1436 = vmatprep.mubr.bf16.mxu0 %v1557_v8 }
  0x5d   :  { %1444 = vmatprep.mubr.bf16.mxu1 %v1558_v9 }
  0x63   :  { %1437 = vmatmul.mubr.bf16.vlgmr.msra.gmra.mrb[32].mxu0 %v1559_v10 }
  0x64   :  { %1445 = vmatmul.mubr.bf16.vlgmr.msra.gmra.mrb[32].mxu1 %v1560_v11  ;;  %1440 = vmatprep.mubr.bf16.mxu0 %v1561_v12 }
  0x65   :  { %1448 = vmatprep.mubr.bf16.mxu1 %v1562_v13 }
  0x6b   :  { %1441 = vmatmul.mubr.bf16.gmra.mrb[36].mxu0 %v1563_v14 }
  0x6c   :  { %1449 = vmatmul.mubr.bf16.gmra.mrb[36].mxu1 %v1564_v15 }
  0xf6   :  { %v1292_v17 = vpop.f32.mrb[0].mxu0 }
  0xf7   :  { %v1356_v18 = vpop.f32.mrb[0].mxu1  ;;  %v1293_v19 = vpop.f32.mrb[1].mxu0 }
  0xf8   :  { %v1294_v20 = vadd.f32 %v1293_v19, %v1292_v17  ;;  %v1357_v21 = vpop.f32.mrb[1].mxu1  ;;  %v1295_v22 = vpop.f32.mrb[2].mxu0 }
  0xf9   :  { %v1358_v23 = vadd.f32 %v1357_v21, %v1356_v18  ;;  %v1359_v24 = vpop.f32.mrb[2].mxu1  ;;  %v1296_v25 = vpop.f32.mrb[3].mxu0 }
  0xfa   :  { %v1297_v26 = vadd.f32 %v1296_v25, %v1295_v22  ;;  %v1360_v27 = vpop.f32.mrb[3].mxu1 }
  0xfb   :  { %v1361_v28 = vadd.f32 %v1360_v27, %v1359_v24  ;;  %v1829_v29 = vadd.f32 %v1358_v23, %v1294_v20 }
  0xfd   :  { %v1831_v30 = vadd.f32 %v1361_v28, %v1297_v26 }
  0xfe   :  { %v1298_v31 = vpop.f32.mrb[4].mxu0 }
  0xff   :  { %v1362_v32 = vpop.f32.mrb[4].mxu1  ;;  %v1299_v33 = vpop.f32.mrb[5].mxu0 }
 0x100   :  { %v1300_v34 = vadd.f32 %v1299_v33, %v1298_v31  ;;  %v1363_v35 = vpop.f32.mrb[5].mxu1  ;;  %v1301_v36 = vpop.f32.mrb[6].mxu0 }
 0x101   :  { %v1364_v37 = vadd.f32 %v1363_v35, %v1362_v32  ;;  %v1365_v38 = vpop.f32.mrb[6].mxu1  ;;  %v1302_v39 = vpop.f32.mrb[7].mxu0 }
 0x102   :  { %v1303_v40 = vadd.f32 %v1302_v39, %v1301_v36  ;;  %v1366_v41 = vpop.f32.mrb[7].mxu1 }
 0x103   :  { %v1367_v42 = vadd.f32 %v1366_v41, %v1365_v38  ;;  %v1833_v43 = vadd.f32 %v1364_v37, %v1300_v34 }
 0x105   :  { %v1835_v44 = vadd.f32 %v1367_v42, %v1303_v40 }
 0x106   :  { %v1304_v45 = vpop.f32.mrb[8].mxu0 }
 0x107   :  { %v1368_v46 = vpop.f32.mrb[8].mxu1  ;;  %v1305_v47 = vpop.f32.mrb[9].mxu0 }
 0x108   :  { %v1306_v48 = vadd.f32 %v1305_v47, %v1304_v45  ;;  %v1369_v49 = vpop.f32.mrb[9].mxu1  ;;  %v1307_v50 = vpop.f32.mrb[10].mxu0 }
 0x109   :  { %v1370_v51 = vadd.f32 %v1369_v49, %v1368_v46  ;;  %v1371_v52 = vpop.f32.mrb[10].mxu1  ;;  %v1308_v53 = vpop.f32.mrb[11].mxu0 }
 0x10a   :  { %v1309_v54 = vadd.f32 %v1308_v53, %v1307_v50  ;;  %v1372_v55 = vpop.f32.mrb[11].mxu1 }
 0x10b   :  { %v1373_v56 = vadd.f32 %v1372_v55, %v1371_v52  ;;  %v1837_v57 = vadd.f32 %v1370_v51, %v1306_v48 }
 0x10d   :  { %v1839_v58 = vadd.f32 %v1373_v56, %v1309_v54 }
 0x10e   :  { %v1310_v59 = vpop.f32.mrb[12].mxu0 }
 0x10f   :  { %v1374_v60 = vpop.f32.mrb[12].mxu1  ;;  %v1311_v61 = vpop.f32.mrb[13].mxu0 }
 0x110   :  { %v1312_v62 = vadd.f32 %v1311_v61, %v1310_v59  ;;  %v1375_v63 = vpop.f32.mrb[13].mxu1  ;;  %v1313_v0 = vpop.f32.mrb[14].mxu0 }
 0x111   :  { %v1376_v1 = vadd.f32 %v1375_v63, %v1374_v60  ;;  %v1377_v2 = vpop.f32.mrb[14].mxu1  ;;  %v1314_v3 = vpop.f32.mrb[15].mxu0 }
 0x112   :  { %v1315_v4 = vadd.f32 %v1314_v3, %v1313_v0  ;;  %v1378_v5 = vpop.f32.mrb[15].mxu1 }
 0x113   :  { %v1379_v6 = vadd.f32 %v1378_v5, %v1377_v2  ;;  %v1841_v7 = vadd.f32 %v1376_v1, %v1312_v62 }
 0x115   :  { %v1843_v8 = vadd.f32 %v1379_v6, %v1315_v4 }
 0x116   :  { %v1316_v9 = vpop.f32.mrb[16].mxu0 }
 0x117   :  { %v1380_v10 = vpop.f32.mrb[16].mxu1  ;;  %v1317_v11 = vpop.f32.mrb[17].mxu0 }
 0x118   :  { %v1318_v12 = vadd.f32 %v1317_v11, %v1316_v9  ;;  %v1381_v13 = vpop.f32.mrb[17].mxu1  ;;  %v1319_v14 = vpop.f32.mrb[18].mxu0 }
 0x119   :  { %v1382_v15 = vadd.f32 %v1381_v13, %v1380_v10  ;;  %v1383_v16 = vpop.f32.mrb[18].mxu1  ;;  %v1320_v17 = vpop.f32.mrb[19].mxu0 }
 0x11a   :  { %v1321_v18 = vadd.f32 %v1320_v17, %v1319_v14  ;;  %v1384_v19 = vpop.f32.mrb[19].mxu1 }
 0x11b   :  { %v1385_v20 = vadd.f32 %v1384_v19, %v1383_v16  ;;  %v790_v21 = vadd.f32 %v1382_v15, %v1318_v12 }
 0x11d   :  { %v793_v22 = vadd.f32 %v1385_v20, %v1321_v18 }
 0x11e   :  { %v1322_v23 = vpop.f32.mrb[20].mxu0 }
 0x11f   :  { %v1386_v24 = vpop.f32.mrb[20].mxu1  ;;  %v1323_v25 = vpop.f32.mrb[21].mxu0 }
 0x120   :  { %v1324_v26 = vadd.f32 %v1323_v25, %v1322_v23  ;;  %v1387_v27 = vpop.f32.mrb[21].mxu1  ;;  %v1325_v28 = vpop.f32.mrb[22].mxu0 }
 0x121   :  { %v1388_v31 = vadd.f32 %v1387_v27, %v1386_v24  ;;  %v1389_v32 = vpop.f32.mrb[22].mxu1  ;;  %v1326_v33 = vpop.f32.mrb[23].mxu0 }
 0x122   :  { %v1327_v34 = vadd.f32 %v1326_v33, %v1325_v28  ;;  %v1390_v35 = vpop.f32.mrb[23].mxu1 }
 0x123   :  { %v1391_v36 = vadd.f32 %v1390_v35, %v1389_v32  ;;  %v798_v37 = vadd.f32 %v1388_v31, %v1324_v26 }
 0x125   :  { %v801_v38 = vadd.f32 %v1391_v36, %v1327_v34 }
 0x126   :  { %v1328_v39 = vpop.f32.mrb[24].mxu0 }
 0x127   :  { %v1392_v40 = vpop.f32.mrb[24].mxu1  ;;  %v1329_v41 = vpop.f32.mrb[25].mxu0 }
 0x128   :  { %v1330_v42 = vadd.f32 %v1329_v41, %v1328_v39  ;;  %v1393_v45 = vpop.f32.mrb[25].mxu1  ;;  %v1331_v46 = vpop.f32.mrb[26].mxu0 }
 0x129   :  { %v1394_v47 = vadd.f32 %v1393_v45, %v1392_v40  ;;  %v1395_v48 = vpop.f32.mrb[26].mxu1  ;;  %v1332_v49 = vpop.f32.mrb[27].mxu0 }
 0x12a   :  { %v1333_v50 = vadd.f32 %v1332_v49, %v1331_v46  ;;  %v1396_v51 = vpop.f32.mrb[27].mxu1 }
 0x12b   :  { %v1397_v52 = vadd.f32 %v1396_v51, %v1395_v48  ;;  %v806_v53 = vadd.f32 %v1394_v47, %v1330_v42 }
 0x12d   :  { %v1845_v54 = vadd.f32 %v1397_v52, %v1333_v50 }
 0x12e   :  { %v1334_v55 = vpop.f32.mrb[28].mxu0 }
 0x12f   :  { %v1398_v56 = vpop.f32.mrb[28].mxu1  ;;  %v1335_v59 = vpop.f32.mrb[29].mxu0 }
 0x130   :  { %v1336_v60 = vadd.f32 %v1335_v59, %v1334_v55  ;;  %v1399_v61 = vpop.f32.mrb[29].mxu1  ;;  %v1337_v62 = vpop.f32.mrb[30].mxu0 }
 0x131   :  { %v1400_v63 = vadd.f32 %v1399_v61, %v1398_v56  ;;  %v1401_v0 = vpop.f32.mrb[30].mxu1  ;;  %v1338_v1 = vpop.f32.mrb[31].mxu0 }
 0x132   :  { %v1339_v2 = vadd.f32 %v1338_v1, %v1337_v62  ;;  %v1402_v3 = vpop.f32.mrb[31].mxu1 }
 0x133   :  { %v1403_v4 = vadd.f32 %v1402_v3, %v1401_v0  ;;  %v814_v5 = vadd.f32 %v1400_v63, %v1336_v60 }
 0x135   :  { %v817_v6 = vadd.f32 %v1403_v4, %v1339_v2 }
 0x136   :  { %v1438_v9 = vpop.f32.mrb[32].mxu0 }
 0x137   :  { %v863_v10 = vadd.f32 %v1438_v9, %v1833_v43  ;;  %v1446_v11 = vpop.f32.mrb[32].mxu1  ;;  %v854_v12 = vpop.f32.mrb[33].mxu0 }
 0x138   :  { %v1848_v13 = vadd.f32 %v1446_v11, %v798_v37  ;;  %v855_v14 = vadd.f32 %v854_v12, %v1829_v29  ;;  %v886_v15 = vpop.f32.mrb[33].mxu1  ;;  %v1439_v16 = vpop.f32.mrb[34].mxu0 }
 0x139   :  { %v1851_v17 = vadd.f32 %v886_v15, %v790_v21  ;;  %v866_v18 = vadd.f32 %v1439_v16, %v1835_v44  ;;  %v1447_v19 = vpop.f32.mrb[34].mxu1  ;;  %v857_v20 = vpop.f32.mrb[35].mxu0  ;;  %v1073_v32 = vmul.f32 %v863_v10, %v863_v10 }
 0x13a   :  { %v1854_v23 = vadd.f32 %v1447_v19, %v801_v38  ;;  %v858_v24 = vadd.f32 %v857_v20, %v1831_v30  ;;  %v889_v25 = vpop.f32.mrb[35].mxu1  ;;  %v1071_v31 = vmul.f32 %v855_v14, %v855_v14  ;;  %v1081_v12 = vmul.f32 %v1848_v13, %v1848_v13 }
 0x13b   :  { %v1237_v43 = vpack.c.bf16 %v866_v18, %v863_v10  ;;  %v890_v26 = vadd.f32 %v889_v25, %v793_v22  ;;  %v1074_v42 = vmul.f32 %v866_v18, %v866_v18  ;;  %v1079_v4 = vmul.f32 %v1851_v17, %v1851_v17 }
 0x13c   :  { %v1257_v27 = vpack.c.bf16 %v1854_v23, %v1848_v13  ;;  %v1232_v28 = vpack.c.bf16 %v858_v24, %v855_v14  ;;  %v1049_v29 = vadd.f32 %v858_v24, %v855_v14  ;;  %v1072_v44 = vmul.f32 %v858_v24, %v858_v24 }
 0x13d   :  { %1269 = vst [vmem:[%s1907_s2 + $0x8] sm:$0xff] %v1237_v43   ;;  %v1252_v21 = vpack.c.bf16 %v890_v26, %v1851_v17  ;;  %v1080_v9 = vmul.f32 %v890_v26, %v890_v26  ;;  %v1082_v16 = vmul.f32 %v1854_v23, %v1854_v23 }
 0x13e   :  { %1273 = vst [vmem:[%s1907_s2 + $0x28] sm:$0xff] %v1257_v27   ;;  %1233 = vst [vmem:[%s1907_s2] sm:$0xff] %v1232_v28   ;;  %v1050_v30 = vadd.f32 %v1049_v29, %v863_v10  ;;  %v1442_v22 = vpop.f32.mrb[36].mxu0  ;;  %v1087_v33 = vadd.f32 %v1072_v44, %v1071_v31 }
 0x13f   :  { %1272 = vst [vmem:[%s1907_s2 + $0x20] sm:$0xff] %v1252_v21   ;;  %v879_v34 = vadd.f32 %v1442_v22, %v1841_v7  ;;  %v1450_v35 = vpop.f32.mrb[36].mxu1  ;;  %v870_v36 = vpop.f32.mrb[37].mxu0 }
 0x140   :  { %v911_v37 = vadd.f32 %v1450_v35, %v814_v5  ;;  %v871_v38 = vadd.f32 %v870_v36, %v1837_v57  ;;  %v1051_v39 = vadd.f32 %v1050_v30, %v866_v18  ;;  %v902_v40 = vpop.f32.mrb[37].mxu1  ;;  %v1443_v41 = vpop.f32.mrb[38].mxu0  ;;  %v1088_v45 = vadd.f32 %v1087_v33, %v1073_v32 }
 0x141   :  { %v903_v46 = vadd.f32 %v902_v40, %v806_v53  ;;  %v882_v47 = vadd.f32 %v1443_v41, %v1843_v8  ;;  %v1451_v48 = vpop.f32.mrb[38].mxu1  ;;  %v873_v49 = vpop.f32.mrb[39].mxu0  ;;  %v1077_v0 = vmul.f32 %v879_v34, %v879_v34 }
 0x142   :  { %v1052_v50 = vadd.f32 %v1051_v39, %v871_v38  ;;  %v1075_v51 = vmul.f32 %v871_v38, %v871_v38  ;;  %v914_v52 = vadd.f32 %v1451_v48, %v817_v6  ;;  %v905_v55 = vpop.f32.mrb[39].mxu1  ;;  %v1089_v7 = vadd.f32 %v1088_v45, %v1074_v42 }
 0x143   :  { %v1247_v56 = vpack.c.bf16 %v882_v47, %v879_v34  ;;  %v874_v60 = vadd.f32 %v873_v49, %v1839_v58  ;;  %v906_v57 = vadd.f32 %v905_v55, %v1845_v54  ;;  %v1078_v1 = vmul.f32 %v882_v47, %v882_v47 }
 0x144   :  { %v1267_v59 = vpack.c.bf16 %v914_v52, %v911_v37  ;;  %v1090_v61 = vadd.f32 %v1089_v7, %v1075_v51  ;;  %v1083_v20 = vmul.f32 %v903_v46, %v903_v46  ;;  %v1085_v28 = vmul.f32 %v911_v37, %v911_v37 }
 0x145   :  { %1271 = vst [vmem:[%s1907_s2 + $0x18] sm:$0xff] %v1247_v56   ;;  %v1242_v8 = vpack.c.bf16 %v874_v60, %v871_v38  ;;  %v1053_v53 = vadd.f32 %v1052_v50, %v874_v60  ;;  %v1076_v62 = vmul.f32 %v874_v60, %v874_v60  ;;  %v1262_v63 = vpack.c.bf16 %v906_v57, %v903_v46 }
 0x146   :  { %1275 = vst [vmem:[%s1907_s2 + $0x38] sm:$0xff] %v1267_v59   ;;  %v1084_v43 = vmul.f32 %v906_v57, %v906_v57  ;;  %v1086_v31 = vmul.f32 %v914_v52, %v914_v52 }
 0x147   :  { %1270 = vst [vmem:[%s1907_s2 + $0x10] sm:$0xff] %v1242_v8   ;;  %v1054_v58 = vadd.f32 %v1053_v53, %v879_v34  ;;  %v1091_v54 = vadd.f32 %v1090_v61, %v1076_v62  ;;  %1274 = vst [vmem:[%s1907_s2 + $0x30] sm:$0xff] %v1262_v63  }
 0x149   :  { %v1055_v2 = vadd.f32 %v1054_v58, %v882_v47  ;;  %v1092_v3 = vadd.f32 %v1091_v54, %v1077_v0 }
 0x14b   :  { %v1056_v5 = vadd.f32 %v1055_v2, %v1851_v17  ;;  %v1093_v6 = vadd.f32 %v1092_v3, %v1078_v1 }
 0x14d   :  { %v1094_v10 = vadd.f32 %v1093_v6, %v1079_v4  ;;  %v1057_v11 = vadd.f32 %v1056_v5, %v890_v26 }
 0x14f   :  { %v1058_v14 = vadd.f32 %v1057_v11, %v1848_v13  ;;  %v1095_v15 = vadd.f32 %v1094_v10, %v1080_v9 }
 0x151   :  { %v1059_v18 = vadd.f32 %v1058_v14, %v1854_v23  ;;  %v1096_v19 = vadd.f32 %v1095_v15, %v1081_v12 }
 0x153   :  { %v1060_v24 = vadd.f32 %v1059_v18, %v903_v46  ;;  %v1097_v25 = vadd.f32 %v1096_v19, %v1082_v16 }
 0x155   :  { %v1061_v17 = vadd.f32 %v1060_v24, %v906_v57  ;;  %v1098_v27 = vadd.f32 %v1097_v25, %v1083_v20 }
 0x157   :  { %v1062_v26 = vadd.f32 %v1061_v17, %v911_v37  ;;  %v1099_v29 = vadd.f32 %v1098_v27, %v1084_v43 }
 0x159   :  { %v1063_v44 = vadd.f32 %v1062_v26, %v914_v52  ;;  %v1100_v21 = vadd.f32 %v1099_v29, %v1085_v28 }
 0x15b   :  { %v1064_v13 = vrot.slane %v1063_v44, 4  ;;  %v1101_v30 = vadd.f32 %v1100_v21, %v1086_v31 }
 0x15d   :  { %v1065_v22 = vadd.f32 %v1064_v13, %v1063_v44  ;;  %v1102_v32 = vrot.slane %v1101_v30, 4 }
 0x15f   :  { %v1066_v33 = vrot.slane %v1065_v22, 2  ;;  %v1103_v34 = vadd.f32 %v1102_v32, %v1101_v30 }
 0x161   :  { %v1067_v23 = vadd.f32 %v1066_v33, %v1065_v22  ;;  %v1104_v35 = vrot.slane %v1103_v34, 2 }
 0x163   :  { %v1068_v36 = vrot.slane %v1067_v23, 1  ;;  %v1105_v38 = vadd.f32 %v1104_v35, %v1103_v34 }
 0x165   :  { %v1069_v39 = vadd.f32 %v1068_v36, %v1067_v23  ;;  %v1106_v40 = vrot.slane %v1105_v38, 1 }
 0x167   :  { %1070 = vst [vmem:[%s1906_s3] sm:$0x1] %v1069_v39  ;;  %v1107_v37 = vadd.f32 %v1106_v40, %v1105_v38 }
 0x169   :  { %1108 = vst [vmem:[%s1906_s3 + $0x1] sm:$0x1] %v1107_v37 }

// kernel: _lambda_.103
= control target key start
LH: loop header
LB: loop body
LE: loop exit
PB: predicated region body
PF: predicated region fallthrough
CT: control target
= control target key end

     0   :  { %s1572_s12 = smov 0   ;;  %s1574_s13 = smov 0   ;;  %s1769_s0 = inlined_call_operand.vmem [shape: bf16[512,128], index: 0, kind: input, shape index: {}]   ;;  %s1770_s1 = inlined_call_operand.vmem [shape: bf16[128,128], index: 1, kind: input, shape index: {}]   ;;  %s1771_s2 = inlined_call_operand.vmem [shape: bf16[512,128], index: 2, kind: output, shape index: {0}]   ;;  %s1772_s3 = inlined_call_operand.vmem [shape: f32[16,128], index: 3, kind: output, shape index: {1}]  }
   0x1   :  { %s1576_s14 = smov 0  }
   0x2 LB: > { %s33_s15 = sadd.s32 1, %s1545_s13  ;;  %p1199_p0 = scmp.ge.s32.totalorder %s1549_s14, 1  ;;  %s1549_s14 = sphi %s1576_s14, %s14_s14   ;;  %s1545_s13 = sphi %s1574_s13, %s1774_s13   ;;  %s1541_s12 = sphi %s1572_s12, %s1773_s12  }
   0x3   : > { %p35_p1 = scmp.ge.s32.totalorder %s33_s15, 2  ;;  %p185_p2 = scmp.lt.s32.totalorder %s1549_s14, 3 }
   0x5   : > { %s1776_s15 = smov (%p35_p1, %s33_s15), 0  ;;  %p186_p3 = pnand %p1199_p0, %p185_p2 }
   0x6   : > { %v1503_v0 = vld [vmem:[%s1770_s1] sm:$0xff] (!%p186_p3)   ;;  %s1200_s18 = sshll.u32 (!%p186_p3), %s1541_s12, 5  ;;  %v1504_v1 = vld [vmem:[%s1770_s1 + $0x8] sm:$0xff] (!%p186_p3)   ;;  %v1505_v2 = vld [vmem:[%s1770_s1 + $0x10] sm:$0xff] (!%p186_p3)   ;;  %p257_p5 = scmp.lt.s32.totalorder (!%p186_p3), %s1541_s12, 1  ;;  %v1551_v24 = vmov (!%p186_p3), 0.0  }
   0x7   : > { %189 = sbr.rel (%p186_p3) target bundleno = 331 (0x14b), region = 28  ;;  %p231_p4 = scmp.lt.s32.totalorder (!%p186_p3), %s1200_s18, 63  ;;  %1414 = vmatprep.subr.bf16.mxu0 (!%p186_p3), %v1503_v0  ;;  %1462 = vmatprep.subr.bf16.mxu1 (!%p186_p3), %v1503_v0  ;;  %v1506_v3 = vld [vmem:[%s1770_s1 + $0x18] sm:$0xff] (!%p186_p3)   ;;  %v1507_v5 = vld [vmem:[%s1770_s1 + $0x20] sm:$0xff] (!%p186_p3)   ;;  %v1508_v6 = vld [vmem:[%s1770_s1 + $0x28] sm:$0xff] (!%p186_p3)  }
   0x8   : > { %1415 = vmatpush3.bf16.msra.mxu0 (!%p186_p3), %v1503_v0  ;;  %1470 = vmatpush3.bf16.msra.mxu1 (!%p186_p3), %v1503_v0  ;;  %v1509_v8 = vld [vmem:[%s1770_s1 + $0x30] sm:$0xff] (!%p186_p3)   ;;  %v1510_v9 = vld [vmem:[%s1770_s1 + $0x38] sm:$0xff] (!%p186_p3)  }
   0x9   : > { %1416 = vmatprep.subr.bf16.mxu0 (!%p186_p3), %v1504_v1  ;;  %1463 = vmatprep.subr.bf16.mxu1 (!%p186_p3), %v1504_v1 }
   0xc   : > { %1417 = vmatpush3.bf16.msra.mxu0 (!%p186_p3), %v1504_v1  ;;  %1471 = vmatpush3.bf16.msra.mxu1 (!%p186_p3), %v1504_v1 }
   0xd   : > { %1418 = vmatprep.subr.bf16.mxu0 (!%p186_p3), %v1505_v2  ;;  %1464 = vmatprep.subr.bf16.mxu1 (!%p186_p3), %v1505_v2 }
   0xe   : > { %s1778_s18 = smov (!%p231_p4, %s1200_s18), 63  ;;  %s1780_s12 = smov (!%p257_p5, %s1541_s12), 1 }
   0xf   : > { %s1201_s23 = sshll.u32 %s1778_s18, 2  ;;  %s1204_s10 = sshll.u32 %s1780_s12, 3 }
  0x10   : > { %s1610_s26 = scalar_lea.vmem %s1769_s0, %s1201_s23  ;;  %1419 = vmatpush3.bf16.msra.mxu0 %v1505_v2  ;;  %1472 = vmatpush3.bf16.msra.mxu1 %v1505_v2  ;;  %s1648_s17 = scalar_lea.vmem %s1772_s3, %s1204_s10 }
  0x11   : > { %v1511_v4 = vld [vmem:[%s1610_s26] sm:$0xff]   ;;  %1420 = vmatprep.subr.bf16.mxu0 %v1506_v3  ;;  %1465 = vmatprep.subr.bf16.mxu1 %v1506_v3  ;;  %v1512_v10 = vld [vmem:[%s1610_s26 + $0x8] sm:$0xff]   ;;  %v1513_v12 = vld [vmem:[%s1610_s26 + $0x10] sm:$0xff]   ;;  %945 = vst [vmem:[%s1648_s17] sm:$0xff] %v1551_v24  ;;  %s1660_s21 = scalar_lea.vmem %s1771_s2, %s1201_s23 }
  0x12   : > { %1430 = vmatprep.mubr.bf16.mxu0 %v1511_v4  ;;  %v1519_v7 = vld [vmem:[%s1610_s26 + $0x40] sm:$0xff]   ;;  %v1520_v11 = vld [vmem:[%s1610_s26 + $0x48] sm:$0xff]   ;;  %v1521_v13 = vld [vmem:[%s1610_s26 + $0x50] sm:$0xff]  }
  0x13   : > { %1446 = vmatprep.mubr.bf16.mxu1 %v1519_v7  ;;  %v1514_v14 = vld [vmem:[%s1610_s26 + $0x18] sm:$0xff]   ;;  %v1515_v16 = vld [vmem:[%s1610_s26 + $0x20] sm:$0xff]   ;;  %v1516_v18 = vld [vmem:[%s1610_s26 + $0x28] sm:$0xff]  }
  0x14   : > { %1421 = vmatpush3.bf16.msra.mxu0 %v1506_v3  ;;  %1473 = vmatpush3.bf16.msra.mxu1 %v1506_v3  ;;  %v1522_v15 = vld [vmem:[%s1610_s26 + $0x58] sm:$0xff]   ;;  %v1523_v17 = vld [vmem:[%s1610_s26 + $0x60] sm:$0xff]   ;;  %v1524_v19 = vld [vmem:[%s1610_s26 + $0x68] sm:$0xff]  }
  0x15   : > { %1422 = vmatprep.subr.bf16.mxu0 %v1507_v5  ;;  %1466 = vmatprep.subr.bf16.mxu1 %v1507_v5  ;;  %v1517_v20 = vld [vmem:[%s1610_s26 + $0x30] sm:$0xff]   ;;  %v1518_v22 = vld [vmem:[%s1610_s26 + $0x38] sm:$0xff]  }
  0x16   : > { %v1525_v21 = vld [vmem:[%s1610_s26 + $0x70] sm:$0xff]   ;;  %v1526_v23 = vld [vmem:[%s1610_s26 + $0x78] sm:$0xff]  }
  0x18   : > { %1423 = vmatpush3.bf16.msra.mxu0 %v1507_v5  ;;  %1474 = vmatpush3.bf16.msra.mxu1 %v1507_v5 }
  0x19   : > { %1424 = vmatprep.subr.bf16.mxu0 %v1508_v6  ;;  %1467 = vmatprep.subr.bf16.mxu1 %v1508_v6 }
  0x1c   : > { %1425 = vmatpush3.bf16.msra.mxu0 %v1508_v6  ;;  %1475 = vmatpush3.bf16.msra.mxu1 %v1508_v6 }
  0x1d   : > { %1426 = vmatprep.subr.bf16.mxu0 %v1509_v8  ;;  %1468 = vmatprep.subr.bf16.mxu1 %v1509_v8 }
  0x20   : > { %1427 = vmatpush3.bf16.msra.mxu0 %v1509_v8  ;;  %1476 = vmatpush3.bf16.msra.mxu1 %v1509_v8 }
  0x21   : > { %1428 = vmatprep.subr.bf16.mxu0 %v1510_v9  ;;  %1469 = vmatprep.subr.bf16.mxu1 %v1510_v9 }
  0x24   : > { %1429 = vmatpush3.bf16.msra.mxu0 %v1510_v9  ;;  %1477 = vmatpush3.bf16.msra.mxu1 %v1510_v9 }
  0x27   : > { %1431 = vmatmul.mubr.bf16.vlgmr.msra.gmra.mrb[0].mxu0 %v1512_v10  ;;  %1447 = vmatmul.mubr.bf16.vlgmr.msra.gmra.mrb[0].mxu1 %v1520_v11 }
  0x28   : > { %1434 = vmatprep.mubr.bf16.mxu0 %v1513_v12  ;;  %1450 = vmatprep.mubr.bf16.mxu1 %v1521_v13 }
  0x2f   : > { %1435 = vmatmul.mubr.bf16.gmra.mrb[4].mxu0 %v1514_v14  ;;  %1451 = vmatmul.mubr.bf16.gmra.mrb[4].mxu1 %v1522_v15 }
  0x30   : > { %1438 = vmatprep.mubr.bf16.mxu0 %v1515_v16  ;;  %1454 = vmatprep.mubr.bf16.mxu1 %v1523_v17 }
  0x37   : > { %1439 = vmatmul.mubr.bf16.gmra.mrb[8].mxu0 %v1516_v18  ;;  %1455 = vmatmul.mubr.bf16.gmra.mrb[8].mxu1 %v1524_v19 }
  0x38   : > { %1442 = vmatprep.mubr.bf16.mxu0 %v1517_v20  ;;  %1458 = vmatprep.mubr.bf16.mxu1 %v1525_v21 }
  0x3f   : > { %1443 = vmatmul.mubr.bf16.gmra.mrb[12].mxu0 %v1518_v22  ;;  %1459 = vmatmul.mubr.bf16.gmra.mrb[12].mxu1 %v1526_v23 }
  0xfa   : > { %v1432_v25 = vpop.f32.mrb[0].mxu0  ;;  %v1651_v26 = vpop.f32.mrb[0].mxu1 }
  0xfb   : > { %v559_v27 = vpop.f32.mrb[1].mxu0  ;;  %v1653_v28 = vpop.f32.mrb[1].mxu1  ;;  %v986_v40 = vmul.f32 %v1432_v25, %v1432_v25 }
  0xfc   : > { %v1433_v29 = vpop.f32.mrb[2].mxu0  ;;  %v1662_v30 = vpop.f32.mrb[2].mxu1  ;;  %v984_v31 = vmul.f32 %v559_v27, %v559_v27 }
  0xfd   : > { %v1303_v32 = vpack.c.bf16 %v1433_v29, %v1432_v25  ;;  %v562_v33 = vpop.f32.mrb[3].mxu0  ;;  %v1343_v34 = vpack.c.bf16 %v1662_v30, %v1651_v26  ;;  %v1666_v35 = vpop.f32.mrb[3].mxu1  ;;  %v987_v43 = vmul.f32 %v1433_v29, %v1433_v29 }
  0xfe   : > { %v1298_v36 = vpack.c.bf16 %v562_v33, %v559_v27  ;;  %v946_v37 = vadd.f32 %v562_v33, %v559_v27  ;;  %v985_v38 = vmul.f32 %v562_v33, %v562_v33  ;;  %v1338_v39 = vpack.c.bf16 %v1666_v35, %v1653_v28 }
  0xff   : > { %1375 = vst [vmem:[%s1660_s21 + $0x8] sm:$0xff] %v1303_v32   ;;  %1383 = vst [vmem:[%s1660_s21 + $0x48] sm:$0xff] %v1343_v34  }
 0x100   : > { %1299 = vst [vmem:[%s1660_s21] sm:$0xff] %v1298_v36   ;;  %v947_v41 = vadd.f32 %v1432_v25, %v946_v37  ;;  %v1016_v42 = vadd.f32 %v985_v38, %v984_v31  ;;  %1382 = vst [vmem:[%s1660_s21 + $0x40] sm:$0xff] %v1338_v39  }
 0x102   : > { %v1017_v44 = vadd.f32 %v1016_v42, %v986_v40  ;;  %v1436_v45 = vpop.f32.mrb[4].mxu0  ;;  %v948_v46 = vadd.f32 %v1433_v29, %v947_v41  ;;  %v1674_v47 = vpop.f32.mrb[4].mxu1 }
 0x103   : > { %v575_v48 = vpop.f32.mrb[5].mxu0  ;;  %v1676_v49 = vpop.f32.mrb[5].mxu1  ;;  %v990_v0 = vmul.f32 %v1436_v45, %v1436_v45 }
 0x104   : > { %v949_v50 = vadd.f32 %v948_v46, %v575_v48  ;;  %v988_v51 = vmul.f32 %v575_v48, %v575_v48  ;;  %v1018_v52 = vadd.f32 %v1017_v44, %v987_v43  ;;  %v1437_v53 = vpop.f32.mrb[6].mxu0  ;;  %v1678_v54 = vpop.f32.mrb[6].mxu1 }
 0x105   : > { %v1313_v55 = vpack.c.bf16 %v1437_v53, %v1436_v45  ;;  %v578_v56 = vpop.f32.mrb[7].mxu0  ;;  %v1353_v57 = vpack.c.bf16 %v1678_v54, %v1674_v47  ;;  %v1682_v58 = vpop.f32.mrb[7].mxu1  ;;  %v991_v3 = vmul.f32 %v1437_v53, %v1437_v53 }
 0x106   : > { %v1019_v59 = vadd.f32 %v1018_v52, %v988_v51  ;;  %v1308_v60 = vpack.c.bf16 %v578_v56, %v575_v48  ;;  %v950_v61 = vadd.f32 %v949_v50, %v578_v56  ;;  %v989_v62 = vmul.f32 %v578_v56, %v578_v56 }
 0x107   : > { %1377 = vst [vmem:[%s1660_s21 + $0x18] sm:$0xff] %v1313_v55   ;;  %1385 = vst [vmem:[%s1660_s21 + $0x58] sm:$0xff] %v1353_v57   ;;  %v1348_v63 = vpack.c.bf16 %v1682_v58, %v1676_v49 }
 0x108   : > { %1376 = vst [vmem:[%s1660_s21 + $0x10] sm:$0xff] %v1308_v60   ;;  %v951_v1 = vadd.f32 %v1436_v45, %v950_v61  ;;  %v1020_v2 = vadd.f32 %v1019_v59, %v989_v62  ;;  %v1000_v62 = vmul.f32 %v1653_v28, %v1653_v28 }
 0x109   : > { %1384 = vst [vmem:[%s1660_s21 + $0x50] sm:$0xff] %v1348_v63  }
 0x10a   : > { %v1021_v4 = vadd.f32 %v1020_v2, %v990_v0  ;;  %v1440_v5 = vpop.f32.mrb[8].mxu0  ;;  %v952_v6 = vadd.f32 %v1437_v53, %v951_v1  ;;  %v1690_v7 = vpop.f32.mrb[8].mxu1 }
 0x10b   : > { %v591_v8 = vpop.f32.mrb[9].mxu0  ;;  %v1692_v9 = vpop.f32.mrb[9].mxu1  ;;  %v994_v24 = vmul.f32 %v1440_v5, %v1440_v5 }
 0x10c   : > { %v953_v10 = vadd.f32 %v952_v6, %v591_v8  ;;  %v992_v11 = vmul.f32 %v591_v8, %v591_v8  ;;  %v1022_v12 = vadd.f32 %v1021_v4, %v991_v3  ;;  %v1441_v13 = vpop.f32.mrb[10].mxu0  ;;  %v1694_v14 = vpop.f32.mrb[10].mxu1  ;;  %v1001_v3 = vmul.f32 %v1666_v35, %v1666_v35 }
 0x10d   : > { %v1323_v15 = vpack.c.bf16 %v1441_v13, %v1440_v5  ;;  %v594_v16 = vpop.f32.mrb[11].mxu0  ;;  %v1363_v17 = vpack.c.bf16 %v1694_v14, %v1690_v7  ;;  %v1698_v18 = vpop.f32.mrb[11].mxu1  ;;  %v995_v29 = vmul.f32 %v1441_v13, %v1441_v13  ;;  %v1002_v4 = vmul.f32 %v1651_v26, %v1651_v26 }
 0x10e   : > { %v1023_v19 = vadd.f32 %v1022_v12, %v992_v11  ;;  %v1318_v20 = vpack.c.bf16 %v594_v16, %v591_v8  ;;  %v954_v21 = vadd.f32 %v953_v10, %v594_v16  ;;  %v993_v22 = vmul.f32 %v594_v16, %v594_v16 }
 0x10f   : > { %1379 = vst [vmem:[%s1660_s21 + $0x28] sm:$0xff] %v1323_v15   ;;  %1387 = vst [vmem:[%s1660_s21 + $0x68] sm:$0xff] %v1363_v17   ;;  %v1358_v23 = vpack.c.bf16 %v1698_v18, %v1692_v9  ;;  %v1003_v8 = vmul.f32 %v1662_v30, %v1662_v30  ;;  %v1005_v16 = vmul.f32 %v1682_v58, %v1682_v58 }
 0x110   : > { %1378 = vst [vmem:[%s1660_s21 + $0x20] sm:$0xff] %v1318_v20   ;;  %v955_v25 = vadd.f32 %v1440_v5, %v954_v21  ;;  %v1024_v27 = vadd.f32 %v1023_v19, %v993_v22 }
 0x111   : > { %1386 = vst [vmem:[%s1660_s21 + $0x60] sm:$0xff] %v1358_v23  }
 0x112   : > { %v1025_v31 = vadd.f32 %v1024_v27, %v994_v24  ;;  %v1444_v32 = vpop.f32.mrb[12].mxu0  ;;  %v956_v33 = vadd.f32 %v1441_v13, %v955_v25  ;;  %v1706_v34 = vpop.f32.mrb[12].mxu1  ;;  %v1009_v25 = vmul.f32 %v1698_v18, %v1698_v18 }
 0x113   : > { %v607_v36 = vpop.f32.mrb[13].mxu0  ;;  %v671_v37 = vpop.f32.mrb[13].mxu1  ;;  %v998_v55 = vmul.f32 %v1444_v32, %v1444_v32 }
 0x114   : > { %v957_v38 = vadd.f32 %v956_v33, %v607_v36  ;;  %v996_v39 = vmul.f32 %v607_v36, %v607_v36  ;;  %v1026_v40 = vadd.f32 %v1025_v31, %v995_v29  ;;  %v1445_v41 = vpop.f32.mrb[14].mxu0  ;;  %v1708_v42 = vpop.f32.mrb[14].mxu1 }
 0x115   : > { %v1333_v43 = vpack.c.bf16 %v1445_v41, %v1444_v32  ;;  %v610_v44 = vpop.f32.mrb[15].mxu0  ;;  %v1373_v45 = vpack.c.bf16 %v1708_v42, %v1706_v34  ;;  %v674_v46 = vpop.f32.mrb[15].mxu1  ;;  %v999_v59 = vmul.f32 %v1445_v41, %v1445_v41 }
 0x116   : > { %v1027_v48 = vadd.f32 %v1026_v40, %v996_v39  ;;  %v1328_v50 = vpack.c.bf16 %v610_v44, %v607_v36  ;;  %v958_v51 = vadd.f32 %v957_v38, %v610_v44  ;;  %v997_v52 = vmul.f32 %v610_v44, %v610_v44 }
 0x117   : > { %1381 = vst [vmem:[%s1660_s21 + $0x38] sm:$0xff] %v1333_v43   ;;  %1389 = vst [vmem:[%s1660_s21 + $0x78] sm:$0xff] %v1373_v45   ;;  %v1368_v53 = vpack.c.bf16 %v674_v46, %v671_v37  ;;  %v1013_v40 = vmul.f32 %v674_v46, %v674_v46 }
 0x118   : > { %1380 = vst [vmem:[%s1660_s21 + $0x30] sm:$0xff] %v1328_v50   ;;  %v959_v56 = vadd.f32 %v1444_v32, %v958_v51  ;;  %v1028_v57 = vadd.f32 %v1027_v48, %v997_v52 }
 0x119   : > { %1388 = vst [vmem:[%s1660_s21 + $0x70] sm:$0xff] %v1368_v53  }
 0x11a   : > { %v1029_v60 = vadd.f32 %v1028_v57, %v998_v55  ;;  %v960_v61 = vadd.f32 %v1445_v41, %v959_v56 }
 0x11c   : > { %v961_v63 = vadd.f32 %v960_v61, %v1653_v28  ;;  %v1030_v0 = vadd.f32 %v1029_v60, %v999_v59  ;;  %v1004_v28 = vmul.f32 %v1676_v49, %v1676_v49 }
 0x11e   : > { %v1031_v1 = vadd.f32 %v1030_v0, %v1000_v62  ;;  %v962_v2 = vadd.f32 %v961_v63, %v1666_v35 }
 0x120   : > { %v963_v5 = vadd.f32 %v1651_v26, %v962_v2  ;;  %v1032_v6 = vadd.f32 %v1031_v1, %v1001_v3  ;;  %v1006_v26 = vmul.f32 %v1674_v47, %v1674_v47 }
 0x122   : > { %v1033_v10 = vadd.f32 %v1032_v6, %v1002_v4  ;;  %v964_v11 = vadd.f32 %v1662_v30, %v963_v5  ;;  %v1007_v30 = vmul.f32 %v1678_v54, %v1678_v54 }
 0x124   : > { %v965_v12 = vadd.f32 %v964_v11, %v1676_v49  ;;  %v1034_v13 = vadd.f32 %v1033_v10, %v1003_v8  ;;  %v1008_v49 = vmul.f32 %v1692_v9, %v1692_v9 }
 0x126   : > { %v1035_v15 = vadd.f32 %v1034_v13, %v1004_v28  ;;  %v966_v35 = vadd.f32 %v965_v12, %v1682_v58 }
 0x128   : > { %v967_v17 = vadd.f32 %v1674_v47, %v966_v35  ;;  %v1036_v19 = vadd.f32 %v1035_v15, %v1005_v16  ;;  %v1010_v47 = vmul.f32 %v1690_v7, %v1690_v7 }
 0x12a   : > { %v1037_v20 = vadd.f32 %v1036_v19, %v1006_v26  ;;  %v968_v21 = vadd.f32 %v1678_v54, %v967_v17  ;;  %v1011_v54 = vmul.f32 %v1694_v14, %v1694_v14 }
 0x12c   : > { %v969_v22 = vadd.f32 %v968_v21, %v1692_v9  ;;  %v1038_v23 = vadd.f32 %v1037_v20, %v1007_v30  ;;  %v1012_v9 = vmul.f32 %v671_v37, %v671_v37 }
 0x12e   : > { %v1039_v24 = vadd.f32 %v1038_v23, %v1008_v49  ;;  %v970_v58 = vadd.f32 %v969_v22, %v1698_v18  ;;  %v1014_v18 = vmul.f32 %v1706_v34, %v1706_v34 }
 0x130   : > { %v971_v27 = vadd.f32 %v1690_v7, %v970_v58  ;;  %v1040_v29 = vadd.f32 %v1039_v24, %v1009_v25  ;;  %v1015_v7 = vmul.f32 %v1708_v42, %v1708_v42 }
 0x132   : > { %v1041_v31 = vadd.f32 %v1040_v29, %v1010_v47  ;;  %v972_v32 = vadd.f32 %v1694_v14, %v971_v27 }
 0x134   : > { %v973_v33 = vadd.f32 %v972_v32, %v671_v37  ;;  %v1042_v36 = vadd.f32 %v1041_v31, %v1011_v54 }
 0x136   : > { %v1043_v38 = vadd.f32 %v1042_v36, %v1012_v9  ;;  %v974_v39 = vadd.f32 %v973_v33, %v674_v46 }
 0x138   : > { %v975_v41 = vadd.f32 %v1706_v34, %v974_v39  ;;  %v1044_v43 = vadd.f32 %v1043_v38, %v1013_v40 }
 0x13a   : > { %v976_v44 = vadd.f32 %v1708_v42, %v975_v41  ;;  %v1045_v14 = vadd.f32 %v1044_v43, %v1014_v18 }
 0x13c   : > { %v977_v45 = vrot.slane %v976_v44, 4  ;;  %v1046_v37 = vadd.f32 %v1045_v14, %v1015_v7 }
 0x13e   : > { %v978_v48 = vadd.f32 %v977_v45, %v976_v44  ;;  %v1047_v50 = vrot.slane %v1046_v37, 4 }
 0x140   : > { %v979_v51 = vrot.slane %v978_v48, 2  ;;  %v1048_v46 = vadd.f32 %v1047_v50, %v1046_v37 }
 0x142   : > { %v980_v52 = vadd.f32 %v979_v51, %v978_v48  ;;  %v1049_v53 = vrot.slane %v1048_v46, 2 }
 0x144   : > { %v981_v55 = vrot.slane %v980_v52, 1  ;;  %v1050_v56 = vadd.f32 %v1049_v53, %v1048_v46 }
 0x146   : > { %v982_v34 = vadd.f32 %v981_v55, %v980_v52  ;;  %v1051_v57 = vrot.slane %v1050_v56, 1 }
 0x148   : > { %983 = vst [vmem:[%s1648_s17] sm:$0x1] %v982_v34  ;;  %v1052_v59 = vadd.f32 %v1051_v57, %v1050_v56 }
 0x14a   : > { %1053 = vst [vmem:[%s1648_s17 + $0x1] sm:$0x1] %v1052_v59 }
 0x14b PF: > { %s14_s14 = sadd.s32 1, %s1549_s14   ;;  %s1773_s12 = smov %s1545_s13 }
 0x14c   : > { %p11_p6 = scmp.ge.s32.totalorder %s14_s14, 4   ;;  %s1774_s13 = smov %s1776_s15 }
 0x14e   :  { %13 = sbr.rel (!%p11_p6) target bundleno = 2 (0x2), region = 81 }

// kernel: _lambda_.104
= control target key start
LH: loop header
LB: loop body
LE: loop exit
PB: predicated region body
PF: predicated region fallthrough
CT: control target
= control target key end

     0   :  { %s915_s12 = smov 0   ;;  %s1050_s0 = inlined_call_operand.vmem [shape: bf16[512,128], index: 0, kind: input, shape index: {}]   ;;  %s1051_s1 = inlined_call_operand.vmem [shape: f32[1,128], index: 1, kind: input, shape index: {}]   ;;  %s1052_s2 = inlined_call_operand.vmem [shape: f32[1,128], index: 2, kind: input, shape index: {}]   ;;  %s1053_s3 = inlined_call_operand.vmem [shape: bf16[512,128], index: 3, kind: output, shape index: {}]  }
   0x1 LB: > { %s628_s13 = sadd.s32 4294967295, %s893_s12   ;;  %p632_p0 = scmp.ge.s32.totalorder %s893_s12, 1  ;;  %s893_s12 = sphi %s915_s12, %s13_s12  }
   0x2   : > { %p138_p1 = scmp.lt.s32.totalorder %s893_s12, 3 }
   0x4   : > { %p139_p2 = pnand %p632_p0, %p138_p1 }
   0x5   : > { %s633_s14 = sshll.u32 (!%p139_p2), %s628_s13, 5  ;;  %v936_v0 = vld [vmem:[%s1051_s1] ss:$0 sm:$0xff] (!%p139_p2) }
   0x6   : > { %142 = sbr.rel (%p139_p2) target bundleno = 76 (0x4c), region = 32  ;;  %p163_p3 = scmp.lt.s32.totalorder (!%p139_p2), %s633_s14, 63  ;;  %v945_v9 = vld [vmem:[%s1052_s2] ss:$0 sm:$0xff] (!%p139_p2) }
   0xd   : > { %s1055_s14 = smov (!%p163_p3, %s633_s14), 63 }
   0xe   : > { %s634_s15 = sshll.u32 %s1055_s14, 2 }
   0xf   : > { %s931_s18 = scalar_lea.vmem %s1050_s0, %s634_s15  ;;  %s968_s25 = scalar_lea.vmem %s1053_s3, %s634_s15 }
  0x10   : > { %v706_v1 = vld [vmem:[%s931_s18] sm:$0xff]   ;;  %v849_v2 = vld [vmem:[%s931_s18 + $0x8] sm:$0xff]   ;;  %v850_v3 = vld [vmem:[%s931_s18 + $0x10] sm:$0xff]  }
  0x11   : > { %v707_v4 = vunpack.c.l.bf16 %v706_v1  ;;  %v708_v5 = vunpack.c.h.bf16 %v706_v1  ;;  %v711_v6 = vunpack.c.l.bf16 %v849_v2  ;;  %v712_v7 = vunpack.c.h.bf16 %v849_v2  ;;  %v851_v8 = vld [vmem:[%s931_s18 + $0x18] sm:$0xff]   ;;  %v852_v36 = vld [vmem:[%s931_s18 + $0x20] sm:$0xff]   ;;  %v853_v41 = vld [vmem:[%s931_s18 + $0x28] sm:$0xff]  }
  0x12   : > { %v715_v10 = vunpack.c.l.bf16 %v850_v3  ;;  %v716_v11 = vunpack.c.h.bf16 %v850_v3  ;;  %v719_v12 = vunpack.c.l.bf16 %v851_v8  ;;  %v720_v13 = vunpack.c.h.bf16 %v851_v8  ;;  %v854_v52 = vld [vmem:[%s931_s18 + $0x30] sm:$0xff]   ;;  %v855_v53 = vld [vmem:[%s931_s18 + $0x38] sm:$0xff]  }
  0x13   : > { %v245_v14 = vmul.f32 %v707_v4, %v936_v0  ;;  %v246_v15 = vmul.f32 %v708_v5, %v936_v0  ;;  %v247_v16 = vmul.f32 %v711_v6, %v936_v0  ;;  %v248_v17 = vmul.f32 %v712_v7, %v936_v0 }
  0x14   : > { %v249_v18 = vmul.f32 %v715_v10, %v936_v0  ;;  %v250_v19 = vmul.f32 %v716_v11, %v936_v0  ;;  %v251_v20 = vmul.f32 %v719_v12, %v936_v0  ;;  %v252_v21 = vmul.f32 %v720_v13, %v936_v0 }
  0x15   : > { %v284_v22 = vadd.f32 %v945_v9, %v245_v14  ;;  %v285_v23 = vadd.f32 %v945_v9, %v246_v15  ;;  %v286_v24 = vadd.f32 %v945_v9, %v247_v16  ;;  %v287_v25 = vadd.f32 %v945_v9, %v248_v17 }
  0x16   : > { %v288_v26 = vadd.f32 %v945_v9, %v249_v18  ;;  %v289_v27 = vadd.f32 %v945_v9, %v250_v19  ;;  %v290_v28 = vadd.f32 %v945_v9, %v251_v20  ;;  %v291_v29 = vadd.f32 %v945_v9, %v252_v21  ;;  %v856_v20 = vld [vmem:[%s931_s18 + $0x40] sm:$0xff]  }
  0x17   : > { %vm316_vm0 = vcmp.ge.f32.partialorder %v284_v22, 0.0  ;;  %vm317_vm1 = vcmp.ge.f32.partialorder %v285_v23, 0.0  ;;  %v348_v30 = vmul.f32 0.1, %v284_v22  ;;  %v349_v31 = vmul.f32 0.1, %v285_v23 }
  0x18   : > { %vm318_vm2 = vcmp.ge.f32.partialorder %v286_v24, 0.0  ;;  %vm319_vm3 = vcmp.ge.f32.partialorder %v287_v25, 0.0  ;;  %v350_v32 = vmul.f32 0.1, %v286_v24  ;;  %v351_v33 = vmul.f32 0.1, %v287_v25 }
  0x19   : > { %v380_v34 = vsel %vm316_vm0, %v284_v22, %v348_v30  ;;  %v381_v35 = vsel %vm317_vm1, %v285_v23, %v349_v31  ;;  %vm320_vm4 = vcmp.ge.f32.partialorder %v288_v26, 0.0  ;;  %vm321_vm5 = vcmp.ge.f32.partialorder %v289_v27, 0.0 }
  0x1a   : > { %v772_v37 = vpack.c.bf16 %v381_v35, %v380_v34  ;;  %v382_v38 = vsel %vm318_vm2, %v286_v24, %v350_v32  ;;  %v383_v39 = vsel %vm319_vm3, %v287_v25, %v351_v33  ;;  %v352_v40 = vmul.f32 0.1, %v288_v26  ;;  %v857_v24 = vld [vmem:[%s931_s18 + $0x48] sm:$0xff]  }
  0x1b   : > { %v777_v42 = vpack.c.bf16 %v383_v39, %v382_v38  ;;  %v353_v43 = vmul.f32 0.1, %v289_v27  ;;  %vm322_vm6 = vcmp.ge.f32.partialorder %v290_v28, 0.0  ;;  %vm323_vm7 = vcmp.ge.f32.partialorder %v291_v29, 0.0 }
  0x1c   : > { %773 = vst [vmem:[%s968_s25] sm:$0xff] %v772_v37   ;;  %v384_v44 = vsel %vm320_vm4, %v288_v26, %v352_v40  ;;  %v354_v45 = vmul.f32 0.1, %v290_v28  ;;  %v355_v46 = vmul.f32 0.1, %v291_v29  ;;  %v723_v47 = vunpack.c.l.bf16 %v852_v36 }
  0x1d   : > { %864 = vst [vmem:[%s968_s25 + $0x8] sm:$0xff] %v777_v42   ;;  %v385_v48 = vsel %vm321_vm5, %v289_v27, %v353_v43  ;;  %v724_v49 = vunpack.c.h.bf16 %v852_v36  ;;  %v727_v50 = vunpack.c.l.bf16 %v853_v41  ;;  %v728_v51 = vunpack.c.h.bf16 %v853_v41  ;;  %v858_v36 = vld [vmem:[%s931_s18 + $0x50] sm:$0xff]  }
  0x1e   : > { %v782_v54 = vpack.c.bf16 %v385_v48, %v384_v44  ;;  %v386_v55 = vsel %vm322_vm6, %v290_v28, %v354_v45  ;;  %v387_v56 = vsel %vm323_vm7, %v291_v29, %v355_v46  ;;  %v253_v57 = vmul.f32 %v723_v47, %v936_v0 }
  0x1f   : > { %v787_v58 = vpack.c.bf16 %v387_v56, %v386_v55  ;;  %v254_v59 = vmul.f32 %v724_v49, %v936_v0  ;;  %v255_v60 = vmul.f32 %v727_v50, %v936_v0  ;;  %v256_v61 = vmul.f32 %v728_v51, %v936_v0  ;;  %v859_v55 = vld [vmem:[%s931_s18 + $0x58] sm:$0xff]  }
  0x20   : > { %865 = vst [vmem:[%s968_s25 + $0x10] sm:$0xff] %v782_v54   ;;  %v292_v62 = vadd.f32 %v945_v9, %v253_v57  ;;  %v731_v63 = vunpack.c.l.bf16 %v854_v52  ;;  %v732_v1 = vunpack.c.h.bf16 %v854_v52  ;;  %v735_v2 = vunpack.c.l.bf16 %v855_v53 }
  0x21   : > { %866 = vst [vmem:[%s968_s25 + $0x18] sm:$0xff] %v787_v58   ;;  %v293_v3 = vadd.f32 %v945_v9, %v254_v59  ;;  %v294_v4 = vadd.f32 %v945_v9, %v255_v60  ;;  %v295_v5 = vadd.f32 %v945_v9, %v256_v61  ;;  %v736_v6 = vunpack.c.h.bf16 %v855_v53 }
  0x22   : > { %vm324_vm8 = vcmp.ge.f32.partialorder %v292_v62, 0.0  ;;  %v356_v7 = vmul.f32 0.1, %v292_v62  ;;  %v257_v8 = vmul.f32 %v731_v63, %v936_v0  ;;  %v258_v10 = vmul.f32 %v732_v1, %v936_v0  ;;  %v860_v1 = vld [vmem:[%s931_s18 + $0x60] sm:$0xff]  }
  0x23   : > { %vm325_vm9 = vcmp.ge.f32.partialorder %v293_v3, 0.0  ;;  %v357_v11 = vmul.f32 0.1, %v293_v3  ;;  %vm326_vm10 = vcmp.ge.f32.partialorder %v294_v4, 0.0  ;;  %vm327_vm11 = vcmp.ge.f32.partialorder %v295_v5, 0.0 }
  0x24   : > { %v388_v12 = vsel %vm324_vm8, %v292_v62, %v356_v7  ;;  %v358_v13 = vmul.f32 0.1, %v294_v4  ;;  %v359_v14 = vmul.f32 0.1, %v295_v5  ;;  %v296_v15 = vadd.f32 %v945_v9, %v257_v8 }
  0x25   : > { %v389_v16 = vsel %vm325_vm9, %v293_v3, %v357_v11  ;;  %v297_v17 = vadd.f32 %v945_v9, %v258_v10  ;;  %v259_v18 = vmul.f32 %v735_v2, %v936_v0  ;;  %v260_v19 = vmul.f32 %v736_v6, %v936_v0  ;;  %v861_v6 = vld [vmem:[%s931_s18 + $0x68] sm:$0xff]  }
  0x26   : > { %v792_v21 = vpack.c.bf16 %v389_v16, %v388_v12  ;;  %v390_v22 = vsel %vm326_vm10, %v294_v4, %v358_v13  ;;  %v391_v23 = vsel %vm327_vm11, %v295_v5, %v359_v14  ;;  %vm328_vm12 = vcmp.ge.f32.partialorder %v296_v15, 0.0 }
  0x27   : > { %v797_v25 = vpack.c.bf16 %v391_v23, %v390_v22  ;;  %vm329_vm13 = vcmp.ge.f32.partialorder %v297_v17, 0.0  ;;  %v360_v26 = vmul.f32 0.1, %v296_v15  ;;  %v361_v27 = vmul.f32 0.1, %v297_v17  ;;  %v862_v22 = vld [vmem:[%s931_s18 + $0x70] sm:$0xff]  }
  0x28   : > { %867 = vst [vmem:[%s968_s25 + $0x20] sm:$0xff] %v792_v21   ;;  %v298_v28 = vadd.f32 %v945_v9, %v259_v18  ;;  %v299_v29 = vadd.f32 %v945_v9, %v260_v19  ;;  %v739_v30 = vunpack.c.l.bf16 %v856_v20  ;;  %v740_v31 = vunpack.c.h.bf16 %v856_v20 }
  0x29   : > { %868 = vst [vmem:[%s968_s25 + $0x28] sm:$0xff] %v797_v25   ;;  %v392_v32 = vsel %vm328_vm12, %v296_v15, %v360_v26  ;;  %v393_v33 = vsel %vm329_vm13, %v297_v17, %v361_v27  ;;  %v743_v34 = vunpack.c.l.bf16 %v857_v24  ;;  %v744_v35 = vunpack.c.h.bf16 %v857_v24 }
  0x2a   : > { %v802_v37 = vpack.c.bf16 %v393_v33, %v392_v32  ;;  %vm330_vm14 = vcmp.ge.f32.partialorder %v298_v28, 0.0  ;;  %vm331_vm15 = vcmp.ge.f32.partialorder %v299_v29, 0.0  ;;  %v362_v38 = vmul.f32 0.1, %v298_v28 }
  0x2b   : > { %v363_v39 = vmul.f32 0.1, %v299_v29  ;;  %v261_v40 = vmul.f32 %v739_v30, %v936_v0  ;;  %v262_v41 = vmul.f32 %v740_v31, %v936_v0  ;;  %v263_v42 = vmul.f32 %v743_v34, %v936_v0 }
  0x2c   : > { %869 = vst [vmem:[%s968_s25 + $0x30] sm:$0xff] %v802_v37   ;;  %v394_v43 = vsel %vm330_vm14, %v298_v28, %v362_v38  ;;  %v264_v44 = vmul.f32 %v744_v35, %v936_v0  ;;  %v747_v45 = vunpack.c.l.bf16 %v858_v36  ;;  %v748_v46 = vunpack.c.h.bf16 %v858_v36 }
  0x2d   : > { %v395_v47 = vsel %vm331_vm15, %v299_v29, %v363_v39  ;;  %v300_v48 = vadd.f32 %v945_v9, %v261_v40  ;;  %v301_v49 = vadd.f32 %v945_v9, %v262_v41  ;;  %v302_v50 = vadd.f32 %v945_v9, %v263_v42  ;;  %v863_v41 = vld [vmem:[%s931_s18 + $0x78] sm:$0xff]  }
  0x2e   : > { %v807_v51 = vpack.c.bf16 %v395_v47, %v394_v43  ;;  %v303_v52 = vadd.f32 %v945_v9, %v264_v44  ;;  %v265_v53 = vmul.f32 %v747_v45, %v936_v0  ;;  %v266_v54 = vmul.f32 %v748_v46, %v936_v0 }
  0x2f   : > { %vm332_vm0 = vcmp.ge.f32.partialorder %v300_v48, 0.0  ;;  %vm333_vm1 = vcmp.ge.f32.partialorder %v301_v49, 0.0  ;;  %v364_v56 = vmul.f32 0.1, %v300_v48  ;;  %v365_v57 = vmul.f32 0.1, %v301_v49 }
  0x30   : > { %870 = vst [vmem:[%s968_s25 + $0x38] sm:$0xff] %v807_v51   ;;  %vm334_vm2 = vcmp.ge.f32.partialorder %v302_v50, 0.0  ;;  %vm335_vm3 = vcmp.ge.f32.partialorder %v303_v52, 0.0  ;;  %v366_v58 = vmul.f32 0.1, %v302_v50  ;;  %v304_v62 = vadd.f32 %v945_v9, %v265_v53 }
  0x31   : > { %v367_v59 = vmul.f32 0.1, %v303_v52  ;;  %v396_v60 = vsel %vm332_vm0, %v300_v48, %v364_v56  ;;  %v397_v61 = vsel %vm333_vm1, %v301_v49, %v365_v57  ;;  %v305_v63 = vadd.f32 %v945_v9, %v266_v54 }
  0x32   : > { %v812_v2 = vpack.c.bf16 %v397_v61, %v396_v60  ;;  %v398_v3 = vsel %vm334_vm2, %v302_v50, %v366_v58  ;;  %v751_v5 = vunpack.c.l.bf16 %v859_v55  ;;  %vm336_vm4 = vcmp.ge.f32.partialorder %v304_v62, 0.0 }
  0x33   : > { %v399_v4 = vsel %vm335_vm3, %v303_v52, %v367_v59  ;;  %vm337_vm5 = vcmp.ge.f32.partialorder %v305_v63, 0.0  ;;  %v368_v8 = vmul.f32 0.1, %v304_v62  ;;  %v369_v10 = vmul.f32 0.1, %v305_v63 }
  0x34   : > { %v817_v7 = vpack.c.bf16 %v399_v4, %v398_v3  ;;  %871 = vst [vmem:[%s968_s25 + $0x40] sm:$0xff] %v812_v2   ;;  %v752_v11 = vunpack.c.h.bf16 %v859_v55  ;;  %v267_v12 = vmul.f32 %v751_v5, %v936_v0  ;;  %v755_v13 = vunpack.c.l.bf16 %v860_v1 }
  0x35   : > { %v400_v14 = vsel %vm336_vm4, %v304_v62, %v368_v8  ;;  %v756_v15 = vunpack.c.h.bf16 %v860_v1  ;;  %v759_v16 = vunpack.c.l.bf16 %v861_v6  ;;  %v760_v17 = vunpack.c.h.bf16 %v861_v6 }
  0x36   : > { %872 = vst [vmem:[%s968_s25 + $0x48] sm:$0xff] %v817_v7   ;;  %v401_v18 = vsel %vm337_vm5, %v305_v63, %v369_v10  ;;  %v268_v19 = vmul.f32 %v752_v11, %v936_v0  ;;  %v306_v20 = vadd.f32 %v945_v9, %v267_v12  ;;  %v269_v21 = vmul.f32 %v755_v13, %v936_v0 }
  0x37   : > { %v822_v23 = vpack.c.bf16 %v401_v18, %v400_v14  ;;  %v270_v24 = vmul.f32 %v756_v15, %v936_v0  ;;  %v271_v25 = vmul.f32 %v759_v16, %v936_v0  ;;  %v272_v26 = vmul.f32 %v760_v17, %v936_v0 }
  0x38   : > { %v307_v27 = vadd.f32 %v945_v9, %v268_v19  ;;  %vm338_vm6 = vcmp.ge.f32.partialorder %v306_v20, 0.0  ;;  %v370_v28 = vmul.f32 0.1, %v306_v20  ;;  %v308_v29 = vadd.f32 %v945_v9, %v269_v21 }
  0x39   : > { %873 = vst [vmem:[%s968_s25 + $0x50] sm:$0xff] %v822_v23   ;;  %v309_v30 = vadd.f32 %v945_v9, %v270_v24  ;;  %v310_v31 = vadd.f32 %v945_v9, %v271_v25  ;;  %v311_v32 = vadd.f32 %v945_v9, %v272_v26  ;;  %v763_v33 = vunpack.c.l.bf16 %v862_v22 }
  0x3a   : > { %vm339_vm7 = vcmp.ge.f32.partialorder %v307_v27, 0.0  ;;  %v371_v34 = vmul.f32 0.1, %v307_v27  ;;  %v402_v35 = vsel %vm338_vm6, %v306_v20, %v370_v28  ;;  %vm340_vm8 = vcmp.ge.f32.partialorder %v308_v29, 0.0 }
  0x3b   : > { %vm341_vm9 = vcmp.ge.f32.partialorder %v309_v30, 0.0  ;;  %v372_v36 = vmul.f32 0.1, %v308_v29  ;;  %v373_v37 = vmul.f32 0.1, %v309_v30  ;;  %vm342_vm10 = vcmp.ge.f32.partialorder %v310_v31, 0.0 }
  0x3c   : > { %v403_v38 = vsel %vm339_vm7, %v307_v27, %v371_v34  ;;  %vm343_vm11 = vcmp.ge.f32.partialorder %v311_v32, 0.0  ;;  %v374_v39 = vmul.f32 0.1, %v310_v31  ;;  %v375_v40 = vmul.f32 0.1, %v311_v32 }
  0x3d   : > { %v827_v42 = vpack.c.bf16 %v403_v38, %v402_v35  ;;  %v404_v43 = vsel %vm340_vm8, %v308_v29, %v372_v36  ;;  %v405_v44 = vsel %vm341_vm9, %v309_v30, %v373_v37  ;;  %v764_v45 = vunpack.c.h.bf16 %v862_v22 }
  0x3e   : > { %v832_v46 = vpack.c.bf16 %v405_v44, %v404_v43  ;;  %v406_v47 = vsel %vm342_vm10, %v310_v31, %v374_v39  ;;  %v407_v48 = vsel %vm343_vm11, %v311_v32, %v375_v40  ;;  %v273_v49 = vmul.f32 %v763_v33, %v936_v0 }
  0x3f   : > { %874 = vst [vmem:[%s968_s25 + $0x58] sm:$0xff] %v827_v42   ;;  %v837_v50 = vpack.c.bf16 %v407_v48, %v406_v47  ;;  %v274_v51 = vmul.f32 %v764_v45, %v936_v0  ;;  %v767_v52 = vunpack.c.l.bf16 %v863_v41  ;;  %v768_v53 = vunpack.c.h.bf16 %v863_v41 }
  0x40   : > { %875 = vst [vmem:[%s968_s25 + $0x60] sm:$0xff] %v832_v46   ;;  %v312_v54 = vadd.f32 %v945_v9, %v273_v49 }
  0x41   : > { %876 = vst [vmem:[%s968_s25 + $0x68] sm:$0xff] %v837_v50   ;;  %v313_v55 = vadd.f32 %v945_v9, %v274_v51  ;;  %v275_v56 = vmul.f32 %v767_v52, %v936_v0  ;;  %v276_v57 = vmul.f32 %v768_v53, %v936_v0 }
  0x42   : > { %vm344_vm12 = vcmp.ge.f32.partialorder %v312_v54, 0.0  ;;  %v376_v58 = vmul.f32 0.1, %v312_v54 }
  0x43   : > { %vm345_vm13 = vcmp.ge.f32.partialorder %v313_v55, 0.0  ;;  %v377_v59 = vmul.f32 0.1, %v313_v55  ;;  %v314_v60 = vadd.f32 %v945_v9, %v275_v56  ;;  %v315_v61 = vadd.f32 %v945_v9, %v276_v57 }
  0x44   : > { %v408_v62 = vsel %vm344_vm12, %v312_v54, %v376_v58 }
  0x45   : > { %v409_v63 = vsel %vm345_vm13, %v313_v55, %v377_v59  ;;  %vm346_vm14 = vcmp.ge.f32.partialorder %v314_v60, 0.0  ;;  %vm347_vm15 = vcmp.ge.f32.partialorder %v315_v61, 0.0  ;;  %v378_v1 = vmul.f32 0.1, %v314_v60 }
  0x46   : > { %v842_v2 = vpack.c.bf16 %v409_v63, %v408_v62  ;;  %v379_v3 = vmul.f32 0.1, %v315_v61 }
  0x47   : > { %v410_v4 = vsel %vm346_vm14, %v314_v60, %v378_v1 }
  0x48   : > { %877 = vst [vmem:[%s968_s25 + $0x70] sm:$0xff] %v842_v2   ;;  %v411_v5 = vsel %vm347_vm15, %v315_v61, %v379_v3 }
  0x49   : > { %v847_v0 = vpack.c.bf16 %v411_v5, %v410_v4 }
  0x4b   : > { %878 = vst [vmem:[%s968_s25 + $0x78] sm:$0xff] %v847_v0  }
  0x4c PF: > { %s13_s12 = sadd.s32 1, %s893_s12  }
  0x4d   : > { %p10_p4 = scmp.ge.s32.totalorder %s13_s12, 4  }
  0x4f   :  { %12 = sbr.rel (!%p10_p4) target bundleno = 1 (0x1), region = 62 }

// kernel: _lambda_.107
= control target key start
LH: loop header
LB: loop body
LE: loop exit
PB: predicated region body
PF: predicated region fallthrough
CT: control target
= control target key end

     0   :  { %s2289_s12 = smov 0   ;;  %s2291_s13 = smov 0   ;;  %s2509_s0 = inlined_call_operand.vmem [shape: bf16[512,384], index: 0, kind: input, shape index: {}]   ;;  %s2510_s1 = inlined_call_operand.vmem [shape: bf16[384,128], index: 1, kind: input, shape index: {}]   ;;  %s2511_s2 = inlined_call_operand.vmem [shape: bf16[512,128], index: 2, kind: output, shape index: {0}]   ;;  %s2512_s3 = inlined_call_operand.vmem [shape: f32[16,128], index: 3, kind: output, shape index: {1}]  }
   0x1   :  { %s2293_s14 = smov 0  }
   0x2 LB: > { %s33_s15 = sadd.s32 1, %s2262_s13  ;;  %p1691_p0 = scmp.ge.s32.totalorder %s2266_s14, 1  ;;  %s2266_s14 = sphi %s2293_s14, %s14_s14   ;;  %s2262_s13 = sphi %s2291_s13, %s2514_s13   ;;  %s2258_s12 = sphi %s2289_s12, %s2513_s12  }
   0x3   : > { %p35_p1 = scmp.ge.s32.totalorder %s33_s15, 2  ;;  %p188_p2 = scmp.lt.s32.totalorder %s2266_s14, 3 }
   0x5   : > { %s2516_s15 = smov (%p35_p1, %s33_s15), 0  ;;  %p189_p3 = pnand %p1691_p0, %p188_p2 }
   0x6   : > { %v2156_v0 = vld [vmem:[%s2510_s1 + $0x40] sm:$0xff] (!%p189_p3)   ;;  %s1692_s18 = sshll.u32 (!%p189_p3), %s2258_s12, 5  ;;  %v2158_v2 = vld [vmem:[%s2510_s1 + $0x48] sm:$0xff] (!%p189_p3)   ;;  %v2160_v4 = vld [vmem:[%s2510_s1 + $0x50] sm:$0xff] (!%p189_p3)   ;;  %p265_p5 = scmp.lt.s32.totalorder (!%p189_p3), %s2258_s12, 1 }
   0x7   : > { %192 = sbr.rel (%p189_p3) target bundleno = 379 (0x17b), region = 28  ;;  %v2157_v1 = vld [vmem:[%s2510_s1] sm:$0xff] (!%p189_p3)   ;;  %1930 = vmatprep.subr.bf16.mxu0 (!%p189_p3), %v2156_v0  ;;  %2114 = vmatprep.subr.bf16.mxu1 (!%p189_p3), %v2156_v0  ;;  %p237_p4 = scmp.lt.s32.totalorder (!%p189_p3), %s1692_s18, 63  ;;  %v2159_v3 = vld [vmem:[%s2510_s1 + $0x8] sm:$0xff] (!%p189_p3)   ;;  %v2161_v5 = vld [vmem:[%s2510_s1 + $0x10] sm:$0xff] (!%p189_p3)  }
   0x8   : > { %1931 = vmatpush3.bf16.msra.mxu0 (!%p189_p3), %v2157_v1  ;;  %2122 = vmatpush3.bf16.msra.mxu1 (!%p189_p3), %v2157_v1  ;;  %v2162_v6 = vld [vmem:[%s2510_s1 + $0x58] sm:$0xff] (!%p189_p3)   ;;  %v2164_v8 = vld [vmem:[%s2510_s1 + $0x60] sm:$0xff] (!%p189_p3)   ;;  %v2166_v10 = vld [vmem:[%s2510_s1 + $0x68] sm:$0xff] (!%p189_p3)  }
   0x9   : > { %1932 = vmatprep.subr.bf16.mxu0 (!%p189_p3), %v2158_v2  ;;  %2115 = vmatprep.subr.bf16.mxu1 (!%p189_p3), %v2158_v2  ;;  %v2163_v7 = vld [vmem:[%s2510_s1 + $0x18] sm:$0xff] (!%p189_p3)   ;;  %v2165_v9 = vld [vmem:[%s2510_s1 + $0x20] sm:$0xff] (!%p189_p3)   ;;  %v2167_v13 = vld [vmem:[%s2510_s1 + $0x28] sm:$0xff] (!%p189_p3)  }
   0xa   : > { %v2168_v14 = vld [vmem:[%s2510_s1 + $0x70] sm:$0xff] (!%p189_p3)   ;;  %v2170_v16 = vld [vmem:[%s2510_s1 + $0x78] sm:$0xff] (!%p189_p3)   ;;  %v2178_v18 = vld [vmem:[%s2510_s1 + $0x80] sm:$0xff] (!%p189_p3)  }
   0xb   : > { %v2169_v15 = vld [vmem:[%s2510_s1 + $0x30] sm:$0xff] (!%p189_p3)   ;;  %v2171_v17 = vld [vmem:[%s2510_s1 + $0x38] sm:$0xff] (!%p189_p3)   ;;  %v2179_v22 = vld [vmem:[%s2510_s1 + $0x88] sm:$0xff] (!%p189_p3)  }
   0xc   : > { %1933 = vmatpush3.bf16.msra.mxu0 (!%p189_p3), %v2159_v3  ;;  %2123 = vmatpush3.bf16.msra.mxu1 (!%p189_p3), %v2159_v3  ;;  %v2186_v25 = vld [vmem:[%s2510_s1 + $0x90] sm:$0xff] (!%p189_p3)   ;;  %v2187_v27 = vld [vmem:[%s2510_s1 + $0x98] sm:$0xff] (!%p189_p3)   ;;  %v2194_v30 = vld [vmem:[%s2510_s1 + $0xa0] sm:$0xff] (!%p189_p3)  }
   0xd   : > { %1934 = vmatprep.subr.bf16.mxu0 (!%p189_p3), %v2160_v4  ;;  %2116 = vmatprep.subr.bf16.mxu1 (!%p189_p3), %v2160_v4  ;;  %v2195_v33 = vld [vmem:[%s2510_s1 + $0xa8] sm:$0xff] (!%p189_p3)   ;;  %v2202_v36 = vld [vmem:[%s2510_s1 + $0xb0] sm:$0xff] (!%p189_p3)   ;;  %v2203_v40 = vld [vmem:[%s2510_s1 + $0xb8] sm:$0xff] (!%p189_p3)  }
   0xe   : > { %s2518_s18 = smov (!%p237_p4, %s1692_s18), 63  ;;  %s2520_s12 = smov (!%p265_p5, %s2258_s12), 1 }
   0xf   : > { %s2130_s4 = smul.u32 12, %s2518_s18  ;;  %s1696_s26 = sshll.u32 %s2520_s12, 3 }
  0x10   : > { %1935 = vmatpush3.bf16.msra.mxu0 %v2161_v5  ;;  %2124 = vmatpush3.bf16.msra.mxu1 %v2161_v5  ;;  %s2443_s29 = scalar_lea.vmem %s2512_s3, %s1696_s26  ;;  %s1695_s12 = sshll.u32 %s2518_s18, 2 }
  0x11   : > { %1936 = vmatprep.subr.bf16.mxu0 %v2162_v6  ;;  %2117 = vmatprep.subr.bf16.mxu1 %v2162_v6  ;;  %s2343_s11 = scalar_lea.vmem %s2509_s0, %s2130_s4  ;;  %s2466_s4 = scalar_lea.vmem %s2511_s2, %s1695_s12 }
  0x12   : > { %v2174_v11 = vld [vmem:[%s2343_s11 + $0x4] ss:$12 sps:$4 sm:$0xff]   ;;  %v2172_v19 = vld [vmem:[%s2343_s11] ss:$12 sps:$4 sm:$0xff]   ;;  %v2180_v21 = vld [vmem:[%s2343_s11 + $0x1c] ss:$12 sps:$4 sm:$0xff]  }
  0x13   : > { %v2177_v12 = vld [vmem:[%s2343_s11 + $0x124] ss:$12 sps:$4 sm:$0xff]   ;;  %885 = vmatprep.mubr.bf16.mxu0 %v2174_v11  ;;  %v2175_v20 = vld [vmem:[%s2343_s11 + $0x120] ss:$12 sps:$4 sm:$0xff]   ;;  %v2182_v23 = vld [vmem:[%s2343_s11 + $0x13c] ss:$12 sps:$4 sm:$0xff]  }
  0x14   : > { %1937 = vmatpush3.bf16.msra.mxu0 %v2163_v7  ;;  %2125 = vmatpush3.bf16.msra.mxu1 %v2163_v7  ;;  %v2184_v24 = vld [vmem:[%s2343_s11 + $0x18] ss:$12 sps:$4 sm:$0xff]   ;;  %v2188_v28 = vld [vmem:[%s2343_s11 + $0x34] ss:$12 sps:$4 sm:$0xff]   ;;  %v2192_v31 = vld [vmem:[%s2343_s11 + $0x30] ss:$12 sps:$4 sm:$0xff]  }
  0x15   : > { %1938 = vmatprep.subr.bf16.mxu0 %v2164_v8  ;;  %2118 = vmatprep.subr.bf16.mxu1 %v2164_v8  ;;  %v2185_v26 = vld [vmem:[%s2343_s11 + $0x138] ss:$12 sps:$4 sm:$0xff]   ;;  %v2190_v29 = vld [vmem:[%s2343_s11 + $0x154] ss:$12 sps:$4 sm:$0xff]   ;;  %v2193_v32 = vld [vmem:[%s2343_s11 + $0x150] ss:$12 sps:$4 sm:$0xff]  }
  0x16   : > { %981 = vmatprep.mubr.bf16.mxu1 %v2177_v12  ;;  %v2196_v34 = vld [vmem:[%s2343_s11 + $0x4c] ss:$12 sps:$4 sm:$0xff]   ;;  %v2200_v37 = vld [vmem:[%s2343_s11 + $0x48] ss:$12 sps:$4 sm:$0xff]   ;;  %v2204_v39 = vld [vmem:[%s2343_s11 + $0x64] ss:$12 sps:$4 sm:$0xff]  }
  0x17   : > { %v2198_v35 = vld [vmem:[%s2343_s11 + $0x16c] ss:$12 sps:$4 sm:$0xff]   ;;  %v2201_v38 = vld [vmem:[%s2343_s11 + $0x168] ss:$12 sps:$4 sm:$0xff]   ;;  %v2213_v47 = vld [vmem:[%s2343_s11 + $0x50] ss:$12 sps:$4 sm:$0xff]  }
  0x18   : > { %1939 = vmatpush3.bf16.msra.mxu0 %v2165_v9  ;;  %2126 = vmatpush3.bf16.msra.mxu1 %v2165_v9  ;;  %v2206_v41 = vld [vmem:[%s2343_s11 + $0x8] ss:$12 sps:$4 sm:$0xff]   ;;  %v2207_v42 = vld [vmem:[%s2343_s11 + $0x60] ss:$12 sps:$4 sm:$0xff]   ;;  %v2211_v45 = vld [vmem:[%s2343_s11 + $0x38] ss:$12 sps:$4 sm:$0xff]  }
  0x19   : > { %1940 = vmatprep.subr.bf16.mxu0 %v2166_v10  ;;  %2119 = vmatprep.subr.bf16.mxu1 %v2166_v10  ;;  %v2208_v43 = vld [vmem:[%s2343_s11 + $0x20] ss:$12 sps:$4 sm:$0xff]   ;;  %v2209_v44 = vld [vmem:[%s2343_s11 + $0x7c] ss:$12 sps:$4 sm:$0xff]   ;;  %v2212_v46 = vld [vmem:[%s2343_s11 + $0x78] ss:$12 sps:$4 sm:$0xff]  }
  0x1a   : > { %v2214_v48 = vld [vmem:[%s2343_s11 + $0x94] ss:$12 sps:$4 sm:$0xff]   ;;  %v2217_v50 = vld [vmem:[%s2343_s11 + $0x90] ss:$12 sps:$4 sm:$0xff]   ;;  %v2219_v52 = vld [vmem:[%s2343_s11 + $0xac] ss:$12 sps:$4 sm:$0xff]  }
  0x1b   : > { %v2216_v49 = vld [vmem:[%s2343_s11 + $0x68] ss:$12 sps:$4 sm:$0xff]   ;;  %v2218_v51 = vld [vmem:[%s2343_s11 + $0x80] ss:$12 sps:$4 sm:$0xff]   ;;  %v2221_v53 = vld [vmem:[%s2343_s11 + $0x98] ss:$12 sps:$4 sm:$0xff]  }
  0x1c   : > { %1941 = vmatpush3.bf16.msra.mxu0 %v2167_v13  ;;  %2127 = vmatpush3.bf16.msra.mxu1 %v2167_v13  ;;  %v2222_v54 = vld [vmem:[%s2343_s11 + $0xa8] ss:$12 sps:$4 sm:$0xff]   ;;  %v2223_v55 = vld [vmem:[%s2343_s11 + $0xb0] ss:$12 sps:$4 sm:$0xff]   ;;  %v2227_v58 = vld [vmem:[%s2343_s11 + $0xc0] ss:$12 sps:$4 sm:$0xff]  }
  0x1d   : > { %1942 = vmatprep.subr.bf16.mxu0 %v2168_v14  ;;  %2120 = vmatprep.subr.bf16.mxu1 %v2168_v14  ;;  %v2224_v56 = vld [vmem:[%s2343_s11 + $0xc4] ss:$12 sps:$4 sm:$0xff]   ;;  %v2226_v57 = vld [vmem:[%s2343_s11 + $0xc8] ss:$12 sps:$4 sm:$0xff]   ;;  %v2228_v59 = vld [vmem:[%s2343_s11 + $0xe0] ss:$12 sps:$4 sm:$0xff]  }
  0x1e   : > { %v2229_v60 = vld [vmem:[%s2343_s11 + $0xdc] ss:$12 sps:$4 sm:$0xff]   ;;  %v2231_v61 = vld [vmem:[%s2343_s11 + $0xf8] ss:$12 sps:$4 sm:$0xff]   ;;  %v2234_v0 = vld [vmem:[%s2343_s11 + $0xf4] ss:$12 sps:$4 sm:$0xff]  }
  0x1f   : > { %v2232_v62 = vld [vmem:[%s2343_s11 + $0xd8] ss:$12 sps:$4 sm:$0xff]   ;;  %v2233_v63 = vld [vmem:[%s2343_s11 + $0x110] ss:$12 sps:$4 sm:$0xff]   ;;  %v2236_v1 = vld [vmem:[%s2343_s11 + $0x128] ss:$12 sps:$4 sm:$0xff]  }
  0x20   : > { %1943 = vmatpush3.bf16.msra.mxu0 %v2169_v15  ;;  %2128 = vmatpush3.bf16.msra.mxu1 %v2169_v15  ;;  %v2237_v2 = vld [vmem:[%s2343_s11 + $0xf0] ss:$12 sps:$4 sm:$0xff]   ;;  %v2238_v3 = vld [vmem:[%s2343_s11 + $0x140] ss:$12 sps:$4 sm:$0xff]   ;;  %v2241_v5 = vld [vmem:[%s2343_s11 + $0x158] ss:$12 sps:$4 sm:$0xff]  }
  0x21   : > { %1944 = vmatprep.subr.bf16.mxu0 %v2170_v16  ;;  %2121 = vmatprep.subr.bf16.mxu1 %v2170_v16  ;;  %v2239_v4 = vld [vmem:[%s2343_s11 + $0x10c] ss:$12 sps:$4 sm:$0xff]   ;;  %v2242_v6 = vld [vmem:[%s2343_s11 + $0x108] ss:$12 sps:$4 sm:$0xff]   ;;  %v2243_v7 = vld [vmem:[%s2343_s11 + $0x170] ss:$12 sps:$4 sm:$0xff]  }
  0x22   : > { %v2268_v8 = vmov 0.0  }
  0x23   : > { %1434 = vst [vmem:[%s2443_s29] sm:$0xff] %v2268_v8 }
  0x24   : > { %1945 = vmatpush3.bf16.msra.mxu0 %v2171_v17  ;;  %2129 = vmatpush3.bf16.msra.mxu1 %v2171_v17 }
  0x25   : > { %2066 = vmatprep.subr.bf16.mxu1 %v2178_v18 }
  0x27   : > { %886 = vmatmul.mubr.bf16.vlgmr.msra.gmra.mrb[0].mxu0 %v2172_v19  ;;  %982 = vmatmul.mubr.bf16.vlgmr.msra.gmra.mrb[0].mxu1 %v2175_v20 }
  0x28   : > { %2067 = vmatpush3.bf16.msra.mxu1 %v2178_v18  ;;  %893 = vmatprep.mubr.bf16.mxu0 %v2180_v21 }
  0x29   : > { %2068 = vmatprep.subr.bf16.mxu1 %v2179_v22  ;;  %989 = vmatprep.mubr.bf16.mxu1 %v2182_v23 }
  0x2c   : > { %2069 = vmatpush3.bf16.msra.mxu1 %v2179_v22 }
  0x2d   : > { %2070 = vmatprep.subr.bf16.mxu1 %v2186_v25 }
  0x2f   : > { %894 = vmatmul.mubr.bf16.gmra.mrb[4].mxu0 %v2184_v24  ;;  %990 = vmatmul.mubr.bf16.gmra.mrb[4].mxu1 %v2185_v26 }
  0x30   : > { %2071 = vmatpush3.bf16.msra.mxu1 %v2186_v25  ;;  %901 = vmatprep.mubr.bf16.mxu0 %v2188_v28 }
  0x31   : > { %2072 = vmatprep.subr.bf16.mxu1 %v2187_v27  ;;  %997 = vmatprep.mubr.bf16.mxu1 %v2190_v29 }
  0x34   : > { %2073 = vmatpush3.bf16.msra.mxu1 %v2187_v27 }
  0x35   : > { %2074 = vmatprep.subr.bf16.mxu1 %v2194_v30 }
  0x37   : > { %902 = vmatmul.mubr.bf16.gmra.mrb[8].mxu0 %v2192_v31  ;;  %998 = vmatmul.mubr.bf16.gmra.mrb[8].mxu1 %v2193_v32 }
  0x38   : > { %2075 = vmatpush3.bf16.msra.mxu1 %v2194_v30  ;;  %909 = vmatprep.mubr.bf16.mxu0 %v2196_v34 }
  0x39   : > { %2076 = vmatprep.subr.bf16.mxu1 %v2195_v33  ;;  %1005 = vmatprep.mubr.bf16.mxu1 %v2198_v35 }
  0x3c   : > { %2077 = vmatpush3.bf16.msra.mxu1 %v2195_v33 }
  0x3d   : > { %2078 = vmatprep.subr.bf16.mxu1 %v2202_v36 }
  0x3f   : > { %910 = vmatmul.mubr.bf16.gmra.mrb[12].mxu0 %v2200_v37  ;;  %1006 = vmatmul.mubr.bf16.gmra.mrb[12].mxu1 %v2201_v38 }
  0x40   : > { %2079 = vmatpush3.bf16.msra.mxu1 %v2202_v36  ;;  %917 = vmatprep.mubr.bf16.mxu0 %v2204_v39 }
  0x41   : > { %2080 = vmatprep.subr.bf16.mxu1 %v2203_v40  ;;  %2082 = vmatprep.mubr.bf16.mxu1 %v2206_v41 }
  0x44   : > { %2081 = vmatpush3.bf16.msra.mxu1 %v2203_v40 }
  0x47   : > { %918 = vmatmul.mubr.bf16.gmra.mrb[16].mxu0 %v2207_v42  ;;  %2083 = vmatmul.mubr.bf16.vlgmr.msra.gmra.mrb[16].mxu1 %v2208_v43 }
  0x48   : > { %925 = vmatprep.mubr.bf16.mxu0 %v2209_v44  ;;  %2086 = vmatprep.mubr.bf16.mxu1 %v2211_v45 }
  0x4f   : > { %926 = vmatmul.mubr.bf16.gmra.mrb[20].mxu0 %v2212_v46  ;;  %2087 = vmatmul.mubr.bf16.gmra.mrb[20].mxu1 %v2213_v47 }
  0x50   : > { %933 = vmatprep.mubr.bf16.mxu0 %v2214_v48  ;;  %2090 = vmatprep.mubr.bf16.mxu1 %v2216_v49 }
  0x57   : > { %934 = vmatmul.mubr.bf16.gmra.mrb[24].mxu0 %v2217_v50  ;;  %2091 = vmatmul.mubr.bf16.gmra.mrb[24].mxu1 %v2218_v51 }
  0x58   : > { %941 = vmatprep.mubr.bf16.mxu0 %v2219_v52  ;;  %2094 = vmatprep.mubr.bf16.mxu1 %v2221_v53 }
  0x5f   : > { %942 = vmatmul.mubr.bf16.gmra.mrb[28].mxu0 %v2222_v54  ;;  %2095 = vmatmul.mubr.bf16.gmra.mrb[28].mxu1 %v2223_v55 }
  0x60   : > { %949 = vmatprep.mubr.bf16.mxu0 %v2224_v56  ;;  %2098 = vmatprep.mubr.bf16.mxu1 %v2226_v57 }
  0x67   : > { %950 = vmatmul.mubr.bf16.gmra.mrb[32].mxu0 %v2227_v58  ;;  %2099 = vmatmul.mubr.bf16.gmra.mrb[32].mxu1 %v2228_v59 }
  0x68   : > { %957 = vmatprep.mubr.bf16.mxu0 %v2229_v60  ;;  %2102 = vmatprep.mubr.bf16.mxu1 %v2231_v61 }
  0x6f   : > { %958 = vmatmul.mubr.bf16.gmra.mrb[36].mxu0 %v2232_v62  ;;  %2103 = vmatmul.mubr.bf16.gmra.mrb[36].mxu1 %v2233_v63 }
  0x70   : > { %965 = vmatprep.mubr.bf16.mxu0 %v2234_v0  ;;  %2106 = vmatprep.mubr.bf16.mxu1 %v2236_v1 }
  0x77   : > { %966 = vmatmul.mubr.bf16.gmra.mrb[40].mxu0 %v2237_v2  ;;  %2107 = vmatmul.mubr.bf16.gmra.mrb[40].mxu1 %v2238_v3 }
  0x78   : > { %973 = vmatprep.mubr.bf16.mxu0 %v2239_v4  ;;  %2110 = vmatprep.mubr.bf16.mxu1 %v2241_v5 }
  0x7f   : > { %974 = vmatmul.mubr.bf16.gmra.mrb[44].mxu0 %v2242_v6  ;;  %2111 = vmatmul.mubr.bf16.gmra.mrb[44].mxu1 %v2243_v7 }
  0xfa   : > { %v1946_v9 = vpop.f32.mrb[0].mxu0  ;;  %v2018_v10 = vpop.f32.mrb[0].mxu1 }
  0xfb   : > { %v1947_v11 = vpop.f32.mrb[1].mxu0  ;;  %v2019_v12 = vpop.f32.mrb[1].mxu1 }
  0xfc   : > { %v1948_v13 = vadd.f32 %v1947_v11, %v1946_v9  ;;  %v1949_v14 = vpop.f32.mrb[2].mxu0  ;;  %v2446_v15 = vadd.f32 %v2019_v12, %v2018_v10  ;;  %v2021_v16 = vpop.f32.mrb[2].mxu1 }
  0xfd   : > { %v1950_v17 = vpop.f32.mrb[3].mxu0  ;;  %v2022_v18 = vpop.f32.mrb[3].mxu1 }
  0xfe   : > { %v1951_v19 = vadd.f32 %v1950_v17, %v1949_v14  ;;  %v2448_v20 = vadd.f32 %v2022_v18, %v2021_v16 }
 0x102   : > { %v1952_v21 = vpop.f32.mrb[4].mxu0  ;;  %v2024_v22 = vpop.f32.mrb[4].mxu1 }
 0x103   : > { %v1953_v23 = vpop.f32.mrb[5].mxu0  ;;  %v2025_v24 = vpop.f32.mrb[5].mxu1 }
 0x104   : > { %v1954_v25 = vadd.f32 %v1953_v23, %v1952_v21  ;;  %v1955_v26 = vpop.f32.mrb[6].mxu0  ;;  %v2450_v27 = vadd.f32 %v2025_v24, %v2024_v22  ;;  %v2027_v28 = vpop.f32.mrb[6].mxu1 }
 0x105   : > { %v1956_v29 = vpop.f32.mrb[7].mxu0  ;;  %v2028_v30 = vpop.f32.mrb[7].mxu1 }
 0x106   : > { %v1957_v31 = vadd.f32 %v1956_v29, %v1955_v26  ;;  %v2452_v32 = vadd.f32 %v2028_v30, %v2027_v28 }
 0x10a   : > { %v1958_v33 = vpop.f32.mrb[8].mxu0  ;;  %v2030_v34 = vpop.f32.mrb[8].mxu1 }
 0x10b   : > { %v1959_v35 = vpop.f32.mrb[9].mxu0  ;;  %v2031_v36 = vpop.f32.mrb[9].mxu1 }
 0x10c   : > { %v1960_v37 = vadd.f32 %v1959_v35, %v1958_v33  ;;  %v1961_v38 = vpop.f32.mrb[10].mxu0  ;;  %v2454_v39 = vadd.f32 %v2031_v36, %v2030_v34  ;;  %v2033_v40 = vpop.f32.mrb[10].mxu1 }
 0x10d   : > { %v1962_v41 = vpop.f32.mrb[11].mxu0  ;;  %v2034_v42 = vpop.f32.mrb[11].mxu1 }
 0x10e   : > { %v1963_v43 = vadd.f32 %v1962_v41, %v1961_v38  ;;  %v2456_v44 = vadd.f32 %v2034_v42, %v2033_v40 }
 0x112   : > { %v1964_v45 = vpop.f32.mrb[12].mxu0  ;;  %v2036_v46 = vpop.f32.mrb[12].mxu1 }
 0x113   : > { %v1965_v47 = vpop.f32.mrb[13].mxu0  ;;  %v2037_v48 = vpop.f32.mrb[13].mxu1 }
 0x114   : > { %v1966_v49 = vadd.f32 %v1965_v47, %v1964_v45  ;;  %v1967_v50 = vpop.f32.mrb[14].mxu0  ;;  %v2458_v51 = vadd.f32 %v2037_v48, %v2036_v46  ;;  %v2039_v52 = vpop.f32.mrb[14].mxu1 }
 0x115   : > { %v1968_v53 = vpop.f32.mrb[15].mxu0  ;;  %v2040_v54 = vpop.f32.mrb[15].mxu1 }
 0x116   : > { %v1969_v55 = vadd.f32 %v1968_v53, %v1967_v50  ;;  %v2460_v56 = vadd.f32 %v2040_v54, %v2039_v52 }
 0x11a   : > { %v1970_v57 = vpop.f32.mrb[16].mxu0  ;;  %v2084_v58 = vpop.f32.mrb[16].mxu1 }
 0x11b   : > { %v1057_v59 = vadd.f32 %v2084_v58, %v1954_v25  ;;  %v1971_v60 = vpop.f32.mrb[17].mxu0  ;;  %v1048_v61 = vpop.f32.mrb[17].mxu1 }
 0x11c   : > { %v1972_v62 = vadd.f32 %v1971_v60, %v1970_v57  ;;  %v1049_v63 = vadd.f32 %v1948_v13, %v1048_v61  ;;  %v1973_v0 = vpop.f32.mrb[18].mxu0  ;;  %v2085_v1 = vpop.f32.mrb[18].mxu1 }
 0x11d   : > { %v1060_v2 = vadd.f32 %v2085_v1, %v1957_v31  ;;  %v1974_v3 = vpop.f32.mrb[19].mxu0  ;;  %v1051_v4 = vpop.f32.mrb[19].mxu1  ;;  %v1475_v12 = vmul.f32 %v1057_v59, %v1057_v59 }
 0x11e   : > { %v1975_v5 = vadd.f32 %v1974_v3, %v1973_v0  ;;  %v1052_v6 = vadd.f32 %v1951_v19, %v1051_v4  ;;  %v1473_v8 = vmul.f32 %v1049_v63, %v1049_v63 }
 0x11f   : > { %v1843_v7 = vpack.c.bf16 %v1060_v2, %v1057_v59  ;;  %v1476_v18 = vmul.f32 %v1060_v2, %v1060_v2 }
 0x120   : > { %v1838_v9 = vpack.c.bf16 %v1052_v6, %v1049_v63  ;;  %v1435_v10 = vadd.f32 %v1052_v6, %v1049_v63  ;;  %v1474_v11 = vmul.f32 %v1052_v6, %v1052_v6 }
 0x121   : > { %1915 = vst [vmem:[%s2466_s4 + $0x8] sm:$0xff] %v1843_v7  }
 0x122   : > { %1839 = vst [vmem:[%s2466_s4] sm:$0xff] %v1838_v9   ;;  %v1436_v13 = vadd.f32 %v1435_v10, %v1057_v59  ;;  %v1505_v14 = vadd.f32 %v1474_v11, %v1473_v8  ;;  %v1976_v16 = vpop.f32.mrb[20].mxu0  ;;  %v2088_v17 = vpop.f32.mrb[20].mxu1 }
 0x123   : > { %v1073_v21 = vadd.f32 %v2088_v17, %v1966_v49  ;;  %v1977_v22 = vpop.f32.mrb[21].mxu0  ;;  %v1064_v23 = vpop.f32.mrb[21].mxu1 }
 0x124   : > { %v1506_v24 = vadd.f32 %v1505_v14, %v1475_v12  ;;  %v1978_v25 = vadd.f32 %v1977_v22, %v1976_v16  ;;  %v1065_v19 = vadd.f32 %v1960_v37, %v1064_v23  ;;  %v1437_v26 = vadd.f32 %v1436_v13, %v1060_v2  ;;  %v1979_v28 = vpop.f32.mrb[22].mxu0  ;;  %v2089_v29 = vpop.f32.mrb[22].mxu1 }
 0x125   : > { %v1076_v30 = vadd.f32 %v2089_v29, %v1969_v55  ;;  %v1980_v31 = vpop.f32.mrb[23].mxu0  ;;  %v1067_v33 = vpop.f32.mrb[23].mxu1  ;;  %v1479_v49 = vmul.f32 %v1073_v21, %v1073_v21 }
 0x126   : > { %v1438_v34 = vadd.f32 %v1437_v26, %v1065_v19  ;;  %v1477_v35 = vmul.f32 %v1065_v19, %v1065_v19  ;;  %v1507_v36 = vadd.f32 %v1506_v24, %v1476_v18  ;;  %v1981_v38 = vadd.f32 %v1980_v31, %v1979_v28 }
 0x127   : > { %v1853_v40 = vpack.c.bf16 %v1076_v30, %v1073_v21  ;;  %v1068_v41 = vadd.f32 %v1963_v43, %v1067_v33  ;;  %v1480_v43 = vmul.f32 %v1076_v30, %v1076_v30 }
 0x128   : > { %v1508_v42 = vadd.f32 %v1507_v36, %v1477_v35 }
 0x129   : > { %1917 = vst [vmem:[%s2466_s4 + $0x18] sm:$0xff] %v1853_v40   ;;  %v1848_v45 = vpack.c.bf16 %v1068_v41, %v1065_v19  ;;  %v1439_v46 = vadd.f32 %v1438_v34, %v1068_v41  ;;  %v1478_v47 = vmul.f32 %v1068_v41, %v1068_v41 }
 0x12a   : > { %v1982_v48 = vpop.f32.mrb[24].mxu0  ;;  %v2092_v37 = vpop.f32.mrb[24].mxu1 }
 0x12b   : > { %1916 = vst [vmem:[%s2466_s4 + $0x10] sm:$0xff] %v1848_v45   ;;  %v1440_v50 = vadd.f32 %v1439_v46, %v1073_v21  ;;  %v1509_v52 = vadd.f32 %v1508_v42, %v1478_v47  ;;  %v1089_v53 = vadd.f32 %v2092_v37, %v1978_v25  ;;  %v1983_v54 = vpop.f32.mrb[25].mxu0  ;;  %v1080_v55 = vpop.f32.mrb[25].mxu1 }
 0x12c   : > { %v1984_v57 = vadd.f32 %v1983_v54, %v1982_v48  ;;  %v1081_v58 = vadd.f32 %v1972_v62, %v1080_v55  ;;  %v1985_v59 = vpop.f32.mrb[26].mxu0  ;;  %v2093_v60 = vpop.f32.mrb[26].mxu1 }
 0x12d   : > { %v1510_v61 = vadd.f32 %v1509_v52, %v1479_v49  ;;  %v1441_v63 = vadd.f32 %v1440_v50, %v1076_v30  ;;  %v1092_v0 = vadd.f32 %v2093_v60, %v1981_v38  ;;  %v1986_v1 = vpop.f32.mrb[27].mxu0  ;;  %v1083_v2 = vpop.f32.mrb[27].mxu1  ;;  %v1483_v16 = vmul.f32 %v1089_v53, %v1089_v53 }
 0x12e   : > { %v1481_v3 = vmul.f32 %v1081_v58, %v1081_v58  ;;  %v1987_v4 = vadd.f32 %v1986_v1, %v1985_v59  ;;  %v1084_v6 = vadd.f32 %v1975_v5, %v1083_v2 }
 0x12f   : > { %v1442_v7 = vadd.f32 %v1441_v63, %v1081_v58  ;;  %v1511_v8 = vadd.f32 %v1510_v61, %v1480_v43  ;;  %v1863_v9 = vpack.c.bf16 %v1092_v0, %v1089_v53  ;;  %v1484_v19 = vmul.f32 %v1092_v0, %v1092_v0 }
 0x130   : > { %v1858_v10 = vpack.c.bf16 %v1084_v6, %v1081_v58  ;;  %v1482_v11 = vmul.f32 %v1084_v6, %v1084_v6 }
 0x131   : > { %v1512_v12 = vadd.f32 %v1511_v8, %v1481_v3  ;;  %1919 = vst [vmem:[%s2466_s4 + $0x28] sm:$0xff] %v1863_v9   ;;  %v1443_v62 = vadd.f32 %v1442_v7, %v1084_v6 }
 0x132   : > { %1918 = vst [vmem:[%s2466_s4 + $0x20] sm:$0xff] %v1858_v10   ;;  %v1988_v13 = vpop.f32.mrb[28].mxu0  ;;  %v2096_v14 = vpop.f32.mrb[28].mxu1 }
 0x133   : > { %v1444_v17 = vadd.f32 %v1443_v62, %v1089_v53  ;;  %v1513_v18 = vadd.f32 %v1512_v12, %v1482_v11  ;;  %v1989_v21 = vpop.f32.mrb[29].mxu0  ;;  %v1096_v22 = vpop.f32.mrb[29].mxu1 }
 0x134   : > { %v1990_v23 = vadd.f32 %v1989_v21, %v1988_v13  ;;  %v1097_v24 = vadd.f32 %v1984_v57, %v1096_v22  ;;  %v1991_v25 = vpop.f32.mrb[30].mxu0  ;;  %v2097_v5 = vpop.f32.mrb[30].mxu1 }
 0x135   : > { %v1514_v26 = vadd.f32 %v1513_v18, %v1483_v16  ;;  %v1445_v28 = vadd.f32 %v1444_v17, %v1092_v0  ;;  %v1992_v29 = vpop.f32.mrb[31].mxu0  ;;  %v1099_v30 = vpop.f32.mrb[31].mxu1 }
 0x136   : > { %v1105_v31 = vadd.f32 %v2096_v14, %v1990_v23  ;;  %v1485_v33 = vmul.f32 %v1097_v24, %v1097_v24  ;;  %v1993_v34 = vadd.f32 %v1992_v29, %v1991_v25  ;;  %v1100_v35 = vadd.f32 %v1987_v4, %v1099_v30 }
 0x137   : > { %v1446_v36 = vadd.f32 %v1445_v28, %v1097_v24  ;;  %v1515_v38 = vadd.f32 %v1514_v26, %v1484_v19 }
 0x138   : > { %v1108_v40 = vadd.f32 %v2097_v5, %v1993_v34  ;;  %v1868_v41 = vpack.c.bf16 %v1100_v35, %v1097_v24  ;;  %v1486_v42 = vmul.f32 %v1100_v35, %v1100_v35  ;;  %v1487_v49 = vmul.f32 %v1105_v31, %v1105_v31 }
 0x139   : > { %v1516_v45 = vadd.f32 %v1515_v38, %v1485_v33  ;;  %v1447_v46 = vadd.f32 %v1446_v36, %v1100_v35 }
 0x13a   : > { %v1873_v47 = vpack.c.bf16 %v1108_v40, %v1105_v31  ;;  %1920 = vst [vmem:[%s2466_s4 + $0x30] sm:$0xff] %v1868_v41   ;;  %v1994_v48 = vpop.f32.mrb[32].mxu0  ;;  %v2100_v37 = vpop.f32.mrb[32].mxu1  ;;  %v1488_v59 = vmul.f32 %v1108_v40, %v1108_v40 }
 0x13b   : > { %v1448_v50 = vadd.f32 %v1447_v46, %v1105_v31  ;;  %v1517_v52 = vadd.f32 %v1516_v45, %v1486_v42  ;;  %v1995_v53 = vpop.f32.mrb[33].mxu0  ;;  %v1112_v54 = vpop.f32.mrb[33].mxu1 }
 0x13c   : > { %1921 = vst [vmem:[%s2466_s4 + $0x38] sm:$0xff] %v1873_v47   ;;  %v1996_v55 = vadd.f32 %v1995_v53, %v1994_v48  ;;  %v1997_v57 = vpop.f32.mrb[34].mxu0  ;;  %v2101_v58 = vpop.f32.mrb[34].mxu1 }
 0x13d   : > { %v1518_v60 = vadd.f32 %v1517_v52, %v1487_v49  ;;  %v1998_v43 = vpop.f32.mrb[35].mxu0  ;;  %v1449_v61 = vadd.f32 %v1448_v50, %v1108_v40  ;;  %v1115_v63 = vpop.f32.mrb[35].mxu1 }
 0x13e   : > { %v1999_v0 = vadd.f32 %v1998_v43, %v1997_v57  ;;  %v1113_v1 = vadd.f32 %v1996_v55, %v1112_v54 }
 0x13f   : > { %v1519_v2 = vadd.f32 %v1518_v60, %v1488_v59 }
 0x140   : > { %v1450_v3 = vadd.f32 %v1449_v61, %v1113_v1  ;;  %v1489_v4 = vmul.f32 %v1113_v1, %v1113_v1  ;;  %v1116_v6 = vadd.f32 %v1999_v0, %v1115_v63 }
 0x142   : > { %v1520_v7 = vadd.f32 %v1519_v2, %v1489_v4  ;;  %v1878_v8 = vpack.c.bf16 %v1116_v6, %v1113_v1  ;;  %v1451_v9 = vadd.f32 %v1450_v3, %v1116_v6  ;;  %v1490_v10 = vmul.f32 %v1116_v6, %v1116_v6  ;;  %v2000_v11 = vpop.f32.mrb[36].mxu0  ;;  %v2104_v12 = vpop.f32.mrb[36].mxu1 }
 0x143   : > { %v2001_v62 = vpop.f32.mrb[37].mxu0  ;;  %v1128_v13 = vpop.f32.mrb[37].mxu1 }
 0x144   : > { %1922 = vst [vmem:[%s2466_s4 + $0x40] sm:$0xff] %v1878_v8   ;;  %v1521_v14 = vadd.f32 %v1520_v7, %v1490_v10  ;;  %v2002_v16 = vadd.f32 %v2001_v62, %v2000_v11  ;;  %v2003_v17 = vpop.f32.mrb[38].mxu0  ;;  %v2105_v18 = vpop.f32.mrb[38].mxu1 }
 0x145   : > { %v2004_v21 = vpop.f32.mrb[39].mxu0  ;;  %v1131_v22 = vpop.f32.mrb[39].mxu1 }
 0x146   : > { %v1121_v23 = vadd.f32 %v2100_v37, %v2002_v16  ;;  %v2005_v24 = vadd.f32 %v2004_v21, %v2003_v17 }
 0x148   : > { %v1452_v25 = vadd.f32 %v1451_v9, %v1121_v23  ;;  %v1491_v5 = vmul.f32 %v1121_v23, %v1121_v23  ;;  %v1124_v19 = vadd.f32 %v2101_v58, %v2005_v24 }
 0x14a   : > { %v1522_v26 = vadd.f32 %v1521_v14, %v1491_v5  ;;  %v1883_v28 = vpack.c.bf16 %v1124_v19, %v1121_v23  ;;  %v1453_v29 = vadd.f32 %v1452_v25, %v1124_v19  ;;  %v1492_v30 = vmul.f32 %v1124_v19, %v1124_v19  ;;  %v2006_v31 = vpop.f32.mrb[40].mxu0  ;;  %v2108_v33 = vpop.f32.mrb[40].mxu1 }
 0x14b   : > { %v2478_v34 = vadd.f32 %v2108_v33, %v2450_v27  ;;  %v2007_v35 = vpop.f32.mrb[41].mxu0  ;;  %v1144_v36 = vpop.f32.mrb[41].mxu1 }
 0x14c   : > { %1923 = vst [vmem:[%s2466_s4 + $0x48] sm:$0xff] %v1883_v28   ;;  %v1523_v38 = vadd.f32 %v1522_v26, %v1492_v30  ;;  %v2008_v40 = vadd.f32 %v2007_v35, %v2006_v31  ;;  %v1145_v41 = vadd.f32 %v2446_v15, %v1144_v36  ;;  %v2009_v42 = vpop.f32.mrb[42].mxu0  ;;  %v2109_v45 = vpop.f32.mrb[42].mxu1 }
 0x14d   : > { %v1156_v46 = vadd.f32 %v2109_v45, %v2452_v32  ;;  %v2010_v47 = vpop.f32.mrb[43].mxu0  ;;  %v1147_v48 = vpop.f32.mrb[43].mxu1 }
 0x14e   : > { %v1129_v37 = vadd.f32 %v2008_v40, %v1128_v13  ;;  %v2011_v49 = vadd.f32 %v2010_v47, %v2009_v42  ;;  %v1148_v27 = vadd.f32 %v2448_v20, %v1147_v48 }
 0x14f   : > { %v1903_v50 = vpack.c.bf16 %v1156_v46, %v2478_v34  ;;  %v1500_v19 = vmul.f32 %v1156_v46, %v1156_v46 }
 0x150   : > { %v1454_v52 = vadd.f32 %v1453_v29, %v1129_v37  ;;  %v1493_v53 = vmul.f32 %v1129_v37, %v1129_v37  ;;  %v1132_v54 = vadd.f32 %v2011_v49, %v1131_v22  ;;  %v1898_v55 = vpack.c.bf16 %v1148_v27, %v1145_v41 }
 0x151   : > { %1927 = vst [vmem:[%s2466_s4 + $0x68] sm:$0xff] %v1903_v50   ;;  %v1498_v24 = vmul.f32 %v1148_v27, %v1148_v27 }
 0x152   : > { %v1524_v15 = vadd.f32 %v1523_v38, %v1493_v53  ;;  %v1888_v57 = vpack.c.bf16 %v1132_v54, %v1129_v37  ;;  %v1455_v58 = vadd.f32 %v1454_v52, %v1132_v54  ;;  %v1494_v59 = vmul.f32 %v1132_v54, %v1132_v54  ;;  %1926 = vst [vmem:[%s2466_s4 + $0x60] sm:$0xff] %v1898_v55   ;;  %v2012_v32 = vpop.f32.mrb[44].mxu0  ;;  %v2112_v60 = vpop.f32.mrb[44].mxu1 }
 0x153   : > { %v1169_v43 = vadd.f32 %v2112_v60, %v2458_v51  ;;  %v2013_v61 = vpop.f32.mrb[45].mxu0  ;;  %v1160_v63 = vpop.f32.mrb[45].mxu1 }
 0x154   : > { %1924 = vst [vmem:[%s2466_s4 + $0x50] sm:$0xff] %v1888_v57   ;;  %v1525_v20 = vadd.f32 %v1524_v15, %v1494_v59  ;;  %v2014_v0 = vadd.f32 %v2013_v61, %v2012_v32  ;;  %v1161_v1 = vadd.f32 %v2454_v39, %v1160_v63  ;;  %v2015_v2 = vpop.f32.mrb[46].mxu0  ;;  %v2113_v3 = vpop.f32.mrb[46].mxu1 }
 0x155   : > { %v1172_v4 = vadd.f32 %v2113_v3, %v2460_v56  ;;  %v2016_v6 = vpop.f32.mrb[47].mxu0  ;;  %v1163_v7 = vpop.f32.mrb[47].mxu1  ;;  %v1497_v56 = vmul.f32 %v1145_v41, %v1145_v41  ;;  %v1503_v38 = vmul.f32 %v1169_v43, %v1169_v43 }
 0x156   : > { %v1137_v8 = vadd.f32 %v2104_v12, %v2014_v0  ;;  %v2017_v9 = vadd.f32 %v2016_v6, %v2015_v2  ;;  %v1164_v51 = vadd.f32 %v2456_v44, %v1163_v7  ;;  %v1499_v44 = vmul.f32 %v2478_v34, %v2478_v34 }
 0x157   : > { %v1913_v10 = vpack.c.bf16 %v1172_v4, %v1169_v43  ;;  %v1501_v29 = vmul.f32 %v1161_v1, %v1161_v1  ;;  %v1504_v42 = vmul.f32 %v1172_v4, %v1172_v4 }
 0x158   : > { %v1456_v11 = vadd.f32 %v1455_v58, %v1137_v8  ;;  %v1495_v62 = vmul.f32 %v1137_v8, %v1137_v8  ;;  %v1140_v13 = vadd.f32 %v2105_v18, %v2017_v9  ;;  %v1908_v14 = vpack.c.bf16 %v1164_v51, %v1161_v1 }
 0x159   : > { %1929 = vst [vmem:[%s2466_s4 + $0x78] sm:$0xff] %v1913_v10   ;;  %v1502_v35 = vmul.f32 %v1164_v51, %v1164_v51 }
 0x15a   : > { %v1526_v16 = vadd.f32 %v1525_v20, %v1495_v62  ;;  %v1893_v39 = vpack.c.bf16 %v1140_v13, %v1137_v8  ;;  %v1457_v17 = vadd.f32 %v1456_v11, %v1140_v13  ;;  %v1496_v21 = vmul.f32 %v1140_v13, %v1140_v13  ;;  %1928 = vst [vmem:[%s2466_s4 + $0x70] sm:$0xff] %v1908_v14  }
 0x15c   : > { %1925 = vst [vmem:[%s2466_s4 + $0x58] sm:$0xff] %v1893_v39   ;;  %v1458_v22 = vadd.f32 %v1457_v17, %v1145_v41  ;;  %v1527_v23 = vadd.f32 %v1526_v16, %v1496_v21 }
 0x15e   : > { %v1459_v12 = vadd.f32 %v1458_v22, %v1148_v27  ;;  %v1528_v25 = vadd.f32 %v1527_v23, %v1497_v56 }
 0x160   : > { %v1529_v5 = vadd.f32 %v1528_v25, %v1498_v24  ;;  %v1460_v18 = vadd.f32 %v1459_v12, %v2478_v34 }
 0x162   : > { %v1461_v26 = vadd.f32 %v1460_v18, %v1156_v46  ;;  %v1530_v28 = vadd.f32 %v1529_v5, %v1499_v44 }
 0x164   : > { %v1462_v30 = vadd.f32 %v1461_v26, %v1161_v1  ;;  %v1531_v31 = vadd.f32 %v1530_v28, %v1500_v19 }
 0x166   : > { %v1463_v33 = vadd.f32 %v1462_v30, %v1164_v51  ;;  %v1532_v36 = vadd.f32 %v1531_v31, %v1501_v29 }
 0x168   : > { %v1464_v40 = vadd.f32 %v1463_v33, %v1169_v43  ;;  %v1533_v41 = vadd.f32 %v1532_v36, %v1502_v35 }
 0x16a   : > { %v1465_v45 = vadd.f32 %v1464_v40, %v1172_v4  ;;  %v1534_v47 = vadd.f32 %v1533_v41, %v1503_v38 }
 0x16c   : > { %v1466_v48 = vrot.slane %v1465_v45, 4  ;;  %v1535_v37 = vadd.f32 %v1534_v47, %v1504_v42 }
 0x16e   : > { %v1467_v34 = vadd.f32 %v1466_v48, %v1465_v45  ;;  %v1536_v49 = vrot.slane %v1535_v37, 4 }
 0x170   : > { %v1468_v46 = vrot.slane %v1467_v34, 2  ;;  %v1537_v27 = vadd.f32 %v1536_v49, %v1535_v37 }
 0x172   : > { %v1469_v50 = vadd.f32 %v1468_v46, %v1467_v34  ;;  %v1538_v52 = vrot.slane %v1537_v27, 2 }
 0x174   : > { %v1470_v53 = vrot.slane %v1469_v50, 1  ;;  %v1539_v54 = vadd.f32 %v1538_v52, %v1537_v27 }
 0x176   : > { %v1471_v55 = vadd.f32 %v1470_v53, %v1469_v50  ;;  %v1540_v15 = vrot.slane %v1539_v54, 1 }
 0x178   : > { %1472 = vst [vmem:[%s2443_s29] sm:$0x1] %v1471_v55  ;;  %v1541_v57 = vadd.f32 %v1540_v15, %v1539_v54 }
 0x17a   : > { %1542 = vst [vmem:[%s2443_s29 + $0x1] sm:$0x1] %v1541_v57 }
 0x17b PF: > { %s14_s14 = sadd.s32 1, %s2266_s14   ;;  %s2513_s12 = smov %s2262_s13 }
 0x17c   : > { %p11_p6 = scmp.ge.s32.totalorder %s14_s14, 4   ;;  %s2514_s13 = smov %s2516_s15 }
 0x17e   :  { %13 = sbr.rel (!%p11_p6) target bundleno = 2 (0x2), region = 81 }

// kernel: _lambda_.115
= control target key start
LH: loop header
LB: loop body
LE: loop exit
PB: predicated region body
PF: predicated region fallthrough
CT: control target
= control target key end

     0   :  { %v1092_v48 = vmov 0.0   ;;  %s1296_s1 = inlined_call_operand.vmem [shape: bf16[384,128], index: 1, kind: input, shape index: {}]   ;;  %s1297_s0 = inlined_call_operand.vmem [shape: bf16[128,384], index: 0, kind: input, shape index: {}]   ;;  %s1298_s3 = inlined_call_operand.vmem [shape: f32[8,128], index: 3, kind: output, shape index: {1}]   ;;  %s1299_s2 = inlined_call_operand.vmem [shape: bf16[128,128], index: 2, kind: output, shape index: {0}]  }
   0x1   :  { %v1036_v0 = vld [vmem:[%s1296_s1 + $0x40] sm:$0xff]   ;;  %v1039_v3 = vld [vmem:[%s1296_s1 + $0x48] sm:$0xff]   ;;  %v1042_v6 = vld [vmem:[%s1296_s1 + $0x50] sm:$0xff]   ;;  %727 = vst [vmem:[%s1298_s3] sm:$0xff] %v1092_v48 }
   0x2   :  { %v1037_v1 = vld [vmem:[%s1296_s1] sm:$0xff]   ;;  %923 = vmatprep.subr.bf16.mxu0 %v1036_v0  ;;  %v1040_v4 = vld [vmem:[%s1296_s1 + $0x8] sm:$0xff]   ;;  %v1043_v7 = vld [vmem:[%s1296_s1 + $0x10] sm:$0xff]  }
   0x3   :  { %v1038_v2 = vld [vmem:[%s1296_s1 + $0x80] sm:$0xff]   ;;  %924 = vmatpush3.bf16.msra.mxu0 %v1037_v1  ;;  %v1041_v5 = vld [vmem:[%s1296_s1 + $0x88] sm:$0xff]   ;;  %v1044_v8 = vld [vmem:[%s1296_s1 + $0x90] sm:$0xff]  }
   0x4   :  { %1003 = vmatprep.subr.bf16.mxu1 %v1038_v2  ;;  %925 = vmatprep.subr.bf16.mxu0 %v1039_v3  ;;  %v1045_v9 = vld [vmem:[%s1296_s1 + $0x58] sm:$0xff]   ;;  %v1048_v12 = vld [vmem:[%s1296_s1 + $0x60] sm:$0xff]   ;;  %v1051_v15 = vld [vmem:[%s1296_s1 + $0x68] sm:$0xff]  }
   0x5   :  { %1004 = vmatpush3.bf16.msra.mxu1 %v1038_v2  ;;  %v1046_v10 = vld [vmem:[%s1296_s1 + $0x18] sm:$0xff]   ;;  %v1050_v13 = vld [vmem:[%s1296_s1 + $0xa0] sm:$0xff]   ;;  %v1053_v16 = vld [vmem:[%s1296_s1 + $0xa8] sm:$0xff]  }
   0x6   :  { %1005 = vmatprep.subr.bf16.mxu1 %v1041_v5  ;;  %v1047_v11 = vld [vmem:[%s1296_s1 + $0x98] sm:$0xff]   ;;  %v1049_v14 = vld [vmem:[%s1296_s1 + $0x20] sm:$0xff]   ;;  %v1052_v17 = vld [vmem:[%s1296_s1 + $0x28] sm:$0xff]  }
   0x7   :  { %926 = vmatpush3.bf16.msra.mxu0 %v1040_v4  ;;  %v1054_v18 = vld [vmem:[%s1296_s1 + $0x70] sm:$0xff]   ;;  %v1057_v21 = vld [vmem:[%s1296_s1 + $0x78] sm:$0xff]   ;;  %v1060_v26 = vld [vmem:[%s1297_s0] ss:$12 sps:$4 sm:$0xff]  }
   0x8   :  { %927 = vmatprep.subr.bf16.mxu0 %v1042_v6  ;;  %v1055_v19 = vld [vmem:[%s1296_s1 + $0x30] sm:$0xff]   ;;  %v1059_v22 = vld [vmem:[%s1296_s1 + $0xb8] sm:$0xff]   ;;  %v1064_v28 = vld [vmem:[%s1297_s0 + $0x20] ss:$12 sps:$4 sm:$0xff]  }
   0x9   :  { %1006 = vmatpush3.bf16.msra.mxu1 %v1041_v5  ;;  %v1056_v20 = vld [vmem:[%s1296_s1 + $0xb0] sm:$0xff]   ;;  %v1058_v25 = vld [vmem:[%s1296_s1 + $0x38] sm:$0xff]   ;;  %v1080_v36 = vld [vmem:[%s1297_s0 + $0x80] ss:$12 sps:$4 sm:$0xff]  }
   0xa   :  { %1007 = vmatprep.subr.bf16.mxu1 %v1044_v8  ;;  %v1062_v23 = vld [vmem:[%s1297_s0 + $0x4] ss:$12 sps:$4 sm:$0xff]   ;;  %v1063_v24 = vld [vmem:[%s1297_s0 + $0x8] ss:$12 sps:$4 sm:$0xff]   ;;  %v1073_v35 = vld [vmem:[%s1297_s0 + $0x4c] ss:$12 sps:$4 sm:$0xff]  }
   0xb   :  { %928 = vmatpush3.bf16.msra.mxu0 %v1043_v7  ;;  %434 = vmatprep.mubr.bf16.mxu0 %v1062_v23  ;;  %v1065_v27 = vld [vmem:[%s1297_s0 + $0x1c] ss:$12 sps:$4 sm:$0xff]   ;;  %v1071_v29 = vld [vmem:[%s1297_s0 + $0x38] ss:$12 sps:$4 sm:$0xff]   ;;  %v1068_v31 = vld [vmem:[%s1297_s0 + $0x34] ss:$12 sps:$4 sm:$0xff]  }
   0xc   :  { %929 = vmatprep.subr.bf16.mxu0 %v1045_v9  ;;  %1019 = vmatprep.mubr.bf16.mxu1 %v1063_v24  ;;  %v1067_v30 = vld [vmem:[%s1297_s0 + $0x18] ss:$12 sps:$4 sm:$0xff]   ;;  %v1072_v32 = vld [vmem:[%s1297_s0 + $0x50] ss:$12 sps:$4 sm:$0xff]   ;;  %v1079_v33 = vld [vmem:[%s1297_s0 + $0x68] ss:$12 sps:$4 sm:$0xff]  }
   0xd   :  { %1008 = vmatpush3.bf16.msra.mxu1 %v1044_v8  ;;  %v1070_v34 = vld [vmem:[%s1297_s0 + $0x30] ss:$12 sps:$4 sm:$0xff]   ;;  %v1087_v37 = vld [vmem:[%s1297_s0 + $0x98] ss:$12 sps:$4 sm:$0xff]   ;;  %v1075_v38 = vld [vmem:[%s1297_s0 + $0x48] ss:$12 sps:$4 sm:$0xff]  }
   0xe   :  { %1009 = vmatprep.subr.bf16.mxu1 %v1047_v11  ;;  %v1076_v39 = vld [vmem:[%s1297_s0 + $0x64] ss:$12 sps:$4 sm:$0xff]   ;;  %v1078_v41 = vld [vmem:[%s1297_s0 + $0x60] ss:$12 sps:$4 sm:$0xff]   ;;  %v1081_v42 = vld [vmem:[%s1297_s0 + $0x7c] ss:$12 sps:$4 sm:$0xff]  }
   0xf   :  { %930 = vmatpush3.bf16.msra.mxu0 %v1046_v10  ;;  %v1088_v40 = vld [vmem:[%s1297_s0 + $0xb0] ss:$12 sps:$4 sm:$0xff]   ;;  %v1083_v43 = vld [vmem:[%s1297_s0 + $0x78] ss:$12 sps:$4 sm:$0xff]   ;;  %v1084_v44 = vld [vmem:[%s1297_s0 + $0x94] ss:$12 sps:$4 sm:$0xff]  }
  0x10   :  { %931 = vmatprep.subr.bf16.mxu0 %v1048_v12  ;;  %v1086_v45 = vld [vmem:[%s1297_s0 + $0x90] ss:$12 sps:$4 sm:$0xff]   ;;  %v1089_v46 = vld [vmem:[%s1297_s0 + $0xac] ss:$12 sps:$4 sm:$0xff]   ;;  %v1091_v47 = vld [vmem:[%s1297_s0 + $0xa8] ss:$12 sps:$4 sm:$0xff]  }
  0x11   :  { %1010 = vmatpush3.bf16.msra.mxu1 %v1047_v11 }
  0x12   :  { %1011 = vmatprep.subr.bf16.mxu1 %v1050_v13 }
  0x13   :  { %932 = vmatpush3.bf16.msra.mxu0 %v1049_v14 }
  0x14   :  { %933 = vmatprep.subr.bf16.mxu0 %v1051_v15 }
  0x15   :  { %1012 = vmatpush3.bf16.msra.mxu1 %v1050_v13 }
  0x16   :  { %1013 = vmatprep.subr.bf16.mxu1 %v1053_v16 }
  0x17   :  { %934 = vmatpush3.bf16.msra.mxu0 %v1052_v17 }
  0x18   :  { %935 = vmatprep.subr.bf16.mxu0 %v1054_v18 }
  0x19   :  { %1014 = vmatpush3.bf16.msra.mxu1 %v1053_v16 }
  0x1a   :  { %1015 = vmatprep.subr.bf16.mxu1 %v1056_v20 }
  0x1b   :  { %936 = vmatpush3.bf16.msra.mxu0 %v1055_v19 }
  0x1c   :  { %937 = vmatprep.subr.bf16.mxu0 %v1057_v21 }
  0x1d   :  { %1016 = vmatpush3.bf16.msra.mxu1 %v1056_v20 }
  0x1e   :  { %1017 = vmatprep.subr.bf16.mxu1 %v1059_v22 }
  0x1f   :  { %938 = vmatpush3.bf16.msra.mxu0 %v1058_v25 }
  0x21   :  { %1018 = vmatpush3.bf16.msra.mxu1 %v1059_v22 }
  0x22   :  { %435 = vmatmul.mubr.bf16.vlgmr.msra.gmra.mrb[0].mxu0 %v1060_v26 }
  0x23   :  { %442 = vmatprep.mubr.bf16.mxu0 %v1065_v27 }
  0x24   :  { %1020 = vmatmul.mubr.bf16.vlgmr.msra.gmra.mrb[0].mxu1 %v1064_v28 }
  0x25   :  { %1023 = vmatprep.mubr.bf16.mxu1 %v1071_v29 }
  0x2a   :  { %443 = vmatmul.mubr.bf16.gmra.mrb[4].mxu0 %v1067_v30 }
  0x2b   :  { %450 = vmatprep.mubr.bf16.mxu0 %v1068_v31 }
  0x2c   :  { %1024 = vmatmul.mubr.bf16.gmra.mrb[4].mxu1 %v1072_v32 }
  0x2d   :  { %1027 = vmatprep.mubr.bf16.mxu1 %v1079_v33 }
  0x32   :  { %451 = vmatmul.mubr.bf16.gmra.mrb[8].mxu0 %v1070_v34 }
  0x33   :  { %458 = vmatprep.mubr.bf16.mxu0 %v1073_v35 }
  0x34   :  { %1028 = vmatmul.mubr.bf16.gmra.mrb[8].mxu1 %v1080_v36 }
  0x35   :  { %1031 = vmatprep.mubr.bf16.mxu1 %v1087_v37 }
  0x3a   :  { %459 = vmatmul.mubr.bf16.gmra.mrb[12].mxu0 %v1075_v38 }
  0x3b   :  { %466 = vmatprep.mubr.bf16.mxu0 %v1076_v39 }
  0x3c   :  { %1032 = vmatmul.mubr.bf16.gmra.mrb[12].mxu1 %v1088_v40 }
  0x42   :  { %467 = vmatmul.mubr.bf16.gmra.mrb[16].mxu0 %v1078_v41 }
  0x43   :  { %474 = vmatprep.mubr.bf16.mxu0 %v1081_v42 }
  0x4a   :  { %475 = vmatmul.mubr.bf16.gmra.mrb[20].mxu0 %v1083_v43 }
  0x4b   :  { %482 = vmatprep.mubr.bf16.mxu0 %v1084_v44 }
  0x52   :  { %483 = vmatmul.mubr.bf16.gmra.mrb[24].mxu0 %v1086_v45 }
  0x53   :  { %490 = vmatprep.mubr.bf16.mxu0 %v1089_v46 }
  0x5a   :  { %491 = vmatmul.mubr.bf16.gmra.mrb[28].mxu0 %v1091_v47 }
  0xf5   :  { %v939_v49 = vpop.f32.mrb[0].mxu0 }
  0xf6   :  { %v940_v50 = vpop.f32.mrb[1].mxu0 }
  0xf7   :  { %v941_v51 = vadd.f32 %v940_v50, %v939_v49  ;;  %v942_v52 = vpop.f32.mrb[2].mxu0  ;;  %v1021_v53 = vpop.f32.mrb[0].mxu1 }
  0xf8   :  { %v943_v54 = vpop.f32.mrb[3].mxu0  ;;  %v533_v55 = vpop.f32.mrb[1].mxu1 }
  0xf9   :  { %v944_v56 = vadd.f32 %v943_v54, %v942_v52  ;;  %v534_v57 = vadd.f32 %v941_v51, %v533_v55  ;;  %v1022_v58 = vpop.f32.mrb[2].mxu1 }
  0xfa   :  { %v536_v59 = vpop.f32.mrb[3].mxu1 }
  0xfb   :  { %v537_v60 = vadd.f32 %v944_v56, %v536_v59  ;;  %v750_v61 = vmul.f32 %v534_v57, %v534_v57 }
  0xfd   :  { %v879_v62 = vpack.c.bf16 %v537_v60, %v534_v57  ;;  %v728_v63 = vadd.f32 %v537_v60, %v534_v57  ;;  %v751_v0 = vmul.f32 %v537_v60, %v537_v60  ;;  %v945_v1 = vpop.f32.mrb[4].mxu0 }
  0xfe   :  { %v946_v2 = vpop.f32.mrb[5].mxu0 }
  0xff   :  { %880 = vst [vmem:[%s1299_s2] sm:$0xff] %v879_v62   ;;  %v766_v3 = vadd.f32 %v751_v0, %v750_v61  ;;  %v947_v4 = vadd.f32 %v946_v2, %v945_v1  ;;  %v948_v5 = vpop.f32.mrb[6].mxu0  ;;  %v1025_v6 = vpop.f32.mrb[4].mxu1 }
 0x100   :  { %v949_v7 = vpop.f32.mrb[7].mxu0  ;;  %v549_v8 = vpop.f32.mrb[5].mxu1 }
 0x101   :  { %v542_v9 = vadd.f32 %v1021_v53, %v947_v4  ;;  %v950_v10 = vadd.f32 %v949_v7, %v948_v5  ;;  %v1026_v11 = vpop.f32.mrb[6].mxu1 }
 0x102   :  { %v552_v12 = vpop.f32.mrb[7].mxu1 }
 0x103   :  { %v729_v13 = vadd.f32 %v728_v63, %v542_v9  ;;  %v752_v14 = vmul.f32 %v542_v9, %v542_v9  ;;  %v545_v15 = vadd.f32 %v1022_v58, %v950_v10 }
 0x105   :  { %v767_v16 = vadd.f32 %v766_v3, %v752_v14  ;;  %v884_v17 = vpack.c.bf16 %v545_v15, %v542_v9  ;;  %v753_v18 = vmul.f32 %v545_v15, %v545_v15  ;;  %v951_v19 = vpop.f32.mrb[8].mxu0  ;;  %v730_v20 = vadd.f32 %v729_v13, %v545_v15 }
 0x106   :  { %v952_v21 = vpop.f32.mrb[9].mxu0 }
 0x107   :  { %916 = vst [vmem:[%s1299_s2 + $0x8] sm:$0xff] %v884_v17   ;;  %v953_v22 = vadd.f32 %v952_v21, %v951_v19  ;;  %v954_v23 = vpop.f32.mrb[10].mxu0  ;;  %v768_v24 = vadd.f32 %v767_v16, %v753_v18  ;;  %v1029_v25 = vpop.f32.mrb[8].mxu1 }
 0x108   :  { %v955_v26 = vpop.f32.mrb[11].mxu0  ;;  %v565_v27 = vpop.f32.mrb[9].mxu1 }
 0x109   :  { %v956_v28 = vadd.f32 %v955_v26, %v954_v23  ;;  %v550_v29 = vadd.f32 %v953_v22, %v549_v8  ;;  %v1030_v30 = vpop.f32.mrb[10].mxu1 }
 0x10a   :  { %v568_v31 = vpop.f32.mrb[11].mxu1 }
 0x10b   :  { %v731_v32 = vadd.f32 %v730_v20, %v550_v29  ;;  %v754_v33 = vmul.f32 %v550_v29, %v550_v29  ;;  %v553_v34 = vadd.f32 %v956_v28, %v552_v12 }
 0x10d   :  { %v769_v35 = vadd.f32 %v768_v24, %v754_v33  ;;  %v889_v36 = vpack.c.bf16 %v553_v34, %v550_v29  ;;  %v732_v37 = vadd.f32 %v731_v32, %v553_v34  ;;  %v755_v38 = vmul.f32 %v553_v34, %v553_v34  ;;  %v957_v39 = vpop.f32.mrb[12].mxu0 }
 0x10e   :  { %v958_v40 = vpop.f32.mrb[13].mxu0 }
 0x10f   :  { %917 = vst [vmem:[%s1299_s2 + $0x10] sm:$0xff] %v889_v36   ;;  %v770_v41 = vadd.f32 %v769_v35, %v755_v38  ;;  %v959_v42 = vadd.f32 %v958_v40, %v957_v39  ;;  %v960_v43 = vpop.f32.mrb[14].mxu0  ;;  %v1269_v44 = vpop.f32.mrb[12].mxu1 }
 0x110   :  { %v961_v45 = vpop.f32.mrb[15].mxu0  ;;  %v581_v46 = vpop.f32.mrb[13].mxu1 }
 0x111   :  { %v558_v47 = vadd.f32 %v1025_v6, %v959_v42  ;;  %v962_v48 = vadd.f32 %v961_v45, %v960_v43  ;;  %v1271_v49 = vpop.f32.mrb[14].mxu1 }
 0x112   :  { %v584_v50 = vpop.f32.mrb[15].mxu1 }
 0x113   :  { %v733_v51 = vadd.f32 %v732_v37, %v558_v47  ;;  %v756_v52 = vmul.f32 %v558_v47, %v558_v47  ;;  %v561_v53 = vadd.f32 %v1026_v11, %v962_v48 }
 0x115   :  { %v771_v54 = vadd.f32 %v770_v41, %v756_v52  ;;  %v894_v55 = vpack.c.bf16 %v561_v53, %v558_v47  ;;  %v757_v56 = vmul.f32 %v561_v53, %v561_v53  ;;  %v963_v57 = vpop.f32.mrb[16].mxu0  ;;  %v734_v58 = vadd.f32 %v733_v51, %v561_v53 }
 0x116   :  { %v964_v59 = vpop.f32.mrb[17].mxu0 }
 0x117   :  { %918 = vst [vmem:[%s1299_s2 + $0x18] sm:$0xff] %v894_v55   ;;  %v965_v60 = vadd.f32 %v964_v59, %v963_v57  ;;  %v966_v61 = vpop.f32.mrb[18].mxu0  ;;  %v772_v62 = vadd.f32 %v771_v54, %v757_v56 }
 0x118   :  { %v967_v63 = vpop.f32.mrb[19].mxu0 }
 0x119   :  { %v968_v0 = vadd.f32 %v967_v63, %v966_v61  ;;  %v566_v1 = vadd.f32 %v965_v60, %v565_v27 }
 0x11b   :  { %v735_v2 = vadd.f32 %v734_v58, %v566_v1  ;;  %v758_v3 = vmul.f32 %v566_v1, %v566_v1  ;;  %v569_v4 = vadd.f32 %v968_v0, %v568_v31 }
 0x11d   :  { %v773_v5 = vadd.f32 %v772_v62, %v758_v3  ;;  %v899_v6 = vpack.c.bf16 %v569_v4, %v566_v1  ;;  %v736_v7 = vadd.f32 %v735_v2, %v569_v4  ;;  %v759_v8 = vmul.f32 %v569_v4, %v569_v4  ;;  %v969_v9 = vpop.f32.mrb[20].mxu0 }
 0x11e   :  { %v970_v10 = vpop.f32.mrb[21].mxu0 }
 0x11f   :  { %919 = vst [vmem:[%s1299_s2 + $0x20] sm:$0xff] %v899_v6   ;;  %v774_v11 = vadd.f32 %v773_v5, %v759_v8  ;;  %v971_v12 = vadd.f32 %v970_v10, %v969_v9  ;;  %v972_v13 = vpop.f32.mrb[22].mxu0 }
 0x120   :  { %v973_v14 = vpop.f32.mrb[23].mxu0 }
 0x121   :  { %v574_v15 = vadd.f32 %v1029_v25, %v971_v12  ;;  %v974_v16 = vadd.f32 %v973_v14, %v972_v13 }
 0x123   :  { %v737_v17 = vadd.f32 %v736_v7, %v574_v15  ;;  %v760_v18 = vmul.f32 %v574_v15, %v574_v15  ;;  %v577_v19 = vadd.f32 %v1030_v30, %v974_v16 }
 0x125   :  { %v775_v20 = vadd.f32 %v774_v11, %v760_v18  ;;  %v904_v21 = vpack.c.bf16 %v577_v19, %v574_v15  ;;  %v761_v22 = vmul.f32 %v577_v19, %v577_v19  ;;  %v975_v23 = vpop.f32.mrb[24].mxu0  ;;  %v738_v24 = vadd.f32 %v737_v17, %v577_v19 }
 0x126   :  { %v976_v26 = vpop.f32.mrb[25].mxu0 }
 0x127   :  { %920 = vst [vmem:[%s1299_s2 + $0x28] sm:$0xff] %v904_v21   ;;  %v977_v27 = vadd.f32 %v976_v26, %v975_v23  ;;  %v978_v28 = vpop.f32.mrb[26].mxu0  ;;  %v776_v29 = vadd.f32 %v775_v20, %v761_v22 }
 0x128   :  { %v979_v31 = vpop.f32.mrb[27].mxu0 }
 0x129   :  { %v980_v32 = vadd.f32 %v979_v31, %v978_v28  ;;  %v582_v25 = vadd.f32 %v977_v27, %v581_v46 }
 0x12b   :  { %v739_v33 = vadd.f32 %v738_v24, %v582_v25  ;;  %v762_v34 = vmul.f32 %v582_v25, %v582_v25  ;;  %v585_v35 = vadd.f32 %v980_v32, %v584_v50 }
 0x12d   :  { %v777_v30 = vadd.f32 %v776_v29, %v762_v34  ;;  %v909_v36 = vpack.c.bf16 %v585_v35, %v582_v25  ;;  %v740_v37 = vadd.f32 %v739_v33, %v585_v35  ;;  %v763_v38 = vmul.f32 %v585_v35, %v585_v35  ;;  %v981_v39 = vpop.f32.mrb[28].mxu0 }
 0x12e   :  { %v982_v40 = vpop.f32.mrb[29].mxu0 }
 0x12f   :  { %921 = vst [vmem:[%s1299_s2 + $0x30] sm:$0xff] %v909_v36   ;;  %v778_v41 = vadd.f32 %v777_v30, %v763_v38  ;;  %v983_v42 = vadd.f32 %v982_v40, %v981_v39  ;;  %v984_v43 = vpop.f32.mrb[30].mxu0 }
 0x130   :  { %v985_v45 = vpop.f32.mrb[31].mxu0 }
 0x131   :  { %v590_v47 = vadd.f32 %v1269_v44, %v983_v42  ;;  %v986_v46 = vadd.f32 %v985_v45, %v984_v43 }
 0x133   :  { %v741_v48 = vadd.f32 %v740_v37, %v590_v47  ;;  %v764_v51 = vmul.f32 %v590_v47, %v590_v47  ;;  %v593_v50 = vadd.f32 %v1271_v49, %v986_v46 }
 0x135   :  { %v779_v52 = vadd.f32 %v778_v41, %v764_v51  ;;  %v914_v53 = vpack.c.bf16 %v593_v50, %v590_v47  ;;  %v742_v54 = vadd.f32 %v741_v48, %v593_v50  ;;  %v765_v55 = vmul.f32 %v593_v50, %v593_v50 }
 0x137   :  { %922 = vst [vmem:[%s1299_s2 + $0x38] sm:$0xff] %v914_v53   ;;  %v743_v56 = vrot.slane %v742_v54, 4  ;;  %v780_v57 = vadd.f32 %v779_v52, %v765_v55 }
 0x139   :  { %v744_v58 = vadd.f32 %v743_v56, %v742_v54  ;;  %v781_v59 = vrot.slane %v780_v57, 4 }
 0x13b   :  { %v745_v60 = vrot.slane %v744_v58, 2  ;;  %v782_v61 = vadd.f32 %v781_v59, %v780_v57 }
 0x13d   :  { %v746_v44 = vadd.f32 %v745_v60, %v744_v58  ;;  %v783_v62 = vrot.slane %v782_v61, 2 }
 0x13f   :  { %v747_v63 = vrot.slane %v746_v44, 1  ;;  %v784_v0 = vadd.f32 %v783_v62, %v782_v61 }
 0x141   :  { %v748_v1 = vadd.f32 %v747_v63, %v746_v44  ;;  %v785_v49 = vrot.slane %v784_v0, 1 }
 0x143   :  { %749 = vst [vmem:[%s1298_s3] sm:$0x1] %v748_v1  ;;  %v786_v2 = vadd.f32 %v785_v49, %v784_v0 }
 0x145   :  { %787 = vst [vmem:[%s1298_s3 + $0x1] sm:$0x1] %v786_v2 }

// kernel: _lambda_.141
= control target key start
LH: loop header
LB: loop body
LE: loop exit
PB: predicated region body
PF: predicated region fallthrough
CT: control target
= control target key end

     0   :  { %8 = vsyncpa [#allocation4], 0  ;;  %s1511_s0 = inlined_call_operand.vmem [shape: bf16[512,128], index: 0, kind: input, shape index: {}]   ;;  %s1512_s1 = inlined_call_operand.vmem [shape: bf16[128,128], index: 1, kind: input, shape index: {}]   ;;  %s1513_s2 = inlined_call_operand.vmem [shape: f32[1,128], index: 2, kind: input, shape index: {}]   ;;  %s1514_s3 = inlined_call_operand.hbm [shape: f32[512,128], index: 3, kind: output, shape index: {}]  }
   0x1   :  { %10 = vsyncpa [#allocation4 + $0x1], 0  ;;  %s1279_s12 = smov 0   ;;  %s1281_s13 = smov 0  }
   0x2   :  { %s1283_s14 = smov 0   ;;  %s1285_s15 = smov 0  }
   0x3   :  { %s1287_s16 = smov 0   ;;  %s1289_s17 = smov 0  }
   0x4 LB: > { %s966_s18 = sadd.s32 4294967295, %s1254_s17   ;;  %s967_s19 = sadd.s32 4294967294, %s1254_s17   ;;  %s1254_s17 = sphi %s1289_s17, %s16_s17   ;;  %s1250_s16 = sphi %s1287_s16, %s1521_s16   ;;  %s1246_s15 = sphi %s1285_s15, %s1520_s15   ;;  %s1242_s14 = sphi %s1283_s14, %s1519_s14   ;;  %s1238_s13 = sphi %s1281_s13, %s1518_s13   ;;  %s1234_s12 = sphi %s1279_s12, %s1517_s12  }
   0x5   : > { %s35_s20 = sadd.s32 1, %s1250_s16  ;;  %s126_s21 = sadd.s32 1, %s1242_s14 }
   0x6   : > { %p37_p0 = scmp.ge.s32.totalorder %s35_s20, 2  ;;  %p136_p1 = scmp.ne.s32.totalorder %s1242_s14, %s1238_s13 }
   0x7   : > { %p137_p2 = scmp.eq.s32.totalorder %s966_s18, 1  ;;  %p142_p3 = scmp.ne.s32.totalorder %s1238_s13, %s1234_s12 }
   0x8   : > { %s1523_s20 = smov (%p37_p0, %s35_s20), 0  ;;  %p143_p5 = scmp.eq.s32.totalorder %s967_s19, 1 }
   0x9   : > { %p1319_p4 = por %p137_p2, %p136_p1  ;;  %s121_s23 = ssub.s32 %s1250_s16, %s1523_s20 }
   0xa   : > { %p972_p6 = scmp.ge.s32.totalorder %s1254_s17, 1  ;;  %p124_p7 = scmp.eq.s32.totalorder %s121_s23, 0 }
   0xb   : > { %p1326_p8 = por %p143_p5, %p142_p3  ;;  %p191_p9 = scmp.lt.s32.totalorder %s1254_s17, 3 }
   0xc   : > { %s1332_s25 = scalar_select %p124_p7, %s1242_s14, %s126_s21  }
   0xd   : > { %p192_p10 = pnand %p972_p6, %p191_p9 }
   0xe   : > { %v1152_v0 = vld [vmem:[%s1512_s1] sm:$0xff] (!%p192_p10)   ;;  %s974_s28 = sshll.u32 (!%p192_p10), %s1246_s15, 5  ;;  %v1153_v1 = vld [vmem:[%s1512_s1 + $0x8] sm:$0xff] (!%p192_p10)   ;;  %v1154_v2 = vld [vmem:[%s1512_s1 + $0x10] sm:$0xff] (!%p192_p10)   ;;  %s226_s30 = sand.u32 (!%p192_p10), 1, %s1238_s13  }
   0xf   : > { %195 = sbr.rel (%p192_p10) target bundleno = 303 (0x12f), region = 32  ;;  %p230_p11 = scmp.lt.s32.totalorder (!%p192_p10), %s974_s28, 63  ;;  %1031 = vmatprep.subr.bf16.mxu0 (!%p192_p10), %v1152_v0  ;;  %1079 = vmatprep.subr.bf16.mxu1 (!%p192_p10), %v1152_v0  ;;  %v1155_v3 = vld [vmem:[%s1512_s1 + $0x18] sm:$0xff] (!%p192_p10)   ;;  %v1156_v6 = vld [vmem:[%s1512_s1 + $0x20] sm:$0xff] (!%p192_p10)   ;;  %v1157_v7 = vld [vmem:[%s1512_s1 + $0x28] sm:$0xff] (!%p192_p10)  }
  0x10   : > { %1032 = vmatpush3.bf16.msra.mxu0 (!%p192_p10), %v1152_v0  ;;  %1087 = vmatpush3.bf16.msra.mxu1 (!%p192_p10), %v1152_v0  ;;  %v1158_v8 = vld [vmem:[%s1512_s1 + $0x30] sm:$0xff] (!%p192_p10)   ;;  %v1159_v9 = vld [vmem:[%s1512_s1 + $0x38] sm:$0xff] (!%p192_p10)   ;;  %s973_s4 = sshll.u32 (!%p192_p10), %s226_s30, 8  ;;  %v1386_v24 = vld [vmem:[%s1513_s2] ss:$0 sm:$0xff] (!%p192_p10)  ;;  %s1006_s8 = sshll.u32 (!%p192_p10), %s1246_s15, 12 }
  0x11   : > { %1033 = vmatprep.subr.bf16.mxu0 (!%p192_p10), %v1153_v1  ;;  %1080 = vmatprep.subr.bf16.mxu1 (!%p192_p10), %v1153_v1  ;;  %s1392_s7 = scalar_lea.vmem (!%p192_p10), [#allocation3], %s973_s4  ;;  %s1451_s11 = scalar_lea.hbm (!%p192_p10), %s1514_s3, %s1006_s8 }
  0x12   : > { %s1465_s18 = scalar_lea.sflag (!%p192_p10), [#allocation4], %s226_s30  ;;  %s1256_s21 = smov (!%p192_p10), [#allocation3]  }
  0x13   : > { %s1180_s23 = sshll.u32 (!%p192_p10), %s1256_s21, 4  ;;  %s1181_s23 = int_to_ptr.vmem [resolvable:$false] %s1180_s23 }
  0x14   : > { %1034 = vmatpush3.bf16.msra.mxu0 (!%p192_p10), %v1153_v1  ;;  %1088 = vmatpush3.bf16.msra.mxu1 (!%p192_p10), %v1153_v1  ;;  %s1182_s26 = scalar_lea.vmem (!%p192_p10), %s1181_s23, 8192 }
  0x15   : > { %1035 = vmatprep.subr.bf16.mxu0 (!%p192_p10), %v1154_v2  ;;  %1081 = vmatprep.subr.bf16.mxu1 (!%p192_p10), %v1154_v2 }
  0x16   : > { %s1525_s28 = smov (!%p230_p11, %s974_s28), 63 }
  0x17   : > { %s975_s6 = sshll.u32 %s1525_s28, 2 }
  0x18   : > { %s1347_s9 = scalar_lea.vmem %s1511_s0, %s975_s6  ;;  %1036 = vmatpush3.bf16.msra.mxu0 %v1154_v2  ;;  %1089 = vmatpush3.bf16.msra.mxu1 %v1154_v2 }
  0x19   : > { %v1160_v4 = vld [vmem:[%s1347_s9] sm:$0xff]   ;;  %1037 = vmatprep.subr.bf16.mxu0 %v1155_v3  ;;  %1082 = vmatprep.subr.bf16.mxu1 %v1155_v3  ;;  %v1162_v10 = vld [vmem:[%s1347_s9 + $0x8] sm:$0xff]   ;;  %v1164_v12 = vld [vmem:[%s1347_s9 + $0x10] sm:$0xff]  }
  0x1a   : > { %v1161_v5 = vld [vmem:[%s1347_s9 + $0x40] sm:$0xff]   ;;  %1047 = vmatprep.mubr.bf16.mxu0 %v1160_v4  ;;  %v1163_v11 = vld [vmem:[%s1347_s9 + $0x48] sm:$0xff]   ;;  %v1165_v13 = vld [vmem:[%s1347_s9 + $0x50] sm:$0xff]  }
  0x1b   : > { %1063 = vmatprep.mubr.bf16.mxu1 %v1161_v5  ;;  %v1166_v14 = vld [vmem:[%s1347_s9 + $0x18] sm:$0xff]   ;;  %v1168_v16 = vld [vmem:[%s1347_s9 + $0x20] sm:$0xff]   ;;  %v1170_v18 = vld [vmem:[%s1347_s9 + $0x28] sm:$0xff]  }
  0x1c   : > { %1038 = vmatpush3.bf16.msra.mxu0 %v1155_v3  ;;  %1090 = vmatpush3.bf16.msra.mxu1 %v1155_v3  ;;  %v1167_v15 = vld [vmem:[%s1347_s9 + $0x58] sm:$0xff]   ;;  %v1169_v17 = vld [vmem:[%s1347_s9 + $0x60] sm:$0xff]   ;;  %v1171_v19 = vld [vmem:[%s1347_s9 + $0x68] sm:$0xff]  }
  0x1d   : > { %1039 = vmatprep.subr.bf16.mxu0 %v1156_v6  ;;  %1083 = vmatprep.subr.bf16.mxu1 %v1156_v6  ;;  %v1172_v20 = vld [vmem:[%s1347_s9 + $0x30] sm:$0xff]   ;;  %v1174_v22 = vld [vmem:[%s1347_s9 + $0x38] sm:$0xff]  }
  0x1e   : > { %v1173_v21 = vld [vmem:[%s1347_s9 + $0x70] sm:$0xff]   ;;  %v1175_v23 = vld [vmem:[%s1347_s9 + $0x78] sm:$0xff]   ;;  %s858_s9 = sshll.u32 %s1392_s7, 4  ;;  %s1453_s9 = int_to_ptr.vmem [resolvable:$true] %s858_s9 }
  0x1f   : > { %s1176_s19 = scalar_lea.vmem %s1453_s9, 4096  ;;  %p1183_p1 = scmp.lt.s32.totalorder %s1453_s9, %s1181_s23 }
  0x20   : > { %1040 = vmatpush3.bf16.msra.mxu0 %v1156_v6  ;;  %1091 = vmatpush3.bf16.msra.mxu1 %v1156_v6  ;;  %p1177_p12 = scmp.ne.s32.totalorder %s1453_s9, %s1176_s19  ;;  %p1184_p2 = scmp.lt.s32.totalorder %s1182_s26, %s1176_s19 }
  0x21   : > { %1041 = vmatprep.subr.bf16.mxu0 %v1157_v7  ;;  %1084 = vmatprep.subr.bf16.mxu1 %v1157_v7 }
  0x22   : > { %p1178_p13 = pnand %p1177_p12, %p1319_p4  ;;  %p1185_p3 = por %p1184_p2, %p1183_p1 }
  0x24   : > { %1042 = vmatpush3.bf16.msra.mxu0 %v1157_v7  ;;  %1092 = vmatpush3.bf16.msra.mxu1 %v1157_v7  ;;  %p1179_p0 = pneg %p1178_p13 }
  0x25   : > { %1043 = vmatprep.subr.bf16.mxu0 %v1158_v8  ;;  %1085 = vmatprep.subr.bf16.mxu1 %v1158_v8 }
  0x26   : > { %p1186_p5 = pnand %p1185_p3, %p1179_p0 }
  0x28   : > { %1044 = vmatpush3.bf16.msra.mxu0 %v1158_v8  ;;  %1093 = vmatpush3.bf16.msra.mxu1 %v1158_v8 }
  0x29   : > { %1045 = vmatprep.subr.bf16.mxu0 %v1159_v9  ;;  %1086 = vmatprep.subr.bf16.mxu1 %v1159_v9 }
  0x2c   : > { %1046 = vmatpush3.bf16.msra.mxu0 %v1159_v9  ;;  %1094 = vmatpush3.bf16.msra.mxu1 %v1159_v9 }
  0x2f   : > { %1048 = vmatmul.mubr.bf16.vlgmr.msra.gmra.mrb[0].mxu0 %v1162_v10  ;;  %1064 = vmatmul.mubr.bf16.vlgmr.msra.gmra.mrb[0].mxu1 %v1163_v11 }
  0x30   : > { %1051 = vmatprep.mubr.bf16.mxu0 %v1164_v12  ;;  %1067 = vmatprep.mubr.bf16.mxu1 %v1165_v13 }
  0x37   : > { %1052 = vmatmul.mubr.bf16.gmra.mrb[4].mxu0 %v1166_v14  ;;  %1068 = vmatmul.mubr.bf16.gmra.mrb[4].mxu1 %v1167_v15 }
  0x38   : > { %1055 = vmatprep.mubr.bf16.mxu0 %v1168_v16  ;;  %1071 = vmatprep.mubr.bf16.mxu1 %v1169_v17 }
  0x3f   : > { %1056 = vmatmul.mubr.bf16.gmra.mrb[8].mxu0 %v1170_v18  ;;  %1072 = vmatmul.mubr.bf16.gmra.mrb[8].mxu1 %v1171_v19 }
  0x40   : > { %1059 = vmatprep.mubr.bf16.mxu0 %v1172_v20  ;;  %1075 = vmatprep.mubr.bf16.mxu1 %v1173_v21 }
  0x47   : > { %1060 = vmatmul.mubr.bf16.gmra.mrb[12].mxu0 %v1174_v22  ;;  %1076 = vmatmul.mubr.bf16.gmra.mrb[12].mxu1 %v1175_v23 }
 0x102   : > { %v1049_v25 = vpop.f32.mrb[0].mxu0  ;;  %v1065_v26 = vpop.f32.mrb[0].mxu1 }
 0x103   : > { %v781_v27 = vadd.f32 %v1049_v25, %v1386_v24  ;;  %v797_v28 = vadd.f32 %v1065_v26, %v1386_v24  ;;  %v546_v29 = vpop.f32.mrb[1].mxu0  ;;  %v610_v30 = vpop.f32.mrb[1].mxu1 }
 0x104   : > { %v779_v31 = vadd.f32 %v1386_v24, %v546_v29  ;;  %v795_v32 = vadd.f32 %v1386_v24, %v610_v30  ;;  %v1050_v33 = vpop.f32.mrb[2].mxu0  ;;  %v1066_v34 = vpop.f32.mrb[2].mxu1 }
 0x105   : > { %813 = vst [vmem:[%s1392_s7 + $0x10] sm:$0xff] %v781_v27  ;;  %829 = vst [vmem:[%s1392_s7 + $0x90] sm:$0xff] %v797_v28  ;;  %v782_v35 = vadd.f32 %v1050_v33, %v1386_v24  ;;  %v798_v36 = vadd.f32 %v1066_v34, %v1386_v24  ;;  %v549_v37 = vpop.f32.mrb[3].mxu0  ;;  %v613_v38 = vpop.f32.mrb[3].mxu1 }
 0x106   : > { %811 = vst [vmem:[%s1392_s7] sm:$0xff] %v779_v31  ;;  %827 = vst [vmem:[%s1392_s7 + $0x80] sm:$0xff] %v795_v32  ;;  %v780_v39 = vadd.f32 %v1386_v24, %v549_v37  ;;  %v796_v40 = vadd.f32 %v1386_v24, %v613_v38 }
 0x107   : > { %814 = vst [vmem:[%s1392_s7 + $0x18] sm:$0xff] %v782_v35  ;;  %830 = vst [vmem:[%s1392_s7 + $0x98] sm:$0xff] %v798_v36 }
 0x108   : > { %812 = vst [vmem:[%s1392_s7 + $0x8] sm:$0xff] %v780_v39  ;;  %828 = vst [vmem:[%s1392_s7 + $0x88] sm:$0xff] %v796_v40 }
 0x10a   : > { %v1053_v41 = vpop.f32.mrb[4].mxu0  ;;  %v1069_v42 = vpop.f32.mrb[4].mxu1 }
 0x10b   : > { %v785_v43 = vadd.f32 %v1053_v41, %v1386_v24  ;;  %v801_v44 = vadd.f32 %v1069_v42, %v1386_v24  ;;  %v562_v45 = vpop.f32.mrb[5].mxu0  ;;  %v626_v46 = vpop.f32.mrb[5].mxu1 }
 0x10c   : > { %v783_v47 = vadd.f32 %v1386_v24, %v562_v45  ;;  %v799_v48 = vadd.f32 %v1386_v24, %v626_v46  ;;  %v1054_v49 = vpop.f32.mrb[6].mxu0  ;;  %v1070_v50 = vpop.f32.mrb[6].mxu1 }
 0x10d   : > { %817 = vst [vmem:[%s1392_s7 + $0x30] sm:$0xff] %v785_v43  ;;  %833 = vst [vmem:[%s1392_s7 + $0xb0] sm:$0xff] %v801_v44  ;;  %v786_v51 = vadd.f32 %v1054_v49, %v1386_v24  ;;  %v802_v52 = vadd.f32 %v1070_v50, %v1386_v24  ;;  %v565_v53 = vpop.f32.mrb[7].mxu0  ;;  %v629_v54 = vpop.f32.mrb[7].mxu1 }
 0x10e   : > { %815 = vst [vmem:[%s1392_s7 + $0x20] sm:$0xff] %v783_v47  ;;  %831 = vst [vmem:[%s1392_s7 + $0xa0] sm:$0xff] %v799_v48  ;;  %v784_v55 = vadd.f32 %v1386_v24, %v565_v53  ;;  %v800_v56 = vadd.f32 %v1386_v24, %v629_v54 }
 0x10f   : > { %818 = vst [vmem:[%s1392_s7 + $0x38] sm:$0xff] %v786_v51  ;;  %834 = vst [vmem:[%s1392_s7 + $0xb8] sm:$0xff] %v802_v52 }
 0x110   : > { %816 = vst [vmem:[%s1392_s7 + $0x28] sm:$0xff] %v784_v55  ;;  %832 = vst [vmem:[%s1392_s7 + $0xa8] sm:$0xff] %v800_v56 }
 0x112   : > { %v1057_v57 = vpop.f32.mrb[8].mxu0  ;;  %v1073_v58 = vpop.f32.mrb[8].mxu1 }
 0x113   : > { %v789_v59 = vadd.f32 %v1057_v57, %v1386_v24  ;;  %v805_v60 = vadd.f32 %v1073_v58, %v1386_v24  ;;  %v578_v61 = vpop.f32.mrb[9].mxu0  ;;  %v642_v62 = vpop.f32.mrb[9].mxu1 }
 0x114   : > { %v787_v63 = vadd.f32 %v1386_v24, %v578_v61  ;;  %v803_v0 = vadd.f32 %v1386_v24, %v642_v62  ;;  %v1058_v1 = vpop.f32.mrb[10].mxu0  ;;  %v1074_v2 = vpop.f32.mrb[10].mxu1 }
 0x115   : > { %821 = vst [vmem:[%s1392_s7 + $0x50] sm:$0xff] %v789_v59  ;;  %837 = vst [vmem:[%s1392_s7 + $0xd0] sm:$0xff] %v805_v60  ;;  %v790_v3 = vadd.f32 %v1058_v1, %v1386_v24  ;;  %v806_v4 = vadd.f32 %v1074_v2, %v1386_v24  ;;  %v581_v5 = vpop.f32.mrb[11].mxu0  ;;  %v645_v6 = vpop.f32.mrb[11].mxu1 }
 0x116   : > { %819 = vst [vmem:[%s1392_s7 + $0x40] sm:$0xff] %v787_v63  ;;  %835 = vst [vmem:[%s1392_s7 + $0xc0] sm:$0xff] %v803_v0  ;;  %v788_v7 = vadd.f32 %v1386_v24, %v581_v5  ;;  %v804_v8 = vadd.f32 %v1386_v24, %v645_v6 }
 0x117   : > { %822 = vst [vmem:[%s1392_s7 + $0x58] sm:$0xff] %v790_v3  ;;  %838 = vst [vmem:[%s1392_s7 + $0xd8] sm:$0xff] %v806_v4 }
 0x118   : > { %820 = vst [vmem:[%s1392_s7 + $0x48] sm:$0xff] %v788_v7  ;;  %836 = vst [vmem:[%s1392_s7 + $0xc8] sm:$0xff] %v804_v8 }
 0x11a   : > { %v1061_v9 = vpop.f32.mrb[12].mxu0  ;;  %v1077_v10 = vpop.f32.mrb[12].mxu1 }
 0x11b   : > { %v793_v11 = vadd.f32 %v1061_v9, %v1386_v24  ;;  %v809_v12 = vadd.f32 %v1077_v10, %v1386_v24  ;;  %v594_v13 = vpop.f32.mrb[13].mxu0  ;;  %v658_v14 = vpop.f32.mrb[13].mxu1 }
 0x11c   : > { %v791_v15 = vadd.f32 %v1386_v24, %v594_v13  ;;  %v807_v16 = vadd.f32 %v1386_v24, %v658_v14  ;;  %v1062_v17 = vpop.f32.mrb[14].mxu0  ;;  %v1078_v18 = vpop.f32.mrb[14].mxu1 }
 0x11d   : > { %825 = vst [vmem:[%s1392_s7 + $0x70] sm:$0xff] %v793_v11  ;;  %841 = vst [vmem:[%s1392_s7 + $0xf0] sm:$0xff] %v809_v12  ;;  %v794_v19 = vadd.f32 %v1062_v17, %v1386_v24  ;;  %v810_v20 = vadd.f32 %v1078_v18, %v1386_v24  ;;  %v597_v21 = vpop.f32.mrb[15].mxu0  ;;  %v661_v22 = vpop.f32.mrb[15].mxu1 }
 0x11e   : > { %823 = vst [vmem:[%s1392_s7 + $0x60] sm:$0xff] %v791_v15  ;;  %839 = vst [vmem:[%s1392_s7 + $0xe0] sm:$0xff] %v807_v16  ;;  %v792_v23 = vadd.f32 %v1386_v24, %v597_v21  ;;  %v808_v25 = vadd.f32 %v1386_v24, %v661_v22 }
 0x11f   : > { %826 = vst [vmem:[%s1392_s7 + $0x78] sm:$0xff] %v794_v19  ;;  %842 = vst [vmem:[%s1392_s7 + $0xf8] sm:$0xff] %v810_v20 }
 0x120   : > { %824 = vst [vmem:[%s1392_s7 + $0x68] sm:$0xff] %v792_v23  ;;  %840 = vst [vmem:[%s1392_s7 + $0xe8] sm:$0xff] %v808_v25 }
 0x121   : > { %1189 = shalt.err (!%p1186_p5)
}
 0x122   : > { %s1190_s27 = scalar_lea.hbm %s1451_s11, 4096  ;;  %s1194_s30 = scalar_lea.hbm %s1514_s3, 8192 }
 0x123   : > { %p1191_p6 = scmp.ne.s32.totalorder %s1451_s11, %s1190_s27  ;;  %p1195_p10 = scmp.lt.u32.totalorder %s1451_s11, %s1514_s3 }
 0x124   : > { %p1196_p11 = scmp.lt.u32.totalorder %s1194_s30, %s1190_s27  ;;  %p1198_p13 = scmp.lt.u32.totalorder %s1190_s27, %s1451_s11 }
 0x125   : > { %p1192_p7 = pnand %p1191_p6, %p1319_p4 }
 0x126   : > { %p1197_p12 = por %p1196_p11, %p1195_p10 }
 0x127   : > { %p1193_p9 = pneg %p1192_p7 }
 0x128   : > { %p1199_p0 = por %p1198_p13, %p1197_p12 }
 0x12a   : > { %p1200_p1 = pnand %p1199_p0, %p1193_p9 }
 0x12c   : > { %1203 = shalt.err (!%p1200_p1)
}
 0x12d   : > { %s1257_s6 = smov 128   ;;  %s1258_s7 = smov 8  }
 0x12e   : > { %1095 = dma.vmem_to_hbm [thread:$0]  (%p1319_p4), %s1453_s9, 4096, %s1451_s11, %s1465_s18, %s1257_s6, %s1257_s6, %s1258_s7  }
 0x12f PF: > { %p1101_p2 = scmp.ge.s32.totalorder %s1254_s17, 2  ;;  %s873_s8 = sand.u32 1, %s1234_s12  }
 0x130   : > { %s874_s15 = scalar_lea.sflag [#allocation4], %s873_s8 }
 0x131   : > { %p1098_p3 = pnand %p1101_p2, %p1326_p8 }
 0x133   : > { %1229 = dma.done.wait (!%p1098_p3), %s874_s15, 4096  }
 0x134   : > { %1231 = vsyncadd (!%p1098_p3), %s874_s15, 4294963200  ;;  %s16_s17 = sadd.s32 1, %s1254_s17   ;;  %s1517_s12 = smov %s1238_s13 }
 0x135   : > { %p13_p5 = scmp.ge.s32.totalorder %s16_s17, 4   ;;  %s1518_s13 = smov %s1242_s14 }
 0x136   : > { %s1519_s14 = smov %s1332_s25  ;;  %s1520_s15 = smov %s1250_s16 }
 0x137   : > { %s1521_s16 = smov %s1523_s20  ;;  %15 = sbr.rel (!%p13_p5) target bundleno = 4 (0x4), region = 81 }
 0x13e   :  { %879 = vsyncpa [#allocation4], 1 }
 0x13f   :  { %881 = vsyncpa [#allocation4 + $0x1], 1 }

// kernel: _lambda_.144
= control target key start
LH: loop header
LB: loop body
LE: loop exit
PB: predicated region body
PF: predicated region fallthrough
CT: control target
= control target key end

     0   :  { %s593_s0 = inlined_call_operand.vmem [shape: bf16[128,128], index: 0, kind: input, shape index: {}]   ;;  %s594_s1 = inlined_call_operand.vmem [shape: bf16[128,128], index: 1, kind: input, shape index: {}]   ;;  %s595_s2 = inlined_call_operand.vmem [shape: f32[1,128], index: 2, kind: input, shape index: {}]   ;;  %s596_s3 = inlined_call_operand.hbm [shape: f32[128,128], index: 3, kind: output, shape index: {}]  }
   0x1   :  { %v467_v0 = vld [vmem:[%s594_s1] sm:$0xff]   ;;  %v468_v1 = vld [vmem:[%s594_s1 + $0x8] sm:$0xff]   ;;  %v469_v2 = vld [vmem:[%s594_s1 + $0x10] sm:$0xff]  }
   0x2   :  { %416 = vmatprep.subr.bf16.mxu0 %v467_v0  ;;  %448 = vmatprep.subr.bf16.mxu1 %v467_v0  ;;  %v470_v3 = vld [vmem:[%s594_s1 + $0x18] sm:$0xff]   ;;  %v475_v4 = vld [vmem:[%s593_s0] sm:$0xff]   ;;  %v472_v7 = vld [vmem:[%s594_s1 + $0x28] sm:$0xff]  }
   0x3   :  { %417 = vmatpush3.bf16.msra.mxu0 %v467_v0  ;;  %456 = vmatpush3.bf16.msra.mxu1 %v467_v0  ;;  %v476_v5 = vld [vmem:[%s593_s0 + $0x20] sm:$0xff]  }
   0x4   :  { %418 = vmatprep.subr.bf16.mxu0 %v468_v1  ;;  %449 = vmatprep.subr.bf16.mxu1 %v468_v1  ;;  %v471_v6 = vld [vmem:[%s594_s1 + $0x20] sm:$0xff]  }
   0x5   :  { %432 = vmatprep.mubr.bf16.mxu0 %v475_v4  ;;  %440 = vmatprep.mubr.bf16.mxu1 %v476_v5 }
   0x7   :  { %419 = vmatpush3.bf16.msra.mxu0 %v468_v1  ;;  %457 = vmatpush3.bf16.msra.mxu1 %v468_v1 }
   0x8   :  { %420 = vmatprep.subr.bf16.mxu0 %v469_v2  ;;  %450 = vmatprep.subr.bf16.mxu1 %v469_v2 }
   0xb   :  { %421 = vmatpush3.bf16.msra.mxu0 %v469_v2  ;;  %458 = vmatpush3.bf16.msra.mxu1 %v469_v2 }
   0xc   :  { %422 = vmatprep.subr.bf16.mxu0 %v470_v3  ;;  %451 = vmatprep.subr.bf16.mxu1 %v470_v3 }
   0xf   :  { %423 = vmatpush3.bf16.msra.mxu0 %v470_v3  ;;  %459 = vmatpush3.bf16.msra.mxu1 %v470_v3 }
  0x10   :  { %424 = vmatprep.subr.bf16.mxu0 %v471_v6  ;;  %452 = vmatprep.subr.bf16.mxu1 %v471_v6 }
  0x11   :  { %8 = vsyncpa [#allocation4], 0  ;;  %v473_v8 = vld [vmem:[%s594_s1 + $0x30] sm:$0xff]   ;;  %v474_v9 = vld [vmem:[%s594_s1 + $0x38] sm:$0xff]  }
  0x12   :  { %v477_v10 = vld [vmem:[%s593_s0 + $0x8] sm:$0xff]   ;;  %v479_v12 = vld [vmem:[%s593_s0 + $0x10] sm:$0xff]   ;;  %v481_v14 = vld [vmem:[%s593_s0 + $0x18] sm:$0xff]  }
  0x13   :  { %425 = vmatpush3.bf16.msra.mxu0 %v471_v6  ;;  %460 = vmatpush3.bf16.msra.mxu1 %v471_v6  ;;  %v478_v11 = vld [vmem:[%s593_s0 + $0x28] sm:$0xff]   ;;  %v480_v13 = vld [vmem:[%s593_s0 + $0x30] sm:$0xff]   ;;  %v482_v15 = vld [vmem:[%s593_s0 + $0x38] sm:$0xff]   ;;  %s507_s0 = smov [#allocation3]  }
  0x14   :  { %426 = vmatprep.subr.bf16.mxu0 %v472_v7  ;;  %453 = vmatprep.subr.bf16.mxu1 %v472_v7  ;;  %v399_v16 = vld [vmem:[%s595_s2] ss:$0 sm:$0xff]  ;;  %s372_s2 = sshll.u32 %s507_s0, 4  ;;  %s373_s2 = int_to_ptr.vmem [resolvable:$true] %s372_s2 }
  0x15   :  { %s483_s18 = scalar_lea.vmem %s373_s2, 2048  ;;  %p488_p1 = scmp.lt.s32.totalorder %s373_s2, %s373_s2 }
  0x16   :  { %p484_p0 = scmp.ne.s32.totalorder %s373_s2, %s483_s18  ;;  %p489_p2 = scmp.lt.s32.totalorder %s483_s18, %s483_s18 }
  0x17   :  { %427 = vmatpush3.bf16.msra.mxu0 %v472_v7  ;;  %461 = vmatpush3.bf16.msra.mxu1 %v472_v7 }
  0x18   :  { %428 = vmatprep.subr.bf16.mxu0 %v473_v8  ;;  %454 = vmatprep.subr.bf16.mxu1 %v473_v8  ;;  %p490_p3 = por %p489_p2, %p488_p1 }
  0x1a   :  { %p491_p4 = pnand %p490_p3, %p484_p0 }
  0x1b   :  { %429 = vmatpush3.bf16.msra.mxu0 %v473_v8  ;;  %462 = vmatpush3.bf16.msra.mxu1 %v473_v8 }
  0x1c   :  { %430 = vmatprep.subr.bf16.mxu0 %v474_v9  ;;  %455 = vmatprep.subr.bf16.mxu1 %v474_v9 }
  0x1f   :  { %431 = vmatpush3.bf16.msra.mxu0 %v474_v9  ;;  %463 = vmatpush3.bf16.msra.mxu1 %v474_v9 }
  0x22   :  { %433 = vmatmul.mubr.bf16.vlgmr.msra.gmra.mrb[0].mxu0 %v477_v10  ;;  %441 = vmatmul.mubr.bf16.vlgmr.msra.gmra.mrb[0].mxu1 %v478_v11 }
  0x23   :  { %436 = vmatprep.mubr.bf16.mxu0 %v479_v12  ;;  %444 = vmatprep.mubr.bf16.mxu1 %v480_v13 }
  0x2a   :  { %437 = vmatmul.mubr.bf16.gmra.mrb[4].mxu0 %v481_v14  ;;  %445 = vmatmul.mubr.bf16.gmra.mrb[4].mxu1 %v482_v15 }
  0xf5   :  { %v434_v17 = vpop.f32.mrb[0].mxu0  ;;  %v442_v18 = vpop.f32.mrb[0].mxu1 }
  0xf6   :  { %v337_v19 = vadd.f32 %v434_v17, %v399_v16  ;;  %v345_v20 = vadd.f32 %v442_v18, %v399_v16  ;;  %v214_v21 = vpop.f32.mrb[1].mxu0  ;;  %v246_v22 = vpop.f32.mrb[1].mxu1 }
  0xf7   :  { %v335_v23 = vadd.f32 %v399_v16, %v214_v21  ;;  %v343_v24 = vadd.f32 %v399_v16, %v246_v22  ;;  %v435_v25 = vpop.f32.mrb[2].mxu0  ;;  %v443_v26 = vpop.f32.mrb[2].mxu1 }
  0xf8   :  { %353 = vst [vmem:[#allocation3 + $0x10] sm:$0xff] %v337_v19  ;;  %361 = vst [vmem:[#allocation3 + $0x50] sm:$0xff] %v345_v20  ;;  %v338_v27 = vadd.f32 %v435_v25, %v399_v16  ;;  %v346_v28 = vadd.f32 %v443_v26, %v399_v16  ;;  %v217_v29 = vpop.f32.mrb[3].mxu0  ;;  %v249_v30 = vpop.f32.mrb[3].mxu1 }
  0xf9   :  { %351 = vst [vmem:[#allocation3] sm:$0xff] %v335_v23  ;;  %359 = vst [vmem:[#allocation3 + $0x40] sm:$0xff] %v343_v24  ;;  %v336_v31 = vadd.f32 %v399_v16, %v217_v29  ;;  %v344_v32 = vadd.f32 %v399_v16, %v249_v30 }
  0xfa   :  { %354 = vst [vmem:[#allocation3 + $0x18] sm:$0xff] %v338_v27  ;;  %362 = vst [vmem:[#allocation3 + $0x58] sm:$0xff] %v346_v28 }
  0xfb   :  { %352 = vst [vmem:[#allocation3 + $0x8] sm:$0xff] %v336_v31  ;;  %360 = vst [vmem:[#allocation3 + $0x48] sm:$0xff] %v344_v32 }
  0xfd   :  { %v438_v33 = vpop.f32.mrb[4].mxu0  ;;  %v446_v34 = vpop.f32.mrb[4].mxu1 }
  0xfe   :  { %v341_v35 = vadd.f32 %v438_v33, %v399_v16  ;;  %v349_v36 = vadd.f32 %v446_v34, %v399_v16  ;;  %v230_v37 = vpop.f32.mrb[5].mxu0  ;;  %v262_v38 = vpop.f32.mrb[5].mxu1 }
  0xff   :  { %v339_v39 = vadd.f32 %v399_v16, %v230_v37  ;;  %v347_v40 = vadd.f32 %v399_v16, %v262_v38  ;;  %v439_v41 = vpop.f32.mrb[6].mxu0  ;;  %v447_v42 = vpop.f32.mrb[6].mxu1 }
 0x100   :  { %357 = vst [vmem:[#allocation3 + $0x30] sm:$0xff] %v341_v35  ;;  %365 = vst [vmem:[#allocation3 + $0x70] sm:$0xff] %v349_v36  ;;  %v342_v43 = vadd.f32 %v439_v41, %v399_v16  ;;  %v350_v44 = vadd.f32 %v447_v42, %v399_v16  ;;  %v233_v45 = vpop.f32.mrb[7].mxu0  ;;  %v265_v46 = vpop.f32.mrb[7].mxu1 }
 0x101   :  { %355 = vst [vmem:[#allocation3 + $0x20] sm:$0xff] %v339_v39  ;;  %363 = vst [vmem:[#allocation3 + $0x60] sm:$0xff] %v347_v40  ;;  %v340_v47 = vadd.f32 %v399_v16, %v233_v45  ;;  %v348_v48 = vadd.f32 %v399_v16, %v265_v46 }
 0x102   :  { %358 = vst [vmem:[#allocation3 + $0x38] sm:$0xff] %v342_v43  ;;  %366 = vst [vmem:[#allocation3 + $0x78] sm:$0xff] %v350_v44 }
 0x103   :  { %356 = vst [vmem:[#allocation3 + $0x28] sm:$0xff] %v340_v47  ;;  %364 = vst [vmem:[#allocation3 + $0x68] sm:$0xff] %v348_v48 }
 0x104   :  { %494 = shalt.err (!%p491_p4)
}
 0x105   :  { %s495_s21 = scalar_lea.hbm %s596_s3, 2048 }
 0x106   :  { %p496_p5 = scmp.ne.s32.totalorder %s596_s3, %s495_s21  ;;  %p499_p6 = scmp.lt.u32.totalorder %s495_s21, %s596_s3 }
 0x108   :  { %p501_p7 = pnand %p499_p6, %p496_p5 }
 0x10a   :  { %504 = shalt.err (!%p501_p7)
}
 0x10b   :  { %s508_s26 = smov 128   ;;  %s509_s27 = smov 8  }
 0x10c   :  { %378 = dma.vmem_to_hbm [thread:$0]  %s373_s2, 2048, %s596_s3, [#allocation4], %s508_s26, %s508_s26, %s509_s27  }
 0x10d   :  { %505 = dma.done.wait [#allocation4], 2048  }
 0x10e   :  { %506 = vsyncadd [#allocation4], 4294965248 }
 0x10f   :  { %382 = vsyncpa [#allocation4], 1 }

// kernel: _lambda_.147
= control target key start
LH: loop header
LB: loop body
LE: loop exit
PB: predicated region body
PF: predicated region fallthrough
CT: control target
= control target key end

     0   :  { %s487_s0 = inlined_call_operand.vmem [shape: bf16[32,256], index: 0, kind: input, shape index: {}]   ;;  %s488_s1 = inlined_call_operand.vmem [shape: bf16[256,128], index: 1, kind: input, shape index: {}]   ;;  %s489_s2 = inlined_call_operand.vmem [shape: f32[1,128], index: 2, kind: input, shape index: {}]   ;;  %s490_s3 = inlined_call_operand.hbm [shape: f32[32,128], index: 3, kind: output, shape index: {}]  }
   0x1   :  { %v343_v0 = vld [vmem:[%s488_s1 + $0x40] sm:$0xff]   ;;  %v345_v2 = vld [vmem:[%s488_s1 + $0x48] sm:$0xff]   ;;  %v347_v4 = vld [vmem:[%s488_s1 + $0x50] sm:$0xff]  }
   0x2   :  { %v344_v1 = vld [vmem:[%s488_s1] sm:$0xff]   ;;  %296 = vmatprep.subr.bf16.mxu0 %v343_v0  ;;  %324 = vmatprep.subr.bf16.mxu1 %v343_v0  ;;  %v346_v3 = vld [vmem:[%s488_s1 + $0x8] sm:$0xff]   ;;  %v348_v5 = vld [vmem:[%s488_s1 + $0x10] sm:$0xff]  }
   0x3   :  { %297 = vmatpush3.bf16.msra.mxu0 %v344_v1  ;;  %332 = vmatpush3.bf16.msra.mxu1 %v344_v1  ;;  %v349_v6 = vld [vmem:[%s488_s1 + $0x58] sm:$0xff]   ;;  %v351_v8 = vld [vmem:[%s488_s1 + $0x60] sm:$0xff]   ;;  %v353_v10 = vld [vmem:[%s488_s1 + $0x68] sm:$0xff]  }
   0x4   :  { %298 = vmatprep.subr.bf16.mxu0 %v345_v2  ;;  %325 = vmatprep.subr.bf16.mxu1 %v345_v2  ;;  %v350_v7 = vld [vmem:[%s488_s1 + $0x18] sm:$0xff]   ;;  %v352_v9 = vld [vmem:[%s488_s1 + $0x20] sm:$0xff]  }
   0x5   :  { %v361_v11 = vld [vmem:[%s487_s0 + $0x4] ss:$8 sps:$4 sm:$0xff]   ;;  %v364_v12 = vld [vmem:[%s487_s0 + $0x14] ss:$8 sps:$4 sm:$0xff]  }
   0x7   :  { %299 = vmatpush3.bf16.msra.mxu0 %v346_v3  ;;  %333 = vmatpush3.bf16.msra.mxu1 %v346_v3 }
   0x8   :  { %300 = vmatprep.subr.bf16.mxu0 %v347_v4  ;;  %326 = vmatprep.subr.bf16.mxu1 %v347_v4 }
   0xb   :  { %301 = vmatpush3.bf16.msra.mxu0 %v348_v5  ;;  %334 = vmatpush3.bf16.msra.mxu1 %v348_v5 }
   0xc   :  { %302 = vmatprep.subr.bf16.mxu0 %v349_v6  ;;  %327 = vmatprep.subr.bf16.mxu1 %v349_v6 }
   0xf   :  { %303 = vmatpush3.bf16.msra.mxu0 %v350_v7  ;;  %335 = vmatpush3.bf16.msra.mxu1 %v350_v7 }
  0x10   :  { %304 = vmatprep.subr.bf16.mxu0 %v351_v8  ;;  %328 = vmatprep.subr.bf16.mxu1 %v351_v8 }
  0x11   :  { %8 = vsyncpa [#allocation4], 0  ;;  %v354_v13 = vld [vmem:[%s488_s1 + $0x28] sm:$0xff]   ;;  %v355_v14 = vld [vmem:[%s488_s1 + $0x70] sm:$0xff]   ;;  %212 = vmatprep.mubr.bf16.mxu0 %v361_v11  ;;  %220 = vmatprep.mubr.bf16.mxu1 %v364_v12 }
  0x12   :  { %v356_v15 = vld [vmem:[%s488_s1 + $0x30] sm:$0xff]   ;;  %v357_v16 = vld [vmem:[%s488_s1 + $0x78] sm:$0xff]   ;;  %v359_v18 = vld [vmem:[%s487_s0] ss:$8 sps:$4 sm:$0xff]  }
  0x13   :  { %305 = vmatpush3.bf16.msra.mxu0 %v352_v9  ;;  %336 = vmatpush3.bf16.msra.mxu1 %v352_v9  ;;  %v358_v17 = vld [vmem:[%s488_s1 + $0x38] sm:$0xff]   ;;  %v295_v23 = vld [vmem:[%s489_s2] ss:$0 sm:$0xff]  ;;  %s389_s1 = smov [#allocation3]  }
  0x14   :  { %306 = vmatprep.subr.bf16.mxu0 %v353_v10  ;;  %329 = vmatprep.subr.bf16.mxu1 %v353_v10  ;;  %v362_v19 = vld [vmem:[%s487_s0 + $0x10] ss:$8 sps:$4 sm:$0xff]   ;;  %s264_s27 = sshll.u32 %s389_s1, 4  ;;  %s265_s27 = int_to_ptr.vmem [resolvable:$true] %s264_s27 }
  0x15   :  { %s365_s0 = scalar_lea.vmem %s265_s27, 512  ;;  %p370_p1 = scmp.lt.s32.totalorder %s265_s27, %s265_s27 }
  0x16   :  { %p366_p0 = scmp.ne.s32.totalorder %s265_s27, %s365_s0  ;;  %p371_p2 = scmp.lt.s32.totalorder %s365_s0, %s365_s0 }
  0x17   :  { %307 = vmatpush3.bf16.msra.mxu0 %v354_v13  ;;  %337 = vmatpush3.bf16.msra.mxu1 %v354_v13 }
  0x18   :  { %308 = vmatprep.subr.bf16.mxu0 %v355_v14  ;;  %330 = vmatprep.subr.bf16.mxu1 %v355_v14  ;;  %p372_p3 = por %p371_p2, %p370_p1 }
  0x1a   :  { %p373_p4 = pnand %p372_p3, %p366_p0 }
  0x1b   :  { %309 = vmatpush3.bf16.msra.mxu0 %v356_v15  ;;  %338 = vmatpush3.bf16.msra.mxu1 %v356_v15 }
  0x1c   :  { %310 = vmatprep.subr.bf16.mxu0 %v357_v16  ;;  %331 = vmatprep.subr.bf16.mxu1 %v357_v16 }
  0x1f   :  { %311 = vmatpush3.bf16.msra.mxu0 %v358_v17  ;;  %339 = vmatpush3.bf16.msra.mxu1 %v358_v17 }
  0x22   :  { %213 = vmatmul.mubr.bf16.vlgmr.msra.gmra.mrb[0].mxu0 %v359_v18  ;;  %221 = vmatmul.mubr.bf16.vlgmr.msra.gmra.mrb[0].mxu1 %v362_v19 }
  0xf5   :  { %v312_v20 = vpop.f32.mrb[0].mxu0  ;;  %v318_v21 = vpop.f32.mrb[0].mxu1 }
  0xf6   :  { %v313_v22 = vpop.f32.mrb[1].mxu0  ;;  %v319_v24 = vpop.f32.mrb[1].mxu1 }
  0xf7   :  { %v314_v25 = vadd.f32 %v313_v22, %v312_v20  ;;  %v320_v26 = vadd.f32 %v319_v24, %v318_v21  ;;  %v315_v27 = vpop.f32.mrb[2].mxu0  ;;  %v321_v28 = vpop.f32.mrb[2].mxu1 }
  0xf8   :  { %v316_v29 = vpop.f32.mrb[3].mxu0  ;;  %v322_v30 = vpop.f32.mrb[3].mxu1 }
  0xf9   :  { %v251_v31 = vadd.f32 %v314_v25, %v295_v23  ;;  %v253_v32 = vadd.f32 %v320_v26, %v295_v23  ;;  %v317_v33 = vadd.f32 %v316_v29, %v315_v27  ;;  %v323_v34 = vadd.f32 %v322_v30, %v321_v28 }
  0xfb   :  { %255 = vst [vmem:[#allocation3] sm:$0xff] %v251_v31  ;;  %257 = vst [vmem:[#allocation3 + $0x10] sm:$0xff] %v253_v32  ;;  %v252_v35 = vadd.f32 %v317_v33, %v295_v23  ;;  %v254_v36 = vadd.f32 %v323_v34, %v295_v23 }
  0xfd   :  { %256 = vst [vmem:[#allocation3 + $0x8] sm:$0xff] %v252_v35  ;;  %258 = vst [vmem:[#allocation3 + $0x18] sm:$0xff] %v254_v36 }
  0xfe   :  { %376 = shalt.err (!%p373_p4)
}
  0xff   :  { %s377_s29 = scalar_lea.hbm %s490_s3, 512 }
 0x100   :  { %p378_p5 = scmp.ne.s32.totalorder %s490_s3, %s377_s29  ;;  %p381_p6 = scmp.lt.u32.totalorder %s377_s29, %s490_s3 }
 0x102   :  { %p383_p7 = pnand %p381_p6, %p378_p5 }
 0x104   :  { %386 = shalt.err (!%p383_p7)
}
 0x105   :  { %s390_s7 = smov 128   ;;  %s391_s8 = smov 8  }
 0x106   :  { %270 = dma.vmem_to_hbm [thread:$0]  %s265_s27, 512, %s490_s3, [#allocation4], %s390_s7, %s390_s7, %s391_s8  }
 0x107   :  { %387 = dma.done.wait [#allocation4], 512  }
 0x108   :  { %388 = vsyncadd [#allocation4], 4294966784 }
 0x109   :  { %274 = vsyncpa [#allocation4], 1 }

// kernel: _lambda_.127
= control target key start
LH: loop header
LB: loop body
LE: loop exit
PB: predicated region body
PF: predicated region fallthrough
CT: control target
= control target key end

     0   :  { %v835_v50 = vmov 0.0   ;;  %s1021_s1 = inlined_call_operand.vmem [shape: bf16[640,128], index: 1, kind: input, shape index: {}]   ;;  %s1022_s0 = inlined_call_operand.vmem [shape: bf16[32,640], index: 0, kind: input, shape index: {}]   ;;  %s1023_s3 = inlined_call_operand.vmem [shape: f32[8,128], index: 3, kind: output, shape index: {1}]   ;;  %s1024_s2 = inlined_call_operand.vmem [shape: bf16[32,128], index: 2, kind: output, shape index: {0}]  }
   0x1   :  { %v781_v0 = vld [vmem:[%s1021_s1 + $0x40] sm:$0xff]   ;;  %v785_v4 = vld [vmem:[%s1021_s1 + $0x48] sm:$0xff]   ;;  %v789_v8 = vld [vmem:[%s1021_s1 + $0x50] sm:$0xff]   ;;  %592 = vst [vmem:[%s1023_s3] sm:$0xff] %v835_v50 }
   0x2   :  { %v782_v1 = vld [vmem:[%s1021_s1 + $0xc0] sm:$0xff]   ;;  %694 = vmatprep.subr.bf16.mxu0 %v781_v0  ;;  %v786_v5 = vld [vmem:[%s1021_s1 + $0xc8] sm:$0xff]   ;;  %v790_v9 = vld [vmem:[%s1021_s1 + $0xd0] sm:$0xff]  }
   0x3   :  { %v783_v2 = vld [vmem:[%s1021_s1] sm:$0xff]   ;;  %722 = vmatprep.subr.bf16.mxu1 %v782_v1  ;;  %v787_v6 = vld [vmem:[%s1021_s1 + $0x8] sm:$0xff]   ;;  %v791_v10 = vld [vmem:[%s1021_s1 + $0x10] sm:$0xff]  }
   0x4   :  { %v784_v3 = vld [vmem:[%s1021_s1 + $0x80] sm:$0xff]   ;;  %695 = vmatpush3.bf16.msra.mxu0 %v783_v2  ;;  %v788_v7 = vld [vmem:[%s1021_s1 + $0x88] sm:$0xff]   ;;  %v792_v11 = vld [vmem:[%s1021_s1 + $0x90] sm:$0xff]  }
   0x5   :  { %723 = vmatpush3.bf16.msra.mxu1 %v784_v3  ;;  %696 = vmatprep.subr.bf16.mxu0 %v785_v4  ;;  %v793_v12 = vld [vmem:[%s1021_s1 + $0x58] sm:$0xff]   ;;  %v797_v16 = vld [vmem:[%s1021_s1 + $0x60] sm:$0xff]   ;;  %v801_v20 = vld [vmem:[%s1021_s1 + $0x68] sm:$0xff]  }
   0x6   :  { %724 = vmatprep.subr.bf16.mxu1 %v786_v5  ;;  %v794_v13 = vld [vmem:[%s1021_s1 + $0xd8] sm:$0xff]   ;;  %v798_v17 = vld [vmem:[%s1021_s1 + $0xe0] sm:$0xff]   ;;  %v802_v21 = vld [vmem:[%s1021_s1 + $0xe8] sm:$0xff]  }
   0x7   :  { %v795_v14 = vld [vmem:[%s1021_s1 + $0x18] sm:$0xff]   ;;  %v799_v18 = vld [vmem:[%s1021_s1 + $0x20] sm:$0xff]   ;;  %v803_v22 = vld [vmem:[%s1021_s1 + $0x28] sm:$0xff]  }
   0x8   :  { %697 = vmatpush3.bf16.msra.mxu0 %v787_v6  ;;  %v796_v15 = vld [vmem:[%s1021_s1 + $0x98] sm:$0xff]   ;;  %v800_v19 = vld [vmem:[%s1021_s1 + $0xa0] sm:$0xff]   ;;  %v804_v23 = vld [vmem:[%s1021_s1 + $0xa8] sm:$0xff]  }
   0x9   :  { %725 = vmatpush3.bf16.msra.mxu1 %v788_v7  ;;  %698 = vmatprep.subr.bf16.mxu0 %v789_v8  ;;  %v805_v24 = vld [vmem:[%s1021_s1 + $0x70] sm:$0xff]   ;;  %v809_v28 = vld [vmem:[%s1021_s1 + $0x78] sm:$0xff]   ;;  %v818_v35 = vld [vmem:[%s1022_s0 + $0xc] ss:$20 sps:$4 sm:$0xff]  }
   0xa   :  { %726 = vmatprep.subr.bf16.mxu1 %v790_v9  ;;  %v806_v25 = vld [vmem:[%s1021_s1 + $0xf0] sm:$0xff]   ;;  %v810_v29 = vld [vmem:[%s1021_s1 + $0xf8] sm:$0xff]   ;;  %v819_v36 = vld [vmem:[%s1021_s1 + $0x100] sm:$0xff]   ;;  %491 = vmatprep.mubr.bf16.mxu1 %v818_v35 }
   0xb   :  { %v807_v26 = vld [vmem:[%s1021_s1 + $0x30] sm:$0xff]   ;;  %v811_v30 = vld [vmem:[%s1021_s1 + $0x38] sm:$0xff]   ;;  %v820_v37 = vld [vmem:[%s1021_s1 + $0x108] sm:$0xff]  }
   0xc   :  { %699 = vmatpush3.bf16.msra.mxu0 %v791_v10  ;;  %v808_v27 = vld [vmem:[%s1021_s1 + $0xb0] sm:$0xff]   ;;  %v812_v31 = vld [vmem:[%s1021_s1 + $0xb8] sm:$0xff]   ;;  %v824_v39 = vld [vmem:[%s1022_s0 + $0x2c] ss:$20 sps:$4 sm:$0xff]  }
   0xd   :  { %727 = vmatpush3.bf16.msra.mxu1 %v792_v11  ;;  %700 = vmatprep.subr.bf16.mxu0 %v793_v12  ;;  %v813_v32 = vld [vmem:[%s1022_s0] ss:$20 sps:$4 sm:$0xff]   ;;  %v815_v33 = vld [vmem:[%s1022_s0 + $0x4] ss:$20 sps:$4 sm:$0xff]   ;;  %v816_v34 = vld [vmem:[%s1022_s0 + $0x8] ss:$20 sps:$4 sm:$0xff]  }
   0xe   :  { %728 = vmatprep.subr.bf16.mxu1 %v794_v13  ;;  %442 = vmatprep.mubr.bf16.mxu0 %v815_v33  ;;  %v821_v38 = vld [vmem:[%s1021_s1 + $0x110] sm:$0xff]   ;;  %v822_v41 = vld [vmem:[%s1021_s1 + $0x118] sm:$0xff]   ;;  %v823_v45 = vld [vmem:[%s1021_s1 + $0x120] sm:$0xff]  }
   0xf   :  { %v826_v40 = vld [vmem:[%s1022_s0 + $0x34] ss:$20 sps:$4 sm:$0xff]   ;;  %v830_v43 = vld [vmem:[%s1022_s0 + $0x30] ss:$20 sps:$4 sm:$0xff]   ;;  %v832_v48 = vld [vmem:[%s1021_s1 + $0x138] sm:$0xff]  }
  0x10   :  { %701 = vmatpush3.bf16.msra.mxu0 %v795_v14  ;;  %v829_v42 = vld [vmem:[%s1022_s0 + $0x28] ss:$20 sps:$4 sm:$0xff]   ;;  %v833_v44 = vld [vmem:[%s1022_s0 + $0x10] ss:$20 sps:$4 sm:$0xff]   ;;  %v834_v49 = vld [vmem:[%s1022_s0 + $0x38] ss:$20 sps:$4 sm:$0xff]  }
  0x11   :  { %729 = vmatpush3.bf16.msra.mxu1 %v796_v15  ;;  %702 = vmatprep.subr.bf16.mxu0 %v797_v16  ;;  %v828_v46 = vld [vmem:[%s1021_s1 + $0x128] sm:$0xff]   ;;  %v831_v47 = vld [vmem:[%s1021_s1 + $0x130] sm:$0xff]  }
  0x12   :  { %730 = vmatprep.subr.bf16.mxu1 %v798_v17 }
  0x14   :  { %703 = vmatpush3.bf16.msra.mxu0 %v799_v18 }
  0x15   :  { %731 = vmatpush3.bf16.msra.mxu1 %v800_v19  ;;  %704 = vmatprep.subr.bf16.mxu0 %v801_v20 }
  0x16   :  { %732 = vmatprep.subr.bf16.mxu1 %v802_v21 }
  0x18   :  { %705 = vmatpush3.bf16.msra.mxu0 %v803_v22 }
  0x19   :  { %733 = vmatpush3.bf16.msra.mxu1 %v804_v23  ;;  %706 = vmatprep.subr.bf16.mxu0 %v805_v24 }
  0x1a   :  { %734 = vmatprep.subr.bf16.mxu1 %v806_v25 }
  0x1c   :  { %707 = vmatpush3.bf16.msra.mxu0 %v807_v26 }
  0x1d   :  { %735 = vmatpush3.bf16.msra.mxu1 %v808_v27  ;;  %708 = vmatprep.subr.bf16.mxu0 %v809_v28 }
  0x1e   :  { %736 = vmatprep.subr.bf16.mxu1 %v810_v29 }
  0x20   :  { %709 = vmatpush3.bf16.msra.mxu0 %v811_v30 }
  0x21   :  { %737 = vmatpush3.bf16.msra.mxu1 %v812_v31  ;;  %760 = vmatprep.subr.bf16.mxu0 %v819_v36 }
  0x23   :  { %443 = vmatmul.mubr.bf16.vlgmr.msra.gmra.mrb[0].mxu0 %v813_v32 }
  0x24   :  { %492 = vmatmul.mubr.bf16.vlgmr.msra.gmra.mrb[0].mxu1 %v816_v34  ;;  %761 = vmatpush3.bf16.msra.mxu0 %v819_v36 }
  0x25   :  { %762 = vmatprep.subr.bf16.mxu0 %v820_v37  ;;  %450 = vmatprep.mubr.bf16.mxu0 %v824_v39 }
  0x26   :  { %499 = vmatprep.mubr.bf16.mxu1 %v826_v40 }
  0x28   :  { %763 = vmatpush3.bf16.msra.mxu0 %v820_v37 }
  0x29   :  { %764 = vmatprep.subr.bf16.mxu0 %v821_v38 }
  0x2b   :  { %451 = vmatmul.mubr.bf16.gmra.mrb[4].mxu0 %v829_v42 }
  0x2c   :  { %500 = vmatmul.mubr.bf16.gmra.mrb[4].mxu1 %v830_v43  ;;  %765 = vmatpush3.bf16.msra.mxu0 %v821_v38 }
  0x2d   :  { %766 = vmatprep.subr.bf16.mxu0 %v822_v41  ;;  %776 = vmatprep.mubr.bf16.mxu0 %v833_v44 }
  0x30   :  { %767 = vmatpush3.bf16.msra.mxu0 %v822_v41 }
  0x31   :  { %768 = vmatprep.subr.bf16.mxu0 %v823_v45 }
  0x34   :  { %769 = vmatpush3.bf16.msra.mxu0 %v823_v45 }
  0x35   :  { %770 = vmatprep.subr.bf16.mxu0 %v828_v46 }
  0x38   :  { %771 = vmatpush3.bf16.msra.mxu0 %v828_v46 }
  0x39   :  { %772 = vmatprep.subr.bf16.mxu0 %v831_v47 }
  0x3c   :  { %773 = vmatpush3.bf16.msra.mxu0 %v831_v47 }
  0x3d   :  { %774 = vmatprep.subr.bf16.mxu0 %v832_v48 }
  0x40   :  { %775 = vmatpush3.bf16.msra.mxu0 %v832_v48 }
  0x43   :  { %777 = vmatmul.mubr.bf16.vlgmr.msra.gmra.mrb[8].mxu0 %v834_v49 }
  0xf6   :  { %v710_v51 = vpop.f32.mrb[0].mxu0 }
  0xf7   :  { %v738_v52 = vpop.f32.mrb[0].mxu1  ;;  %v711_v53 = vpop.f32.mrb[1].mxu0 }
  0xf8   :  { %v712_v54 = vadd.f32 %v711_v53, %v710_v51  ;;  %v739_v55 = vpop.f32.mrb[1].mxu1  ;;  %v713_v56 = vpop.f32.mrb[2].mxu0 }
  0xf9   :  { %v740_v57 = vadd.f32 %v739_v55, %v738_v52  ;;  %v741_v58 = vpop.f32.mrb[2].mxu1  ;;  %v714_v59 = vpop.f32.mrb[3].mxu0 }
  0xfa   :  { %v715_v60 = vadd.f32 %v714_v59, %v713_v56  ;;  %v742_v61 = vpop.f32.mrb[3].mxu1 }
  0xfb   :  { %v743_v62 = vadd.f32 %v742_v61, %v741_v58  ;;  %v494_v63 = vadd.f32 %v740_v57, %v712_v54 }
  0xfd   :  { %v497_v0 = vadd.f32 %v743_v62, %v715_v60 }
  0xfe   :  { %v716_v1 = vpop.f32.mrb[4].mxu0 }
  0xff   :  { %v744_v2 = vpop.f32.mrb[4].mxu1  ;;  %v717_v3 = vpop.f32.mrb[5].mxu0 }
 0x100   :  { %v718_v4 = vadd.f32 %v717_v3, %v716_v1  ;;  %v745_v5 = vpop.f32.mrb[5].mxu1  ;;  %v719_v6 = vpop.f32.mrb[6].mxu0 }
 0x101   :  { %v746_v7 = vadd.f32 %v745_v5, %v744_v2  ;;  %v747_v8 = vpop.f32.mrb[6].mxu1  ;;  %v720_v9 = vpop.f32.mrb[7].mxu0 }
 0x102   :  { %v721_v10 = vadd.f32 %v720_v9, %v719_v6  ;;  %v748_v11 = vpop.f32.mrb[7].mxu1 }
 0x103   :  { %v749_v12 = vadd.f32 %v748_v11, %v747_v8  ;;  %v502_v13 = vadd.f32 %v746_v7, %v718_v4 }
 0x105   :  { %v505_v14 = vadd.f32 %v749_v12, %v721_v10 }
 0x116   :  { %v778_v15 = vpop.f32.mrb[8].mxu0 }
 0x117   :  { %v551_v16 = vadd.f32 %v778_v15, %v502_v13  ;;  %v542_v17 = vpop.f32.mrb[9].mxu0 }
 0x118   :  { %v543_v18 = vadd.f32 %v542_v17, %v494_v63  ;;  %v779_v19 = vpop.f32.mrb[10].mxu0 }
 0x119   :  { %v554_v20 = vadd.f32 %v779_v19, %v505_v14  ;;  %v545_v21 = vpop.f32.mrb[11].mxu0  ;;  %v605_v28 = vmul.f32 %v551_v16, %v551_v16 }
 0x11a   :  { %v546_v22 = vadd.f32 %v545_v21, %v497_v0  ;;  %v603_v24 = vmul.f32 %v543_v18, %v543_v18 }
 0x11b   :  { %v691_v23 = vpack.c.bf16 %v554_v20, %v551_v16  ;;  %v606_v31 = vmul.f32 %v554_v20, %v554_v20 }
 0x11c   :  { %v686_v25 = vpack.c.bf16 %v546_v22, %v543_v18  ;;  %v593_v26 = vadd.f32 %v546_v22, %v543_v18  ;;  %v604_v27 = vmul.f32 %v546_v22, %v546_v22 }
 0x11d   :  { %693 = vst [vmem:[%s1024_s2 + $0x8] sm:$0xff] %v691_v23  }
 0x11e   :  { %687 = vst [vmem:[%s1024_s2] sm:$0xff] %v686_v25   ;;  %v594_v29 = vadd.f32 %v593_v26, %v551_v16  ;;  %v607_v30 = vadd.f32 %v604_v27, %v603_v24 }
 0x120   :  { %v595_v32 = vadd.f32 %v594_v29, %v554_v20  ;;  %v608_v33 = vadd.f32 %v607_v30, %v605_v28 }
 0x122   :  { %v596_v34 = vrot.slane %v595_v32, 4  ;;  %v609_v35 = vadd.f32 %v608_v33, %v606_v31 }
 0x124   :  { %v597_v36 = vadd.f32 %v596_v34, %v595_v32  ;;  %v610_v37 = vrot.slane %v609_v35, 4 }
 0x126   :  { %v598_v38 = vrot.slane %v597_v36, 2  ;;  %v611_v39 = vadd.f32 %v610_v37, %v609_v35 }
 0x128   :  { %v599_v40 = vadd.f32 %v598_v38, %v597_v36  ;;  %v612_v41 = vrot.slane %v611_v39, 2 }
 0x12a   :  { %v600_v42 = vrot.slane %v599_v40, 1  ;;  %v613_v43 = vadd.f32 %v612_v41, %v611_v39 }
 0x12c   :  { %v601_v44 = vadd.f32 %v600_v42, %v599_v40  ;;  %v614_v45 = vrot.slane %v613_v43, 1 }
 0x12e   :  { %602 = vst [vmem:[%s1023_s3] sm:$0x1] %v601_v44  ;;  %v615_v46 = vadd.f32 %v614_v45, %v613_v43 }
 0x130   :  { %616 = vst [vmem:[%s1023_s3 + $0x1] sm:$0x1] %v615_v46 }

</bundles_post_ra>
